<compile_context>
chip_gen: v6e
topology: v6e:2x2x1
jax: 0.10.0
libtpu: 0.0.40
codegen_flags: <defaults>
</compile_context>

<pallas_src>
import functools

import jax
import jax.numpy as jnp
from jax import lax
from jax.experimental import pallas as pl
from jax.experimental.pallas import tpu as pltpu

_LANE = 128
_SUBLANE = 8


def _round_up(v, m):
    return ((v + m - 1) // m) * m


def _ds(start, size, stride):
    # pl.ds with optional stride; plain dslice for the common stride-1 case.
    return pl.ds(start, size) if stride == 1 else pl.ds(start, size, stride)


def dsconv3d_kernel(x_ref, wf_ref, bf_ref, o_ref, *,
                    k, stride, td, h_out, w_out, c_in, k_pad):
    """One (batch, depth-tile) step producing TD output-depth slices.

    x_ref  : (1, Dp, Hp, Wp, Cin) whole padded volume for this batch.  Its block
             index ignores the depth-tile grid axis, so the pipeline only re-DMAs
             it when the batch changes.
    wf_ref : (k_pad, Cout_p)  fused weights, rows ordered (tap, cin), zero padded.
    bf_ref : (1, Cout_p)      fused bias (f32).
    o_ref  : (1, td, Ho*Wo, Cout_p)
    """
    j = pl.program_id(1)
    d_base = pl.multiple_of(j * (td * stride), td * stride)

    # im2col in registers: one ref load per tap, one lane-concat, no scratch stores.
    pieces = []
    for kd in range(k):
        for kh in range(k):
            for kw in range(k):
                pieces.append(
                    x_ref[0,
                          _ds(d_base + kd, td, stride),
                          _ds(kh, h_out, stride),
                          _ds(kw, w_out, stride),
                          :])                                  # (td, Ho, Wo, Cin)
    kk = k * k * k * c_in
    if k_pad > kk:
        # Zero tail supplied in registers — nothing uninitialized ever reaches the MXU.
        pieces.append(jnp.zeros((td, h_out, w_out, k_pad - kk), pieces[0].dtype))

    patches = jnp.concatenate(pieces, axis=-1)                  # (td, Ho, Wo, k_pad)
    # Wo is a multiple of 8 here, so this reshape is layout-free.
    patches = patches.reshape(td * h_out * w_out, k_pad)

    # Single fused matmul on the MXU: (TD*Ho*Wo, 128) @ (128, 128), f32 accumulate.
    y = jnp.dot(patches, wf_ref[...], preferred_element_type=jnp.float32)
    y = y + bf_ref[...]                                         # one fused bias add
    o_ref[...] = y.reshape(1, td, h_out * w_out, -1).astype(o_ref.dtype)


def _pick_td(n, d_out, h_out, w_out, k_pad, itemsize, cap_bytes=4 << 20):
    """Largest divisor of d_out whose per-step patch block stays small and which
    leaves >= 4 grid steps when possible (2 steps / TensorCore on v7x)."""
    divisors = [t for t in range(1, d_out + 1) if d_out % t == 0]

    def fits(t):
        return t * h_out * w_out * k_pad * max(itemsize, 4) <= cap_bytes

    for min_steps in (4, 2, 1):
        cands = [t for t in divisors if fits(t) and n * (d_out // t) >= min_steps]
        if cands:
            return max(cands)
    return 1


def depth_sep_conv3d(x, dw_w, dw_b, pw_w, pw_b, *, stride=1, padding=1, td=None):
    """x: (N, Cin, D, H, W) NCDHW.  Weights in PyTorch Conv3d shapes:
       dw_w (Cin, 1, k, k, k), dw_b (Cin,), pw_w (Cout, Cin, 1, 1, 1), pw_b (Cout,).
       Returns (N, Cout, Do, Ho, Wo) NCDHW."""
    n, c_in, d, h, w = x.shape
    k = dw_w.shape[-1]
    c_out = pw_w.shape[0]
    d_out = (d + 2 * padding - k) // stride + 1
    h_out = (h + 2 * padding - k) // stride + 1
    w_out = (w + 2 * padding - k) // stride + 1
    dp, hp, wp = d + 2 * padding, h + 2 * padding, w + 2 * padding

    k_taps = k * k * k
    kk = k_taps * c_in
    k_pad = _round_up(kk, _LANE)
    c_out_p = _round_up(c_out, _LANE)
    itemsize = x.dtype.itemsize

    if td is None:
        td = _pick_td(n, d_out, h_out, w_out, k_pad, itemsize)
    assert d_out % td == 0, (d_out, td)
    n_td = d_out // td

    # ---- one-time XLA glue: NCDHW -> NDHWC + spatial zero pad, weight fusion ------
    x_l = jnp.transpose(x, (0, 2, 3, 4, 1))
    x_pad = jnp.pad(
        x_l, ((0, 0), (padding, padding), (padding, padding), (padding, padding), (0, 0)))

    dw2 = dw_w.reshape(c_in, k_taps)                  # dw2[c, tap]
    pw2 = pw_w.reshape(c_out, c_in)                   # pw2[co, c]
    wf = (dw2.T[:, :, None] * pw2.T[None, :, :]).reshape(kk, c_out)   # (tap*cin, cout)
    wf = jnp.pad(wf, ((0, k_pad - kk), (0, c_out_p - c_out))).astype(x.dtype)
    bf = pw_b + pw2 @ dw_b                            # exact fused bias
    bf = jnp.pad(bf, (0, c_out_p - c_out)).reshape(1, c_out_p).astype(jnp.float32)

    # ---- VMEM budget from actual (layout-padded, double-buffered) block sizes -----
    in_block = dp * hp * _round_up(wp, _SUBLANE) * _round_up(c_in, _LANE) * itemsize
    w_block = k_pad * c_out_p * itemsize
    b_block = _SUBLANE * c_out_p * 4
    out_block = td * _round_up(h_out * w_out, _SUBLANE) * c_out_p * itemsize
    patch_block = td * h_out * w_out * k_pad * 4
    vmem_bytes = 2 * (in_block + w_block + b_block + out_block) + 2 * patch_block
    vmem_limit = int(min(max(2 * vmem_bytes, 8 << 20), 64 << 20))   # v7x-safe cap

    kern = functools.partial(dsconv3d_kernel, k=k, stride=stride, td=td,
                             h_out=h_out, w_out=w_out, c_in=c_in, k_pad=k_pad)

    in_specs = [
        # Whole padded volume per batch; depth-tile axis ignored -> fetched once/batch.
        pl.BlockSpec((1, dp, hp, wp, c_in), lambda i, j: (i, 0, 0, 0, 0)),
        pl.BlockSpec((k_pad, c_out_p), lambda i, j: (0, 0)),
        pl.BlockSpec((1, c_out_p), lambda i, j: (0, 0)),
    ]
    out_spec = pl.BlockSpec((1, td, h_out * w_out, c_out_p), lambda i, j: (i, j, 0, 0))

    out = pl.pallas_call(
        kern,
        out_shape=jax.ShapeDtypeStruct((n, d_out, h_out * w_out, c_out_p), x.dtype),
        grid_spec=pltpu.PrefetchScalarGridSpec(
            num_scalar_prefetch=0,
            grid=(n, n_td),
            in_specs=in_specs,
            out_specs=out_spec,
        ),
        compiler_params=pltpu.CompilerParams(
            dimension_semantics=("parallel", "parallel"),
            vmem_limit_bytes=vmem_limit,
        ),
    )(x_pad, wf, bf)

    # TODO(synk): emit NDHWC (padded Cout) directly when the consumer accepts it to
    # skip this slice + NCDHW transpose round-trip (review opt 10).
    out = out[:, :, :, :c_out].reshape(n, d_out, h_out, w_out, c_out)
    return jnp.transpose(out, (0, 4, 1, 2, 3))


def ref_depth_sep_conv3d(x, dw_w, dw_b, pw_w, pw_b, *, stride=1, padding=1):
    """Pure-JAX reference (lax.conv) matching PyTorch Conv3d semantics."""
    c_in = x.shape[1]
    dn = lax.conv_dimension_numbers(x.shape, dw_w.shape, ('NCDHW', 'OIDHW', 'NCDHW'))
    y = lax.conv_general_dilated(x, dw_w, (stride,) * 3, [(padding, padding)] * 3,
                                 dimension_numbers=dn, feature_group_count=c_in)
    y = y + dw_b.reshape(1, -1, 1, 1, 1)
    dn2 = lax.conv_dimension_numbers(y.shape, pw_w.shape, ('NCDHW', 'OIDHW', 'NCDHW'))
    z = lax.conv_general_dilated(y, pw_w, (1,) * 3, [(0, 0)] * 3,
                                 dimension_numbers=dn2)
    return z + pw_b.reshape(1, -1, 1, 1, 1)


if __name__ == "__main__":
    N, CIN, COUT = 2, 4, 8
    D = H = W = 8
    K, STRIDE, PAD = 3, 1, 1

    key = jax.random.PRNGKey(0)
    kx, k1, k2, k3, k4 = jax.random.split(key, 5)
    x = jax.random.normal(kx, (N, CIN, D, H, W), dtype=jnp.float32)
    # Deterministic parameter init (PyTorch Conv3d weight/bias shapes).
    dw_w = jax.random.normal(k1, (CIN, 1, K, K, K), dtype=jnp.float32) * 0.1
    dw_b = jax.random.normal(k2, (CIN,), dtype=jnp.float32) * 0.1
    pw_w = jax.random.normal(k3, (COUT, CIN, 1, 1, 1), dtype=jnp.float32) * 0.1
    pw_b = jax.random.normal(k4, (COUT,), dtype=jnp.float32) * 0.1

    fwd = jax.jit(functools.partial(depth_sep_conv3d, stride=STRIDE, padding=PAD))
    out = fwd(x, dw_w, dw_b, pw_w, pw_b)
    out = jax.block_until_ready(out)

    ref = ref_depth_sep_conv3d(x, dw_w, dw_b, pw_w, pw_b, stride=STRIDE, padding=PAD)
    assert out.shape == (N, COUT, D, H, W), out.shape
    assert jnp.allclose(out, ref, atol=1e-4, rtol=1e-4), \
        float(jnp.max(jnp.abs(out - ref)))
    print("KERNEL_OK")
</pallas_src>

<mosaic_0001>
module attributes {stable_mosaic.version = 11 : i64} {
  func.func @dsconv3d_kernel(%arg0: i32, %arg1: i32, %arg2: memref<1x10x10x10x4xf32, #tpu.memory_space<vmem>>, %arg3: memref<128x128xf32, #tpu.memory_space<vmem>>, %arg4: memref<1x128xf32, #tpu.memory_space<vmem>>, %arg5: memref<1x4x64x128xf32, #tpu.memory_space<vmem>>) attributes {dimension_semantics = [#tpu.dimension_semantics<parallel>, #tpu.dimension_semantics<parallel>], iteration_bounds = array<i64: 2, 2>, scalar_prefetch = 0 : i64, scratch_operands = 0 : i64, tpu.core_type = #tpu.core_type<tc>, window_params = [{transform_indices = @transform_0, window_bounds = array<i64: 1, 10, 10, 10, 4>}, {pipeline_mode = #tpu.pipeline_mode<synchronous>, transform_indices = @transform_1, window_bounds = array<i64: 128, 128>}, {pipeline_mode = #tpu.pipeline_mode<synchronous>, transform_indices = @transform_2, window_bounds = array<i64: 1, 128>}, {transform_indices = @transform_3, window_bounds = array<i64: 1, 4, 64, 128>}]} {
    %c4_i32 = arith.constant 4 : i32
    %0 = arith.muli %arg1, %c4_i32 : i32
    %1 = tpu.assume_multiple %0, 4 : i32
    %c0_i32 = arith.constant 0 : i32
    %2 = arith.addi %1, %c0_i32 : i32
    %c0 = arith.constant 0 : index
    %3 = arith.index_cast %2 : i32 to index
    %c0_0 = arith.constant 0 : index
    %c0_1 = arith.constant 0 : index
    %c0_2 = arith.constant 0 : index
    %4 = vector.load %arg2[%c0, %3, %c0_0, %c0_1, %c0_2] : memref<1x10x10x10x4xf32, #tpu.memory_space<vmem>>, vector<1x4x8x8x4xf32>
    %5 = vector.shape_cast %4 : vector<1x4x8x8x4xf32> to vector<4x8x8x4xf32>
    %c0_i32_3 = arith.constant 0 : i32
    %6 = arith.addi %1, %c0_i32_3 : i32
    %c0_4 = arith.constant 0 : index
    %7 = arith.index_cast %6 : i32 to index
    %c0_5 = arith.constant 0 : index
    %c1 = arith.constant 1 : index
    %c0_6 = arith.constant 0 : index
    %8 = vector.load %arg2[%c0_4, %7, %c0_5, %c1, %c0_6] : memref<1x10x10x10x4xf32, #tpu.memory_space<vmem>>, vector<1x4x8x8x4xf32>
    %9 = vector.shape_cast %8 : vector<1x4x8x8x4xf32> to vector<4x8x8x4xf32>
    %c0_i32_7 = arith.constant 0 : i32
    %10 = arith.addi %1, %c0_i32_7 : i32
    %c0_8 = arith.constant 0 : index
    %11 = arith.index_cast %10 : i32 to index
    %c0_9 = arith.constant 0 : index
    %c2 = arith.constant 2 : index
    %c0_10 = arith.constant 0 : index
    %12 = vector.load %arg2[%c0_8, %11, %c0_9, %c2, %c0_10] : memref<1x10x10x10x4xf32, #tpu.memory_space<vmem>>, vector<1x4x8x8x4xf32>
    %13 = vector.shape_cast %12 : vector<1x4x8x8x4xf32> to vector<4x8x8x4xf32>
    %c0_i32_11 = arith.constant 0 : i32
    %14 = arith.addi %1, %c0_i32_11 : i32
    %c0_12 = arith.constant 0 : index
    %15 = arith.index_cast %14 : i32 to index
    %c1_13 = arith.constant 1 : index
    %c0_14 = arith.constant 0 : index
    %c0_15 = arith.constant 0 : index
    %16 = vector.load %arg2[%c0_12, %15, %c1_13, %c0_14, %c0_15] : memref<1x10x10x10x4xf32, #tpu.memory_space<vmem>>, vector<1x4x8x8x4xf32>
    %17 = vector.shape_cast %16 : vector<1x4x8x8x4xf32> to vector<4x8x8x4xf32>
    %c0_i32_16 = arith.constant 0 : i32
    %18 = arith.addi %1, %c0_i32_16 : i32
    %c0_17 = arith.constant 0 : index
    %19 = arith.index_cast %18 : i32 to index
    %c1_18 = arith.constant 1 : index
    %c1_19 = arith.constant 1 : index
    %c0_20 = arith.constant 0 : index
    %20 = vector.load %arg2[%c0_17, %19, %c1_18, %c1_19, %c0_20] : memref<1x10x10x10x4xf32, #tpu.memory_space<vmem>>, vector<1x4x8x8x4xf32>
    %21 = vector.shape_cast %20 : vector<1x4x8x8x4xf32> to vector<4x8x8x4xf32>
    %c0_i32_21 = arith.constant 0 : i32
    %22 = arith.addi %1, %c0_i32_21 : i32
    %c0_22 = arith.constant 0 : index
    %23 = arith.index_cast %22 : i32 to index
    %c1_23 = arith.constant 1 : index
    %c2_24 = arith.constant 2 : index
    %c0_25 = arith.constant 0 : index
    %24 = vector.load %arg2[%c0_22, %23, %c1_23, %c2_24, %c0_25] : memref<1x10x10x10x4xf32, #tpu.memory_space<vmem>>, vector<1x4x8x8x4xf32>
    %25 = vector.shape_cast %24 : vector<1x4x8x8x4xf32> to vector<4x8x8x4xf32>
    %c0_i32_26 = arith.constant 0 : i32
    %26 = arith.addi %1, %c0_i32_26 : i32
    %c0_27 = arith.constant 0 : index
    %27 = arith.index_cast %26 : i32 to index
    %c2_28 = arith.constant 2 : index
    %c0_29 = arith.constant 0 : index
    %c0_30 = arith.constant 0 : index
    %28 = vector.load %arg2[%c0_27, %27, %c2_28, %c0_29, %c0_30] : memref<1x10x10x10x4xf32, #tpu.memory_space<vmem>>, vector<1x4x8x8x4xf32>
    %29 = vector.shape_cast %28 : vector<1x4x8x8x4xf32> to vector<4x8x8x4xf32>
    %c0_i32_31 = arith.constant 0 : i32
    %30 = arith.addi %1, %c0_i32_31 : i32
    %c0_32 = arith.constant 0 : index
    %31 = arith.index_cast %30 : i32 to index
    %c2_33 = arith.constant 2 : index
    %c1_34 = arith.constant 1 : index
    %c0_35 = arith.constant 0 : index
    %32 = vector.load %arg2[%c0_32, %31, %c2_33, %c1_34, %c0_35] : memref<1x10x10x10x4xf32, #tpu.memory_space<vmem>>, vector<1x4x8x8x4xf32>
    %33 = vector.shape_cast %32 : vector<1x4x8x8x4xf32> to vector<4x8x8x4xf32>
    %c0_i32_36 = arith.constant 0 : i32
    %34 = arith.addi %1, %c0_i32_36 : i32
    %c0_37 = arith.constant 0 : index
    %35 = arith.index_cast %34 : i32 to index
    %c2_38 = arith.constant 2 : index
    %c2_39 = arith.constant 2 : index
    %c0_40 = arith.constant 0 : index
    %36 = vector.load %arg2[%c0_37, %35, %c2_38, %c2_39, %c0_40] : memref<1x10x10x10x4xf32, #tpu.memory_space<vmem>>, vector<1x4x8x8x4xf32>
    %37 = vector.shape_cast %36 : vector<1x4x8x8x4xf32> to vector<4x8x8x4xf32>
    %c1_i32 = arith.constant 1 : i32
    %38 = arith.addi %1, %c1_i32 : i32
    %c0_41 = arith.constant 0 : index
    %39 = arith.index_cast %38 : i32 to index
    %c0_42 = arith.constant 0 : index
    %c0_43 = arith.constant 0 : index
    %c0_44 = arith.constant 0 : index
    %40 = vector.load %arg2[%c0_41, %39, %c0_42, %c0_43, %c0_44] : memref<1x10x10x10x4xf32, #tpu.memory_space<vmem>>, vector<1x4x8x8x4xf32>
    %41 = vector.shape_cast %40 : vector<1x4x8x8x4xf32> to vector<4x8x8x4xf32>
    %c1_i32_45 = arith.constant 1 : i32
    %42 = arith.addi %1, %c1_i32_45 : i32
    %c0_46 = arith.constant 0 : index
    %43 = arith.index_cast %42 : i32 to index
    %c0_47 = arith.constant 0 : index
    %c1_48 = arith.constant 1 : index
    %c0_49 = arith.constant 0 : index
    %44 = vector.load %arg2[%c0_46, %43, %c0_47, %c1_48, %c0_49] : memref<1x10x10x10x4xf32, #tpu.memory_space<vmem>>, vector<1x4x8x8x4xf32>
    %45 = vector.shape_cast %44 : vector<1x4x8x8x4xf32> to vector<4x8x8x4xf32>
    %c1_i32_50 = arith.constant 1 : i32
    %46 = arith.addi %1, %c1_i32_50 : i32
    %c0_51 = arith.constant 0 : index
    %47 = arith.index_cast %46 : i32 to index
    %c0_52 = arith.constant 0 : index
    %c2_53 = arith.constant 2 : index
    %c0_54 = arith.constant 0 : index
    %48 = vector.load %arg2[%c0_51, %47, %c0_52, %c2_53, %c0_54] : memref<1x10x10x10x4xf32, #tpu.memory_space<vmem>>, vector<1x4x8x8x4xf32>
    %49 = vector.shape_cast %48 : vector<1x4x8x8x4xf32> to vector<4x8x8x4xf32>
    %c1_i32_55 = arith.constant 1 : i32
    %50 = arith.addi %1, %c1_i32_55 : i32
    %c0_56 = arith.constant 0 : index
    %51 = arith.index_cast %50 : i32 to index
    %c1_57 = arith.constant 1 : index
    %c0_58 = arith.constant 0 : index
    %c0_59 = arith.constant 0 : index
    %52 = vector.load %arg2[%c0_56, %51, %c1_57, %c0_58, %c0_59] : memref<1x10x10x10x4xf32, #tpu.memory_space<vmem>>, vector<1x4x8x8x4xf32>
    %53 = vector.shape_cast %52 : vector<1x4x8x8x4xf32> to vector<4x8x8x4xf32>
    %c1_i32_60 = arith.constant 1 : i32
    %54 = arith.addi %1, %c1_i32_60 : i32
    %c0_61 = arith.constant 0 : index
    %55 = arith.index_cast %54 : i32 to index
    %c1_62 = arith.constant 1 : index
    %c1_63 = arith.constant 1 : index
    %c0_64 = arith.constant 0 : index
    %56 = vector.load %arg2[%c0_61, %55, %c1_62, %c1_63, %c0_64] : memref<1x10x10x10x4xf32, #tpu.memory_space<vmem>>, vector<1x4x8x8x4xf32>
    %57 = vector.shape_cast %56 : vector<1x4x8x8x4xf32> to vector<4x8x8x4xf32>
    %c1_i32_65 = arith.constant 1 : i32
    %58 = arith.addi %1, %c1_i32_65 : i32
    %c0_66 = arith.constant 0 : index
    %59 = arith.index_cast %58 : i32 to index
    %c1_67 = arith.constant 1 : index
    %c2_68 = arith.constant 2 : index
    %c0_69 = arith.constant 0 : index
    %60 = vector.load %arg2[%c0_66, %59, %c1_67, %c2_68, %c0_69] : memref<1x10x10x10x4xf32, #tpu.memory_space<vmem>>, vector<1x4x8x8x4xf32>
    %61 = vector.shape_cast %60 : vector<1x4x8x8x4xf32> to vector<4x8x8x4xf32>
    %c1_i32_70 = arith.constant 1 : i32
    %62 = arith.addi %1, %c1_i32_70 : i32
    %c0_71 = arith.constant 0 : index
    %63 = arith.index_cast %62 : i32 to index
    %c2_72 = arith.constant 2 : index
    %c0_73 = arith.constant 0 : index
    %c0_74 = arith.constant 0 : index
    %64 = vector.load %arg2[%c0_71, %63, %c2_72, %c0_73, %c0_74] : memref<1x10x10x10x4xf32, #tpu.memory_space<vmem>>, vector<1x4x8x8x4xf32>
    %65 = vector.shape_cast %64 : vector<1x4x8x8x4xf32> to vector<4x8x8x4xf32>
    %c1_i32_75 = arith.constant 1 : i32
    %66 = arith.addi %1, %c1_i32_75 : i32
    %c0_76 = arith.constant 0 : index
    %67 = arith.index_cast %66 : i32 to index
    %c2_77 = arith.constant 2 : index
    %c1_78 = arith.constant 1 : index
    %c0_79 = arith.constant 0 : index
    %68 = vector.load %arg2[%c0_76, %67, %c2_77, %c1_78, %c0_79] : memref<1x10x10x10x4xf32, #tpu.memory_space<vmem>>, vector<1x4x8x8x4xf32>
    %69 = vector.shape_cast %68 : vector<1x4x8x8x4xf32> to vector<4x8x8x4xf32>
    %c1_i32_80 = arith.constant 1 : i32
    %70 = arith.addi %1, %c1_i32_80 : i32
    %c0_81 = arith.constant 0 : index
    %71 = arith.index_cast %70 : i32 to index
    %c2_82 = arith.constant 2 : index
    %c2_83 = arith.constant 2 : index
    %c0_84 = arith.constant 0 : index
    %72 = vector.load %arg2[%c0_81, %71, %c2_82, %c2_83, %c0_84] : memref<1x10x10x10x4xf32, #tpu.memory_space<vmem>>, vector<1x4x8x8x4xf32>
    %73 = vector.shape_cast %72 : vector<1x4x8x8x4xf32> to vector<4x8x8x4xf32>
    %c2_i32 = arith.constant 2 : i32
    %74 = arith.addi %1, %c2_i32 : i32
    %c0_85 = arith.constant 0 : index
    %75 = arith.index_cast %74 : i32 to index
    %c0_86 = arith.constant 0 : index
    %c0_87 = arith.constant 0 : index
    %c0_88 = arith.constant 0 : index
    %76 = vector.load %arg2[%c0_85, %75, %c0_86, %c0_87, %c0_88] : memref<1x10x10x10x4xf32, #tpu.memory_space<vmem>>, vector<1x4x8x8x4xf32>
    %77 = vector.shape_cast %76 : vector<1x4x8x8x4xf32> to vector<4x8x8x4xf32>
    %c2_i32_89 = arith.constant 2 : i32
    %78 = arith.addi %1, %c2_i32_89 : i32
    %c0_90 = arith.constant 0 : index
    %79 = arith.index_cast %78 : i32 to index
    %c0_91 = arith.constant 0 : index
    %c1_92 = arith.constant 1 : index
    %c0_93 = arith.constant 0 : index
    %80 = vector.load %arg2[%c0_90, %79, %c0_91, %c1_92, %c0_93] : memref<1x10x10x10x4xf32, #tpu.memory_space<vmem>>, vector<1x4x8x8x4xf32>
    %81 = vector.shape_cast %80 : vector<1x4x8x8x4xf32> to vector<4x8x8x4xf32>
    %c2_i32_94 = arith.constant 2 : i32
    %82 = arith.addi %1, %c2_i32_94 : i32
    %c0_95 = arith.constant 0 : index
    %83 = arith.index_cast %82 : i32 to index
    %c0_96 = arith.constant 0 : index
    %c2_97 = arith.constant 2 : index
    %c0_98 = arith.constant 0 : index
    %84 = vector.load %arg2[%c0_95, %83, %c0_96, %c2_97, %c0_98] : memref<1x10x10x10x4xf32, #tpu.memory_space<vmem>>, vector<1x4x8x8x4xf32>
    %85 = vector.shape_cast %84 : vector<1x4x8x8x4xf32> to vector<4x8x8x4xf32>
    %c2_i32_99 = arith.constant 2 : i32
    %86 = arith.addi %1, %c2_i32_99 : i32
    %c0_100 = arith.constant 0 : index
    %87 = arith.index_cast %86 : i32 to index
    %c1_101 = arith.constant 1 : index
    %c0_102 = arith.constant 0 : index
    %c0_103 = arith.constant 0 : index
    %88 = vector.load %arg2[%c0_100, %87, %c1_101, %c0_102, %c0_103] : memref<1x10x10x10x4xf32, #tpu.memory_space<vmem>>, vector<1x4x8x8x4xf32>
    %89 = vector.shape_cast %88 : vector<1x4x8x8x4xf32> to vector<4x8x8x4xf32>
    %c2_i32_104 = arith.constant 2 : i32
    %90 = arith.addi %1, %c2_i32_104 : i32
    %c0_105 = arith.constant 0 : index
    %91 = arith.index_cast %90 : i32 to index
    %c1_106 = arith.constant 1 : index
    %c1_107 = arith.constant 1 : index
    %c0_108 = arith.constant 0 : index
    %92 = vector.load %arg2[%c0_105, %91, %c1_106, %c1_107, %c0_108] : memref<1x10x10x10x4xf32, #tpu.memory_space<vmem>>, vector<1x4x8x8x4xf32>
    %93 = vector.shape_cast %92 : vector<1x4x8x8x4xf32> to vector<4x8x8x4xf32>
    %c2_i32_109 = arith.constant 2 : i32
    %94 = arith.addi %1, %c2_i32_109 : i32
    %c0_110 = arith.constant 0 : index
    %95 = arith.index_cast %94 : i32 to index
    %c1_111 = arith.constant 1 : index
    %c2_112 = arith.constant 2 : index
    %c0_113 = arith.constant 0 : index
    %96 = vector.load %arg2[%c0_110, %95, %c1_111, %c2_112, %c0_113] : memref<1x10x10x10x4xf32, #tpu.memory_space<vmem>>, vector<1x4x8x8x4xf32>
    %97 = vector.shape_cast %96 : vector<1x4x8x8x4xf32> to vector<4x8x8x4xf32>
    %c2_i32_114 = arith.constant 2 : i32
    %98 = arith.addi %1, %c2_i32_114 : i32
    %c0_115 = arith.constant 0 : index
    %99 = arith.index_cast %98 : i32 to index
    %c2_116 = arith.constant 2 : index
    %c0_117 = arith.constant 0 : index
    %c0_118 = arith.constant 0 : index
    %100 = vector.load %arg2[%c0_115, %99, %c2_116, %c0_117, %c0_118] : memref<1x10x10x10x4xf32, #tpu.memory_space<vmem>>, vector<1x4x8x8x4xf32>
    %101 = vector.shape_cast %100 : vector<1x4x8x8x4xf32> to vector<4x8x8x4xf32>
    %c2_i32_119 = arith.constant 2 : i32
    %102 = arith.addi %1, %c2_i32_119 : i32
    %c0_120 = arith.constant 0 : index
    %103 = arith.index_cast %102 : i32 to index
    %c2_121 = arith.constant 2 : index
    %c1_122 = arith.constant 1 : index
    %c0_123 = arith.constant 0 : index
    %104 = vector.load %arg2[%c0_120, %103, %c2_121, %c1_122, %c0_123] : memref<1x10x10x10x4xf32, #tpu.memory_space<vmem>>, vector<1x4x8x8x4xf32>
    %105 = vector.shape_cast %104 : vector<1x4x8x8x4xf32> to vector<4x8x8x4xf32>
    %c2_i32_124 = arith.constant 2 : i32
    %106 = arith.addi %1, %c2_i32_124 : i32
    %c0_125 = arith.constant 0 : index
    %107 = arith.index_cast %106 : i32 to index
    %c2_126 = arith.constant 2 : index
    %c2_127 = arith.constant 2 : index
    %c0_128 = arith.constant 0 : index
    %108 = vector.load %arg2[%c0_125, %107, %c2_126, %c2_127, %c0_128] : memref<1x10x10x10x4xf32, #tpu.memory_space<vmem>>, vector<1x4x8x8x4xf32>
    %109 = vector.shape_cast %108 : vector<1x4x8x8x4xf32> to vector<4x8x8x4xf32>
    %cst = arith.constant 0.000000e+00 : f32
    %110 = vector.broadcast %cst : f32 to vector<4x8x8x20xf32>
    %111 = tpu.concatenate %5, %9, %13, %17, %21, %25, %29, %33, %37, %41, %45, %49, %53, %57, %61, %65 in 3 : vector<4x8x8x4xf32>, vector<4x8x8x4xf32>, vector<4x8x8x4xf32>, vector<4x8x8x4xf32>, vector<4x8x8x4xf32>, vector<4x8x8x4xf32>, vector<4x8x8x4xf32>, vector<4x8x8x4xf32>, vector<4x8x8x4xf32>, vector<4x8x8x4xf32>, vector<4x8x8x4xf32>, vector<4x8x8x4xf32>, vector<4x8x8x4xf32>, vector<4x8x8x4xf32>, vector<4x8x8x4xf32>, vector<4x8x8x4xf32> -> vector<4x8x8x64xf32>
    %112 = tpu.concatenate %69, %73, %77, %81, %85, %89, %93, %97, %101, %105, %109, %110 in 3 : vector<4x8x8x4xf32>, vector<4x8x8x4xf32>, vector<4x8x8x4xf32>, vector<4x8x8x4xf32>, vector<4x8x8x4xf32>, vector<4x8x8x4xf32>, vector<4x8x8x4xf32>, vector<4x8x8x4xf32>, vector<4x8x8x4xf32>, vector<4x8x8x4xf32>, vector<4x8x8x4xf32>, vector<4x8x8x20xf32> -> vector<4x8x8x64xf32>
    %113 = tpu.concatenate %111, %112 in 3 : vector<4x8x8x64xf32>, vector<4x8x8x64xf32> -> vector<4x8x8x128xf32>
    %114 = vector.shape_cast %113 : vector<4x8x8x128xf32> to vector<256x128xf32>
    %c0_129 = arith.constant 0 : index
    %c0_130 = arith.constant 0 : index
    %115 = vector.load %arg3[%c0_129, %c0_130] : memref<128x128xf32, #tpu.memory_space<vmem>>, vector<128x128xf32>
    %cst_131 = arith.constant dense<0.000000e+00> : vector<256x128xf32>
    %116 = tpu.matmul %114, %115, %cst_131 {dimension_numbers = #tpu.dot_dimension_numbers<[1], [0], [0], [1], [0, 0, 1, 1], [], []>} : vector<256x128xf32>, vector<128x128xf32>, vector<256x128xf32> -> vector<256x128xf32>
    %c0_132 = arith.constant 0 : index
    %c0_133 = arith.constant 0 : index
    %117 = vector.load %arg4[%c0_132, %c0_133] : memref<1x128xf32, #tpu.memory_space<vmem>>, vector<1x128xf32>
    %118 = vector.broadcast %117 : vector<1x128xf32> to vector<256x128xf32>
    %119 = arith.addf %116, %118 : vector<256x128xf32>
    %120 = vector.shape_cast %119 : vector<256x128xf32> to vector<1x4x64x128xf32>
    %c0_134 = arith.constant 0 : index
    %c0_135 = arith.constant 0 : index
    %c0_136 = arith.constant 0 : index
    %c0_137 = arith.constant 0 : index
    %121 = vector.load %arg5[%c0_134, %c0_135, %c0_136, %c0_137] : memref<1x4x64x128xf32, #tpu.memory_space<vmem>>, vector<1x4x64x128xf32>
    tpu.vector_store %arg5[%c0_134, %c0_135, %c0_136, %c0_137], %120 {strides = array<i32>} : memref<1x4x64x128xf32, #tpu.memory_space<vmem>>, vector<1x4x64x128xf32>,
    return
  }
  func.func @transform_0(%arg0: i32, %arg1: i32) -> (i32, i32, i32, i32, i32) {
    %c0_i32 = arith.constant 0 : i32
    %c0_i32_0 = arith.constant 0 : i32
    %c0_i32_1 = arith.constant 0 : i32
    %c0_i32_2 = arith.constant 0 : i32
    %c0_i32_3 = arith.constant 0 : i32
    return %arg0, %c0_i32, %c0_i32_0, %c0_i32_1, %c0_i32_2 : i32, i32, i32, i32, i32
  }
  func.func @transform_1(%arg0: i32, %arg1: i32) -> (i32, i32) {
    %c0_i32 = arith.constant 0 : i32
    %c0_i32_0 = arith.constant 0 : i32
    %c0_i32_1 = arith.constant 0 : i32
    return %c0_i32, %c0_i32_0 : i32, i32
  }
  func.func @transform_2(%arg0: i32, %arg1: i32) -> (i32, i32) {
    %c0_i32 = arith.constant 0 : i32
    %c0_i32_0 = arith.constant 0 : i32
    %c0_i32_1 = arith.constant 0 : i32
    return %c0_i32, %c0_i32_0 : i32, i32
  }
  func.func @transform_3(%arg0: i32, %arg1: i32) -> (i32, i32, i32, i32) {
    %c0_i32 = arith.constant 0 : i32
    %c0_i32_0 = arith.constant 0 : i32
    %c0_i32_1 = arith.constant 0 : i32
    return %arg0, %arg1, %c0_i32, %c0_i32_0 : i32, i32, i32, i32
  }
}

</mosaic_0001>

<bundles_post_ra>
// kernel: depth_sep_conv3d.1
= control target key start
LH: loop header
LB: loop body
LE: loop exit
PB: predicated region body
PF: predicated region fallthrough
CT: control target
= control target key end

     0   :  { %s8907_s12 = smov 0   ;;  %s8909_s13 = smov 0   ;;  %s14029_s0 = inlined_call_operand.vmem [shape: f32[2,10,10,10,4], index: 0, kind: input, shape index: {}]   ;;  %s14030_s1 = inlined_call_operand.vmem [shape: f32[128,128], index: 1, kind: input, shape index: {}]   ;;  %s14031_s2 = inlined_call_operand.vmem [shape: f32[1,128], index: 2, kind: input, shape index: {}]   ;;  %s14032_s3 = inlined_call_operand.vmem [shape: f32[2,8,64,128], index: 3, kind: output, shape index: {}]  }
   0x1   :  { %s8911_s14 = smov 0   ;;  %s8913_s15 = smov 0  }
   0x2   :  { %s8915_s16 = smov 0  }
   0x3 LB: > { %s22_s17 = sadd.s32 1, %s8861_s14  ;;  %s25_s18 = sadd.s32 1, %s8865_s15  ;;  %s8869_s16 = sphi %s8915_s16, %s13_s16   ;;  %s8865_s15 = sphi %s8913_s15, %s15101_s15   ;;  %s8861_s14 = sphi %s8911_s14, %s15100_s14   ;;  %s8857_s13 = sphi %s8909_s13, %s15099_s13   ;;  %s8853_s12 = sphi %s8907_s12, %s15098_s12  }
   0x4   : > { %p23_p0 = scmp.ge.s32.totalorder %s22_s17, 2  ;;  %p5695_p1 = scmp.ge.s32.totalorder %s8869_s16, 1 }
   0x5   : > { %p151_p2 = scmp.lt.s32.totalorder %s8869_s16, 5 }
   0x6   : > { %s15103_s17 = smov (%p23_p0, %s22_s17), 0  ;;  %s15105_s18 = smov (!%p23_p0, %s25_s18), %s8865_s15 }
   0x7   : > { %p152_p3 = pnand %p5695_p1, %p151_p2  ;;  %p27_p4 = scmp.ge.s32.totalorder %s15105_s18, 2 }
   0x9   : > { %s15107_s18 = smov (%p27_p4, %s15105_s18), 0  ;;  %155 = sbr.rel (%p152_p3) target bundleno = 1264 (0x4f0), region = 32 }
   0xe   : > { %p180_p5 = scmp.lt.s32.totalorder %s8857_s13, 1  ;;  %s5702_s19 = smul.u32 640, %s8853_s12  ;;  %vm3001_vm0 = vcmask 31744   ;;  %vm3034_vm1 = vcmask 64512   ;;  %vm3067_vm2 = vcmask 97280   ;;  %vm3100_vm3 = vcmask 130048  }
   0xf   : > { %s8871_s25 = smov 4   ;;  %s8872_s26 = smov 8   ;;  %vm3133_vm4 = vcmask 162816   ;;  %vm3166_vm5 = vcmask 195584   ;;  %vm3199_vm6 = vcmask 228352   ;;  %vm3232_vm7 = vcmask 261120  }
  0x10   : > { %s15109_s13 = smov (!%p180_p5, %s8857_s13), 1  ;;  %s8873_s27 = smov 12   ;;  %vm3265_vm8 = vcmask 293888   ;;  %vm3298_vm9 = vcmask 326656   ;;  %vm3331_vm10 = vcmask 359424   ;;  %vm3364_vm11 = vcmask 392192  }
  0x11   : > { %s6646_s20 = smul.u32 1600, %s15109_s13  ;;  %s8874_s28 = smov 16   ;;  %vm3397_vm12 = vcmask 424960   ;;  %vm3430_vm13 = vcmask 457728   ;;  %vm3463_vm14 = vcmask 490496   ;;  %vm5256_vm15 = vcmask 523264  }
  0x12   : > { %s8875_s29 = smov 20   ;;  %s8876_s30 = smov 24  }
  0x13   : > { %s184_s23 = scalar_lea.vmem %s14029_s0, %s6646_s20  ;;  %s8877_s4 = smov 28  }
  0x14   : > { %s8946_s24 = scalar_lea.vmem %s184_s23, %s5702_s19  ;;  %s8878_s5 = smov 32  }
  0x15   : > { %v8949_v0 = vld [vmem:[%s8946_s24 + $0x41] sm:$0xff]  ;;  %v8952_v1 = vld [vmem:[%s8946_s24 + $0x51] sm:$0xff]  ;;  %s8879_s6 = smov 36   ;;  %s8880_s7 = smov 40  }
  0x16   : > { %v231_v2 = vld [vmem:[%s8946_s24 + $0x1] sm:$0xff]  ;;  %v6713_v3 = vpack.i.bf16 %v8952_v1, %v8949_v0  ;;  %v8958_v4 = vld [vmem:[%s8946_s24 + $0x11] sm:$0xff]  ;;  %s8881_s8 = smov 44   ;;  %s8882_s9 = smov 48  }
  0x17   : > { %v8961_v5 = vld [vmem:[%s8946_s24 + $0x61] sm:$0xff]  ;;  %v8964_v6 = vld [vmem:[%s8946_s24 + $0x71] sm:$0xff]  ;;  %v6703_v7 = vpack.i.bf16 %v8958_v4, %v231_v2  ;;  %s8883_s10 = smov 52   ;;  %s8884_s11 = smov 56  }
  0x18   : > { %v8968_v8 = vld [vmem:[%s8946_s24 + $0x21] sm:$0xff]  ;;  %v8971_v9 = vld [vmem:[%s8946_s24 + $0x31] sm:$0xff]  ;;  %6714 = vrot.lane.b32.xlu1 %v6713_v3, %s8871_s25  ;;  %v6718_v11 = vpack.i.bf16 %v8964_v6, %v8961_v5  ;;  %s8885_s19 = smov 60   ;;  %s5699_s20 = sshll.u32 %s15109_s13, 6 }
  0x19   : > { %v8979_v12 = vld [vmem:[%s8946_s24 + $0xc1] sm:$0xff]  ;;  %v8982_v13 = vld [vmem:[%s8946_s24 + $0xb1] sm:$0xff]  ;;  %6704 = vrot.lane.b32.xlu0 %v6703_v7, %s8871_s25  ;;  %v6708_v16 = vpack.i.bf16 %v8971_v9, %v8968_v8 }
  0x1a   : > { %v8992_v17 = vld [vmem:[%s8946_s24 + $0xd1] sm:$0xff]  ;;  %v8995_v18 = vld [vmem:[%s8946_s24 + $0xe1] sm:$0xff] }
  0x1b   : > { %v239_v20 = vld [vmem:[%s8946_s24 + $0xa1] sm:$0xff]  ;;  %v9004_v22 = vld [vmem:[%s8946_s24 + $0xf1] sm:$0xff]  ;;  %v6728_v28 = vpack.i.bf16 %v8992_v17, %v8979_v12 }
  0x1c   : > { %v9001_v21 = vld [vmem:[%s8946_s24 + $0x101] sm:$0xff]  ;;  %v9012_v25 = vld [vmem:[%s8946_s24 + $0x171] sm:$0xff]  ;;  %6719 = vrot.lane.b32.xlu1 %v6718_v11, %s8871_s25  ;;  %v6723_v33 = vpack.i.bf16 %v8982_v13, %v239_v20  ;;  %v6733_v49 = vpack.i.bf16 %v9004_v22, %v8995_v18 }
  0x1d   : > { %v9009_v24 = vld [vmem:[%s8946_s24 + $0x161] sm:$0xff]  ;;  %v9015_v26 = vld [vmem:[%s8946_s24 + $0x151] sm:$0xff]  ;;  %6709 = vrot.lane.b32.xlu0 %v6708_v16, %s8871_s25 }
  0x1e   : > { %v9023_v29 = vld [vmem:[%s8946_s24 + $0x1a1] sm:$0xff]  ;;  %v9029_v31 = vld [vmem:[%s8946_s24 + $0x191] sm:$0xff]  ;;  %v6748_v61 = vpack.i.bf16 %v9012_v25, %v9009_v24 }
  0x1f   : > { %v9026_v30 = vld [vmem:[%s8946_s24 + $0x181] sm:$0xff]  ;;  %v9036_v34 = vld [vmem:[%s8946_s24 + $0x111] sm:$0xff] }
  0x20   : > { %v9043_v37 = vld [vmem:[%s8946_s24 + $0x201] sm:$0xff]  ;;  %v9046_v38 = vld [vmem:[%s8946_s24 + $0x211] sm:$0xff]  ;;  %6729 = vrot.lane.b32.xlu1 %v6728_v28, %s8871_s25  ;;  %v6738_v44 = vpack.i.bf16 %v9036_v34, %v9001_v21  ;;  %v6753_v16 = vpack.i.bf16 %v9029_v31, %v9026_v30 }
  0x21   : > { %v9049_v39 = vld [vmem:[%s8946_s24 + $0x1f1] sm:$0xff]  ;;  %v9052_v40 = vld [vmem:[%s8946_s24 + $0x241] sm:$0xff]  ;;  %6724 = vrot.lane.b32.xlu0 %v6723_v33, %s8871_s25  ;;  %v6768_v3 = vpack.i.bf16 %v9046_v38, %v9043_v37 }
  0x22   : > { %v9055_v41 = vld [vmem:[%s8946_s24 + $0x221] sm:$0xff]  ;;  %v9058_v42 = vld [vmem:[%s8946_s24 + $0x231] sm:$0xff] }
  0x23   : > { %v9066_v45 = vld [vmem:[%s8946_s24 + $0x22] sm:$0xff]  ;;  %v9069_v46 = vld [vmem:[%s8946_s24 + $0x12] sm:$0xff] }
  0x24   : > { %v9079_v50 = vld [vmem:[%s8946_s24 + $0x32] sm:$0xff]  ;;  %v9082_v51 = vld [vmem:[%s8946_s24 + $0x42] sm:$0xff]  ;;  %6739 = vrot.lane.b32.xlu1 %v6738_v44, %s8871_s25 }
  0x25   : > { %v247_v53 = vld [vmem:[%s8946_s24 + $0x141] sm:$0xff]  ;;  %v9091_v55 = vld [vmem:[%s8946_s24 + $0x52] sm:$0xff]  ;;  %6734 = vrot.lane.b32.xlu0 %v6733_v49, %s8871_s25 }
  0x26   : > { %v9088_v54 = vld [vmem:[%s8946_s24 + $0x62] sm:$0xff]  ;;  %v9099_v58 = vld [vmem:[%s8946_s24 + $0xd2] sm:$0xff]  ;;  %v6743_v7 = vpack.i.bf16 %v9015_v26, %v247_v53 }
  0x27   : > { %v9096_v57 = vld [vmem:[%s8946_s24 + $0xc2] sm:$0xff]  ;;  %v9102_v59 = vld [vmem:[%s8946_s24 + $0xb2] sm:$0xff] }
  0x28   : > { %v9110_v62 = vld [vmem:[%s8946_s24 + $0x102] sm:$0xff]  ;;  %v9116_v2 = vld [vmem:[%s8946_s24 + $0xf2] sm:$0xff]  ;;  %6749 = vrot.lane.b32.xlu1 %v6748_v61, %s8871_s25 }
  0x29   : > { %v9113_v63 = vld [vmem:[%s8946_s24 + $0xe2] sm:$0xff]  ;;  %v9123_v11 = vld [vmem:[%s8946_s24 + $0x1b1] sm:$0xff]  ;;  %6744 = vrot.lane.b32.xlu0 %v6743_v7, %s8871_s25 }
  0x2a   : > { %v9130_v28 = vld [vmem:[%s8946_s24 + $0x162] sm:$0xff]  ;;  %v9133_v33 = vld [vmem:[%s8946_s24 + $0x152] sm:$0xff]  ;;  %v6758_v20 = vpack.i.bf16 %v9123_v11, %v9023_v29 }
  0x2b   : > { %v9136_v44 = vld [vmem:[%s8946_s24 + $0x172] sm:$0xff]  ;;  %v9139_v49 = vld [vmem:[%s8946_s24 + $0x182] sm:$0xff] }
  0x2c   : > { %v255_v60 = vld [vmem:[%s8946_s24 + $0x1e1] sm:$0xff]  ;;  %v9156_v53 = vld [vmem:[%s8946_s24 + $0x192] sm:$0xff]  ;;  %6759 = vrot.lane.b32.xlu1 %v6758_v20, %s8871_s25 }
  0x2d   : > { %v9153_v52 = vld [vmem:[%s8946_s24 + $0x1a2] sm:$0xff]  ;;  %6754 = vrot.lane.b32.xlu0 %v6753_v16, %s8871_s25  ;;  %v6763_v7 = vpack.i.bf16 %v9049_v39, %v255_v60  ;;  %v9166_v56 = vld [vmem:[%s8946_s24 + $0x251] sm:$0xff]  ;;  %v6773_v16 = vpack.i.bf16 %v9058_v42, %v9055_v41 }
  0x2e   : > { %v9169_v48 = vld [vmem:[%s8946_s24 + $0x202] sm:$0xff]  ;;  %v9172_v43 = vld [vmem:[%s8946_s24 + $0x212] sm:$0xff]  ;;  %v6778_v60 = vpack.i.bf16 %v9166_v56, %v9052_v40 }
  0x2f   : > { %14338 = vst [vmem:[#allocation2_spill] sm:$0xff] %v9169_v48  ;;  %v9175_v47 = vld [vmem:[%s8946_s24 + $0x1f2] sm:$0xff]  ;;  %v9178_v61 = vld [vmem:[%s8946_s24 + $0x222] sm:$0xff] }
  0x30   : > { %14339 = vst [vmem:[#allocation3_spill] sm:$0xff] %v9175_v47  ;;  %6769 = vrot.lane.b32.xlu1 %v6768_v3, %s8871_s25  ;;  %v263_v32 = vld [vmem:[%s8946_s24 + $0x2] sm:$0xff]  ;;  %v9195_v27 = vld [vmem:[%s8946_s24 + $0x232] sm:$0xff]  ;;  %v6788_v3 = vpack.i.bf16 %v9079_v50, %v9066_v45 }
  0x31   : > { %6764 = vrot.lane.b32.xlu0 %v6763_v7, %s8871_s25  ;;  %v9192_v35 = vld [vmem:[%s8946_s24 + $0x242] sm:$0xff]  ;;  %14341 = vst [vmem:[#allocation5_spill] sm:$0xff] %v9195_v27  ;;  %v6783_v7 = vpack.i.bf16 %v9069_v46, %v263_v32  ;;  %v9205_v36 = vld [vmem:[%s8946_s24 + $0x72] sm:$0xff]  ;;  %v6808_v32 = vpack.i.bf16 %v9099_v58, %v9096_v57 }
  0x32   : > { %14340 = vst [vmem:[#allocation4_spill] sm:$0xff] %v9192_v35  ;;  %v6798_v19 = vpack.i.bf16 %v9205_v36, %v9088_v54  ;;  %v271_v20 = vld [vmem:[%s8946_s24 + $0xa2] sm:$0xff]  ;;  %v9259_v15 = vld [vmem:[%s8946_s24 + $0x30] sm:$0xff] }
  0x33   : > { %v279_v23 = vld [vmem:[%s8946_s24 + $0x142] sm:$0xff]  ;;  %14342 = vst [vmem:[#allocation6_spill] sm:$0xff] %v9259_v15 }
  0x34   : > { %6779 = vrot.lane.b32.xlu1 %v6778_v60, %s8871_s25  ;;  %v6793_v60 = vpack.i.bf16 %v9091_v55, %v9082_v51  ;;  %v287_v10 = vld [vmem:[%s8946_s24 + $0x1e2] sm:$0xff] }
  0x35   : > { %6774 = vrot.lane.b32.xlu0 %v6773_v16, %s8871_s25  ;;  %v6803_v16 = vpack.i.bf16 %v9102_v59, %v271_v20  ;;  %v6828_v20 = vpack.i.bf16 %v9136_v44, %v9130_v28  ;;  %v9266_v14 = vld [vmem:[%s8946_s24 + $0x20] sm:$0xff] }
  0x36   : > { %14344 = vst [vmem:[#allocation8_spill] sm:$0xff] %v9266_v14 }
  0x38   : > { %6789 = vrot.lane.b32.xlu1 %v6788_v3, %s8872_s26  ;;  %v9220_v3 = vld [vmem:[%s8946_s24 + $0x112] sm:$0xff] }
  0x39   : > { %6784 = vrot.lane.b32.xlu0 %v6783_v7, %s8872_s26  ;;  %v6818_v7 = vpack.i.bf16 %v9220_v3, %v9110_v62 }
  0x3c   : > { %6799 = vrot.lane.b32.xlu1 %v6798_v19, %s8872_s26  ;;  %v6813_v19 = vpack.i.bf16 %v9116_v2, %v9113_v63 }
  0x3d   : > { %6794 = vrot.lane.b32.xlu0 %v6793_v60, %s8872_s26  ;;  %v6823_v60 = vpack.i.bf16 %v9133_v33, %v279_v23  ;;  %v6848_v23 = vpack.i.bf16 %v9172_v43, %v9169_v48  ;;  %v9283_v48 = vld [vmem:[%s8946_s24 + $0x60] sm:$0xff] }
  0x3e   : > { %14348 = vst [vmem:[#allocation12_spill] sm:$0xff] %v9283_v48 }
  0x40   : > { %6809 = vrot.lane.b32.xlu1 %v6808_v32, %s8872_s26  ;;  %v9235_v32 = vld [vmem:[%s8946_s24 + $0x1b2] sm:$0xff] }
  0x41   : > { %6804 = vrot.lane.b32.xlu0 %v6803_v16, %s8872_s26  ;;  %v6838_v16 = vpack.i.bf16 %v9235_v32, %v9153_v52 }
  0x44   : > { %6819 = vrot.lane.b32.xlu1 %v6818_v7, %s8872_s26  ;;  %v6833_v7 = vpack.i.bf16 %v9156_v53, %v9139_v49 }
  0x45   : > { %6814 = vrot.lane.b32.xlu0 %v6813_v19, %s8872_s26  ;;  %v6843_v19 = vpack.i.bf16 %v9175_v47, %v287_v10  ;;  %v5703_v10 = vld [vmem:[%s8946_s24 + $0x10] sm:$0xff] }
  0x46   : > { %v9280_v47 = vld [vmem:[%s8946_s24 + $0x50] sm:$0xff] }
  0x47   : > { %14347 = vst [vmem:[#allocation11_spill] sm:$0xff] %v9280_v47 }
  0x48   : > { %6829 = vrot.lane.b32.xlu1 %v6828_v20, %s8872_s26  ;;  %v9250_v20 = vld [vmem:[%s8946_s24 + $0x252] sm:$0xff] }
  0x49   : > { %6824 = vrot.lane.b32.xlu0 %v6823_v60, %s8872_s26  ;;  %v6858_v60 = vpack.i.bf16 %v9250_v20, %v9192_v35  ;;  %v9277_v35 = vld [vmem:[%s8946_s24 + $0x80] sm:$0xff] }
  0x4a   : > { %14346 = vst [vmem:[#allocation10_spill] sm:$0xff] %v9277_v35 }
  0x4c   : > { %6839 = vrot.lane.b32.xlu1 %v6838_v16, %s8872_s26  ;;  %v6853_v16 = vpack.i.bf16 %v9195_v27, %v9178_v61  ;;  %v9274_v27 = vld [vmem:[%s8946_s24 + $0x70] sm:$0xff] }
  0x4d   : > { %6834 = vrot.lane.b32.xlu0 %v6833_v7, %s8872_s26  ;;  %v9262_v7 = vld [vmem:[%s8946_s24 + $0x40] sm:$0xff]  ;;  %14345 = vst [vmem:[#allocation9_spill] sm:$0xff] %v9274_v27 }
  0x4e   : > { %14343 = vst [vmem:[#allocation7_spill] sm:$0xff] %v9262_v7 }
  0x50   : > { %6849 = vrot.lane.b32.xlu1 %v6848_v23, %s8872_s26  ;;  %v6868_v23 = vpack.i.bf16 %v9262_v7, %v9259_v15  ;;  %v9295_v15 = vld [vmem:[%s8946_s24 + $0xe0] sm:$0xff] }
  0x51   : > { %6844 = vrot.lane.b32.xlu0 %v6843_v19, %s8872_s26  ;;  %v6863_v19 = vpack.i.bf16 %v9266_v14, %v5703_v10  ;;  %v9292_v10 = vld [vmem:[%s8946_s24 + $0xd0] sm:$0xff]  ;;  %14350 = vst [vmem:[#allocation14_spill] sm:$0xff] %v9295_v15  ;;  %v9299_v7 = vld [vmem:[%s8946_s24 + $0xc0] sm:$0xff] }
  0x52   : > { %14349 = vst [vmem:[#allocation13_spill] sm:$0xff] %v9292_v10  ;;  %v5711_v14 = vld [vmem:[%s8946_s24 + $0xb0] sm:$0xff]  ;;  %14351 = vst [vmem:[#allocation15_spill] sm:$0xff] %v9299_v7 }
  0x54   : > { %6859 = vrot.lane.b32.xlu1 %v6858_v60, %s8872_s26  ;;  %v6878_v60 = vpack.i.bf16 %v9277_v35, %v9274_v27  ;;  %v9307_v27 = vld [vmem:[%s8946_s24 + $0x110] sm:$0xff] }
  0x55   : > { %6854 = vrot.lane.b32.xlu0 %v6853_v16, %s8872_s26  ;;  %v6873_v16 = vpack.i.bf16 %v9283_v48, %v9280_v47  ;;  %14352 = vst [vmem:[#allocation16_spill] sm:$0xff] %v9307_v27  ;;  %v9310_v48 = vld [vmem:[%s8946_s24 + $0x120] sm:$0xff]  ;;  %v9313_v35 = vld [vmem:[%s8946_s24 + $0xf0] sm:$0xff] }
  0x56   : > { %14353 = vst [vmem:[#allocation17_spill] sm:$0xff] %v9310_v48  ;;  %14354 = vst [vmem:[#allocation18_spill] sm:$0xff] %v9313_v35  ;;  %v9316_v47 = vld [vmem:[%s8946_s24 + $0x100] sm:$0xff] }
  0x57   : > { %14355 = vst [vmem:[#allocation19_spill] sm:$0xff] %v9316_v47 }
  0x58   : > { %6869 = vrot.lane.b32.xlu1 %v6868_v23, %s8873_s27  ;;  %v6888_v23 = vpack.i.bf16 %v9295_v15, %v9292_v10  ;;  %v9328_v10 = vld [vmem:[%s8946_s24 + $0x180] sm:$0xff] }
  0x59   : > { %6864 = vrot.lane.b32.xlu0 %v6863_v19, %s8873_s27  ;;  %v6883_v19 = vpack.i.bf16 %v9299_v7, %v5711_v14  ;;  %v6893_v14 = vpack.i.bf16 %v9316_v47, %v9313_v35  ;;  %14357 = vst [vmem:[#allocation21_spill] sm:$0xff] %v9328_v10  ;;  %v5719_v7 = vld [vmem:[%s8946_s24 + $0x150] sm:$0xff]  ;;  %v9332_v15 = vld [vmem:[%s8946_s24 + $0x160] sm:$0xff] }
  0x5a   : > { %14358 = vst [vmem:[#allocation22_spill] sm:$0xff] %v9332_v15  ;;  %v9343_v47 = vld [vmem:[%s8946_s24 + $0x1c0] sm:$0xff] }
  0x5b   : > { %14360 = vst [vmem:[#allocation24_spill] sm:$0xff] %v9343_v47  ;;  %v9349_v35 = vld [vmem:[%s8946_s24 + $0x1a0] sm:$0xff] }
  0x5c   : > { %6879 = vrot.lane.b32.xlu1 %v6878_v60, %s8873_s27  ;;  %v6898_v60 = vpack.i.bf16 %v9310_v48, %v9307_v27  ;;  %v9340_v27 = vld [vmem:[%s8946_s24 + $0x1b0] sm:$0xff]  ;;  %14362 = vst [vmem:[#allocation26_spill] sm:$0xff] %v9349_v35 }
  0x5d   : > { %6874 = vrot.lane.b32.xlu0 %v6873_v16, %s8873_s27  ;;  %v9325_v16 = vld [vmem:[%s8946_s24 + $0x170] sm:$0xff]  ;;  %14359 = vst [vmem:[#allocation23_spill] sm:$0xff] %v9340_v27 }
  0x5e   : > { %14356 = vst [vmem:[#allocation20_spill] sm:$0xff] %v9325_v16  ;;  %v9346_v48 = vld [vmem:[%s8946_s24 + $0x190] sm:$0xff] }
  0x5f   : > { %14361 = vst [vmem:[#allocation25_spill] sm:$0xff] %v9346_v48 }
  0x60   : > { %6889 = vrot.lane.b32.xlu1 %v6888_v23, %s8873_s27  ;;  %v6908_v23 = vpack.i.bf16 %v9328_v10, %v9325_v16  ;;  %v9361_v16 = vld [vmem:[%s8946_s24 + $0x220] sm:$0xff] }
  0x61   : > { %6884 = vrot.lane.b32.xlu0 %v6883_v19, %s8873_s27  ;;  %v6903_v19 = vpack.i.bf16 %v9332_v15, %v5719_v7  ;;  %v6913_v7 = vpack.i.bf16 %v9349_v35, %v9346_v48  ;;  %v5727_v15 = vld [vmem:[%s8946_s24 + $0x1f0] sm:$0xff]  ;;  %v9365_v10 = vld [vmem:[%s8946_s24 + $0x200] sm:$0xff] }
  0x62   : > { %v9376_v35 = vld [vmem:[%s8946_s24 + $0x260] sm:$0xff] }
  0x63   : > { %v9382_v48 = vld [vmem:[%s8946_s24 + $0x240] sm:$0xff] }
  0x64   : > { %6899 = vrot.lane.b32.xlu1 %v6898_v60, %s8873_s27  ;;  %v6918_v60 = vpack.i.bf16 %v9343_v47, %v9340_v27  ;;  %v9373_v27 = vld [vmem:[%s8946_s24 + $0x250] sm:$0xff] }
  0x65   : > { %6894 = vrot.lane.b32.xlu0 %v6893_v14, %s8873_s27  ;;  %v9358_v14 = vld [vmem:[%s8946_s24 + $0x210] sm:$0xff]  ;;  %14363 = vst [vmem:[#allocation27_spill] sm:$0xff] %v9373_v27 }
  0x66   : > { %v9379_v47 = vld [vmem:[%s8946_s24 + $0x230] sm:$0xff] }
  0x68   : > { %6909 = vrot.lane.b32.xlu1 %v6908_v23, %s8873_s27  ;;  %v6928_v23 = vpack.i.bf16 %v9361_v16, %v9358_v14 }
  0x69   : > { %6904 = vrot.lane.b32.xlu0 %v6903_v19, %s8873_s27  ;;  %v6923_v19 = vpack.i.bf16 %v9365_v10, %v5727_v15  ;;  %v9393_v15 = vld [vmem:[%s8946_s24 + $0x81] sm:$0xff] }
  0x6c   : > { %6919 = vrot.lane.b32.xlu1 %v6918_v60, %s8873_s27  ;;  %v6938_v60 = vpack.i.bf16 %v9376_v35, %v9373_v27  ;;  %v6958_v27 = vpack.i.bf16 %v9393_v15, %v8964_v6 }
  0x6d   : > { %6914 = vrot.lane.b32.xlu0 %v6913_v7, %s8873_s27  ;;  %v6933_v7 = vpack.i.bf16 %v9382_v48, %v9379_v47 }
  0x70   : > { %6929 = vrot.lane.b32.xlu1 %v6928_v23, %s8873_s27  ;;  %v14364_v23 = vpack.i.bf16 %v8949_v0, %v8971_v9  ;;  %v14367_v0 = vpack.i.bf16 %v8995_v18, %v8992_v17  ;;  %v14374_v18 = vpack.i.bf16 %v9023_v29, %v9029_v31  ;;  %v14379_v31 = vpack.i.bf16 %v9052_v40, %v9058_v42 }
  0x71   : > { %6924 = vrot.lane.b32.xlu0 %v6923_v19, %s8873_s27  ;;  %v14365_v19 = vpack.i.bf16 %v8968_v8, %v8958_v4  ;;  %v14368_v4 = vpack.i.bf16 %v8979_v12, %v8982_v13  ;;  %v14370_v8 = vpack.i.bf16 %v9026_v30, %v9012_v25  ;;  %v14371_v12 = vpack.i.bf16 %v9009_v24, %v9015_v26 }
  0x72   : > { %v14377_v24 = vpack.i.bf16 %v9055_v41, %v9046_v38  ;;  %v14381_v40 = vpack.i.bf16 %v9066_v45, %v9069_v46  ;;  %v14387_v45 = vpack.i.bf16 %v9113_v63, %v9099_v58  ;;  %v14389_v58 = vpack.i.bf16 %v9110_v62, %v9116_v2  ;;  %v9529_v63 = vld [vmem:[%s8946_s24 + $0x1c2] sm:$0xff] }
  0x74   : > { %6939 = vrot.lane.b32.xlu1 %v6938_v60, %s8873_s27  ;;  %v14366_v60 = vpack.i.bf16 %v8961_v5, %v8952_v1  ;;  %v14369_v1 = vpack.i.bf16 %v9001_v21, %v9004_v22  ;;  %v9429_v5 = vld [vmem:[%s8946_s24 + $0x1c1] sm:$0xff] }
  0x75   : > { %6934 = vrot.lane.b32.xlu0 %v6933_v7, %s8873_s27  ;;  %v9411_v7 = vld [vmem:[%s8946_s24 + $0x121] sm:$0xff]  ;;  %v6998_v9 = vpack.i.bf16 %v9429_v5, %v9123_v11 }
  0x76   : > { %v6978_v6 = vpack.i.bf16 %v9411_v7, %v9036_v34  ;;  %v9451_v21 = vld [vmem:[%s8946_s24 + $0x261] sm:$0xff] }
  0x77   : > { %v7018_v26 = vpack.i.bf16 %v9451_v21, %v9166_v56  ;;  %v9477_v34 = vld [vmem:[%s8946_s24 + $0x82] sm:$0xff] }
  0x78   : > { %6949 = vrot.lane.b32.xlu1 %v14364_v23, %s8874_s28  ;;  %v14388_v23 = vpack.i.bf16 %v9096_v57, %v9102_v59  ;;  %v14390_v57 = vpack.i.bf16 %v9139_v49, %v9136_v44  ;;  %v7078_v59 = vpack.i.bf16 %v9529_v63, %v9235_v32  ;;  %v14394_v44 = vpack.i.bf16 %v9153_v52, %v9156_v53  ;;  %v9555_v49 = vld [vmem:[%s8946_s24 + $0x262] sm:$0xff] }
  0x79   : > { %6944 = vrot.lane.b32.xlu0 %v14365_v19, %s8874_s28 }
  0x7c   : > { %6959 = vrot.lane.b32.xlu1 %v6958_v27, %s8874_s28  ;;  %v14378_v27 = vpack.i.bf16 %v9043_v37, %v9049_v39  ;;  %v14380_v37 = vpack.i.bf16 %v9082_v51, %v9079_v50  ;;  %v7038_v39 = vpack.i.bf16 %v9477_v34, %v9205_v36  ;;  %v14384_v50 = vpack.i.bf16 %v9088_v54, %v9091_v55  ;;  %v9503_v51 = vld [vmem:[%s8946_s24 + $0x122] sm:$0xff] }
  0x7d   : > { %6954 = vrot.lane.b32.xlu0 %v14366_v60, %s8874_s28  ;;  %v7058_v46 = vpack.i.bf16 %v9503_v51, %v9220_v3  ;;  %v14391_v60 = vpack.i.bf16 %v9130_v28, %v9133_v33  ;;  %v14397_v28 = vpack.i.bf16 %v9178_v61, %v9172_v43  ;;  %v7098_v33 = vpack.i.bf16 %v9555_v49, %v9250_v20  ;;  %v14405_v43 = vld [vmem:[#allocation4_spill] sm:$0xff]  ;;  %v14406_v61 = vld [vmem:[#allocation5_spill] sm:$0xff] }
  0x7e   : > { %v14408_v20 = vld [vmem:[#allocation8_spill] sm:$0xff] }
  0x80   : > { %6969 = vrot.lane.b32.xlu1 %v14367_v0, %s8874_s28 }
  0x81   : > { %6964 = vrot.lane.b32.xlu0 %v14368_v4, %s8874_s28  ;;  %v14399_v4 = vld [vmem:[#allocation3_spill] sm:$0xff] }
  0x84   : > { %6979 = vrot.lane.b32.xlu1 %v6978_v6, %s8874_s28  ;;  %v14398_v6 = vld [vmem:[#allocation2_spill] sm:$0xff] }
  0x85   : > { %6974 = vrot.lane.b32.xlu0 %v14369_v1, %s8874_s28  ;;  %v14400_v1 = vpack.i.bf16 %v14398_v6, %v14399_v4  ;;  %v5814_v6 = vld [vmem:[%s8946_s24 + $0x130] sm:$0xff] }
  0x88   : > { %6989 = vrot.lane.b32.xlu1 %v14370_v8, %s8874_s28  ;;  %v14403_v8 = vld [vmem:[#allocation7_spill] sm:$0xff] }
  0x89   : > { %6984 = vrot.lane.b32.xlu0 %v14371_v12, %s8874_s28 }
  0x8a   : > { %v9441_v13 = vpop.permute.xlu1 %6714 }
  0x8b   : > { %14372 = vst [vmem:[#allocation28_spill] sm:$0xff] %v9441_v13  ;;  %v9443_v17 = vpop.permute.xlu0 %6704 }
  0x8c   : > { %14373 = vst [vmem:[#allocation29_spill] sm:$0xff] %v9443_v17  ;;  %6999 = vrot.lane.b32.xlu1 %v6998_v9, %s8874_s28  ;;  %v14404_v9 = vld [vmem:[#allocation11_spill] sm:$0xff]  ;;  %v9896_v17 = vld [vmem:[%s8946_s24 + $0xe0] sm:$0xff] }
  0x8d   : > { %6994 = vrot.lane.b32.xlu0 %v14374_v18, %s8874_s28  ;;  %v7108_v12 = vpack.i.bf16 %v14404_v9, %v14403_v8  ;;  %v14407_v18 = vpack.i.bf16 %v14405_v43, %v14406_v61  ;;  %v14423_v8 = vld [vmem:[#allocation17_spill] sm:$0xff]  ;;  %v14425_v43 = vld [vmem:[#allocation16_spill] sm:$0xff] }
  0x8e   : > { %v9453_v22 = vpop.permute.xlu1 %6719  ;;  %v7138_v9 = vpack.i.bf16 %v5814_v6, %v14423_v8 }
  0x8f   : > { %14375 = vst [vmem:[#allocation30_spill] sm:$0xff] %v9453_v22  ;;  %v9455_v25 = vpop.permute.xlu0 %6709 }
  0x90   : > { %14376 = vst [vmem:[#allocation31_spill] sm:$0xff] %v9455_v25  ;;  %7009 = vrot.lane.b32.xlu1 %v14377_v24, %s8874_s28  ;;  %v14409_v24 = vld [vmem:[#allocation6_spill] sm:$0xff] }
  0x91   : > { %7004 = vrot.lane.b32.xlu0 %v14378_v27, %s8874_s28  ;;  %v5806_v27 = vld [vmem:[%s8946_s24 + $0x90] sm:$0xff] }
  0x92   : > { %v9467_v29 = vpop.permute.xlu1 %6729 }
  0x93   : > { %v9469_v30 = vpop.permute.xlu0 %6724 }
  0x94   : > { %7019 = vrot.lane.b32.xlu1 %v7018_v26, %s8874_s28  ;;  %v7103_v26 = vpack.i.bf16 %v14409_v24, %v14408_v20  ;;  %v14428_v24 = vld [vmem:[#allocation21_spill] sm:$0xff] }
  0x95   : > { %7014 = vrot.lane.b32.xlu0 %v14379_v31, %s8874_s28 }
  0x96   : > { %v9479_v38 = vpop.permute.xlu1 %6739 }
  0x97   : > { %v9481_v41 = vpop.permute.xlu0 %6734 }
  0x98   : > { %7029 = vrot.lane.b32.xlu1 %v14380_v37, %s8875_s29 }
  0x99   : > { %7024 = vrot.lane.b32.xlu0 %v14381_v40, %s8875_s29 }
  0x9a   : > { %v9493_v42 = vpop.permute.xlu1 %6749 }
  0x9b   : > { %14382 = vst [vmem:[#allocation32_spill] sm:$0xff] %v9493_v42  ;;  %v9495_v56 = vpop.permute.xlu0 %6744  ;;  %v5892_v42 = vld [vmem:[%s8946_s24 + $0x252] sm:$0xff] }
  0x9c   : > { %14383 = vst [vmem:[#allocation33_spill] sm:$0xff] %v9495_v56  ;;  %7039 = vrot.lane.b32.xlu1 %v7038_v39, %s8875_s29  ;;  %v14412_v39 = vld [vmem:[#allocation10_spill] sm:$0xff] }
  0x9d   : > { %7034 = vrot.lane.b32.xlu0 %v14384_v50, %s8875_s29  ;;  %v7118_v40 = vpack.i.bf16 %v5806_v27, %v14412_v39  ;;  %v14413_v50 = vld [vmem:[#allocation12_spill] sm:$0xff]  ;;  %v14430_v39 = vld [vmem:[#allocation22_spill] sm:$0xff] }
  0x9e   : > { %v9505_v36 = vpop.permute.xlu1 %6759 }
  0x9f   : > { %14385 = vst [vmem:[#allocation34_spill] sm:$0xff] %v9505_v36  ;;  %v9507_v11 = vpop.permute.xlu0 %6754  ;;  %v5888_v36 = vld [vmem:[%s8946_s24 + $0x212] sm:$0xff] }
  0xa0   : > { %14386 = vst [vmem:[#allocation35_spill] sm:$0xff] %v9507_v11  ;;  %7049 = vrot.lane.b32.xlu1 %v14387_v45, %s8875_s29  ;;  %v14414_v45 = vld [vmem:[#allocation9_spill] sm:$0xff]  ;;  %v5887_v11 = vld [vmem:[%s8946_s24 + $0x202] sm:$0xff] }
  0xa1   : > { %7044 = vrot.lane.b32.xlu0 %v14388_v23, %s8875_s29 }
  0xa2   : > { %v9519_v54 = vpop.permute.xlu1 %6769 }
  0xa3   : > { %v9521_v55 = vpop.permute.xlu0 %6764 }
  0xa4   : > { %7059 = vrot.lane.b32.xlu1 %v7058_v46, %s8875_s29  ;;  %v7113_v46 = vpack.i.bf16 %v14414_v45, %v14413_v50  ;;  %v5822_v45 = vld [vmem:[%s8946_s24 + $0x1d0] sm:$0xff] }
  0xa5   : > { %7054 = vrot.lane.b32.xlu0 %v14389_v58, %s8875_s29 }
  0xa6   : > { %v9531_v3 = vpop.permute.xlu1 %6779 }
  0xa7   : > { %v9533_v19 = vpop.permute.xlu0 %6774 }
  0xa8   : > { %7069 = vrot.lane.b32.xlu1 %v14390_v57, %s8875_s29  ;;  %v14417_v57 = vld [vmem:[#allocation14_spill] sm:$0xff] }
  0xa9   : > { %7064 = vrot.lane.b32.xlu0 %v14391_v60, %s8875_s29 }
  0xaa   : > { %v9545_v62 = vpop.permute.xlu1 %6789 }
  0xab   : > { %14392 = vst [vmem:[#allocation36_spill] sm:$0xff] %v9545_v62  ;;  %v9547_v2 = vpop.permute.xlu0 %6784 }
  0xac   : > { %14393 = vst [vmem:[#allocation37_spill] sm:$0xff] %v9547_v2  ;;  %7079 = vrot.lane.b32.xlu1 %v7078_v59, %s8875_s29  ;;  %v14418_v59 = vld [vmem:[#allocation18_spill] sm:$0xff]  ;;  %v5884_v2 = vld [vmem:[%s8946_s24 + $0x1b2] sm:$0xff] }
  0xad   : > { %7074 = vrot.lane.b32.xlu0 %v14394_v44, %s8875_s29  ;;  %v7128_v60 = vpack.i.bf16 %v14418_v59, %v14417_v57  ;;  %v14419_v44 = vld [vmem:[#allocation15_spill] sm:$0xff]  ;;  %v14434_v59 = vld [vmem:[#allocation24_spill] sm:$0xff] }
  0xae   : > { %v9557_v32 = vpop.permute.xlu1 %6799 }
  0xaf   : > { %14395 = vst [vmem:[#allocation38_spill] sm:$0xff] %v9557_v32  ;;  %v9559_v0 = vpop.permute.xlu0 %6794 }
  0xb0   : > { %14396 = vst [vmem:[#allocation39_spill] sm:$0xff] %v9559_v0  ;;  %7089 = vrot.lane.b32.xlu1 %v14397_v28, %s8875_s29  ;;  %v14420_v28 = vld [vmem:[#allocation13_spill] sm:$0xff] }
  0xb1   : > { %7084 = vrot.lane.b32.xlu0 %v14400_v1, %s8875_s29  ;;  %v5872_v0 = vld [vmem:[%s8946_s24 + $0xd2] sm:$0xff] }
  0xb2   : > { %v9571_v52 = vpop.permute.xlu1 %6809 }
  0xb3   : > { %14401 = vst [vmem:[#allocation2_spill] sm:$0xff] %v9571_v52  ;;  %v9573_v53 = vpop.permute.xlu0 %6804 }
  0xb4   : > { %14402 = vst [vmem:[#allocation3_spill] sm:$0xff] %v9573_v53  ;;  %7099 = vrot.lane.b32.xlu1 %v7098_v33, %s8875_s29  ;;  %v7123_v33 = vpack.i.bf16 %v14420_v28, %v14419_v44  ;;  %v14435_v44 = vld [vmem:[#allocation26_spill] sm:$0xff]  ;;  %v14436_v28 = vld [vmem:[#allocation23_spill] sm:$0xff] }
  0xb5   : > { %7094 = vrot.lane.b32.xlu0 %v14407_v18, %s8875_s29 }
  0xb6   : > { %v9585_v31 = vpop.permute.xlu1 %6819 }
  0xb7   : > { %14410 = vst [vmem:[#allocation7_spill] sm:$0xff] %v9585_v31  ;;  %v9587_v37 = vpop.permute.xlu0 %6814  ;;  %v10036_v31 = vld [vmem:[%s8946_s24 + $0xb1] sm:$0xff] }
  0xb8   : > { %14411 = vst [vmem:[#allocation11_spill] sm:$0xff] %v9587_v37  ;;  %7109 = vrot.lane.b32.xlu1 %v7108_v12, %s8876_s30  ;;  %v14424_v12 = vld [vmem:[#allocation19_spill] sm:$0xff] }
  0xb9   : > { %7104 = vrot.lane.b32.xlu0 %v7103_v26, %s8876_s30  ;;  %v7133_v61 = vpack.i.bf16 %v14425_v43, %v14424_v12  ;;  %v14429_v26 = vld [vmem:[#allocation25_spill] sm:$0xff]  ;;  %v7163_v12 = vpack.i.bf16 %v9358_v14, %v9365_v10  ;;  %v5830_v43 = vld [vmem:[%s8946_s24 + $0x270] sm:$0xff]  ;;  %v5831_v14 = vld [vmem:[%s8946_s24 + $0x21] sm:$0xff] }
  0xba   : > { %v9594_v23 = vpop.permute.xlu1 %6829  ;;  %v7148_v27 = vpack.i.bf16 %v14429_v26, %v14428_v24  ;;  %v7178_v26 = vpack.i.bf16 %v5830_v43, %v9376_v35  ;;  %v5842_v43 = vld [vmem:[%s8946_s24 + $0xf1] sm:$0xff] }
  0xbb   : > { %14415 = vst [vmem:[#allocation4_spill] sm:$0xff] %v9594_v23  ;;  %v9596_v58 = vpop.permute.xlu0 %6824  ;;  %v5871_v23 = vld [vmem:[%s8946_s24 + $0xc2] sm:$0xff] }
  0xbc   : > { %14416 = vst [vmem:[#allocation5_spill] sm:$0xff] %v9596_v58  ;;  %7119 = vrot.lane.b32.xlu1 %v7118_v40, %s8876_s30  ;;  %v14431_v40 = vld [vmem:[#allocation20_spill] sm:$0xff] }
  0xbd   : > { %7114 = vrot.lane.b32.xlu0 %v7113_v46, %s8876_s30  ;;  %v7143_v50 = vpack.i.bf16 %v14431_v40, %v14430_v39  ;;  %v5834_v39 = vld [vmem:[%s8946_s24 + $0x51] sm:$0xff] }
  0xbe   : > { %v9605_v4 = vpop.permute.xlu1 %6839  ;;  %v5832_v40 = vld [vmem:[%s8946_s24 + $0x31] sm:$0xff] }
  0xbf   : > { %14421 = vst [vmem:[#allocation8_spill] sm:$0xff] %v9605_v4  ;;  %v9607_v1 = vpop.permute.xlu0 %6834  ;;  %v7183_v35 = vpack.i.bf16 %v5832_v40, %v5831_v14  ;;  %v5846_v14 = vld [vmem:[%s8946_s24 + $0x131] sm:$0xff] }
  0xc0   : > { %14422 = vst [vmem:[#allocation6_spill] sm:$0xff] %v9607_v1  ;;  %7129 = vrot.lane.b32.xlu1 %v7128_v60, %s8876_s30  ;;  %v7158_v60 = vpack.i.bf16 %v5822_v45, %v14434_v59  ;;  %v5838_v59 = vld [vmem:[%s8946_s24 + $0x91] sm:$0xff] }
  0xc1   : > { %7124 = vrot.lane.b32.xlu0 %v7123_v33, %s8876_s30  ;;  %v7153_v33 = vpack.i.bf16 %v14436_v28, %v14435_v44  ;;  %v5836_v44 = vld [vmem:[%s8946_s24 + $0x71] sm:$0xff] }
  0xc2   : > { %v9614_v18 = vpop.permute.xlu1 %6849  ;;  %v5868_v4 = vld [vmem:[%s8946_s24 + $0x72] sm:$0xff] }
  0xc3   : > { %14426 = vst [vmem:[#allocation10_spill] sm:$0xff] %v9614_v18  ;;  %v9616_v20 = vpop.permute.xlu0 %6844  ;;  %v10019_v18 = vld [vmem:[%s8946_s24 + $0x2c0] sm:$0xff] }
  0xc4   : > { %14427 = vst [vmem:[#allocation12_spill] sm:$0xff] %v9616_v20  ;;  %7139 = vrot.lane.b32.xlu1 %v7138_v9, %s8876_s30  ;;  %v7168_v9 = vpack.i.bf16 %v9379_v47, %v9361_v16  ;;  %v14441_v47 = vld [vmem:[#allocation27_spill] sm:$0xff]  ;;  %v10014_v20 = vld [vmem:[%s8946_s24 + $0x2f0] sm:$0xff] }
  0xc5   : > { %7134 = vrot.lane.b32.xlu0 %v7133_v61, %s8876_s30  ;;  %v7173_v16 = vpack.i.bf16 %v14441_v47, %v9382_v48  ;;  %v5839_v47 = vld [vmem:[%s8946_s24 + $0xc1] sm:$0xff] }
  0xc6   : > { %v9625_v46 = vpop.permute.xlu1 %6859 }
  0xc7   : > { %14432 = vst [vmem:[#allocation9_spill] sm:$0xff] %v9625_v46  ;;  %v9627_v57 = vpop.permute.xlu0 %6854  ;;  %v10011_v46 = vld [vmem:[%s8946_s24 + $0x2e0] sm:$0xff] }
  0xc8   : > { %14433 = vst [vmem:[#allocation14_spill] sm:$0xff] %v9627_v57  ;;  %7149 = vrot.lane.b32.xlu1 %v7148_v27, %s8876_s30  ;;  %v5833_v27 = vld [vmem:[%s8946_s24 + $0x41] sm:$0xff] }
  0xc9   : > { %7144 = vrot.lane.b32.xlu0 %v7143_v50, %s8876_s30  ;;  %v7188_v45 = vpack.i.bf16 %v5834_v39, %v5833_v27 }
  0xca   : > { %v9634_v6 = vpop.permute.xlu1 %6869 }
  0xcb   : > { %14437 = vst [vmem:[#allocation18_spill] sm:$0xff] %v9634_v6  ;;  %v9636_v8 = vpop.permute.xlu0 %6864 }
  0xcc   : > { %14438 = vst [vmem:[#allocation15_spill] sm:$0xff] %v9636_v8  ;;  %7159 = vrot.lane.b32.xlu1 %v7158_v60, %s8876_s30  ;;  %v5835_v60 = vld [vmem:[%s8946_s24 + $0x61] sm:$0xff]  ;;  %v5860_v8 = vld [vmem:[%s8946_s24 + $0x251] sm:$0xff] }
  0xcd   : > { %7154 = vrot.lane.b32.xlu0 %v7153_v33, %s8876_s30  ;;  %v7198_v33 = vpack.i.bf16 %v5838_v59, %v9393_v15 }
  0xce   : > { %v9645_v61 = vpop.permute.xlu1 %6879 }
  0xcf   : > { %14439 = vst [vmem:[#allocation13_spill] sm:$0xff] %v9645_v61  ;;  %v9647_v24 = vpop.permute.xlu0 %6874 }
  0xd0   : > { %14440 = vst [vmem:[#allocation17_spill] sm:$0xff] %v9647_v24  ;;  %7169 = vrot.lane.b32.xlu1 %v7168_v9, %s8876_s30  ;;  %v7193_v9 = vpack.i.bf16 %v5836_v44, %v5835_v60  ;;  %v7218_v60 = vpack.i.bf16 %v5846_v14, %v9411_v7  ;;  %v5856_v24 = vld [vmem:[%s8946_s24 + $0x211] sm:$0xff] }
  0xd1   : > { %7164 = vrot.lane.b32.xlu0 %v7163_v12, %s8876_s30  ;;  %v5841_v12 = vld [vmem:[%s8946_s24 + $0xe1] sm:$0xff] }
  0xd2   : > { %v9656_v10 = vpop.permute.xlu1 %6889  ;;  %v9683_v39 = vpack.i.bf16 %v5842_v43, %v5841_v12  ;;  %v5847_v43 = vld [vmem:[%s8946_s24 + $0x161] sm:$0xff] }
  0xd3   : > { %14442 = vst [vmem:[#allocation19_spill] sm:$0xff] %v9656_v10  ;;  %v9660_v50 = vpop.permute.xlu0 %6884  ;;  %v10001_v10 = vld [vmem:[%s8946_s24 + $0x290] sm:$0xff] }
  0xd4   : > { %14443 = vst [vmem:[#allocation16_spill] sm:$0xff] %v9660_v50  ;;  %7179 = vrot.lane.b32.xlu1 %v7178_v26, %s8876_s30 }
  0xd5   : > { %7174 = vrot.lane.b32.xlu0 %v7173_v16, %s8876_s30  ;;  %v5840_v16 = vld [vmem:[%s8946_s24 + $0xd1] sm:$0xff] }
  0xd6   : > { %v9665_v48 = vpop.permute.xlu1 %6899  ;;  %v9686_v15 = vpack.i.bf16 %v5840_v16, %v5839_v47  ;;  %v5848_v47 = vld [vmem:[%s8946_s24 + $0x171] sm:$0xff] }
  0xd7   : > { %14444 = vst [vmem:[#allocation21_spill] sm:$0xff] %v9665_v48  ;;  %v9669_v28 = vpop.permute.xlu0 %6894  ;;  %v9715_v14 = vpack.i.bf16 %v5848_v47, %v5847_v43  ;;  %v5858_v43 = vld [vmem:[%s8946_s24 + $0x231] sm:$0xff] }
  0xd8   : > { %14445 = vst [vmem:[#allocation25_spill] sm:$0xff] %v9669_v28  ;;  %7189 = vrot.lane.b32.xlu1 %v7188_v45, %s8877_s4  ;;  %v5843_v45 = vld [vmem:[%s8946_s24 + $0x101] sm:$0xff]  ;;  %v9995_v48 = vld [vmem:[%s8946_s24 + $0x2b0] sm:$0xff] }
  0xd9   : > { %7184 = vrot.lane.b32.xlu0 %v7183_v35, %s8877_s4  ;;  %v5844_v35 = vld [vmem:[%s8946_s24 + $0x111] sm:$0xff]  ;;  %v9978_v28 = vld [vmem:[%s8946_s24 + $0x220] sm:$0xff] }
  0xda   : > { %v9676_v26 = vpop.permute.xlu1 %6909  ;;  %v9700_v44 = vpack.i.bf16 %v5844_v35, %v5843_v45  ;;  %v5854_v45 = vld [vmem:[%s8946_s24 + $0x1d1] sm:$0xff] }
  0xdb   : > { %14446 = vst [vmem:[#allocation22_spill] sm:$0xff] %v9676_v26  ;;  %v9680_v27 = vpop.permute.xlu0 %6904  ;;  %v5855_v26 = vld [vmem:[%s8946_s24 + $0x201] sm:$0xff] }
  0xdc   : > { %14447 = vst [vmem:[#allocation20_spill] sm:$0xff] %v9680_v27  ;;  %7199 = vrot.lane.b32.xlu1 %v7198_v33, %s8877_s4  ;;  %v5849_v33 = vld [vmem:[%s8946_s24 + $0x181] sm:$0xff] }
  0xdd   : > { %7194 = vrot.lane.b32.xlu0 %v7193_v9, %s8877_s4  ;;  %v5850_v9 = vld [vmem:[%s8946_s24 + $0x191] sm:$0xff] }
  0xde   : > { %v9689_v40 = vpop.permute.xlu1 %6919  ;;  %v9711_v7 = vpack.i.bf16 %v5850_v9, %v5849_v33  ;;  %v5857_v9 = vld [vmem:[%s8946_s24 + $0x221] sm:$0xff] }
  0xdf   : > { %14448 = vst [vmem:[#allocation24_spill] sm:$0xff] %v9689_v40  ;;  %v9693_v59 = vpop.permute.xlu0 %6914  ;;  %v5852_v40 = vld [vmem:[%s8946_s24 + $0x1b1] sm:$0xff] }
  0xe0   : > { %14449 = vst [vmem:[#allocation26_spill] sm:$0xff] %v9693_v59  ;;  %7209 = vrot.lane.b32.xlu1 %v9683_v39, %s8877_s4  ;;  %v5851_v59 = vld [vmem:[%s8946_s24 + $0x1a1] sm:$0xff] }
  0xe1   : > { %7204 = vrot.lane.b32.xlu0 %v9686_v15, %s8877_s4  ;;  %v9729_v33 = vpack.i.bf16 %v5852_v40, %v5851_v59  ;;  %v9744_v40 = vpack.i.bf16 %v5856_v24, %v5855_v26  ;;  %v5862_v59 = vld [vmem:[%s8946_s24 + $0x271] sm:$0xff]  ;;  %v5865_v26 = vld [vmem:[%s8946_s24 + $0x42] sm:$0xff] }
  0xe2   : > { %v9704_v12 = vpop.permute.xlu1 %6929 }
  0xe3   : > { %14450 = vst [vmem:[#allocation23_spill] sm:$0xff] %v9704_v12  ;;  %v9708_v16 = vpop.permute.xlu0 %6924 }
  0xe4   : > { %14451 = vst [vmem:[#allocation27_spill] sm:$0xff] %v9708_v16  ;;  %7219 = vrot.lane.b32.xlu1 %v7218_v60, %s8877_s4  ;;  %v7238_v60 = vpack.i.bf16 %v5854_v45, %v9429_v5  ;;  %v9740_v5 = vpack.i.bf16 %v5858_v43, %v5857_v9  ;;  %v5866_v9 = vld [vmem:[%s8946_s24 + $0x52] sm:$0xff]  ;;  %v9970_v16 = vld [vmem:[%s8946_s24 + $0x240] sm:$0xff] }
  0xe5   : > { %7214 = vrot.lane.b32.xlu0 %v9700_v44, %s8877_s4  ;;  %v7268_v1 = vpack.i.bf16 %v5866_v9, %v5865_v26  ;;  %v5873_v9 = vld [vmem:[%s8946_s24 + $0xe2] sm:$0xff] }
  0xe6   : > { %v9718_v35 = vpop.permute.xlu1 %6939 }
  0xe7   : > { %14452 = vst [vmem:[#allocation40_spill] sm:$0xff] %v9718_v35  ;;  %v9722_v27 = vpop.permute.xlu0 %6934 }
  0xe8   : > { %14453 = vst [vmem:[#allocation41_spill] sm:$0xff] %v9722_v27  ;;  %7229 = vrot.lane.b32.xlu1 %v9711_v7, %s8877_s4  ;;  %v9960_v27 = vld [vmem:[%s8946_s24 + $0x1f0] sm:$0xff] }
  0xe9   : > { %7224 = vrot.lane.b32.xlu0 %v9715_v14, %s8877_s4 }
  0xea   : > { %v9733_v47 = vpop.permute.xlu1 %6949 }
  0xeb   : > { %14454 = vst [vmem:[#allocation42_spill] sm:$0xff] %v9733_v47  ;;  %v9737_v61 = vpop.permute.xlu0 %6944  ;;  %v5859_v47 = vld [vmem:[%s8946_s24 + $0x241] sm:$0xff] }
  0xec   : > { %14455 = vst [vmem:[#allocation43_spill] sm:$0xff] %v9737_v61  ;;  %7239 = vrot.lane.b32.xlu1 %v7238_v60, %s8877_s4  ;;  %v7258_v60 = vpack.i.bf16 %v5862_v59, %v9451_v21  ;;  %v9758_v24 = vpack.i.bf16 %v5860_v8, %v5859_v47  ;;  %v5864_v61 = vld [vmem:[%s8946_s24 + $0x32] sm:$0xff]  ;;  %v5867_v59 = vld [vmem:[%s8946_s24 + $0x62] sm:$0xff] }
  0xed   : > { %7234 = vrot.lane.b32.xlu0 %v9729_v33, %s8877_s4  ;;  %v5870_v8 = vld [vmem:[%s8946_s24 + $0x92] sm:$0xff]  ;;  %v7273_v26 = vpack.i.bf16 %v5868_v4, %v5867_v59 }
  0xee   : > { %v9747_v45 = vpop.permute.xlu1 %6959  ;;  %v5878_v4 = vld [vmem:[%s8946_s24 + $0x132] sm:$0xff] }
  0xef   : > { %14456 = vst [vmem:[#allocation44_spill] sm:$0xff] %v9747_v45  ;;  %v9751_v6 = vpop.permute.xlu0 %6954  ;;  %v5863_v45 = vld [vmem:[%s8946_s24 + $0x22] sm:$0xff]  ;;  %v5876_v59 = vld [vmem:[%s8946_s24 + $0x112] sm:$0xff] }
  0xf0   : > { %14457 = vst [vmem:[#allocation45_spill] sm:$0xff] %v9751_v6  ;;  %7249 = vrot.lane.b32.xlu1 %v9740_v5, %s8877_s4  ;;  %v7263_v21 = vpack.i.bf16 %v5864_v61, %v5863_v45  ;;  %v5874_v61 = vld [vmem:[%s8946_s24 + $0xf2] sm:$0xff] }
  0xf1   : > { %7244 = vrot.lane.b32.xlu0 %v9744_v40, %s8877_s4 }
  0xf2   : > { %v9762_v43 = vpop.permute.xlu1 %6969 }
  0xf3   : > { %14458 = vst [vmem:[#allocation46_spill] sm:$0xff] %v9762_v43  ;;  %v9766_v6 = vpop.permute.xlu0 %6964 }
  0xf4   : > { %14459 = vst [vmem:[#allocation47_spill] sm:$0xff] %v9766_v6  ;;  %7259 = vrot.lane.b32.xlu1 %v7258_v60, %s8877_s4  ;;  %v7278_v60 = vpack.i.bf16 %v5870_v8, %v9477_v34  ;;  %v9793_v34 = vpack.i.bf16 %v5872_v0, %v5871_v23  ;;  %v5875_v8 = vld [vmem:[%s8946_s24 + $0x102] sm:$0xff]  ;;  %v9954_v6 = vld [vmem:[%s8946_s24 + $0x210] sm:$0xff] }
  0xf5   : > { %7254 = vrot.lane.b32.xlu0 %v9758_v24, %s8877_s4  ;;  %v9807_v0 = vpack.i.bf16 %v5876_v59, %v5875_v8  ;;  %v5881_v23 = vld [vmem:[%s8946_s24 + $0x182] sm:$0xff]  ;;  %v5886_v8 = vld [vmem:[%s8946_s24 + $0x1d2] sm:$0xff] }
  0xf6   : > { %v9772_v47 = vpop.permute.xlu1 %6979 }
  0xf7   : > { %14460 = vst [vmem:[#allocation48_spill] sm:$0xff] %v9772_v47  ;;  %v9776_v58 = vpop.permute.xlu0 %6974  ;;  %v9937_v47 = vld [vmem:[%s8946_s24 + $0x180] sm:$0xff] }
  0xf8   : > { %14461 = vst [vmem:[#allocation49_spill] sm:$0xff] %v9776_v58  ;;  %7269 = vrot.lane.b32.xlu1 %v7268_v1, %s8878_s5  ;;  %v9790_v1 = vpack.i.bf16 %v5874_v61, %v5873_v9  ;;  %v5879_v61 = vld [vmem:[%s8946_s24 + $0x162] sm:$0xff] }
  0xf9   : > { %7264 = vrot.lane.b32.xlu0 %v7263_v21, %s8878_s5 }
  0xfa   : > { %v9783_v45 = vpop.permute.xlu1 %6989 }
  0xfb   : > { %14462 = vst [vmem:[#allocation50_spill] sm:$0xff] %v9783_v45  ;;  %v9787_v32 = vpop.permute.xlu0 %6984 }
  0xfc   : > { %14463 = vst [vmem:[#allocation51_spill] sm:$0xff] %v9787_v32  ;;  %7279 = vrot.lane.b32.xlu1 %v7278_v60, %s8878_s5  ;;  %v7298_v60 = vpack.i.bf16 %v5878_v4, %v9503_v51  ;;  %v5883_v32 = vld [vmem:[%s8946_s24 + $0x1a2] sm:$0xff] }
  0xfd   : > { %7274 = vrot.lane.b32.xlu0 %v7273_v26, %s8878_s5  ;;  %v5882_v26 = vld [vmem:[%s8946_s24 + $0x192] sm:$0xff] }
  0xfe   : > { %v9796_v21 = vpop.permute.xlu1 %6999  ;;  %v9818_v51 = vpack.i.bf16 %v5882_v26, %v5881_v23  ;;  %v5889_v23 = vld [vmem:[%s8946_s24 + $0x222] sm:$0xff]  ;;  %v5890_v26 = vld [vmem:[%s8946_s24 + $0x232] sm:$0xff] }
  0xff   : > { %14464 = vst [vmem:[#allocation52_spill] sm:$0xff] %v9796_v21  ;;  %v9800_v45 = vpop.permute.xlu0 %6994  ;;  %v5880_v21 = vld [vmem:[%s8946_s24 + $0x172] sm:$0xff] }
 0x100   : > { %14465 = vst [vmem:[#allocation53_spill] sm:$0xff] %v9800_v45  ;;  %7289 = vrot.lane.b32.xlu1 %v9790_v1, %s8878_s5  ;;  %v9822_v4 = vpack.i.bf16 %v5880_v21, %v5879_v61  ;;  %v9836_v21 = vpack.i.bf16 %v5884_v2, %v5883_v32  ;;  %v9851_v2 = vpack.i.bf16 %v5888_v36, %v5887_v11  ;;  %v5894_v32 = vld [vmem:[%s8946_s24 + $0x272] sm:$0xff]  ;;  %v9868_v11 = vld [vmem:[%s8946_s24 + $0xc0] sm:$0xff] }
 0x101   : > { %7284 = vrot.lane.b32.xlu0 %v9793_v34, %s8878_s5 }
 0x102   : > { %v9811_v9 = vpop.permute.xlu1 %7009 }
 0x103   : > { %14466 = vst [vmem:[#allocation54_spill] sm:$0xff] %v9811_v9  ;;  %v9815_v45 = vpop.permute.xlu0 %7004  ;;  %v9929_v9 = vld [vmem:[%s8946_s24 + $0x1a0] sm:$0xff] }
 0x104   : > { %14467 = vst [vmem:[#allocation55_spill] sm:$0xff] %v9815_v45  ;;  %7299 = vrot.lane.b32.xlu1 %v7298_v60, %s8878_s5  ;;  %v7318_v60 = vpack.i.bf16 %v5886_v8, %v9529_v63  ;;  %v9847_v63 = vpack.i.bf16 %v5890_v26, %v5889_v23  ;;  %v9871_v23 = vld [vmem:[%s8946_s24 + $0xd0] sm:$0xff] }
 0x105   : > { %7294 = vrot.lane.b32.xlu0 %v9807_v0, %s8878_s5 }
 0x106   : > { %v9825_v59 = vpop.permute.xlu1 %7019 }
 0x107   : > { %14468 = vst [vmem:[#allocation56_spill] sm:$0xff] %v9825_v59  ;;  %v9829_v62 = vpop.permute.xlu0 %7014  ;;  %v9919_v59 = vld [vmem:[%s8946_s24 + $0x150] sm:$0xff] }
 0x108   : > { %14469 = vst [vmem:[#allocation57_spill] sm:$0xff] %v9829_v62  ;;  %7309 = vrot.lane.b32.xlu1 %v9818_v51, %s8878_s5  ;;  %v5905_v62 = vld [vmem:[%s8946_s24 + $0x140] sm:$0xff] }
 0x109   : > { %7304 = vrot.lane.b32.xlu0 %v9822_v4, %s8878_s5  ;;  %v7363_v45 = vpack.i.bf16 %v9919_v59, %v5905_v62 }
 0x10a   : > { %v9840_v61 = vpop.permute.xlu1 %7029 }
 0x10b   : > { %14470 = vst [vmem:[#allocation58_spill] sm:$0xff] %v9840_v61  ;;  %v9844_v56 = vpop.permute.xlu0 %7024  ;;  %v5891_v61 = vld [vmem:[%s8946_s24 + $0x242] sm:$0xff] }
 0x10c   : > { %14471 = vst [vmem:[#allocation59_spill] sm:$0xff] %v9844_v56  ;;  %7319 = vrot.lane.b32.xlu1 %v7318_v60, %s8878_s5  ;;  %v7338_v60 = vpack.i.bf16 %v5894_v32, %v9555_v49  ;;  %v9865_v36 = vpack.i.bf16 %v5892_v42, %v5891_v61  ;;  %v7348_v49 = vpack.i.bf16 %v9871_v23, %v9868_v11  ;;  %v9888_v61 = vld [vmem:[%s8946_s24 + $0x100] sm:$0xff]  ;;  %v9891_v32 = vld [vmem:[%s8946_s24 + $0x110] sm:$0xff] }
 0x10d   : > { %7314 = vrot.lane.b32.xlu0 %v9836_v21, %s8878_s5 }
 0x10e   : > { %v9854_v8 = vpop.permute.xlu1 %7039 }
 0x10f   : > { %14472 = vst [vmem:[#allocation60_spill] sm:$0xff] %v9854_v8  ;;  %v9858_v25 = vpop.permute.xlu0 %7034  ;;  %v9877_v8 = vld [vmem:[%s8946_s24 + $0xb0] sm:$0xff] }
 0x110   : > { %14473 = vst [vmem:[#allocation61_spill] sm:$0xff] %v9858_v25  ;;  %7329 = vrot.lane.b32.xlu1 %v9847_v63, %s8878_s5  ;;  %v5897_v25 = vld [vmem:[%s8946_s24 + $0xa0] sm:$0xff] }
 0x111   : > { %7324 = vrot.lane.b32.xlu0 %v9851_v2, %s8878_s5  ;;  %v7343_v42 = vpack.i.bf16 %v9877_v8, %v5897_v25  ;;  %v7358_v25 = vpack.i.bf16 %v9891_v32, %v9888_v61 }
 0x112   : > { %v9873_v26 = vpop.permute.xlu1 %7049 }
 0x113   : > { %14474 = vst [vmem:[#allocation62_spill] sm:$0xff] %v9873_v26  ;;  %v9879_v56 = vpop.permute.xlu0 %7044  ;;  %v9913_v26 = vld [vmem:[%s8946_s24 + $0x170] sm:$0xff] }
 0x114   : > { %14475 = vst [vmem:[#allocation63_spill] sm:$0xff] %v9879_v56  ;;  %7339 = vrot.lane.b32.xlu1 %v7338_v60, %s8878_s5  ;;  %v9899_v60 = vld [vmem:[%s8946_s24 + $0xf0] sm:$0xff]  ;;  %v9910_v56 = vld [vmem:[%s8946_s24 + $0x160] sm:$0xff] }
 0x115   : > { %7334 = vrot.lane.b32.xlu0 %v9865_v36, %s8878_s5 }
 0x116   : > { %v9893_v22 = vpop.permute.xlu1 %7059 }
 0x117   : > { %14476 = vst [vmem:[#allocation64_spill] sm:$0xff] %v9893_v22  ;;  %v9901_v13 = vpop.permute.xlu0 %7054  ;;  %v7353_v22 = vpack.i.bf16 %v9899_v60, %v9896_v17 }
 0x118   : > { %14477 = vst [vmem:[#allocation65_spill] sm:$0xff] %v9901_v13  ;;  %7349 = vrot.lane.b32.xlu1 %v7348_v49, %s8879_s6 }
 0x119   : > { %7344 = vrot.lane.b32.xlu0 %v7343_v42, %s8879_s6  ;;  %v7368_v42 = vpack.i.bf16 %v9913_v26, %v9910_v56 }
 0x11a   : > { %v9915_v13 = vpop.permute.xlu1 %7069 }
 0x11b   : > { %14478 = vst [vmem:[#allocation66_spill] sm:$0xff] %v9915_v13  ;;  %v9921_v49 = vpop.permute.xlu0 %7064  ;;  %v9932_v13 = vld [vmem:[%s8946_s24 + $0x1b0] sm:$0xff] }
 0x11c   : > { %14479 = vst [vmem:[#allocation67_spill] sm:$0xff] %v9921_v49  ;;  %7359 = vrot.lane.b32.xlu1 %v7358_v25, %s8879_s6  ;;  %v9940_v49 = vld [vmem:[%s8946_s24 + $0x190] sm:$0xff] }
 0x11d   : > { %7354 = vrot.lane.b32.xlu0 %v7353_v22, %s8879_s6  ;;  %v7378_v22 = vpack.i.bf16 %v9932_v13, %v9929_v9  ;;  %v7373_v62 = vpack.i.bf16 %v9940_v49, %v9937_v47 }
 0x11e   : > { %v9934_v58 = vpop.permute.xlu1 %7079 }
 0x11f   : > { %14480 = vst [vmem:[#allocation68_spill] sm:$0xff] %v9934_v58  ;;  %v9942_v25 = vpop.permute.xlu0 %7074  ;;  %v9951_v58 = vld [vmem:[%s8946_s24 + $0x200] sm:$0xff] }
 0x120   : > { %14481 = vst [vmem:[#allocation69_spill] sm:$0xff] %v9942_v25  ;;  %7369 = vrot.lane.b32.xlu1 %v7368_v42, %s8879_s6  ;;  %v5913_v25 = vld [vmem:[%s8946_s24 + $0x1e0] sm:$0xff] }
 0x121   : > { %7364 = vrot.lane.b32.xlu0 %v7363_v45, %s8879_s6  ;;  %v7388_v45 = vpack.i.bf16 %v9954_v6, %v9951_v58  ;;  %v7383_v35 = vpack.i.bf16 %v9960_v27, %v5913_v25 }
 0x122   : > { %v9956_v43 = vpop.permute.xlu1 %7089 }
 0x123   : > { %14482 = vst [vmem:[#allocation70_spill] sm:$0xff] %v9956_v43  ;;  %v9962_v42 = vpop.permute.xlu0 %7084  ;;  %v9973_v43 = vld [vmem:[%s8946_s24 + $0x250] sm:$0xff] }
 0x124   : > { %14483 = vst [vmem:[#allocation71_spill] sm:$0xff] %v9962_v42  ;;  %7379 = vrot.lane.b32.xlu1 %v7378_v22, %s8879_s6  ;;  %v9981_v42 = vld [vmem:[%s8946_s24 + $0x230] sm:$0xff] }
 0x125   : > { %7374 = vrot.lane.b32.xlu0 %v7373_v62, %s8879_s6  ;;  %v7398_v62 = vpack.i.bf16 %v9973_v43, %v9970_v16  ;;  %v7393_v25 = vpack.i.bf16 %v9981_v42, %v9978_v28 }
 0x126   : > { %v9975_v12 = vpop.permute.xlu1 %7099 }
 0x127   : > { %14484 = vst [vmem:[#allocation72_spill] sm:$0xff] %v9975_v12  ;;  %v9983_v22 = vpop.permute.xlu0 %7094  ;;  %v9992_v12 = vld [vmem:[%s8946_s24 + $0x2a0] sm:$0xff] }
 0x128   : > { %14485 = vst [vmem:[#allocation73_spill] sm:$0xff] %v9983_v22  ;;  %7389 = vrot.lane.b32.xlu1 %v7388_v45, %s8879_s6  ;;  %v5921_v22 = vld [vmem:[%s8946_s24 + $0x280] sm:$0xff] }
 0x129   : > { %7384 = vrot.lane.b32.xlu0 %v7383_v35, %s8879_s6  ;;  %v7408_v35 = vpack.i.bf16 %v9995_v48, %v9992_v12  ;;  %v7403_v57 = vpack.i.bf16 %v10001_v10, %v5921_v22 }
 0x12a   : > { %v9997_v50 = vpop.permute.xlu1 %7109 }
 0x12b   : > { %14486 = vst [vmem:[#allocation74_spill] sm:$0xff] %v9997_v50  ;;  %v10003_v45 = vpop.permute.xlu0 %7104 }
 0x12c   : > { %14487 = vst [vmem:[#allocation75_spill] sm:$0xff] %v10003_v45  ;;  %7399 = vrot.lane.b32.xlu1 %v7398_v62, %s8879_s6  ;;  %v10022_v45 = vld [vmem:[%s8946_s24 + $0x2d0] sm:$0xff]  ;;  %v7418_v62 = vpack.i.bf16 %v10014_v20, %v10011_v46 }
 0x12d   : > { %7394 = vrot.lane.b32.xlu0 %v7393_v25, %s8879_s6  ;;  %v7413_v22 = vpack.i.bf16 %v10022_v45, %v10019_v18 }
 0x12e   : > { %v10016_v50 = vpop.permute.xlu1 %7119 }
 0x12f   : > { %14488 = vst [vmem:[#allocation76_spill] sm:$0xff] %v10016_v50  ;;  %v10024_v37 = vpop.permute.xlu0 %7114  ;;  %v5929_v50 = vld [vmem:[%s8946_s24 + $0xa1] sm:$0xff] }
 0x130   : > { %14489 = vst [vmem:[#allocation77_spill] sm:$0xff] %v10024_v37  ;;  %7409 = vrot.lane.b32.xlu1 %v7408_v35, %s8879_s6  ;;  %v7423_v35 = vpack.i.bf16 %v10036_v31, %v5929_v50 }
 0x131   : > { %7404 = vrot.lane.b32.xlu0 %v7403_v57, %s8879_s6 }
 0x132   : > { %v10032_v25 = vpop.permute.xlu1 %7129 }
 0x133   : > { %14490 = vst [vmem:[#allocation78_spill] sm:$0xff] %v10032_v25  ;;  %v10038_v53 = vpop.permute.xlu0 %7124 }
 0x134   : > { %14491 = vst [vmem:[#allocation79_spill] sm:$0xff] %v10038_v53  ;;  %7419 = vrot.lane.b32.xlu1 %v7418_v62, %s8879_s6  ;;  %v5937_v53 = vld [vmem:[%s8946_s24 + $0x141] sm:$0xff]  ;;  %v10054_v62 = vld [vmem:[%s8946_s24 + $0x151] sm:$0xff] }
 0x135   : > { %7414 = vrot.lane.b32.xlu0 %v7413_v22, %s8879_s6  ;;  %v7443_v50 = vpack.i.bf16 %v10054_v62, %v5937_v53 }
 0x136   : > { %v10043_v37 = vpop.permute.xlu1 %7139 }
 0x137   : > { %14492 = vst [vmem:[#allocation80_spill] sm:$0xff] %v10043_v37  ;;  %v10045_v57 = vpop.permute.xlu0 %7134  ;;  %v10137_v37 = vld [vmem:[%s8946_s24 + $0xb2] sm:$0xff] }
 0x138   : > { %14493 = vst [vmem:[#allocation81_spill] sm:$0xff] %v10045_v57  ;;  %7429 = vrot.lane.b32.xlu1 %v9686_v15, %s8880_s7 }
 0x139   : > { %7424 = vrot.lane.b32.xlu0 %v7423_v35, %s8880_s7 }
 0x13a   : > { %v10050_v25 = vpop.permute.xlu1 %7149 }
 0x13b   : > { %14494 = vst [vmem:[#allocation82_spill] sm:$0xff] %v10050_v25  ;;  %v10056_v22 = vpop.permute.xlu0 %7144 }
 0x13c   : > { %14495 = vst [vmem:[#allocation83_spill] sm:$0xff] %v10056_v22  ;;  %7439 = vrot.lane.b32.xlu1 %v9700_v44, %s8880_s7  ;;  %v5945_v44 = vld [vmem:[%s8946_s24 + $0x1e1] sm:$0xff]  ;;  %v10074_v22 = vld [vmem:[%s8946_s24 + $0x1f1] sm:$0xff] }
 0x13d   : > { %7434 = vrot.lane.b32.xlu0 %v9683_v39, %s8880_s7  ;;  %v7463_v53 = vpack.i.bf16 %v10074_v22, %v5945_v44  ;;  %v10100_v44 = vld [vmem:[%s8946_s24 + $0x291] sm:$0xff] }
 0x13e   : > { %v10063_v57 = vpop.permute.xlu1 %7159 }
 0x13f   : > { %14496 = vst [vmem:[#allocation84_spill] sm:$0xff] %v10063_v57  ;;  %v10065_v15 = vpop.permute.xlu0 %7154  ;;  %v5953_v57 = vld [vmem:[%s8946_s24 + $0x281] sm:$0xff] }
 0x140   : > { %14497 = vst [vmem:[#allocation85_spill] sm:$0xff] %v10065_v15  ;;  %7449 = vrot.lane.b32.xlu1 %v9715_v14, %s8880_s7  ;;  %v10091_v15 = vld [vmem:[%s8946_s24 + $0x2a1] sm:$0xff] }
 0x141   : > { %7444 = vrot.lane.b32.xlu0 %v7443_v50, %s8880_s7 }
 0x142   : > { %v10070_v35 = vpop.permute.xlu1 %7169 }
 0x143   : > { %14498 = vst [vmem:[#allocation86_spill] sm:$0xff] %v10070_v35  ;;  %v10076_v39 = vpop.permute.xlu0 %7164 }
 0x144   : > { %14499 = vst [vmem:[#allocation87_spill] sm:$0xff] %v10076_v39  ;;  %7459 = vrot.lane.b32.xlu1 %v9729_v33, %s8880_s7  ;;  %v10094_v33 = vld [vmem:[%s8946_s24 + $0x2b1] sm:$0xff] }
 0x145   : > { %7454 = vrot.lane.b32.xlu0 %v9711_v7, %s8880_s7  ;;  %v10123_v39 = vld [vmem:[%s8946_s24 + $0x2d1] sm:$0xff] }
 0x146   : > { %v10083_v14 = vpop.permute.xlu1 %7179 }
 0x147   : > { %14500 = vst [vmem:[#allocation88_spill] sm:$0xff] %v10083_v14  ;;  %v10085_v50 = vpop.permute.xlu0 %7174 }
 0x148   : > { %14501 = vst [vmem:[#allocation89_spill] sm:$0xff] %v10085_v50  ;;  %7469 = vrot.lane.b32.xlu1 %v9744_v40, %s8880_s7  ;;  %v7488_v40 = vpack.i.bf16 %v10094_v33, %v10091_v15  ;;  %v10112_v50 = vld [vmem:[%s8946_s24 + $0x2e1] sm:$0xff] }
 0x149   : > { %7464 = vrot.lane.b32.xlu0 %v7463_v53, %s8880_s7  ;;  %v7483_v53 = vpack.i.bf16 %v10100_v44, %v5953_v57 }
 0x14a   : > { %v10096_v7 = vpop.permute.xlu1 %7189 }
 0x14b   : > { %14502 = vst [vmem:[#allocation90_spill] sm:$0xff] %v10096_v7  ;;  %v10102_v25 = vpop.permute.xlu0 %7184  ;;  %v10115_v7 = vld [vmem:[%s8946_s24 + $0x2f1] sm:$0xff] }
 0x14c   : > { %14503 = vst [vmem:[#allocation91_spill] sm:$0xff] %v10102_v25  ;;  %7479 = vrot.lane.b32.xlu1 %v9758_v24, %s8880_s7  ;;  %v10120_v25 = vld [vmem:[%s8946_s24 + $0x2c1] sm:$0xff]  ;;  %v7498_v35 = vpack.i.bf16 %v10115_v7, %v10112_v50 }
 0x14d   : > { %7474 = vrot.lane.b32.xlu0 %v9740_v5, %s8880_s7  ;;  %v7493_v5 = vpack.i.bf16 %v10123_v39, %v10120_v25 }
 0x14e   : > { %v10117_v14 = vpop.permute.xlu1 %7199 }
 0x14f   : > { %14504 = vst [vmem:[#allocation92_spill] sm:$0xff] %v10117_v14  ;;  %v10125_v24 = vpop.permute.xlu0 %7194  ;;  %v5961_v14 = vld [vmem:[%s8946_s24 + $0xa2] sm:$0xff] }
 0x150   : > { %14505 = vst [vmem:[#allocation93_spill] sm:$0xff] %v10125_v24  ;;  %7489 = vrot.lane.b32.xlu1 %v7488_v40, %s8880_s7  ;;  %v7503_v40 = vpack.i.bf16 %v10137_v37, %v5961_v14 }
 0x151   : > { %7484 = vrot.lane.b32.xlu0 %v7483_v53, %s8880_s7 }
 0x152   : > { %v10133_v57 = vpop.permute.xlu1 %7209 }
 0x153   : > { %14506 = vst [vmem:[#allocation94_spill] sm:$0xff] %v10133_v57  ;;  %v10139_v52 = vpop.permute.xlu0 %7204 }
 0x154   : > { %14507 = vst [vmem:[#allocation95_spill] sm:$0xff] %v10139_v52  ;;  %7499 = vrot.lane.b32.xlu1 %v7498_v35, %s8880_s7  ;;  %v5969_v52 = vld [vmem:[%s8946_s24 + $0x142] sm:$0xff]  ;;  %v10155_v35 = vld [vmem:[%s8946_s24 + $0x152] sm:$0xff] }
 0x155   : > { %7494 = vrot.lane.b32.xlu0 %v7493_v5, %s8880_s7  ;;  %v7523_v14 = vpack.i.bf16 %v10155_v35, %v5969_v52 }
 0x156   : > { %v10144_v24 = vpop.permute.xlu1 %7219 }
 0x157   : > { %14508 = vst [vmem:[#allocation96_spill] sm:$0xff] %v10144_v24  ;;  %v10146_v53 = vpop.permute.xlu0 %7214 }
 0x158   : > { %14509 = vst [vmem:[#allocation97_spill] sm:$0xff] %v10146_v53  ;;  %7509 = vrot.lane.b32.xlu1 %v9793_v34, %s8881_s8 }
 0x159   : > { %7504 = vrot.lane.b32.xlu0 %v7503_v40, %s8881_s8 }
 0x15a   : > { %v10151_v57 = vpop.permute.xlu1 %7229 }
 0x15b   : > { %14510 = vst [vmem:[#allocation98_spill] sm:$0xff] %v10151_v57  ;;  %v10157_v5 = vpop.permute.xlu0 %7224 }
 0x15c   : > { %14511 = vst [vmem:[#allocation99_spill] sm:$0xff] %v10157_v5  ;;  %7519 = vrot.lane.b32.xlu1 %v9807_v0, %s8881_s8  ;;  %v5977_v0 = vld [vmem:[%s8946_s24 + $0x1e2] sm:$0xff]  ;;  %v10175_v5 = vld [vmem:[%s8946_s24 + $0x1f2] sm:$0xff] }
 0x15d   : > { %7514 = vrot.lane.b32.xlu0 %v9790_v1, %s8881_s8  ;;  %v7543_v52 = vpack.i.bf16 %v10175_v5, %v5977_v0  ;;  %v10201_v0 = vld [vmem:[%s8946_s24 + $0x292] sm:$0xff] }
 0x15e   : > { %v10164_v53 = vpop.permute.xlu1 %7239 }
 0x15f   : > { %14512 = vst [vmem:[#allocation100_spill] sm:$0xff] %v10164_v53  ;;  %v10166_v34 = vpop.permute.xlu0 %7234  ;;  %v5985_v53 = vld [vmem:[%s8946_s24 + $0x282] sm:$0xff] }
 0x160   : > { %14513 = vst [vmem:[#allocation101_spill] sm:$0xff] %v10166_v34  ;;  %7529 = vrot.lane.b32.xlu1 %v9822_v4, %s8881_s8  ;;  %v10192_v34 = vld [vmem:[%s8946_s24 + $0x2a2] sm:$0xff] }
 0x161   : > { %7524 = vrot.lane.b32.xlu0 %v7523_v14, %s8881_s8 }
 0x162   : > { %v10171_v40 = vpop.permute.xlu1 %7249 }
 0x163   : > { %14514 = vst [vmem:[#allocation102_spill] sm:$0xff] %v10171_v40  ;;  %v10177_v1 = vpop.permute.xlu0 %7244 }
 0x164   : > { %14515 = vst [vmem:[#allocation103_spill] sm:$0xff] %v10177_v1  ;;  %7539 = vrot.lane.b32.xlu1 %v9836_v21, %s8881_s8  ;;  %v10195_v21 = vld [vmem:[%s8946_s24 + $0x2b2] sm:$0xff] }
 0x165   : > { %7534 = vrot.lane.b32.xlu0 %v9818_v51, %s8881_s8 }
 0x166   : > { %v10184_v4 = vpop.permute.xlu1 %7259 }
 0x167   : > { %14516 = vst [vmem:[#allocation104_spill] sm:$0xff] %v10184_v4  ;;  %v10186_v14 = vpop.permute.xlu0 %7254 }
 0x168   : > { %14517 = vst [vmem:[#allocation105_spill] sm:$0xff] %v10186_v14  ;;  %7549 = vrot.lane.b32.xlu1 %v9851_v2, %s8881_s8  ;;  %v7568_v2 = vpack.i.bf16 %v10195_v21, %v10192_v34  ;;  %v10213_v14 = vld [vmem:[%s8946_s24 + $0x2e2] sm:$0xff] }
 0x169   : > { %7544 = vrot.lane.b32.xlu0 %v7543_v52, %s8881_s8  ;;  %v7563_v52 = vpack.i.bf16 %v10201_v0, %v5985_v53  ;;  %14520 = vst [vmem:[#allocation108_spill] sm:$0xff] %v10213_v14 }
 0x16a   : > { %v10197_v51 = vpop.permute.xlu1 %7269 }
 0x16b   : > { %14518 = vst [vmem:[#allocation106_spill] sm:$0xff] %v10197_v51  ;;  %v10203_v57 = vpop.permute.xlu0 %7264  ;;  %v10216_v51 = vld [vmem:[%s8946_s24 + $0x2f2] sm:$0xff] }
 0x16c   : > { %14519 = vst [vmem:[#allocation107_spill] sm:$0xff] %v10203_v57  ;;  %7559 = vrot.lane.b32.xlu1 %v9865_v36, %s8881_s8  ;;  %v10221_v57 = vld [vmem:[%s8946_s24 + $0x2c2] sm:$0xff]  ;;  %v10224_v36 = vld [vmem:[%s8946_s24 + $0x2d2] sm:$0xff] }
 0x16d   : > { %7554 = vrot.lane.b32.xlu0 %v9847_v63, %s8881_s8  ;;  %v7578_v63 = vpack.i.bf16 %v10216_v51, %v10213_v14  ;;  %v7573_v53 = vpack.i.bf16 %v10224_v36, %v10221_v57  ;;  %v10250_v14 = vld [vmem:[%s8946_s24 + $0xd2] sm:$0xff] }
 0x16e   : > { %v10218_v4 = vpop.permute.xlu1 %7279 }
 0x16f   : > { %14521 = vst [vmem:[#allocation109_spill] sm:$0xff] %v10218_v4  ;;  %v10226_v1 = vpop.permute.xlu0 %7274 }
 0x170   : > { %14522 = vst [vmem:[#allocation110_spill] sm:$0xff] %v10226_v1  ;;  %7569 = vrot.lane.b32.xlu1 %v7568_v2, %s8881_s8  ;;  %v7588_v1 = vpack.i.bf16 %v9896_v17, %v9871_v23  ;;  %v7583_v2 = vpack.i.bf16 %v9868_v11, %v9877_v8  ;;  %v7593_v11 = vpack.i.bf16 %v9888_v61, %v9899_v60  ;;  %v10284_v60 = vld [vmem:[%s8946_s24 + $0x1c0] sm:$0xff] }
 0x171   : > { %7564 = vrot.lane.b32.xlu0 %v7563_v52, %s8881_s8  ;;  %v10245_v52 = vld [vmem:[%s8946_s24 + $0x120] sm:$0xff]  ;;  %v7603_v61 = vpack.i.bf16 %v9910_v56, %v9919_v59  ;;  %v7618_v56 = vpack.i.bf16 %v10284_v60, %v9932_v13  ;;  %v7628_v13 = vpack.i.bf16 %v9978_v28, %v9954_v6 }
 0x172   : > { %v10234_v40 = vpop.permute.xlu1 %7289  ;;  %v7598_v8 = vpack.i.bf16 %v10245_v52, %v9891_v32  ;;  %v7608_v32 = vpack.i.bf16 %v9937_v47, %v9913_v26  ;;  %v7613_v47 = vpack.i.bf16 %v9929_v9, %v9940_v49  ;;  %v10307_v26 = vld [vmem:[%s8946_s24 + $0x1b2] sm:$0xff]  ;;  %v7623_v9 = vpack.i.bf16 %v9951_v58, %v9960_v27  ;;  %v10323_v49 = vld [vmem:[%s8946_s24 + $0x260] sm:$0xff] }
 0x173   : > { %14523 = vst [vmem:[#allocation111_spill] sm:$0xff] %v10234_v40  ;;  %v10236_v4 = vpop.permute.xlu0 %7284  ;;  %v10253_v40 = vld [vmem:[%s8946_s24 + $0xc2] sm:$0xff]  ;;  %14533 = vst [vmem:[#allocation121_spill] sm:$0xff] %v10307_v26  ;;  %v7638_v6 = vpack.i.bf16 %v10323_v49, %v9973_v43  ;;  %v7633_v58 = vpack.i.bf16 %v9970_v16, %v9981_v42  ;;  %v10346_v27 = vld [vmem:[%s8946_s24 + $0x252] sm:$0xff]  ;;  %v7648_v43 = vpack.i.bf16 %v10019_v18, %v9995_v48 }
 0x174   : > { %14524 = vst [vmem:[#allocation112_spill] sm:$0xff] %v10236_v4  ;;  %7579 = vrot.lane.b32.xlu1 %v7578_v63, %s8881_s8  ;;  %v10268_v63 = vld [vmem:[%s8946_s24 + $0x112] sm:$0xff]  ;;  %v7643_v16 = vpack.i.bf16 %v9992_v12, %v10001_v10  ;;  %v10362_v42 = vld [vmem:[%s8946_s24 + $0x300] sm:$0xff]  ;;  %v7653_v18 = vpack.i.bf16 %v10011_v46, %v10022_v45 }
 0x175   : > { %7574 = vrot.lane.b32.xlu0 %v7573_v53, %s8881_s8  ;;  %14526 = vst [vmem:[#allocation114_spill] sm:$0xff] %v10268_v63  ;;  %v10271_v53 = vld [vmem:[%s8946_s24 + $0x102] sm:$0xff]  ;;  %v6029_v10 = vld [vmem:[%s8946_s24 + $0xd1] sm:$0xff] }
 0x176   : > { %v10247_v24 = vpop.permute.xlu1 %7299  ;;  %14527 = vst [vmem:[#allocation115_spill] sm:$0xff] %v10271_v53  ;;  %v6030_v48 = vld [vmem:[%s8946_s24 + $0xe1] sm:$0xff]  ;;  %v6031_v45 = vld [vmem:[%s8946_s24 + $0xf1] sm:$0xff] }
 0x177   : > { %v10255_v4 = vpop.permute.xlu0 %7294 }
 0x178   : > { %7589 = vrot.lane.b32.xlu1 %v7588_v1, %s8882_s9 }
 0x179   : > { %7584 = vrot.lane.b32.xlu0 %v7583_v2, %s8882_s9 }
 0x17a   : > { %v10265_v23 = vpop.permute.xlu1 %7309 }
 0x17b   : > { %14525 = vst [vmem:[#allocation113_spill] sm:$0xff] %v10265_v23  ;;  %v10273_v17 = vpop.permute.xlu0 %7304  ;;  %v10292_v23 = vld [vmem:[%s8946_s24 + $0x162] sm:$0xff] }
 0x17c   : > { %14528 = vst [vmem:[#allocation116_spill] sm:$0xff] %v10273_v17  ;;  %7599 = vrot.lane.b32.xlu1 %v7598_v8, %s8882_s9  ;;  %v10289_v17 = vld [vmem:[%s8946_s24 + $0x172] sm:$0xff]  ;;  %14531 = vst [vmem:[#allocation119_spill] sm:$0xff] %v10292_v23 }
 0x17d   : > { %7594 = vrot.lane.b32.xlu0 %v7593_v11, %s8882_s9  ;;  %14530 = vst [vmem:[#allocation118_spill] sm:$0xff] %v10289_v17  ;;  %v10310_v11 = vld [vmem:[%s8946_s24 + $0x1a2] sm:$0xff]  ;;  %v10328_v8 = vld [vmem:[%s8946_s24 + $0x212] sm:$0xff] }
 0x17e   : > { %v10286_v2 = vpop.permute.xlu1 %7319  ;;  %14534 = vst [vmem:[#allocation122_spill] sm:$0xff] %v10310_v11 }
 0x17f   : > { %14529 = vst [vmem:[#allocation117_spill] sm:$0xff] %v10286_v2  ;;  %v10294_v1 = vpop.permute.xlu0 %7314  ;;  %v10331_v2 = vld [vmem:[%s8946_s24 + $0x202] sm:$0xff] }
 0x180   : > { %14532 = vst [vmem:[#allocation120_spill] sm:$0xff] %v10294_v1  ;;  %7609 = vrot.lane.b32.xlu1 %v7608_v32, %s8882_s9 }
 0x181   : > { %7604 = vrot.lane.b32.xlu0 %v7603_v61, %s8882_s9 }
 0x182   : > { %v10304_v59 = vpop.permute.xlu1 %7329 }
 0x183   : > { %v10312_v1 = vpop.permute.xlu0 %7324 }
 0x184   : > { %7619 = vrot.lane.b32.xlu1 %v7618_v56, %s8882_s9 }
 0x185   : > { %7614 = vrot.lane.b32.xlu0 %v7613_v47, %s8882_s9  ;;  %v10349_v47 = vld [vmem:[%s8946_s24 + $0x242] sm:$0xff] }
 0x186   : > { %v10325_v61 = vpop.permute.xlu1 %7339  ;;  %14538 = vst [vmem:[#allocation126_spill] sm:$0xff] %v10349_v47 }
 0x187   : > { %14535 = vst [vmem:[#allocation123_spill] sm:$0xff] %v10325_v61  ;;  %v10333_v32 = vpop.permute.xlu0 %7334 }
 0x188   : > { %14536 = vst [vmem:[#allocation124_spill] sm:$0xff] %v10333_v32  ;;  %7629 = vrot.lane.b32.xlu1 %v7628_v13, %s8882_s9 }
 0x189   : > { %7624 = vrot.lane.b32.xlu0 %v7623_v9, %s8882_s9 }
 0x18a   : > { %v10343_v28 = vpop.permute.xlu1 %7349 }
 0x18b   : > { %14537 = vst [vmem:[#allocation125_spill] sm:$0xff] %v10343_v28  ;;  %v10351_v32 = vpop.permute.xlu0 %7344 }
 0x18c   : > { %14539 = vst [vmem:[#allocation127_spill] sm:$0xff] %v10351_v32  ;;  %7639 = vrot.lane.b32.xlu1 %v7638_v6, %s8882_s9  ;;  %v7658_v6 = vpack.i.bf16 %v10362_v42, %v10014_v20 }
 0x18d   : > { %7634 = vrot.lane.b32.xlu0 %v7633_v58, %s8882_s9  ;;  %v6028_v58 = vld [vmem:[%s8946_s24 + $0xc1] sm:$0xff] }
 0x18e   : > { %v10364_v9 = vpop.permute.xlu1 %7359  ;;  %v7663_v20 = vpack.i.bf16 %v6028_v58, %v10036_v31  ;;  %v6037_v31 = vld [vmem:[%s8946_s24 + $0x171] sm:$0xff]  ;;  %v6036_v58 = vld [vmem:[%s8946_s24 + $0x161] sm:$0xff] }
 0x18f   : > { %14540 = vst [vmem:[#allocation128_spill] sm:$0xff] %v10364_v9  ;;  %v10366_v56 = vpop.permute.xlu0 %7354  ;;  %v6032_v9 = vld [vmem:[%s8946_s24 + $0x101] sm:$0xff] }
 0x190   : > { %14541 = vst [vmem:[#allocation129_spill] sm:$0xff] %v10366_v56  ;;  %7649 = vrot.lane.b32.xlu1 %v7648_v43, %s8882_s9  ;;  %v7668_v43 = vpack.i.bf16 %v6030_v48, %v6029_v10  ;;  %v6034_v56 = vld [vmem:[%s8946_s24 + $0x121] sm:$0xff] }
 0x191   : > { %7644 = vrot.lane.b32.xlu0 %v7643_v16, %s8882_s9  ;;  %v6033_v16 = vld [vmem:[%s8946_s24 + $0x111] sm:$0xff]  ;;  %v6038_v10 = vld [vmem:[%s8946_s24 + $0x181] sm:$0xff] }
 0x192   : > { %v10376_v12 = vpop.permute.xlu1 %7369 }
 0x193   : > { %14542 = vst [vmem:[#allocation130_spill] sm:$0xff] %v10376_v12  ;;  %v10379_v13 = vpop.permute.xlu0 %7364 }
 0x194   : > { %14543 = vst [vmem:[#allocation131_spill] sm:$0xff] %v10379_v13  ;;  %7659 = vrot.lane.b32.xlu1 %v7658_v6, %s8882_s9  ;;  %v7678_v6 = vpack.i.bf16 %v6034_v56, %v6033_v16  ;;  %v7683_v56 = vpack.i.bf16 %v6036_v58, %v10054_v62  ;;  %v6039_v16 = vld [vmem:[%s8946_s24 + $0x191] sm:$0xff]  ;;  %v6046_v62 = vld [vmem:[%s8946_s24 + $0x221] sm:$0xff] }
 0x195   : > { %7654 = vrot.lane.b32.xlu0 %v7653_v18, %s8882_s9  ;;  %v7673_v18 = vpack.i.bf16 %v6032_v9, %v6031_v45  ;;  %v6040_v45 = vld [vmem:[%s8946_s24 + $0x1a1] sm:$0xff] }
 0x196   : > { %v10386_v46 = vpop.permute.xlu1 %7379  ;;  %v6044_v58 = vld [vmem:[%s8946_s24 + $0x201] sm:$0xff] }
 0x197   : > { %14544 = vst [vmem:[#allocation132_spill] sm:$0xff] %v10386_v46  ;;  %v10390_v32 = vpop.permute.xlu0 %7374  ;;  %v8792_v46 = vld [vmem:[%s8946_s24 + $0x1f0] sm:$0xff]  ;;  %v14572_v13 = vld [vmem:[#allocation11_spill] sm:$0xff] }
 0x198   : > { %14545 = vst [vmem:[#allocation133_spill] sm:$0xff] %v10390_v32  ;;  %7669 = vrot.lane.b32.xlu1 %v7668_v43, %s8883_s10  ;;  %v7688_v32 = vpack.i.bf16 %v6038_v10, %v6037_v31  ;;  %v6041_v43 = vld [vmem:[%s8946_s24 + $0x1b1] sm:$0xff]  ;;  %v6816_v12 = vunpack.i.l.bf16 %v14572_v13 }
 0x199   : > { %7664 = vrot.lane.b32.xlu0 %v7663_v20, %s8883_s10  ;;  %v6042_v20 = vld [vmem:[%s8946_s24 + $0x1c1] sm:$0xff]  ;;  %v6045_v31 = vld [vmem:[%s8946_s24 + $0x211] sm:$0xff] }
 0x19a   : > { %v10396_v48 = vpop.permute.xlu1 %7389 }
 0x19b   : > { %14546 = vst [vmem:[#allocation134_spill] sm:$0xff] %v10396_v48  ;;  %v10399_v28 = vpop.permute.xlu0 %7384 }
 0x19c   : > { %14547 = vst [vmem:[#allocation135_spill] sm:$0xff] %v10399_v28  ;;  %7679 = vrot.lane.b32.xlu1 %v7678_v6, %s8883_s10  ;;  %v7698_v6 = vpack.i.bf16 %v6042_v20, %v6041_v43  ;;  %v7708_v28 = vpack.i.bf16 %v6046_v62, %v6045_v31  ;;  %v6050_v43 = vld [vmem:[%s8946_s24 + $0x261] sm:$0xff] }
 0x19d   : > { %7674 = vrot.lane.b32.xlu0 %v7673_v18, %s8883_s10  ;;  %v7693_v18 = vpack.i.bf16 %v6040_v45, %v6039_v16  ;;  %v6048_v16 = vld [vmem:[%s8946_s24 + $0x241] sm:$0xff] }
 0x19e   : > { %v10406_v9 = vpop.permute.xlu1 %7399 }
 0x19f   : > { %14548 = vst [vmem:[#allocation136_spill] sm:$0xff] %v10406_v9  ;;  %v10410_v48 = vpop.permute.xlu0 %7394 }
 0x1a0   : > { %14549 = vst [vmem:[#allocation137_spill] sm:$0xff] %v10410_v48  ;;  %7689 = vrot.lane.b32.xlu1 %v7688_v32, %s8883_s10  ;;  %v7703_v32 = vpack.i.bf16 %v6044_v58, %v10074_v22  ;;  %v6049_v48 = vld [vmem:[%s8946_s24 + $0x251] sm:$0xff]  ;;  %v7728_v22 = vpack.i.bf16 %v10120_v25, %v10094_v33  ;;  %v7733_v25 = vpack.i.bf16 %v10112_v50, %v10123_v39  ;;  %v10455_v33 = vld [vmem:[%s8946_s24 + $0xe2] sm:$0xff]  ;;  %v6731_v39 = vunpack.i.l.bf16 %v9467_v29 }
 0x1a1   : > { %7684 = vrot.lane.b32.xlu0 %v7683_v56, %s8883_s10  ;;  %v6047_v56 = vld [vmem:[%s8946_s24 + $0x231] sm:$0xff] }
 0x1a2   : > { %v10416_v10 = vpop.permute.xlu1 %7409 }
 0x1a3   : > { %14550 = vst [vmem:[#allocation138_spill] sm:$0xff] %v10416_v10  ;;  %v10419_v9 = vpop.permute.xlu0 %7404  ;;  %v7718_v10 = vpack.i.bf16 %v6050_v43, %v6049_v48  ;;  %v6058_v48 = vld [vmem:[%s8946_s24 + $0x301] sm:$0xff] }
 0x1a4   : > { %14551 = vst [vmem:[#allocation139_spill] sm:$0xff] %v10419_v9  ;;  %7699 = vrot.lane.b32.xlu1 %v7698_v6, %s8883_s10  ;;  %v7713_v6 = vpack.i.bf16 %v6048_v16, %v6047_v56  ;;  %v10468_v43 = vld [vmem:[%s8946_s24 + $0x122] sm:$0xff]  ;;  %v10474_v56 = vld [vmem:[%s8946_s24 + $0xf2] sm:$0xff]  ;;  %v6732_v16 = vunpack.i.h.bf16 %v9467_v29  ;;  %v6736_v29 = vunpack.i.l.bf16 %v9481_v41 }
 0x1a5   : > { %7694 = vrot.lane.b32.xlu0 %v7693_v18, %s8883_s10 }
 0x1a6   : > { %v10426_v20 = vpop.permute.xlu1 %7419 }
 0x1a7   : > { %14552 = vst [vmem:[#allocation140_spill] sm:$0xff] %v10426_v20  ;;  %v10430_v45 = vpop.permute.xlu0 %7414  ;;  %v8788_v20 = vld [vmem:[%s8946_s24 + $0xe0] sm:$0xff] }
 0x1a8   : > { %14553 = vst [vmem:[#allocation141_spill] sm:$0xff] %v10430_v45  ;;  %7709 = vrot.lane.b32.xlu1 %v7708_v28, %s8883_s10  ;;  %v7723_v28 = vpack.i.bf16 %v10091_v15, %v10100_v44  ;;  %v7748_v44 = vpack.i.bf16 %v10455_v33, %v10250_v14  ;;  %v6767_v45 = vunpack.i.h.bf16 %v9521_v55 }
 0x1a9   : > { %7704 = vrot.lane.b32.xlu0 %v7703_v32, %s8883_s10  ;;  %v7738_v32 = vpack.i.bf16 %v6058_v48, %v10115_v7  ;;  %v7743_v7 = vpack.i.bf16 %v10253_v40, %v10137_v37  ;;  %v7758_v37 = vpack.i.bf16 %v10468_v43, %v10268_v63  ;;  %v207_v48 = vld [vmem:[%s8946_s24 + $0xa0] sm:$0xff] }
 0x1aa   : > { %v10434_v31 = vpop.permute.xlu1 %7429 }
 0x1ab   : > { %14554 = vst [vmem:[#allocation142_spill] sm:$0xff] %v10434_v31  ;;  %v10436_v18 = vpop.permute.xlu0 %7424  ;;  %v6772_v31 = vunpack.i.h.bf16 %v9519_v54 }
 0x1ac   : > { %14555 = vst [vmem:[#allocation143_spill] sm:$0xff] %v10436_v18  ;;  %7719 = vrot.lane.b32.xlu1 %v7718_v10, %s8883_s10  ;;  %v6737_v18 = vunpack.i.h.bf16 %v9481_v41 }
 0x1ad   : > { %7714 = vrot.lane.b32.xlu0 %v7713_v6, %s8883_s10 }
 0x1ae   : > { %v10445_v62 = vpop.permute.xlu1 %7439 }
 0x1af   : > { %14556 = vst [vmem:[#allocation144_spill] sm:$0xff] %v10445_v62  ;;  %v10447_v58 = vpop.permute.xlu0 %7434  ;;  %v7753_v62 = vpack.i.bf16 %v10271_v53, %v10474_v56 }
 0x1b0   : > { %14557 = vst [vmem:[#allocation145_spill] sm:$0xff] %v10447_v58  ;;  %7729 = vrot.lane.b32.xlu1 %v7728_v22, %s8883_s10  ;;  %v6727_v22 = vunpack.i.h.bf16 %v9469_v30  ;;  %v8783_v58 = vld [vmem:[%s8946_s24 + $0xc0] sm:$0xff] }
 0x1b1   : > { %7724 = vrot.lane.b32.xlu0 %v7723_v28, %s8883_s10  ;;  %v6726_v28 = vunpack.i.l.bf16 %v9469_v30  ;;  %v10492_v30 = vld [vmem:[%s8946_s24 + $0x182] sm:$0xff] }
 0x1b2   : > { %v10457_v10 = vpop.permute.xlu1 %7449  ;;  %14562 = vst [vmem:[#allocation150_spill] sm:$0xff] %v10492_v30 }
 0x1b3   : > { %14558 = vst [vmem:[#allocation146_spill] sm:$0xff] %v10457_v10  ;;  %v10459_v15 = vpop.permute.xlu0 %7444  ;;  %v8786_v10 = vld [vmem:[%s8946_s24 + $0x100] sm:$0xff] }
 0x1b4   : > { %14559 = vst [vmem:[#allocation147_spill] sm:$0xff] %v10459_v15  ;;  %7739 = vrot.lane.b32.xlu1 %v7738_v32, %s8883_s10  ;;  %v6742_v32 = vunpack.i.h.bf16 %v9479_v38 }
 0x1b5   : > { %7734 = vrot.lane.b32.xlu0 %v7733_v25, %s8883_s10  ;;  %v6741_v25 = vunpack.i.l.bf16 %v9479_v38  ;;  %v6771_v38 = vunpack.i.l.bf16 %v9519_v54  ;;  %v10513_v54 = vsel %vm3001_vm0, %v207_v48, %v6726_v28  ;;  %v8787_v28 = vld [vmem:[%s8946_s24 + $0x110] sm:$0xff] }
 0x1b6   : > { %v10471_v50 = vpop.permute.xlu1 %7459  ;;  %v3017_v48 = vsel %vm3001_vm0, %v8787_v28, %v6742_v32  ;;  %v8791_v32 = vld [vmem:[%s8946_s24 + $0x210] sm:$0xff] }
 0x1b7   : > { %14560 = vst [vmem:[#allocation148_spill] sm:$0xff] %v10471_v50  ;;  %v10477_v6 = vpop.permute.xlu0 %7454  ;;  %v3029_v28 = vsel %vm3001_vm0, %v8791_v32, %v6772_v31  ;;  %v8794_v31 = vld [vmem:[%s8946_s24 + $0x250] sm:$0xff]  ;;  %v14569_v32 = vld [vmem:[#allocation2_spill] sm:$0xff] }
 0x1b8   : > { %14561 = vst [vmem:[#allocation149_spill] sm:$0xff] %v10477_v6  ;;  %7749 = vrot.lane.b32.xlu1 %v7748_v44, %s8884_s11  ;;  %v10496_v44 = vsel %vm3001_vm0, %v8783_v58, %v6731_v39  ;;  %v6766_v58 = vunpack.i.l.bf16 %v9521_v55  ;;  %v6781_v39 = vunpack.i.l.bf16 %v9531_v3  ;;  %v7768_v55 = vpack.i.bf16 %v10492_v30, %v10289_v17  ;;  %v8793_v17 = vld [vmem:[%s8946_s24 + $0x240] sm:$0xff] }
 0x1b9   : > { %7744 = vrot.lane.b32.xlu0 %v7743_v7, %s8884_s11  ;;  %v8784_v7 = vld [vmem:[%s8946_s24 + $0xd0] sm:$0xff] }
 0x1ba   : > { %v10501_v6 = vpop.permute.xlu1 %7469  ;;  %v10505_v50 = vsel %vm3001_vm0, %v8784_v7, %v6732_v16  ;;  %v223_v16 = vld [vmem:[%s8946_s24 + $0x1e0] sm:$0xff]  ;;  %v6782_v7 = vunpack.i.h.bf16 %v9531_v3  ;;  %v7763_v3 = vpack.i.bf16 %v10292_v23, %v10155_v35  ;;  %v3027_v23 = vsel %vm3001_vm0, %v8792_v46, %v6767_v45  ;;  %v14570_v45 = vld [vmem:[#allocation3_spill] sm:$0xff] }
 0x1bb   : > { %14563 = vst [vmem:[#allocation151_spill] sm:$0xff] %v10501_v6  ;;  %v10510_v41 = vpop.permute.xlu0 %7464  ;;  %v8785_v6 = vld [vmem:[%s8946_s24 + $0xb0] sm:$0xff]  ;;  %v3026_v35 = vsel %vm3001_vm0, %v223_v16, %v6766_v58  ;;  %v6811_v58 = vunpack.i.l.bf16 %v14569_v32  ;;  %v6807_v16 = vunpack.i.h.bf16 %v14570_v45 }
 0x1bc   : > { %14564 = vst [vmem:[#allocation152_spill] sm:$0xff] %v10510_v41  ;;  %v3011_v15 = vsel %vm3001_vm0, %v8785_v6, %v6727_v22  ;;  %7759 = vrot.lane.b32.xlu1 %v7758_v37, %s8884_s11  ;;  %v3016_v41 = vsel %vm3001_vm0, %v8786_v10, %v6741_v25  ;;  %v3014_v6 = vsel %vm3001_vm0, %v8788_v20, %v6736_v29  ;;  %v10532_v22 = vld [vmem:[%s8946_s24 + $0x1c2] sm:$0xff]  ;;  %v8789_v37 = vld [vmem:[%s8946_s24 + $0xf0] sm:$0xff]  ;;  %v6776_v20 = vunpack.i.l.bf16 %v9533_v19 }
 0x1bd   : > { %7754 = vrot.lane.b32.xlu0 %v7753_v62, %s8884_s11  ;;  %14565 = vst [vmem:[#allocation153_spill] sm:$0xff] %v10532_v22  ;;  %v3015_v10 = vsel %vm3001_vm0, %v8789_v37, %v6737_v18  ;;  %v8790_v25 = vld [vmem:[%s8946_s24 + $0x200] sm:$0xff]  ;;  %v10544_v62 = vld [vmem:[%s8946_s24 + $0x192] sm:$0xff]  ;;  %v3032_v18 = vsel %vm3001_vm0, %v8793_v17, %v6781_v39  ;;  %v7778_v46 = vpack.i.bf16 %v10532_v22, %v10307_v26  ;;  %v6806_v17 = vunpack.i.l.bf16 %v14570_v45 }
 0x1be   : > { %v3028_v9 = vsel %vm3001_vm0, %v8790_v25, %v6771_v38  ;;  %v10541_v29 = vpop.permute.xlu1 %7479  ;;  %14567 = vst [vmem:[#allocation155_spill] sm:$0xff] %v10544_v62  ;;  %v6777_v38 = vunpack.i.h.bf16 %v9533_v19  ;;  %v3033_v25 = vsel %vm3001_vm0, %v8794_v31, %v6782_v7  ;;  %v14571_v19 = vld [vmem:[#allocation7_spill] sm:$0xff]  ;;  %v7773_v7 = vpack.i.bf16 %v10310_v11, %v10544_v62  ;;  %v8796_v45 = vld [vmem:[%s8946_s24 + $0x230] sm:$0xff] }
 0x1bf   : > { %14566 = vst [vmem:[#allocation154_spill] sm:$0xff] %v10541_v29  ;;  %v10552_v37 = vpop.permute.xlu0 %7474  ;;  %v6812_v29 = vunpack.i.h.bf16 %v14569_v32  ;;  %v6821_v39 = vunpack.i.l.bf16 %v14571_v19  ;;  %v10568_v31 = vld [vmem:[%s8946_s24 + $0x222] sm:$0xff]  ;;  %v6817_v26 = vunpack.i.h.bf16 %v14572_v13  ;;  %v14575_v62 = vld [vmem:[#allocation12_spill] sm:$0xff] }
 0x1c0   : > { %14568 = vst [vmem:[#allocation156_spill] sm:$0xff] %v10552_v37  ;;  %7769 = vrot.lane.b32.xlu1 %v7768_v55, %s8884_s11  ;;  %v8795_v37 = vld [vmem:[%s8946_s24 + $0x220] sm:$0xff]  ;;  %v6822_v55 = vunpack.i.h.bf16 %v14571_v19  ;;  %v3031_v53 = vsel %vm3001_vm0, %v8796_v45, %v6777_v38  ;;  %v6846_v30 = vunpack.i.l.bf16 %v14575_v62  ;;  %v7788_v38 = vpack.i.bf16 %v10568_v31, %v10328_v8 }
 0x1c1   : > { %7764 = vrot.lane.b32.xlu0 %v7763_v3, %s8884_s11  ;;  %v3030_v32 = vsel %vm3001_vm0, %v8795_v37, %v6776_v20  ;;  %v14574_v3 = vld [vmem:[#allocation10_spill] sm:$0xff]  ;;  %v3045_v20 = vsel %vm3034_vm1, %v10496_v44, %v6811_v58  ;;  %v3046_v13 = vsel %vm3034_vm1, %v10505_v50, %v6812_v29  ;;  %v6847_v37 = vunpack.i.h.bf16 %v14575_v62 }
 0x1c2   : > { %v10575_v22 = vpop.permute.xlu1 %7489  ;;  %v6852_v63 = vunpack.i.h.bf16 %v14574_v3  ;;  %v6851_v11 = vunpack.i.l.bf16 %v14574_v3  ;;  %v3043_v19 = vsel %vm3034_vm1, %v10513_v54, %v6806_v17  ;;  %v3044_v45 = vsel %vm3034_vm1, %v3011_v15, %v6807_v16  ;;  %v10600_v44 = vld [vmem:[%s8946_s24 + $0x262] sm:$0xff]  ;;  %v10609_v15 = vld [vmem:[%s8946_s24 + $0x232] sm:$0xff] }
 0x1c3   : > { %14573 = vst [vmem:[#allocation2_spill] sm:$0xff] %v10575_v22  ;;  %v10582_v61 = vpop.permute.xlu0 %7484  ;;  %v3049_v3 = vsel %vm3034_vm1, %v3016_v41, %v6821_v39  ;;  %v7783_v50 = vpack.i.bf16 %v10331_v2, %v10175_v5  ;;  %v3050_v29 = vsel %vm3034_vm1, %v3017_v48, %v6822_v55  ;;  %v3047_v62 = vsel %vm3034_vm1, %v3014_v6, %v6816_v12  ;;  %v14580_v48 = vld [vmem:[#allocation14_spill] sm:$0xff]  ;;  %v14583_v55 = vld [vmem:[#allocation21_spill] sm:$0xff] }
 0x1c4   : > { %14576 = vst [vmem:[#allocation3_spill] sm:$0xff] %v10582_v61  ;;  %7779 = vrot.lane.b32.xlu1 %v7778_v46, %s8884_s11  ;;  %v3048_v58 = vsel %vm3034_vm1, %v3015_v10, %v6817_v26  ;;  %v14577_v46 = vld [vmem:[#allocation9_spill] sm:$0xff]  ;;  %v3061_v41 = vsel %vm3034_vm1, %v3028_v9, %v6851_v11  ;;  %v3062_v16 = vsel %vm3034_vm1, %v3029_v28, %v6852_v63  ;;  %v6857_v26 = vunpack.i.h.bf16 %v14580_v48  ;;  %v14581_v11 = vld [vmem:[#allocation19_spill] sm:$0xff] }
 0x1c5   : > { %7774 = vrot.lane.b32.xlu0 %v7773_v7, %s8884_s11  ;;  %v6861_v61 = vunpack.i.l.bf16 %v14577_v46  ;;  %v3059_v5 = vsel %vm3034_vm1, %v3026_v35, %v6846_v30  ;;  %v6862_v17 = vunpack.i.h.bf16 %v14577_v46  ;;  %v3060_v12 = vsel %vm3034_vm1, %v3027_v23, %v6847_v37  ;;  %v14582_v30 = vld [vmem:[#allocation16_spill] sm:$0xff] }
 0x1c6   : > { %v10606_v54 = vpop.permute.xlu1 %7499  ;;  %v6856_v6 = vunpack.i.l.bf16 %v14580_v48  ;;  %v7798_v10 = vpack.i.bf16 %v10600_v44, %v10346_v27  ;;  %v6892_v9 = vunpack.i.h.bf16 %v14581_v11  ;;  %v6891_v63 = vunpack.i.l.bf16 %v14581_v11  ;;  %v14585_v11 = vld [vmem:[#allocation25_spill] sm:$0xff] }
 0x1c7   : > { %14578 = vst [vmem:[#allocation7_spill] sm:$0xff] %v10606_v54  ;;  %v10615_v39 = vpop.permute.xlu0 %7494  ;;  %v6886_v28 = vunpack.i.l.bf16 %v14582_v30  ;;  %v7793_v23 = vpack.i.bf16 %v10349_v47, %v10609_v15  ;;  %v3065_v35 = vsel %vm3034_vm1, %v3032_v18, %v6861_v61  ;;  %v6887_v7 = vunpack.i.h.bf16 %v14582_v30  ;;  %v14586_v54 = vld [vmem:[#allocation23_spill] sm:$0xff] }
 0x1c8   : > { %14579 = vst [vmem:[#allocation11_spill] sm:$0xff] %v10615_v39  ;;  %7789 = vrot.lane.b32.xlu1 %v7788_v38, %s8884_s11  ;;  %v6902_v37 = vunpack.i.h.bf16 %v14583_v55  ;;  %v6901_v38 = vunpack.i.l.bf16 %v14583_v55  ;;  %v3066_v48 = vsel %vm3034_vm1, %v3033_v25, %v6862_v17  ;;  %v6897_v39 = vunpack.i.h.bf16 %v14585_v11 }
 0x1c9   : > { %7784 = vrot.lane.b32.xlu0 %v7783_v50, %s8884_s11  ;;  %v6896_v50 = vunpack.i.l.bf16 %v14585_v11  ;;  %v6931_v22 = vunpack.i.l.bf16 %v14586_v54  ;;  %v3063_v61 = vsel %vm3034_vm1, %v3030_v32, %v6856_v6  ;;  %v3064_v18 = vsel %vm3034_vm1, %v3031_v53, %v6857_v26  ;;  %v10654_v53 = vld [vmem:[%s8946_s24 + $0x302] sm:$0xff] }
 0x1ca   : > { %v10633_v46 = vpop.permute.xlu1 %7509  ;;  %v6932_v30 = vunpack.i.h.bf16 %v14586_v54  ;;  %v7808_v25 = vpack.i.bf16 %v10221_v57, %v10195_v21  ;;  %v3078_v17 = vsel %vm3067_vm2, %v3045_v20, %v6891_v63  ;;  %v3079_v55 = vsel %vm3067_vm2, %v3046_v13, %v6892_v9  ;;  %v14588_v57 = vld [vmem:[#allocation27_spill] sm:$0xff] }
 0x1cb   : > { %14584 = vst [vmem:[#allocation10_spill] sm:$0xff] %v10633_v46  ;;  %v10639_v47 = vpop.permute.xlu0 %7504  ;;  %v3076_v11 = vsel %vm3067_vm2, %v3043_v19, %v6886_v28  ;;  %v7803_v32 = vpack.i.bf16 %v10192_v34, %v10201_v0  ;;  %v3077_v54 = vsel %vm3067_vm2, %v3044_v45, %v6887_v7  ;;  %v3082_v26 = vsel %vm3067_vm2, %v3049_v3, %v6901_v38  ;;  %v6096_v7 = vld [vmem:[%s8946_s24 + $0xf0] sm:$0xff] }
 0x1cc   : > { %14587 = vst [vmem:[#allocation12_spill] sm:$0xff] %v10639_v47  ;;  %7799 = vrot.lane.b32.xlu1 %v7798_v10, %s8884_s11  ;;  %v3083_v6 = vsel %vm3067_vm2, %v3050_v29, %v6902_v37  ;;  %v6926_v21 = vunpack.i.l.bf16 %v14588_v57  ;;  %v3080_v13 = vsel %vm3067_vm2, %v3047_v62, %v6896_v50  ;;  %v3081_v19 = vsel %vm3067_vm2, %v3048_v58, %v6897_v39  ;;  %v14591_v29 = vld [vmem:[#allocation40_spill] sm:$0xff]  ;;  %v14593_v39 = vld [vmem:[#allocation46_spill] sm:$0xff]  ;;  %v14595_v50 = vld [vmem:[#allocation47_spill] sm:$0xff] }
 0x1cd   : > { %7794 = vrot.lane.b32.xlu0 %v7793_v23, %s8884_s11  ;;  %v10665_v34 = vsel %vm3067_vm2, %v3061_v41, %v6931_v22  ;;  %v6927_v0 = vunpack.i.h.bf16 %v14588_v57  ;;  %v10671_v3 = vsel %vm3067_vm2, %v3062_v16, %v6932_v30  ;;  %v6942_v10 = vunpack.i.h.bf16 %v14591_v29  ;;  %v14592_v22 = vld [vmem:[#allocation41_spill] sm:$0xff]  ;;  %v14594_v16 = vld [vmem:[#allocation108_spill] sm:$0xff]  ;;  %v6095_v23 = vld [vmem:[%s8946_s24 + $0xe0] sm:$0xff] }
 0x1ce   : > { %v10660_v20 = vpop.permute.xlu1 %7519  ;;  %v6941_v9 = vunpack.i.l.bf16 %v14591_v29  ;;  %v7818_v62 = vpack.i.bf16 %v10654_v53, %v10216_v51  ;;  %v6937_v58 = vunpack.i.h.bf16 %v14592_v22  ;;  %v6936_v41 = vunpack.i.l.bf16 %v14592_v22  ;;  %v6093_v57 = vld [vmem:[%s8946_s24 + $0xc0] sm:$0xff]  ;;  %v6094_v29 = vld [vmem:[%s8946_s24 + $0xd0] sm:$0xff] }
 0x1cf   : > { %14589 = vst [vmem:[#allocation9_spill] sm:$0xff] %v10660_v20  ;;  %v10668_v45 = vpop.permute.xlu0 %7514  ;;  %v6971_v63 = vunpack.i.l.bf16 %v14593_v39  ;;  %v7813_v28 = vpack.i.bf16 %v14594_v16, %v10224_v36  ;;  %v3092_v37 = vsel %vm3067_vm2, %v3059_v5, %v6926_v21  ;;  %v6972_v38 = vunpack.i.h.bf16 %v14593_v39  ;;  %v14597_v16 = vld [vmem:[#allocation49_spill] sm:$0xff] }
 0x1d0   : > { %14590 = vst [vmem:[#allocation14_spill] sm:$0xff] %v10668_v45  ;;  %7809 = vrot.lane.b32.xlu1 %v7808_v25, %s8884_s11  ;;  %v6967_v30 = vunpack.i.h.bf16 %v14595_v50  ;;  %v6966_v51 = vunpack.i.l.bf16 %v14595_v50  ;;  %v3093_v22 = vsel %vm3067_vm2, %v3060_v12, %v6927_v0  ;;  %v6976_v45 = vunpack.i.l.bf16 %v14597_v16 }
 0x1d1   : > { %7804 = vrot.lane.b32.xlu0 %v7803_v32, %s8884_s11  ;;  %v14596_v32 = vld [vmem:[#allocation48_spill] sm:$0xff]  ;;  %v3098_v21 = vsel %vm3067_vm2, %v3065_v35, %v6941_v9  ;;  %v3099_v39 = vsel %vm3067_vm2, %v3066_v48, %v6942_v10  ;;  %v6977_v50 = vunpack.i.h.bf16 %v14597_v16  ;;  %v7828_v12 = vpack.i.bf16 %v6096_v7, %v6095_v23  ;;  %v14598_v16 = vld [vmem:[#allocation54_spill] sm:$0xff] }
 0x1d2   : > { %v10690_v25 = vpop.permute.xlu1 %7529  ;;  %v6982_v20 = vunpack.i.h.bf16 %v14596_v32  ;;  %v6981_v36 = vunpack.i.l.bf16 %v14596_v32  ;;  %v3096_v0 = vsel %vm3067_vm2, %v3063_v61, %v6936_v41  ;;  %v3097_v46 = vsel %vm3067_vm2, %v3064_v18, %v6937_v58  ;;  %v6100_v35 = vld [vmem:[%s8946_s24 + $0x130] sm:$0xff]  ;;  %v6097_v61 = vld [vmem:[%s8946_s24 + $0x100] sm:$0xff] }
 0x1d3   : > { %v10698_v5 = vpop.permute.xlu0 %7524  ;;  %v3111_v32 = vsel %vm3100_vm3, %v3078_v17, %v6971_v63  ;;  %v7823_v47 = vpack.i.bf16 %v6094_v29, %v6093_v57  ;;  %v3112_v48 = vsel %vm3100_vm3, %v3079_v55, %v6972_v38  ;;  %v3109_v10 = vsel %vm3100_vm3, %v3076_v11, %v6966_v51  ;;  %v6098_v41 = vld [vmem:[%s8946_s24 + $0x110] sm:$0xff]  ;;  %v14600_v63 = vld [vmem:[#allocation55_spill] sm:$0xff] }
 0x1d4   : > { %7819 = vrot.lane.b32.xlu1 %v7818_v62, %s8884_s11  ;;  %v3110_v9 = vsel %vm3100_vm3, %v3077_v54, %v6967_v30  ;;  %v7011_v62 = vunpack.i.l.bf16 %v14598_v16  ;;  %v3115_v18 = vsel %vm3100_vm3, %v3082_v26, %v6981_v36  ;;  %v3116_v17 = vsel %vm3100_vm3, %v3083_v6, %v6982_v20  ;;  %v14601_v6 = vld [vmem:[#allocation56_spill] sm:$0xff]  ;;  %v6103_v30 = vld [vmem:[%s8946_s24 + $0x180] sm:$0xff] }
 0x1d5   : > { %7814 = vrot.lane.b32.xlu0 %v7813_v28, %s8884_s11  ;;  %v10720_v58 = vsel %vm3100_vm3, %v3080_v13, %v6976_v45  ;;  %v7012_v55 = vunpack.i.h.bf16 %v14598_v16  ;;  %v10726_v54 = vsel %vm3100_vm3, %v3081_v19, %v6977_v50  ;;  %v7007_v28 = vunpack.i.h.bf16 %v14600_v63  ;;  %v14602_v45 = vld [vmem:[#allocation57_spill] sm:$0xff]  ;;  %v6104_v51 = vld [vmem:[%s8946_s24 + $0x190] sm:$0xff]  ;;  %v14603_v36 = vld [vmem:[#allocation62_spill] sm:$0xff] }
 0x1d6   : > { %v10713_v23 = vpop.permute.xlu1 %7539  ;;  %v7006_v7 = vunpack.i.l.bf16 %v14600_v63  ;;  %v7838_v26 = vpack.i.bf16 %v6100_v35, %v10245_v52  ;;  %v7022_v20 = vunpack.i.h.bf16 %v14601_v6  ;;  %v7021_v13 = vunpack.i.l.bf16 %v14601_v6  ;;  %v6101_v35 = vld [vmem:[%s8946_s24 + $0x160] sm:$0xff]  ;;  %v6102_v16 = vld [vmem:[%s8946_s24 + $0x170] sm:$0xff] }
 0x1d7   : > { %v10723_v11 = vpop.permute.xlu0 %7534  ;;  %v7016_v38 = vunpack.i.l.bf16 %v14602_v45  ;;  %v7833_v19 = vpack.i.bf16 %v6098_v41, %v6097_v61  ;;  %v3127_v57 = vsel %vm3100_vm3, %v10665_v34, %v7011_v62  ;;  %v7017_v29 = vunpack.i.h.bf16 %v14602_v45  ;;  %v14605_v61 = vld [vmem:[#allocation63_spill] sm:$0xff]  ;;  %v14606_v6 = vld [vmem:[#allocation64_spill] sm:$0xff] }
 0x1d8   : > { %14599 = vst [vmem:[#allocation19_spill] sm:$0xff] %v10723_v11  ;;  %7829 = vrot.lane.b32.xlu1 %v7828_v12, %s8885_s19  ;;  %v7052_v50 = vunpack.i.h.bf16 %v14603_v36  ;;  %v7051_v52 = vunpack.i.l.bf16 %v14603_v36  ;;  %v7047_v41 = vunpack.i.h.bf16 %v14605_v61  ;;  %v7046_v63 = vunpack.i.l.bf16 %v14605_v61 }
 0x1d9   : > { %7824 = vrot.lane.b32.xlu0 %v7823_v47, %s8885_s19  ;;  %v3128_v47 = vsel %vm3100_vm3, %v10671_v3, %v7012_v55  ;;  %v7061_v34 = vunpack.i.l.bf16 %v14606_v6  ;;  %v3125_v45 = vsel %vm3100_vm3, %v3092_v37, %v7006_v7  ;;  %v3126_v36 = vsel %vm3100_vm3, %v3093_v22, %v7007_v28  ;;  %v6108_v37 = vld [vmem:[%s8946_s24 + $0x1d0] sm:$0xff] }
 0x1da   : > { %v10743_v12 = vpop.permute.xlu1 %7549  ;;  %v10758_v11 = vpack.i.bf16 %v6104_v51, %v6103_v30  ;;  %v3131_v3 = vsel %vm3100_vm3, %v3098_v21, %v7021_v13  ;;  %v3132_v55 = vsel %vm3100_vm3, %v3099_v39, %v7022_v20  ;;  %v3129_v61 = vsel %vm3100_vm3, %v3096_v0, %v7016_v38  ;;  %v6105_v21 = vld [vmem:[%s8946_s24 + $0x1a0] sm:$0xff]  ;;  %v6106_v39 = vld [vmem:[%s8946_s24 + $0x1b0] sm:$0xff] }
 0x1db   : > { %14604 = vst [vmem:[#allocation16_spill] sm:$0xff] %v10743_v12  ;;  %v10752_v62 = vpop.permute.xlu0 %7544  ;;  %v7062_v12 = vunpack.i.h.bf16 %v14606_v6  ;;  %v3130_v22 = vsel %vm3100_vm3, %v3097_v46, %v7017_v29  ;;  %v3144_v28 = vsel %vm3133_vm4, %v3111_v32, %v7051_v52  ;;  %v3145_v7 = vsel %vm3133_vm4, %v3112_v48, %v7052_v50  ;;  %v14612_v38 = vld [vmem:[#allocation70_spill] sm:$0xff]  ;;  %v14614_v52 = vld [vmem:[#allocation72_spill] sm:$0xff]  ;;  %v14615_v6 = vld [vmem:[#allocation73_spill] sm:$0xff] }
 0x1dc   : > { %14607 = vst [vmem:[#allocation21_spill] sm:$0xff] %v10752_v62  ;;  %7839 = vrot.lane.b32.xlu1 %v7838_v26, %s8885_s19  ;;  %14608 = vst [vmem:[#allocation25_spill] sm:$0xff] %v10758_v11  ;;  %v10764_v62 = vpack.i.bf16 %v6102_v16, %v6101_v35  ;;  %v14609_v26 = vld [vmem:[#allocation65_spill] sm:$0xff]  ;;  %v3142_v0 = vsel %vm3133_vm4, %v3109_v10, %v7046_v63  ;;  %v3143_v20 = vsel %vm3133_vm4, %v3110_v9, %v7047_v41  ;;  %v14613_v9 = vld [vmem:[#allocation71_spill] sm:$0xff] }
 0x1dd   : > { %7834 = vrot.lane.b32.xlu0 %v7833_v19, %s8885_s19  ;;  %v7056_v30 = vunpack.i.l.bf16 %v14609_v26  ;;  %v10778_v13 = vsel %vm3133_vm4, %v3115_v18, %v7061_v34  ;;  %v7057_v46 = vunpack.i.h.bf16 %v14609_v26  ;;  %v10784_v48 = vsel %vm3133_vm4, %v3116_v17, %v7062_v12  ;;  %v6111_v12 = vld [vmem:[%s8946_s24 + $0x220] sm:$0xff]  ;;  %v6112_v16 = vld [vmem:[%s8946_s24 + $0x230] sm:$0xff] }
 0x1de   : > { %v10771_v51 = vpop.permute.xlu1 %7559  ;;  %v7092_v19 = vunpack.i.h.bf16 %v14612_v38  ;;  %v7091_v29 = vunpack.i.l.bf16 %v14612_v38  ;;  %v7858_v10 = vpack.i.bf16 %v6108_v37, %v10284_v60  ;;  %v7087_v18 = vunpack.i.h.bf16 %v14613_v9  ;;  %v6109_v26 = vld [vmem:[%s8946_s24 + $0x200] sm:$0xff]  ;;  %v6110_v38 = vld [vmem:[%s8946_s24 + $0x210] sm:$0xff] }
 0x1df   : > { %14610 = vst [vmem:[#allocation23_spill] sm:$0xff] %v10771_v51  ;;  %v10781_v32 = vpop.permute.xlu0 %7554  ;;  %v7086_v50 = vunpack.i.l.bf16 %v14613_v9  ;;  %v7101_v35 = vunpack.i.l.bf16 %v14614_v52  ;;  %v10796_v17 = vpack.i.bf16 %v6106_v39, %v6105_v21  ;;  %v3146_v41 = vsel %vm3133_vm4, %v10720_v58, %v7056_v30  ;;  %v14617_v39 = vld [vmem:[#allocation78_spill] sm:$0xff] }
 0x1e0   : > { %14611 = vst [vmem:[#allocation27_spill] sm:$0xff] %v10781_v32  ;;  %7849 = vrot.lane.b32.xlu1 %v10758_v11, %s8885_s19  ;;  %v7102_v63 = vunpack.i.h.bf16 %v14614_v52  ;;  %v7097_v60 = vunpack.i.h.bf16 %v14615_v6  ;;  %v7096_v34 = vunpack.i.l.bf16 %v14615_v6  ;;  %v3147_v21 = vsel %vm3133_vm4, %v10726_v54, %v7057_v46  ;;  %v14618_v32 = vld [vmem:[#allocation79_spill] sm:$0xff] }
 0x1e1   : > { %7844 = vrot.lane.b32.xlu0 %v10764_v62, %s8885_s19  ;;  %v7132_v9 = vunpack.i.h.bf16 %v14617_v39  ;;  %v7131_v51 = vunpack.i.l.bf16 %v14617_v39  ;;  %v7126_v58 = vunpack.i.l.bf16 %v14618_v32  ;;  %v3160_v52 = vsel %vm3133_vm4, %v3127_v57, %v7091_v29 }
 0x1e2   : > { %v10805_v37 = vpop.permute.xlu1 %7569  ;;  %v3161_v6 = vsel %vm3133_vm4, %v3128_v47, %v7092_v19  ;;  %v7127_v11 = vunpack.i.h.bf16 %v14618_v32  ;;  %v3158_v54 = vsel %vm3133_vm4, %v3125_v45, %v7086_v50  ;;  %v3159_v46 = vsel %vm3133_vm4, %v3126_v36, %v7087_v18  ;;  %v6116_v47 = vld [vmem:[%s8946_s24 + $0x270] sm:$0xff]  ;;  %v6113_v36 = vld [vmem:[%s8946_s24 + $0x240] sm:$0xff] }
 0x1e3   : > { %14616 = vst [vmem:[#allocation40_spill] sm:$0xff] %v10805_v37  ;;  %v10814_v30 = vpop.permute.xlu0 %7564  ;;  %v10820_v37 = vpack.i.bf16 %v6112_v16, %v6111_v12  ;;  %v3164_v39 = vsel %vm3133_vm4, %v3131_v3, %v7101_v35  ;;  %v10827_v57 = vpack.i.bf16 %v6110_v38, %v6109_v26  ;;  %v3165_v19 = vsel %vm3133_vm4, %v3132_v55, %v7102_v63  ;;  %v6114_v18 = vld [vmem:[%s8946_s24 + $0x250] sm:$0xff]  ;;  %v14625_v16 = vld [vmem:[#allocation81_spill] sm:$0xff] }
 0x1e4   : > { %14619 = vst [vmem:[#allocation41_spill] sm:$0xff] %v10814_v30  ;;  %7859 = vrot.lane.b32.xlu1 %v7858_v10, %s8885_s19  ;;  %v3162_v32 = vsel %vm3133_vm4, %v3129_v61, %v7096_v34  ;;  %v3163_v29 = vsel %vm3133_vm4, %v3130_v22, %v7097_v60  ;;  %v14622_v10 = vld [vmem:[#allocation80_spill] sm:$0xff]  ;;  %v3177_v3 = vsel %vm3166_vm5, %v3144_v28, %v7131_v51  ;;  %v7137_v63 = vunpack.i.h.bf16 %v14625_v16  ;;  %v14627_v34 = vld [vmem:[#allocation87_spill] sm:$0xff] }
 0x1e5   : > { %14620 = vst [vmem:[#allocation46_spill] sm:$0xff] %v10820_v37  ;;  %7854 = vrot.lane.b32.xlu0 %v10796_v17, %s8885_s19  ;;  %14621 = vst [vmem:[#allocation108_spill] sm:$0xff] %v10827_v57  ;;  %v7141_v12 = vunpack.i.l.bf16 %v14622_v10  ;;  %v3178_v50 = vsel %vm3166_vm5, %v3145_v7, %v7132_v9  ;;  %v3175_v35 = vsel %vm3166_vm5, %v3142_v0, %v7126_v58  ;;  %v7142_v55 = vunpack.i.h.bf16 %v14622_v10  ;;  %v14626_v7 = vld [vmem:[#allocation86_spill] sm:$0xff]  ;;  %v6120_v38 = vld [vmem:[%s8946_s24 + $0x2d0] sm:$0xff] }
 0x1e6   : > { %v10834_v45 = vpop.permute.xlu1 %7579  ;;  %v10845_v22 = vsel %vm3166_vm5, %v3143_v20, %v7127_v11  ;;  %v7136_v60 = vunpack.i.l.bf16 %v14625_v16  ;;  %v7878_v28 = vpack.i.bf16 %v6116_v47, %v10323_v49  ;;  %v7172_v51 = vunpack.i.h.bf16 %v14626_v7  ;;  %v6119_v20 = vld [vmem:[%s8946_s24 + $0x2c0] sm:$0xff]  ;;  %v14628_v10 = vld [vmem:[#allocation88_spill] sm:$0xff] }
 0x1e7   : > { %14623 = vst [vmem:[#allocation47_spill] sm:$0xff] %v10834_v45  ;;  %v10842_v61 = vpop.permute.xlu0 %7574  ;;  %v7171_v0 = vunpack.i.l.bf16 %v14626_v7  ;;  %v7166_v26 = vunpack.i.l.bf16 %v14627_v34  ;;  %v10857_v11 = vpack.i.bf16 %v6114_v18, %v6113_v36  ;;  %v3181_v9 = vsel %vm3166_vm5, %v10778_v13, %v7141_v12  ;;  %v6117_v7 = vld [vmem:[%s8946_s24 + $0x2a0] sm:$0xff]  ;;  %v14630_v18 = vld [vmem:[#allocation89_spill] sm:$0xff] }
 0x1e8   : > { %14624 = vst [vmem:[#allocation48_spill] sm:$0xff] %v10842_v61  ;;  %7869 = vrot.lane.b32.xlu1 %v10820_v37, %s8885_s19  ;;  %v7167_v58 = vunpack.i.h.bf16 %v14627_v34  ;;  %v7182_v49 = vunpack.i.h.bf16 %v14628_v10  ;;  %v7181_v47 = vunpack.i.l.bf16 %v14628_v10  ;;  %v6118_v37 = vld [vmem:[%s8946_s24 + $0x2b0] sm:$0xff]  ;;  %v3182_v36 = vsel %vm3166_vm5, %v10784_v48, %v7142_v55 }
 0x1e9   : > { %7864 = vrot.lane.b32.xlu0 %v10827_v57, %s8885_s19  ;;  %v7177_v61 = vunpack.i.h.bf16 %v14630_v18  ;;  %v7176_v45 = vunpack.i.l.bf16 %v14630_v18  ;;  %v14631_v57 = vld [vmem:[#allocation94_spill] sm:$0xff]  ;;  %v3179_v34 = vsel %vm3166_vm5, %v3146_v41, %v7136_v60  ;;  %v3180_v10 = vsel %vm3166_vm5, %v3147_v21, %v7137_v63  ;;  %v6124_v60 = vld [vmem:[%s8946_s24 + $0x310] sm:$0xff] }
 0x1ea   : > { %v10866_v16 = vpop.permute.xlu1 %7589  ;;  %v7211_v13 = vunpack.i.l.bf16 %v14631_v57  ;;  %v10881_v30 = vpack.i.bf16 %v6120_v38, %v6119_v20  ;;  %v3193_v48 = vsel %vm3166_vm5, %v3160_v52, %v7171_v0  ;;  %v3194_v55 = vsel %vm3166_vm5, %v3161_v6, %v7172_v51  ;;  %v6121_v52 = vld [vmem:[%s8946_s24 + $0x2e0] sm:$0xff]  ;;  %v6122_v6 = vld [vmem:[%s8946_s24 + $0x2f0] sm:$0xff] }
 0x1eb   : > { %14629 = vst [vmem:[#allocation49_spill] sm:$0xff] %v10866_v16  ;;  %v10875_v12 = vpop.permute.xlu0 %7584  ;;  %v7212_v16 = vunpack.i.h.bf16 %v14631_v57  ;;  %v3191_v18 = vsel %vm3166_vm5, %v3158_v54, %v7166_v26  ;;  %v10888_v41 = vpack.i.bf16 %v6118_v37, %v6117_v7  ;;  %v3192_v21 = vsel %vm3166_vm5, %v3159_v46, %v7167_v58  ;;  %v14641_v7 = vld [vmem:[#allocation103_spill] sm:$0xff] }
 0x1ec   : > { %14632 = vst [vmem:[#allocation54_spill] sm:$0xff] %v10875_v12  ;;  %7879 = vrot.lane.b32.xlu1 %v7878_v28, %s8885_s19  ;;  %14633 = vst [vmem:[#allocation55_spill] sm:$0xff] %v10881_v30  ;;  %v3197_v57 = vsel %vm3166_vm5, %v3164_v39, %v7181_v47  ;;  %v3198_v63 = vsel %vm3166_vm5, %v3165_v19, %v7182_v49  ;;  %v14634_v28 = vld [vmem:[#allocation95_spill] sm:$0xff]  ;;  %v3195_v54 = vsel %vm3166_vm5, %v3162_v32, %v7176_v45  ;;  %v14637_v19 = vld [vmem:[#allocation96_spill] sm:$0xff] }
 0x1ed   : > { %7874 = vrot.lane.b32.xlu0 %v10857_v11, %s8885_s19  ;;  %v7206_v20 = vunpack.i.l.bf16 %v14634_v28  ;;  %v3196_v51 = vsel %vm3166_vm5, %v3163_v29, %v7177_v61  ;;  %v3210_v37 = vsel %vm3199_vm6, %v3177_v3, %v7211_v13  ;;  %v7207_v0 = vunpack.i.h.bf16 %v14634_v28  ;;  %v14638_v45 = vld [vmem:[#allocation97_spill] sm:$0xff]  ;;  %v14639_v61 = vld [vmem:[#allocation102_spill] sm:$0xff] }
 0x1ee   : > { %v10895_v38 = vpop.permute.xlu1 %7599  ;;  %v3211_v39 = vsel %vm3199_vm6, %v3178_v50, %v7212_v16  ;;  %v7222_v26 = vunpack.i.h.bf16 %v14637_v19  ;;  %v7221_v58 = vunpack.i.l.bf16 %v14637_v19  ;;  %v7898_v32 = vpack.i.bf16 %v6124_v60, %v10362_v42  ;;  %v14642_v19 = vld [vmem:[#allocation104_spill] sm:$0xff] }
 0x1ef   : > { %14635 = vst [vmem:[#allocation56_spill] sm:$0xff] %v10895_v38  ;;  %v10903_v46 = vpop.permute.xlu0 %7594  ;;  %v7217_v29 = vunpack.i.h.bf16 %v14638_v45  ;;  %v7216_v3 = vunpack.i.l.bf16 %v14638_v45  ;;  %v7251_v49 = vunpack.i.l.bf16 %v14639_v61  ;;  %v10916_v47 = vpack.i.bf16 %v6122_v6, %v6121_v52  ;;  %v14643_v52 = vld [vmem:[#allocation105_spill] sm:$0xff] }
 0x1f0   : > { %14636 = vst [vmem:[#allocation57_spill] sm:$0xff] %v10903_v46  ;;  %7889 = vrot.lane.b32.xlu1 %v10881_v30, %s8885_s19  ;;  %v3208_v50 = vsel %vm3199_vm6, %v3175_v35, %v7206_v20  ;;  %v7252_v16 = vunpack.i.h.bf16 %v14639_v61  ;;  %v7247_v13 = vunpack.i.h.bf16 %v14641_v7  ;;  %v7246_v28 = vunpack.i.l.bf16 %v14641_v7  ;;  %v14644_v61 = vld [vmem:[#allocation111_spill] sm:$0xff] }
 0x1f1   : > { %7884 = vrot.lane.b32.xlu0 %v10888_v41, %s8885_s19  ;;  %14640 = vst [vmem:[#allocation62_spill] sm:$0xff] %v10916_v47  ;;  %v3209_v60 = vsel %vm3199_vm6, %v10845_v22, %v7207_v0  ;;  %v7262_v45 = vunpack.i.h.bf16 %v14642_v19  ;;  %v7261_v38 = vunpack.i.l.bf16 %v14642_v19  ;;  %v7256_v6 = vunpack.i.l.bf16 %v14643_v52 }
 0x1f2   : > { %v10922_v42 = vpop.permute.xlu1 %7609  ;;  %v3214_v35 = vsel %vm3199_vm6, %v3181_v9, %v7221_v58  ;;  %v7257_v20 = vunpack.i.h.bf16 %v14643_v52  ;;  %v7291_v7 = vunpack.i.l.bf16 %v14644_v61  ;;  %v7908_v12 = vpack.i.bf16 %v10474_v56, %v10455_v33  ;;  %v6164_v9 = vld [vmem:[%s8946_s24 + $0x132] sm:$0xff] }
 0x1f3   : > { %v10929_v46 = vpop.permute.xlu0 %7604  ;;  %v3215_v22 = vsel %vm3199_vm6, %v3182_v36, %v7222_v26  ;;  %v3212_v0 = vsel %vm3199_vm6, %v3179_v34, %v7216_v3  ;;  %v3213_v19 = vsel %vm3199_vm6, %v3180_v10, %v7217_v29  ;;  %v3226_v30 = vsel %vm3199_vm6, %v3193_v48, %v7251_v49  ;;  %v14645_v48 = vld [vmem:[#allocation112_spill] sm:$0xff] }
 0x1f4   : > { %7899 = vrot.lane.b32.xlu1 %v7898_v32, %s8885_s19  ;;  %v3227_v58 = vsel %vm3199_vm6, %v3194_v55, %v7252_v16  ;;  %v3224_v52 = vsel %vm3199_vm6, %v3191_v18, %v7246_v28  ;;  %v3225_v32 = vsel %vm3199_vm6, %v3192_v21, %v7247_v13  ;;  %v7292_v33 = vunpack.i.h.bf16 %v14644_v61  ;;  %v14648_v13 = vld [vmem:[#allocation123_spill] sm:$0xff] }
 0x1f5   : > { %7894 = vrot.lane.b32.xlu0 %v10916_v47, %s8885_s19  ;;  %v3230_v36 = vsel %vm3199_vm6, %v3197_v57, %v7261_v38  ;;  %v3231_v34 = vsel %vm3199_vm6, %v3198_v63, %v7262_v45  ;;  %v3228_v10 = vsel %vm3199_vm6, %v3195_v54, %v7256_v6  ;;  %v7286_v26 = vunpack.i.l.bf16 %v14645_v48  ;;  %v14650_v45 = vld [vmem:[#allocation124_spill] sm:$0xff]  ;;  %s5697_s19 = sshll.u32 %s8853_s12, 2 }
 0x1f6   : > { %v10948_v56 = vpop.permute.xlu1 %7619  ;;  %v3229_v55 = vsel %vm3199_vm6, %v3196_v51, %v7257_v20  ;;  %v10958_v18 = vsel %vm3232_vm7, %v3210_v37, %v7291_v7  ;;  %v7287_v21 = vunpack.i.h.bf16 %v14645_v48  ;;  %v7918_v3 = vpack.i.bf16 %v6164_v9, %v10468_v43  ;;  %v14652_v20 = vld [vmem:[#allocation155_spill] sm:$0xff]  ;;  %v14653_v48 = vld [vmem:[#allocation114_spill] sm:$0xff]  ;;  %p188_p6 = scmp.lt.s32.totalorder %s5697_s19, 7 }
 0x1f7   : > { %v10954_v29 = vpop.permute.xlu0 %7614  ;;  %v7302_v57 = vunpack.i.h.bf16 %v10247_v24  ;;  %v7301_v63 = vunpack.i.l.bf16 %v10247_v24  ;;  %v7297_v38 = vunpack.i.h.bf16 %v10255_v4  ;;  %v7296_v54 = vunpack.i.l.bf16 %v10255_v4 }
 0x1f8   : > { %7909 = vrot.lane.b32.xlu1 %v7908_v12, %s8871_s25  ;;  %v14646_v51 = vpack.i.bf16 %v10250_v14, %v10253_v40  ;;  %v10972_v37 = vsel %vm3232_vm7, %v3211_v39, %v7292_v33  ;;  %v7332_v12 = vunpack.i.h.bf16 %v10304_v59  ;;  %v7331_v43 = vunpack.i.l.bf16 %v10304_v59  ;;  %v6172_v39 = vld [vmem:[%s8946_s24 + $0x1d2] sm:$0xff]  ;;  %s15111_s19 = smov (!%p188_p6, %s5697_s19), 7 }
 0x1f9   : > { %v7326_v49 = vunpack.i.l.bf16 %v10312_v1  ;;  %v10980_v24 = vsel %vm3232_vm7, %v3208_v50, %v7286_v26  ;;  %v7327_v4 = vunpack.i.h.bf16 %v10312_v1  ;;  %v7342_v28 = vunpack.i.h.bf16 %v14648_v13  ;;  %v14651_v1 = vld [vmem:[#allocation150_spill] sm:$0xff]  ;;  %v14654_v26 = vld [vmem:[#allocation115_spill] sm:$0xff] }
 0x1fa   : > { %7904 = vrot.lane.b32.xlu0 %v14646_v51, %s8871_s25  ;;  %v10977_v16 = vpop.permute.xlu1 %7629  ;;  %v7341_v40 = vunpack.i.l.bf16 %v14648_v13  ;;  %v3242_v59 = vsel %vm3232_vm7, %v3209_v60, %v7287_v21  ;;  %v7337_v6 = vunpack.i.h.bf16 %v14650_v45  ;;  %v7336_v50 = vunpack.i.l.bf16 %v14650_v45  ;;  %v14661_v45 = vld [vmem:[#allocation118_spill] sm:$0xff] }
 0x1fb   : > { %14647 = vst [vmem:[#allocation63_spill] sm:$0xff] %v10977_v16  ;;  %v10985_v14 = vpop.permute.xlu0 %7624  ;;  %v7928_v61 = vpack.i.bf16 %v14652_v20, %v14651_v1  ;;  %v3247_v7 = vsel %vm3232_vm7, %v3214_v35, %v7301_v63  ;;  %v3248_v9 = vsel %vm3232_vm7, %v3215_v22, %v7302_v57  ;;  %v3245_v33 = vsel %vm3232_vm7, %v3212_v0, %v7296_v54  ;;  %v14657_v0 = vld [vmem:[#allocation153_spill] sm:$0xff]  ;;  %v6183_v63 = vld [vmem:[%s8946_s24 + $0x2c2] sm:$0xff]  ;;  %v14664_v20 = vld [vmem:[#allocation132_spill] sm:$0xff] }
 0x1fc   : > { %14649 = vst [vmem:[#allocation64_spill] sm:$0xff] %v10985_v14  ;;  %7919 = vrot.lane.b32.xlu1 %v7918_v3, %s8871_s25  ;;  %v3246_v60 = vsel %vm3232_vm7, %v3213_v19, %v7297_v38  ;;  %v14655_v21 = vpack.i.bf16 %v14653_v48, %v14654_v26  ;;  %v3259_v3 = vsel %vm3232_vm7, %v3226_v30, %v7331_v43  ;;  %v11013_v19 = vld [vmem:[%s8946_s24 + $0x272] sm:$0xff]  ;;  %v6181_v43 = vld [vmem:[%s8946_s24 + $0x2a2] sm:$0xff]  ;;  %v7381_v48 = vunpack.i.l.bf16 %v14664_v20 }
 0x1fd   : > { %v11004_v51 = vsel %vm3232_vm7, %v3227_v58, %v7332_v12  ;;  %v11007_v35 = vsel %vm3232_vm7, %v3224_v52, %v7326_v49  ;;  %v7938_v57 = vpack.i.bf16 %v6172_v39, %v14657_v0  ;;  %v6184_v38 = vld [vmem:[%s8946_s24 + $0x2d2] sm:$0xff]  ;;  %v11018_v54 = vsel %vm3232_vm7, %v3225_v32, %v7327_v4  ;;  %v14659_v32 = vld [vmem:[#allocation130_spill] sm:$0xff]  ;;  %v14667_v16 = vld [vmem:[#allocation139_spill] sm:$0xff] }
 0x1fe   : > { %7914 = vrot.lane.b32.xlu0 %v14655_v21, %s8871_s25  ;;  %v11009_v22 = vpop.permute.xlu1 %7639  ;;  %v11021_v30 = vsel %vm3232_vm7, %v3230_v36, %v7341_v40  ;;  %v11024_v58 = vsel %vm3232_vm7, %v3231_v34, %v7342_v28  ;;  %v7948_v12 = vpack.i.bf16 %v10609_v15, %v10568_v31  ;;  %v6182_v49 = vld [vmem:[%s8946_s24 + $0x2b2] sm:$0xff]  ;;  %v11033_v13 = vsel %vm3232_vm7, %v3228_v10, %v7336_v50  ;;  %v6185_v28 = vld [vmem:[%s8946_s24 + $0x2e2] sm:$0xff] }
 0x1ff   : > { %14656 = vst [vmem:[#allocation65_spill] sm:$0xff] %v11009_v22  ;;  %v11026_v52 = vpop.permute.xlu0 %7634  ;;  %v11036_v39 = vsel %vm3232_vm7, %v3229_v55, %v7337_v6  ;;  %v7372_v4 = vunpack.i.h.bf16 %v14659_v32  ;;  %v7371_v36 = vunpack.i.l.bf16 %v14659_v32  ;;  %v11042_v34 = vld [vmem:[%s8946_s24 + $0x312] sm:$0xff]  ;;  %v14660_v15 = vld [vmem:[#allocation131_spill] sm:$0xff]  ;;  %v11054_v1 = vpack.i.bf16 %v6184_v38, %v6183_v63 }
 0x200   : > { %14658 = vst [vmem:[#allocation70_spill] sm:$0xff] %v11026_v52  ;;  %7929 = vrot.lane.b32.xlu1 %v7928_v61, %s8871_s25  ;;  %v6186_v31 = vld [vmem:[%s8946_s24 + $0x2f2] sm:$0xff]  ;;  %v7367_v40 = vunpack.i.h.bf16 %v14660_v15  ;;  %v7366_v10 = vunpack.i.l.bf16 %v14660_v15  ;;  %v14662_v55 = vld [vmem:[#allocation119_spill] sm:$0xff]  ;;  %v7382_v61 = vunpack.i.h.bf16 %v14664_v20  ;;  %v11063_v15 = vld [vmem:[%s8946_s24 + $0x140] sm:$0xff]  ;;  %v11071_v38 = vpack.i.bf16 %v6182_v49, %v6181_v43 }
 0x201   : > { %v14663_v6 = vpack.i.bf16 %v14661_v45, %v14662_v55  ;;  %v14665_v26 = vld [vmem:[#allocation133_spill] sm:$0xff]  ;;  %v11066_v45 = vld [vmem:[%s8946_s24 + $0x150] sm:$0xff]  ;;  %v14666_v55 = vld [vmem:[#allocation138_spill] sm:$0xff]  ;;  %v11075_v50 = vpack.i.bf16 %v6186_v31, %v6185_v28  ;;  %v3277_v22 = vsel %vm3265_vm8, %v10972_v37, %v7372_v4  ;;  %v7406_v14 = vunpack.i.l.bf16 %v14667_v16 }
 0x202   : > { %v7377_v21 = vunpack.i.h.bf16 %v14665_v26  ;;  %v7376_v0 = vunpack.i.l.bf16 %v14665_v26  ;;  %v11060_v32 = vpop.permute.xlu1 %7649  ;;  %v3276_v26 = vsel %vm3265_vm8, %v10958_v18, %v7371_v36  ;;  %v7412_v52 = vunpack.i.h.bf16 %v14666_v55  ;;  %v11085_v43 = vld [vmem:[%s8946_s24 + $0x1e0] sm:$0xff]  ;;  %v11088_v49 = vld [vmem:[%s8946_s24 + $0x1f0] sm:$0xff]  ;;  %v14668_v37 = vld [vmem:[#allocation121_spill] sm:$0xff] }
 0x203   : > { %7924 = vrot.lane.b32.xlu0 %v14663_v6, %s8871_s25  ;;  %v7411_v6 = vunpack.i.l.bf16 %v14666_v55  ;;  %v11069_v63 = vpop.permute.xlu0 %7644  ;;  %v3274_v28 = vsel %vm3265_vm8, %v10980_v24, %v7366_v10  ;;  %v3275_v18 = vsel %vm3265_vm8, %v3242_v59, %v7367_v40  ;;  %v7407_v36 = vunpack.i.h.bf16 %v14667_v16  ;;  %v14669_v4 = vld [vmem:[#allocation122_spill] sm:$0xff]  ;;  %v11110_v16 = vld [vmem:[%s8946_s24 + $0x290] sm:$0xff] }
 0x204   : > { %7939 = vrot.lane.b32.xlu1 %v7938_v57, %s8871_s25  ;;  %v14670_v31 = vpack.i.bf16 %v14668_v37, %v14669_v4  ;;  %v3280_v57 = vsel %vm3265_vm8, %v3247_v7, %v7381_v48  ;;  %v3281_v20 = vsel %vm3265_vm8, %v3248_v9, %v7382_v61  ;;  %v3278_v47 = vsel %vm3265_vm8, %v3245_v33, %v7376_v0  ;;  %v11107_v59 = vld [vmem:[%s8946_s24 + $0x280] sm:$0xff]  ;;  %v14671_v37 = vld [vmem:[#allocation140_spill] sm:$0xff]  ;;  %v14673_v0 = vld [vmem:[#allocation147_spill] sm:$0xff] }
 0x205   : > { %v3279_v24 = vsel %vm3265_vm8, %v3246_v60, %v7377_v21  ;;  %v11113_v40 = vsel %vm3265_vm8, %v3259_v3, %v7411_v6  ;;  %v7422_v4 = vunpack.i.h.bf16 %v14671_v37  ;;  %v11123_v33 = vsel %vm3265_vm8, %v11004_v51, %v7412_v52  ;;  %v14672_v3 = vld [vmem:[#allocation146_spill] sm:$0xff] }
 0x206   : > { %v11104_v10 = vpop.permute.xlu1 %7659  ;;  %v11127_v60 = vsel %vm3265_vm8, %v11007_v35, %v7406_v14  ;;  %v7452_v61 = vunpack.i.h.bf16 %v14672_v3  ;;  %v7451_v48 = vunpack.i.l.bf16 %v14672_v3  ;;  %v11134_v21 = vsel %vm3265_vm8, %v11018_v54, %v7407_v36  ;;  %v14675_v35 = vld [vmem:[#allocation141_spill] sm:$0xff]  ;;  %v14676_v3 = vld [vmem:[#allocation148_spill] sm:$0xff] }
 0x207   : > { %7934 = vrot.lane.b32.xlu0 %v14670_v31, %s8871_s25  ;;  %v7421_v31 = vunpack.i.l.bf16 %v14671_v37  ;;  %v11117_v7 = vpop.permute.xlu0 %7654  ;;  %v7447_v6 = vunpack.i.h.bf16 %v14673_v0  ;;  %v7446_v37 = vunpack.i.l.bf16 %v14673_v0  ;;  %v14674_v14 = vpack.i.bf16 %v10328_v8, %v10331_v2  ;;  %v14678_v8 = vld [vmem:[#allocation149_spill] sm:$0xff] }
 0x208   : > { %7949 = vrot.lane.b32.xlu1 %v7948_v12, %s8871_s25  ;;  %v7462_v54 = vunpack.i.h.bf16 %v14676_v3  ;;  %v7461_v36 = vunpack.i.l.bf16 %v14676_v3  ;;  %v11156_v2 = vsel %vm3265_vm8, %v11024_v58, %v7422_v4  ;;  %v7456_v51 = vunpack.i.l.bf16 %v14678_v8 }
 0x209   : > { %v11152_v0 = vsel %vm3265_vm8, %v11021_v30, %v7421_v31  ;;  %v3309_v12 = vsel %vm3298_vm9, %v3276_v26, %v7451_v48  ;;  %v3310_v3 = vsel %vm3298_vm9, %v3277_v22, %v7452_v61  ;;  %v7532_v55 = vunpack.i.h.bf16 %v10690_v25  ;;  %v14681_v22 = vld [vmem:[#allocation126_spill] sm:$0xff] }
 0x20a   : > { %v11148_v9 = vpop.permute.xlu1 %7669  ;;  %v14680_v30 = vpack.i.bf16 %v11013_v19, %v10600_v44  ;;  %v3307_v58 = vsel %vm3298_vm9, %v3274_v28, %v7446_v37  ;;  %v3308_v4 = vsel %vm3298_vm9, %v3275_v18, %v7447_v6  ;;  %v7527_v31 = vunpack.i.h.bf16 %v10698_v5 }
 0x20b   : > { %7944 = vrot.lane.b32.xlu0 %v14674_v14, %s8871_s25  ;;  %14677 = vst [vmem:[#allocation71_spill] sm:$0xff] %v11148_v9  ;;  %v7457_v14 = vunpack.i.h.bf16 %v14678_v8  ;;  %v11160_v52 = vpop.permute.xlu0 %7664  ;;  %v7531_v9 = vunpack.i.l.bf16 %v10690_v25  ;;  %v7526_v26 = vunpack.i.l.bf16 %v10698_v5  ;;  %v14682_v61 = vpack.i.bf16 %v10346_v27, %v14681_v22  ;;  %v14685_v8 = vld [vmem:[#allocation2_spill] sm:$0xff] }
 0x20c   : > { %14679 = vst [vmem:[#allocation72_spill] sm:$0xff] %v11160_v52  ;;  %7959 = vrot.lane.b32.xlu1 %v14680_v30, %s8871_s25  ;;  %v3313_v25 = vsel %vm3298_vm9, %v3280_v57, %v7461_v36  ;;  %v3314_v48 = vsel %vm3298_vm9, %v3281_v20, %v7462_v54  ;;  %v7612_v44 = vunpack.i.h.bf16 %v10922_v42  ;;  %v7611_v19 = vunpack.i.l.bf16 %v10922_v42  ;;  %v14686_v36 = vld [vmem:[#allocation19_spill] sm:$0xff]  ;;  %v6250_v52 = vld [vmem:[%s8946_s24 + $0x351] sm:$0xff] }
 0x20d   : > { %v3311_v18 = vsel %vm3298_vm9, %v3278_v47, %v7456_v51  ;;  %v3312_v6 = vsel %vm3298_vm9, %v3279_v24, %v7457_v14  ;;  %v7607_v5 = vunpack.i.h.bf16 %v10929_v46  ;;  %v7606_v37 = vunpack.i.l.bf16 %v10929_v46 }
 0x20e   : > { %v11182_v28 = vpop.permute.xlu1 %7679  ;;  %v7491_v20 = vunpack.i.l.bf16 %v14685_v8  ;;  %v3342_v54 = vsel %vm3331_vm10, %v3309_v12, %v7531_v9  ;;  %v3343_v42 = vsel %vm3331_vm10, %v3310_v3, %v7532_v55  ;;  %v3340_v47 = vsel %vm3331_vm10, %v3307_v58, %v7526_v26 }
 0x20f   : > { %7954 = vrot.lane.b32.xlu0 %v14682_v61, %s8871_s25  ;;  %14683 = vst [vmem:[#allocation73_spill] sm:$0xff] %v11182_v28  ;;  %v11188_v27 = vpop.permute.xlu0 %7674  ;;  %v3341_v24 = vsel %vm3331_vm10, %v3308_v4, %v7527_v31  ;;  %v7542_v51 = vunpack.i.h.bf16 %v10713_v23  ;;  %v7541_v46 = vunpack.i.l.bf16 %v10713_v23  ;;  %v7537_v14 = vunpack.i.h.bf16 %v14686_v36 }
 0x210   : > { %14684 = vst [vmem:[#allocation78_spill] sm:$0xff] %v11188_v27  ;;  %7969 = vrot.lane.b32.xlu1 %v11054_v1, %s8871_s25  ;;  %v7536_v9 = vunpack.i.l.bf16 %v14686_v36  ;;  %v3375_v55 = vsel %vm3364_vm11, %v3342_v54, %v7611_v19  ;;  %v3376_v12 = vsel %vm3364_vm11, %v3343_v42, %v7612_v44  ;;  %v3373_v30 = vsel %vm3364_vm11, %v3340_v47, %v7606_v37 }
 0x211   : > { %v3374_v58 = vsel %vm3364_vm11, %v3341_v24, %v7607_v5  ;;  %v7622_v23 = vunpack.i.h.bf16 %v10948_v56  ;;  %v7621_v22 = vunpack.i.l.bf16 %v10948_v56  ;;  %v14687_v19 = vpack.i.bf16 %v11042_v34, %v10654_v53 }
 0x212   : > { %v7690_v3 = vpop.permute.xlu1 %7689  ;;  %v7617_v44 = vunpack.i.h.bf16 %v10954_v29  ;;  %v7616_v37 = vunpack.i.l.bf16 %v10954_v29  ;;  %v3346_v56 = vsel %vm3331_vm10, %v3313_v25, %v7541_v46  ;;  %v3347_v42 = vsel %vm3331_vm10, %v3314_v48, %v7542_v51 }
 0x213   : > { %7964 = vrot.lane.b32.xlu0 %v11071_v38, %s8871_s25  ;;  %v7692_v4 = vunpack.i.h.bf16 %v7690_v3  ;;  %v7691_v31 = vunpack.i.l.bf16 %v7690_v3  ;;  %v7685_v26 = vpop.permute.xlu0 %7684  ;;  %v3344_v47 = vsel %vm3331_vm10, %v3311_v18, %v7536_v9  ;;  %v3345_v24 = vsel %vm3331_vm10, %v3312_v6, %v7537_v14  ;;  %v14689_v9 = vld [vmem:[#allocation3_spill] sm:$0xff] }
 0x214   : > { %v7687_v61 = vunpack.i.h.bf16 %v7685_v26  ;;  %v7686_v57 = vunpack.i.l.bf16 %v7685_v26  ;;  %7979 = vrot.lane.b32.xlu1 %v14687_v19, %s8871_s25  ;;  %v3379_v3 = vsel %vm3364_vm11, %v3346_v56, %v7621_v22  ;;  %v3380_v25 = vsel %vm3364_vm11, %v3347_v42, %v7622_v23  ;;  %v14695_v56 = vld [vmem:[#allocation11_spill] sm:$0xff] }
 0x215   : > { %v11217_v5 = vsel %vm3397_vm12, %v3375_v55, %v7691_v31  ;;  %v11220_v54 = vsel %vm3397_vm12, %v3376_v12, %v7692_v4  ;;  %v3378_v51 = vsel %vm3364_vm11, %v3345_v24, %v7617_v44  ;;  %v14688_v14 = vpack.i.bf16 %v11066_v45, %v11063_v15 }
 0x216   : > { %v11227_v53 = vsel %vm3397_vm12, %v3373_v30, %v7686_v57  ;;  %v11230_v34 = vsel %vm3397_vm12, %v3374_v58, %v7687_v61  ;;  %v7700_v29 = vpop.permute.xlu1 %7699  ;;  %v3377_v57 = vsel %vm3364_vm11, %v3344_v47, %v7616_v37  ;;  %v7487_v30 = vunpack.i.h.bf16 %v14689_v9  ;;  %v14693_v61 = vld [vmem:[#allocation7_spill] sm:$0xff]  ;;  %v14696_v47 = vld [vmem:[#allocation40_spill] sm:$0xff] }
 0x217   : > { %7974 = vrot.lane.b32.xlu0 %v11075_v50, %s8871_s25  ;;  %v7702_v36 = vunpack.i.h.bf16 %v7700_v29  ;;  %v7701_v55 = vunpack.i.l.bf16 %v7700_v29  ;;  %v7695_v12 = vpop.permute.xlu0 %7694  ;;  %v7486_v58 = vunpack.i.l.bf16 %v14689_v9  ;;  %v14691_v26 = vunpack.i.l.bf16 %v14675_v35 }
 0x218   : > { %v7697_v46 = vunpack.i.h.bf16 %v7695_v12  ;;  %v7696_v48 = vunpack.i.l.bf16 %v7695_v12  ;;  %7989 = vrot.lane.b32.xlu1 %v10764_v62, %s8872_s26  ;;  %v14692_v15 = vunpack.i.h.bf16 %v14675_v35  ;;  %v7502_v19 = vunpack.i.h.bf16 %v14693_v61 }
 0x219   : > { %v11241_v18 = vsel %vm3397_vm12, %v3379_v3, %v7701_v55  ;;  %v11244_v6 = vsel %vm3397_vm12, %v3380_v25, %v7702_v36  ;;  %v3294_v23 = vsel %vm3265_vm8, %v11033_v13, %v14691_v26  ;;  %v7501_v44 = vunpack.i.l.bf16 %v14693_v61  ;;  %v14698_v55 = vld [vmem:[#allocation41_spill] sm:$0xff] }
 0x21a   : > { %v11253_v62 = vsel %vm3397_vm12, %v3377_v57, %v7696_v48  ;;  %v11256_v4 = vsel %vm3397_vm12, %v3378_v51, %v7697_v46  ;;  %v11258_v31 = vpop.permute.xlu1 %7709  ;;  %v3295_v22 = vsel %vm3265_vm8, %v11036_v39, %v14692_v15  ;;  %v7497_v42 = vunpack.i.h.bf16 %v14695_v56  ;;  %v14699_v25 = vld [vmem:[#allocation25_spill] sm:$0xff]  ;;  %v14705_v15 = vld [vmem:[#allocation48_spill] sm:$0xff] }
 0x21b   : > { %7984 = vrot.lane.b32.xlu0 %v14688_v14, %s8872_s26  ;;  %14690 = vst [vmem:[#allocation79_spill] sm:$0xff] %v11258_v31  ;;  %v11270_v37 = vpop.permute.xlu0 %7704  ;;  %v7496_v29 = vunpack.i.l.bf16 %v14695_v56  ;;  %v7572_v24 = vunpack.i.h.bf16 %v14696_v47  ;;  %v7571_v36 = vunpack.i.l.bf16 %v14696_v47  ;;  %v3325_v13 = vsel %vm3298_vm9, %v11113_v40, %v7491_v20 }
 0x21c   : > { %14694 = vst [vmem:[#allocation80_spill] sm:$0xff] %v11270_v37  ;;  %7999 = vrot.lane.b32.xlu1 %v10796_v17, %s8872_s26  ;;  %v14697_v39 = vunpack.i.h.bf16 %v14685_v8  ;;  %v7567_v12 = vunpack.i.h.bf16 %v14698_v55  ;;  %v7566_v3 = vunpack.i.l.bf16 %v14698_v55  ;;  %v3323_v17 = vsel %vm3298_vm9, %v11127_v60, %v7486_v58  ;;  %v14703_v58 = vld [vmem:[#allocation47_spill] sm:$0xff] }
 0x21d   : > { %v3324_v46 = vsel %vm3298_vm9, %v11134_v21, %v7487_v30  ;;  %v7652_v40 = vunpack.i.h.bf16 %v11060_v32  ;;  %v7651_v8 = vunpack.i.l.bf16 %v11060_v32  ;;  %v3330_v48 = vsel %vm3298_vm9, %v11156_v2, %v7502_v19  ;;  %v14702_v30 = vld [vmem:[#allocation108_spill] sm:$0xff] }
 0x21e   : > { %v3326_v35 = vsel %vm3298_vm9, %v11123_v33, %v14697_v39  ;;  %v11296_v20 = vpop.permute.xlu1 %7719  ;;  %v3329_v33 = vsel %vm3298_vm9, %v11152_v0, %v7501_v44  ;;  %v7647_v57 = vunpack.i.h.bf16 %v11069_v63  ;;  %v7646_v51 = vunpack.i.l.bf16 %v11069_v63 }
 0x21f   : > { %7994 = vrot.lane.b32.xlu0 %v14699_v25, %s8872_s26  ;;  %14700 = vst [vmem:[#allocation81_spill] sm:$0xff] %v11296_v20  ;;  %v11304_v60 = vpop.permute.xlu0 %7714  ;;  %v3327_v21 = vsel %vm3298_vm9, %v3294_v23, %v7496_v29  ;;  %v3328_v14 = vsel %vm3298_vm9, %v3295_v22, %v7497_v42  ;;  %v3358_v32 = vsel %vm3331_vm10, %v3325_v13, %v7571_v36  ;;  %v7582_v26 = vunpack.i.h.bf16 %v14703_v58  ;;  %v11529_v20 = vld [vmem:[%s8946_s24 + $0x291] sm:$0xff] }
 0x220   : > { %14701 = vst [vmem:[#allocation86_spill] sm:$0xff] %v11304_v60  ;;  %v3359_v9 = vsel %vm3331_vm10, %v3326_v35, %v7572_v24  ;;  %8009 = vrot.lane.b32.xlu1 %v14702_v30, %s8872_s26  ;;  %v3356_v0 = vsel %vm3331_vm10, %v3323_v17, %v7566_v3  ;;  %v3357_v2 = vsel %vm3331_vm10, %v3324_v46, %v7567_v12  ;;  %v7581_v63 = vunpack.i.l.bf16 %v14703_v58  ;;  %v14706_v17 = vld [vmem:[#allocation46_spill] sm:$0xff] }
 0x221   : > { %v14704_v23 = vpack.i.bf16 %v11088_v49, %v11085_v43  ;;  %v7577_v22 = vunpack.i.h.bf16 %v14705_v15  ;;  %v7576_v61 = vunpack.i.l.bf16 %v14705_v15  ;;  %v3391_v19 = vsel %vm3364_vm11, %v3358_v32, %v7651_v8 }
 0x222   : > { %v3392_v44 = vsel %vm3364_vm11, %v3359_v9, %v7652_v40  ;;  %v7730_v56 = vpop.permute.xlu1 %7729  ;;  %v3389_v42 = vsel %vm3364_vm11, %v3356_v0, %v7646_v51  ;;  %v3390_v29 = vsel %vm3364_vm11, %v3357_v2, %v7647_v57  ;;  %v7662_v13 = vunpack.i.h.bf16 %v11104_v10 }
 0x223   : > { %8004 = vrot.lane.b32.xlu0 %v14704_v23, %s8872_s26  ;;  %v7732_v47 = vunpack.i.h.bf16 %v7730_v56  ;;  %v7731_v24 = vunpack.i.l.bf16 %v7730_v56  ;;  %v7725_v36 = vpop.permute.xlu0 %7724  ;;  %v7661_v43 = vunpack.i.l.bf16 %v11104_v10  ;;  %v7657_v55 = vunpack.i.h.bf16 %v11117_v7 }
 0x224   : > { %v7727_v39 = vunpack.i.h.bf16 %v7725_v36  ;;  %v7726_v35 = vunpack.i.l.bf16 %v7725_v36  ;;  %8019 = vrot.lane.b32.xlu1 %v10857_v11, %s8872_s26  ;;  %v7656_v12 = vunpack.i.l.bf16 %v11117_v7  ;;  %v3362_v10 = vsel %vm3331_vm10, %v3329_v33, %v7581_v63  ;;  %v11367_v63 = vld [vmem:[%s8946_s24 + $0x340] sm:$0xff] }
 0x225   : > { %v11333_v3 = vsel %vm3397_vm12, %v3391_v19, %v7731_v24  ;;  %v11336_v25 = vsel %vm3397_vm12, %v3392_v44, %v7732_v47  ;;  %v3363_v46 = vsel %vm3331_vm10, %v3330_v48, %v7582_v26  ;;  %v3360_v8 = vsel %vm3331_vm10, %v3327_v21, %v7576_v61  ;;  %v6215_v61 = vld [vmem:[%s8946_s24 + $0x320] sm:$0xff]  ;;  %v11382_v19 = vld [vmem:[%s8946_s24 + $0x330] sm:$0xff] }
 0x226   : > { %v11343_v40 = vsel %vm3397_vm12, %v3389_v42, %v7726_v35  ;;  %v11346_v11 = vsel %vm3397_vm12, %v3390_v29, %v7727_v39  ;;  %v7740_v7 = vpop.permute.xlu1 %7739  ;;  %v3361_v57 = vsel %vm3331_vm10, %v3328_v14, %v7577_v22  ;;  %v3395_v33 = vsel %vm3364_vm11, %v3362_v10, %v7661_v43  ;;  %v14710_v44 = vld [vmem:[#allocation62_spill] sm:$0xff]  ;;  %v14711_v42 = vld [vmem:[#allocation55_spill] sm:$0xff]  ;;  %v11397_v24 = vld [vmem:[%s8946_s24 + $0x390] sm:$0xff] }
 0x227   : > { %8014 = vrot.lane.b32.xlu0 %v14706_v17, %s8872_s26  ;;  %v7742_v51 = vunpack.i.h.bf16 %v7740_v7  ;;  %v7741_v32 = vunpack.i.l.bf16 %v7740_v7  ;;  %v7735_v9 = vpop.permute.xlu0 %7734  ;;  %v3396_v48 = vsel %vm3364_vm11, %v3363_v46, %v7662_v13  ;;  %v3393_v2 = vsel %vm3364_vm11, %v3360_v8, %v7656_v12  ;;  %v11394_v47 = vld [vmem:[%s8946_s24 + $0x380] sm:$0xff]  ;;  %v11405_v43 = vld [vmem:[%s8946_s24 + $0x370] sm:$0xff] }
 0x228   : > { %v7737_v30 = vunpack.i.h.bf16 %v7735_v9  ;;  %v7736_v0 = vunpack.i.l.bf16 %v7735_v9  ;;  %8029 = vrot.lane.b32.xlu1 %v10888_v41, %s8872_s26  ;;  %v3394_v21 = vsel %vm3364_vm11, %v3361_v57, %v7657_v55  ;;  %v14707_v26 = vpack.i.bf16 %v11110_v16, %v11107_v59  ;;  %v11370_v41 = vld [vmem:[%s8946_s24 + $0x350] sm:$0xff]  ;;  %v11402_v13 = vld [vmem:[%s8946_s24 + $0x360] sm:$0xff] }
 0x229   : > { %v11357_v14 = vsel %vm3397_vm12, %v3395_v33, %v7741_v32  ;;  %v11360_v58 = vsel %vm3397_vm12, %v3396_v48, %v7742_v51  ;;  %v8048_v56 = vpack.i.bf16 %v11370_v41, %v11367_v63  ;;  %v8043_v29 = vpack.i.bf16 %v11382_v19, %v6215_v61  ;;  %v11416_v12 = vld [vmem:[%s8946_s24 + $0x161] sm:$0xff]  ;;  %v11419_v17 = vld [vmem:[%s8946_s24 + $0x171] sm:$0xff] }
 0x22a   : > { %v11373_v23 = vsel %vm3397_vm12, %v3393_v2, %v7736_v0  ;;  %v11376_v15 = vsel %vm3397_vm12, %v3394_v21, %v7737_v30  ;;  %v11378_v22 = vpop.permute.xlu1 %7749  ;;  %v8058_v35 = vpack.i.bf16 %v11397_v24, %v11394_v47  ;;  %v8053_v55 = vpack.i.bf16 %v11405_v43, %v11402_v13  ;;  %v6223_v46 = vld [vmem:[%s8946_s24 + $0x141] sm:$0xff]  ;;  %v11423_v7 = vld [vmem:[%s8946_s24 + $0x151] sm:$0xff] }
 0x22b   : > { %8024 = vrot.lane.b32.xlu0 %v14707_v26, %s8872_s26  ;;  %14708 = vst [vmem:[#allocation87_spill] sm:$0xff] %v11378_v22  ;;  %v11384_v59 = vpop.permute.xlu0 %7744  ;;  %v8068_v33 = vpack.i.bf16 %v11419_v17, %v11416_v12  ;;  %v8063_v48 = vpack.i.bf16 %v11423_v7, %v6223_v46  ;;  %v11431_v30 = vld [vmem:[%s8946_s24 + $0x1a1] sm:$0xff]  ;;  %v11434_v0 = vld [vmem:[%s8946_s24 + $0x1b1] sm:$0xff] }
 0x22c   : > { %14709 = vst [vmem:[#allocation88_spill] sm:$0xff] %v11384_v59  ;;  %8039 = vrot.lane.b32.xlu1 %v14710_v44, %s8872_s26  ;;  %v11445_v61 = vld [vmem:[%s8946_s24 + $0x181] sm:$0xff]  ;;  %v11448_v44 = vld [vmem:[%s8946_s24 + $0x191] sm:$0xff] }
 0x22d   : > { %v11468_v46 = vld [vmem:[%s8946_s24 + $0x211] sm:$0xff] }
 0x22e   : > { %v11399_v36 = vpop.permute.xlu1 %7759  ;;  %v6246_v22 = vld [vmem:[%s8946_s24 + $0x2f1] sm:$0xff] }
 0x22f   : > { %8034 = vrot.lane.b32.xlu0 %v14711_v42, %s8872_s26  ;;  %14712 = vst [vmem:[#allocation89_spill] sm:$0xff] %v11399_v36  ;;  %v11407_v39 = vpop.permute.xlu0 %7754  ;;  %v6239_v36 = vld [vmem:[%s8946_s24 + $0x281] sm:$0xff] }
 0x230   : > { %14713 = vst [vmem:[#allocation94_spill] sm:$0xff] %v11407_v39  ;;  %8049 = vrot.lane.b32.xlu1 %v8048_v56, %s8872_s26  ;;  %v8103_v27 = vpack.i.bf16 %v11529_v20, %v6239_v36 }
 0x232   : > { %v7770_v10 = vpop.permute.xlu1 %7769 }
 0x233   : > { %8044 = vrot.lane.b32.xlu0 %v8043_v29, %s8872_s26  ;;  %v7772_v8 = vunpack.i.h.bf16 %v7770_v10  ;;  %v7771_v57 = vunpack.i.l.bf16 %v7770_v10  ;;  %v7765_v51 = vpop.permute.xlu0 %7764  ;;  %v8078_v10 = vpack.i.bf16 %v11434_v0, %v11431_v30 }
 0x234   : > { %v7767_v32 = vunpack.i.h.bf16 %v7765_v51  ;;  %v7766_v9 = vunpack.i.l.bf16 %v7765_v51  ;;  %8059 = vrot.lane.b32.xlu1 %v8058_v35, %s8872_s26 }
 0x235   : > { %v11438_v2 = vsel %vm3430_vm13, %v11217_v5, %v7771_v57  ;;  %v11442_v21 = vsel %vm3430_vm13, %v11220_v54, %v7772_v8 }
 0x236   : > { %v7780_v26 = vpop.permute.xlu1 %7779  ;;  %v11452_v56 = vsel %vm3430_vm13, %v11227_v53, %v7766_v9  ;;  %v11456_v5 = vsel %vm3430_vm13, %v11230_v34, %v7767_v32  ;;  %v8073_v53 = vpack.i.bf16 %v11448_v44, %v11445_v61  ;;  %v11465_v34 = vld [vmem:[%s8946_s24 + $0x201] sm:$0xff]  ;;  %v11482_v9 = vld [vmem:[%s8946_s24 + $0x1f1] sm:$0xff] }
 0x237   : > { %8054 = vrot.lane.b32.xlu0 %v8053_v55, %s8872_s26  ;;  %v7782_v42 = vunpack.i.h.bf16 %v7780_v26  ;;  %v7781_v29 = vunpack.i.l.bf16 %v7780_v26  ;;  %v7775_v54 = vpop.permute.xlu0 %7774  ;;  %v6231_v32 = vld [vmem:[%s8946_s24 + $0x1e1] sm:$0xff] }
 0x238   : > { %v7777_v35 = vunpack.i.h.bf16 %v7775_v54  ;;  %v7776_v55 = vunpack.i.l.bf16 %v7775_v54  ;;  %8069 = vrot.lane.b32.xlu1 %v8068_v33, %s8873_s27  ;;  %v11500_v26 = vld [vmem:[%s8946_s24 + $0x241] sm:$0xff]  ;;  %v11511_v54 = vld [vmem:[%s8946_s24 + $0x231] sm:$0xff] }
 0x239   : > { %v11472_v8 = vsel %vm3430_vm13, %v11241_v18, %v7781_v29  ;;  %v11476_v57 = vsel %vm3430_vm13, %v11244_v6, %v7782_v42  ;;  %v8088_v6 = vpack.i.bf16 %v11468_v46, %v11465_v34  ;;  %v11503_v42 = vld [vmem:[%s8946_s24 + $0x251] sm:$0xff]  ;;  %v11508_v29 = vld [vmem:[%s8946_s24 + $0x221] sm:$0xff] }
 0x23a   : > { %v11478_v51 = vpop.permute.xlu1 %7789  ;;  %v11486_v33 = vsel %vm3430_vm13, %v11253_v62, %v7776_v55  ;;  %v8083_v62 = vpack.i.bf16 %v11482_v9, %v6231_v32  ;;  %v8098_v55 = vpack.i.bf16 %v11503_v42, %v11500_v26  ;;  %v11525_v32 = vld [vmem:[%s8946_s24 + $0x2b1] sm:$0xff] }
 0x23b   : > { %8064 = vrot.lane.b32.xlu0 %v8063_v48, %s8873_s27  ;;  %14714 = vst [vmem:[#allocation95_spill] sm:$0xff] %v11478_v51  ;;  %v11490_v48 = vsel %vm3430_vm13, %v11256_v4, %v7777_v35  ;;  %v11492_v18 = vpop.permute.xlu0 %7784  ;;  %v6245_v51 = vld [vmem:[%s8946_s24 + $0x2e1] sm:$0xff] }
 0x23c   : > { %14715 = vst [vmem:[#allocation96_spill] sm:$0xff] %v11492_v18  ;;  %8079 = vrot.lane.b32.xlu1 %v8078_v10, %s8873_s27  ;;  %v8093_v10 = vpack.i.bf16 %v11511_v54, %v11508_v29  ;;  %v6244_v18 = vld [vmem:[%s8946_s24 + $0x2d1] sm:$0xff]  ;;  %v8118_v37 = vpack.i.bf16 %v6246_v22, %v6245_v51  ;;  %v6247_v22 = vld [vmem:[%s8946_s24 + $0x321] sm:$0xff] }
 0x23e   : > { %v11505_v4 = vpop.permute.xlu1 %7799 }
 0x23f   : > { %8074 = vrot.lane.b32.xlu0 %v8073_v53, %s8873_s27  ;;  %14716 = vst [vmem:[#allocation97_spill] sm:$0xff] %v11505_v4  ;;  %v11513_v35 = vpop.permute.xlu0 %7794  ;;  %v11522_v53 = vld [vmem:[%s8946_s24 + $0x2a1] sm:$0xff] }
 0x240   : > { %14717 = vst [vmem:[#allocation102_spill] sm:$0xff] %v11513_v35  ;;  %8089 = vrot.lane.b32.xlu1 %v8088_v6, %s8873_s27  ;;  %v8108_v60 = vpack.i.bf16 %v11525_v32, %v11522_v53 }
 0x242   : > { %v7810_v4 = vpop.permute.xlu1 %7809 }
 0x243   : > { %8084 = vrot.lane.b32.xlu0 %v8083_v62, %s8873_s27  ;;  %v7812_v6 = vunpack.i.h.bf16 %v7810_v4  ;;  %v7811_v28 = vunpack.i.l.bf16 %v7810_v4  ;;  %v7805_v35 = vpop.permute.xlu0 %7804 }
 0x244   : > { %v7807_v39 = vunpack.i.h.bf16 %v7805_v35  ;;  %v7806_v62 = vunpack.i.l.bf16 %v7805_v35  ;;  %8099 = vrot.lane.b32.xlu1 %v8098_v55, %s8873_s27  ;;  %v11547_v55 = vld [vmem:[%s8946_s24 + $0x2c1] sm:$0xff] }
 0x245   : > { %v11540_v31 = vsel %vm3430_vm13, %v11333_v3, %v7811_v28  ;;  %v11544_v4 = vsel %vm3430_vm13, %v11336_v25, %v7812_v6 }
 0x246   : > { %v7820_v35 = vpop.permute.xlu1 %7819  ;;  %v11556_v36 = vsel %vm3430_vm13, %v11346_v11, %v7807_v39 }
 0x247   : > { %8094 = vrot.lane.b32.xlu0 %v8093_v10, %s8873_s27  ;;  %v11552_v10 = vsel %vm3430_vm13, %v11343_v40, %v7806_v62  ;;  %v7822_v28 = vunpack.i.h.bf16 %v7820_v35  ;;  %v7821_v3 = vunpack.i.l.bf16 %v7820_v35  ;;  %v7815_v59 = vpop.permute.xlu0 %7814  ;;  %v8113_v40 = vpack.i.bf16 %v6244_v18, %v11547_v55  ;;  %v6249_v62 = vld [vmem:[%s8946_s24 + $0x341] sm:$0xff] }
 0x248   : > { %v7817_v25 = vunpack.i.h.bf16 %v7815_v59  ;;  %v7816_v6 = vunpack.i.l.bf16 %v7815_v59  ;;  %8109 = vrot.lane.b32.xlu1 %v8108_v60, %s8873_s27  ;;  %v6253_v35 = vld [vmem:[%s8946_s24 + $0x381] sm:$0xff] }
 0x249   : > { %v11565_v11 = vsel %vm3430_vm13, %v11357_v14, %v7821_v3  ;;  %v11569_v59 = vsel %vm3430_vm13, %v11360_v58, %v7822_v28  ;;  %v8128_v58 = vpack.i.bf16 %v6250_v52, %v6249_v62  ;;  %v6254_v28 = vld [vmem:[%s8946_s24 + $0x391] sm:$0xff]  ;;  %v6251_v3 = vld [vmem:[%s8946_s24 + $0x361] sm:$0xff] }
 0x24a   : > { %v11571_v60 = vpop.permute.xlu1 %7829  ;;  %v11577_v39 = vsel %vm3430_vm13, %v11373_v23, %v7816_v6  ;;  %v11581_v51 = vsel %vm3430_vm13, %v11376_v15, %v7817_v25  ;;  %v6252_v6 = vld [vmem:[%s8946_s24 + $0x371] sm:$0xff]  ;;  %v8138_v25 = vpack.i.bf16 %v6254_v28, %v6253_v35  ;;  %v11598_v52 = vld [vmem:[%s8946_s24 + $0x162] sm:$0xff] }
 0x24b   : > { %8104 = vrot.lane.b32.xlu0 %v8103_v27, %s8873_s27  ;;  %14718 = vst [vmem:[#allocation103_spill] sm:$0xff] %v11571_v60  ;;  %v6248_v27 = vld [vmem:[%s8946_s24 + $0x331] sm:$0xff]  ;;  %v11583_v14 = vpop.permute.xlu0 %7824 }
 0x24c   : > { %14719 = vst [vmem:[#allocation104_spill] sm:$0xff] %v11583_v14  ;;  %8119 = vrot.lane.b32.xlu1 %v8118_v37, %s8873_s27  ;;  %v8123_v18 = vpack.i.bf16 %v6248_v27, %v6247_v22  ;;  %v8133_v37 = vpack.i.bf16 %v6252_v6, %v6251_v3  ;;  %v6255_v22 = vld [vmem:[%s8946_s24 + $0x142] sm:$0xff]  ;;  %v11605_v27 = vld [vmem:[%s8946_s24 + $0x152] sm:$0xff] }
 0x24d   : > { %v8143_v28 = vpack.i.bf16 %v11605_v27, %v6255_v22  ;;  %v6261_v3 = vld [vmem:[%s8946_s24 + $0x1a2] sm:$0xff]  ;;  %v6262_v6 = vld [vmem:[%s8946_s24 + $0x1b2] sm:$0xff] }
 0x24e   : > { %v11589_v23 = vpop.permute.xlu1 %7839 }
 0x24f   : > { %8114 = vrot.lane.b32.xlu0 %v8113_v40, %s8873_s27  ;;  %14720 = vst [vmem:[#allocation105_spill] sm:$0xff] %v11589_v23  ;;  %v11593_v15 = vpop.permute.xlu0 %7834  ;;  %v11601_v40 = vld [vmem:[%s8946_s24 + $0x172] sm:$0xff] }
 0x250   : > { %14721 = vst [vmem:[#allocation111_spill] sm:$0xff] %v11593_v15  ;;  %8129 = vrot.lane.b32.xlu1 %v8128_v58, %s8873_s27  ;;  %14722 = vst [vmem:[#allocation112_spill] sm:$0xff] %v11601_v40 }
 0x252   : > { %v7850_v62 = vpop.permute.xlu1 %7849 }
 0x253   : > { %8124 = vrot.lane.b32.xlu0 %v8123_v18, %s8873_s27  ;;  %v7852_v23 = vunpack.i.h.bf16 %v7850_v62  ;;  %v7851_v15 = vunpack.i.l.bf16 %v7850_v62  ;;  %v7845_v60 = vpop.permute.xlu0 %7844  ;;  %v8148_v18 = vpack.i.bf16 %v11601_v40, %v11598_v52  ;;  %v11623_v62 = vld [vmem:[%s8946_s24 + $0x182] sm:$0xff]  ;;  %v6260_v40 = vld [vmem:[%s8946_s24 + $0x192] sm:$0xff] }
 0x254   : > { %v7847_v58 = vunpack.i.h.bf16 %v7845_v60  ;;  %v7846_v35 = vunpack.i.l.bf16 %v7845_v60  ;;  %8139 = vrot.lane.b32.xlu1 %v8138_v25, %s8873_s27 }
 0x255   : > { %v11616_v14 = vsel %vm3463_vm14, %v11438_v2, %v7851_v15  ;;  %v11620_v60 = vsel %vm3463_vm14, %v11442_v21, %v7852_v23 }
 0x256   : > { %14723 = vst [vmem:[#allocation123_spill] sm:$0xff] %v11616_v14  ;;  %14724 = vst [vmem:[#allocation124_spill] sm:$0xff] %v11620_v60  ;;  %v7860_v25 = vpop.permute.xlu1 %7859  ;;  %v11632_v22 = vsel %vm3463_vm14, %v11456_v5, %v7847_v58  ;;  %v8158_v60 = vpack.i.bf16 %v6262_v6, %v6261_v3 }
 0x257   : > { %8134 = vrot.lane.b32.xlu0 %v8133_v37, %s8873_s27  ;;  %v11628_v37 = vsel %vm3463_vm14, %v11452_v56, %v7846_v35  ;;  %14726 = vst [vmem:[#allocation155_spill] sm:$0xff] %v11632_v22  ;;  %v7862_v2 = vunpack.i.h.bf16 %v7860_v25  ;;  %v7861_v15 = vunpack.i.l.bf16 %v7860_v25  ;;  %v7855_v14 = vpop.permute.xlu0 %7854  ;;  %v8153_v56 = vpack.i.bf16 %v6260_v40, %v11623_v62  ;;  %v6265_v35 = vld [vmem:[%s8946_s24 + $0x202] sm:$0xff]  ;;  %v6301_v22 = vld [vmem:[%s8946_s24 + $0x230] sm:$0xff] }
 0x258   : > { %14725 = vst [vmem:[#allocation150_spill] sm:$0xff] %v11628_v37  ;;  %v7857_v21 = vunpack.i.h.bf16 %v7855_v14  ;;  %v7856_v23 = vunpack.i.l.bf16 %v7855_v14  ;;  %8149 = vrot.lane.b32.xlu1 %v8148_v18, %s8874_s28  ;;  %v6266_v37 = vld [vmem:[%s8946_s24 + $0x212] sm:$0xff]  ;;  %v6263_v18 = vld [vmem:[%s8946_s24 + $0x1e2] sm:$0xff] }
 0x259   : > { %v11641_v5 = vsel %vm3463_vm14, %v11472_v8, %v7861_v15  ;;  %v11645_v14 = vsel %vm3463_vm14, %v11476_v57, %v7862_v2  ;;  %v8168_v8 = vpack.i.bf16 %v6266_v37, %v6265_v35  ;;  %v6269_v25 = vld [vmem:[%s8946_s24 + $0x242] sm:$0xff]  ;;  %v6270_v2 = vld [vmem:[%s8946_s24 + $0x252] sm:$0xff] }
 0x25a   : > { %14727 = vst [vmem:[#allocation114_spill] sm:$0xff] %v11641_v5  ;;  %14728 = vst [vmem:[#allocation115_spill] sm:$0xff] %v11645_v14  ;;  %v11647_v58 = vpop.permute.xlu1 %7869  ;;  %v11653_v40 = vsel %vm3463_vm14, %v11486_v33, %v7856_v23  ;;  %v11657_v3 = vsel %vm3463_vm14, %v11490_v48, %v7857_v21  ;;  %v6267_v33 = vld [vmem:[%s8946_s24 + $0x222] sm:$0xff]  ;;  %v6268_v23 = vld [vmem:[%s8946_s24 + $0x232] sm:$0xff]  ;;  %v8178_v48 = vpack.i.bf16 %v6270_v2, %v6269_v25 }
 0x25b   : > { %8144 = vrot.lane.b32.xlu0 %v8143_v28, %s8874_s28  ;;  %14729 = vst [vmem:[#allocation153_spill] sm:$0xff] %v11647_v58  ;;  %v6264_v28 = vld [vmem:[%s8946_s24 + $0x1f2] sm:$0xff]  ;;  %14730 = vst [vmem:[#allocation130_spill] sm:$0xff] %v11653_v40  ;;  %v11659_v6 = vpop.permute.xlu0 %7864  ;;  %v8173_v21 = vpack.i.bf16 %v6268_v23, %v6267_v33  ;;  %v6271_v5 = vld [vmem:[%s8946_s24 + $0x282] sm:$0xff] }
 0x25c   : > { %14731 = vst [vmem:[#allocation131_spill] sm:$0xff] %v11657_v3  ;;  %14732 = vst [vmem:[#allocation118_spill] sm:$0xff] %v11659_v6  ;;  %8159 = vrot.lane.b32.xlu1 %v8158_v60, %s8874_s28  ;;  %v8163_v57 = vpack.i.bf16 %v6264_v28, %v6263_v18  ;;  %v11675_v37 = vld [vmem:[%s8946_s24 + $0x292] sm:$0xff]  ;;  %v11829_v58 = vld [vmem:[%s8946_s24 + $0x2e0] sm:$0xff] }
 0x25e   : > { %v11665_v15 = vpop.permute.xlu1 %7879 }
 0x25f   : > { %8154 = vrot.lane.b32.xlu0 %v8153_v56, %s8874_s28  ;;  %14733 = vst [vmem:[#allocation119_spill] sm:$0xff] %v11665_v15  ;;  %v11669_v14 = vpop.permute.xlu0 %7874 }
 0x260   : > { %14734 = vst [vmem:[#allocation132_spill] sm:$0xff] %v11669_v14  ;;  %8169 = vrot.lane.b32.xlu1 %v8168_v8, %s8874_s28  ;;  %v8183_v8 = vpack.i.bf16 %v11675_v37, %v6271_v5 }
 0x262   : > { %v7890_v60 = vpop.permute.xlu1 %7889 }
 0x263   : > { %8164 = vrot.lane.b32.xlu0 %v8163_v57, %s8874_s28  ;;  %v7892_v56 = vunpack.i.h.bf16 %v7890_v60  ;;  %v7891_v35 = vunpack.i.l.bf16 %v7890_v60  ;;  %v7885_v18 = vpop.permute.xlu0 %7884 }
 0x264   : > { %v7887_v28 = vunpack.i.h.bf16 %v7885_v18  ;;  %v7886_v3 = vunpack.i.l.bf16 %v7885_v18  ;;  %8179 = vrot.lane.b32.xlu1 %v8178_v48, %s8874_s28 }
 0x265   : > { %v11682_v57 = vsel %vm3463_vm14, %v11540_v31, %v7891_v35  ;;  %v11686_v25 = vsel %vm3463_vm14, %v11544_v4, %v7892_v56  ;;  %v6281_v4 = vld [vmem:[%s8946_s24 + $0x342] sm:$0xff]  ;;  %v6282_v56 = vld [vmem:[%s8946_s24 + $0x352] sm:$0xff] }
 0x266   : > { %14735 = vst [vmem:[#allocation133_spill] sm:$0xff] %v11682_v57  ;;  %14736 = vst [vmem:[#allocation138_spill] sm:$0xff] %v11686_v25  ;;  %v7900_v2 = vpop.permute.xlu1 %7899  ;;  %v11690_v33 = vsel %vm3463_vm14, %v11552_v10, %v7886_v3  ;;  %v11694_v23 = vsel %vm3463_vm14, %v11556_v36, %v7887_v28  ;;  %v6279_v35 = vld [vmem:[%s8946_s24 + $0x322] sm:$0xff]  ;;  %v6303_v25 = vld [vmem:[%s8946_s24 + $0x250] sm:$0xff] }
 0x267   : > { %8174 = vrot.lane.b32.xlu0 %v8173_v21, %s8874_s28  ;;  %14737 = vst [vmem:[#allocation139_spill] sm:$0xff] %v11690_v33  ;;  %14738 = vst [vmem:[#allocation121_spill] sm:$0xff] %v11694_v23  ;;  %v7902_v5 = vunpack.i.h.bf16 %v7900_v2  ;;  %v7901_v48 = vunpack.i.l.bf16 %v7900_v2  ;;  %v7895_v21 = vpop.permute.xlu0 %7894  ;;  %v6285_v2 = vld [vmem:[%s8946_s24 + $0x382] sm:$0xff] }
 0x268   : > { %v7897_v31 = vunpack.i.h.bf16 %v7895_v21  ;;  %v7896_v60 = vunpack.i.l.bf16 %v7895_v21  ;;  %8189 = vrot.lane.b32.xlu1 %v11071_v38, %s8874_s28  ;;  %v6280_v38 = vld [vmem:[%s8946_s24 + $0x332] sm:$0xff]  ;;  %v6304_v57 = vld [vmem:[%s8946_s24 + $0x260] sm:$0xff] }
 0x269   : > { %v11703_v10 = vsel %vm3463_vm14, %v11565_v11, %v7901_v48  ;;  %v11707_v36 = vsel %vm3463_vm14, %v11569_v59, %v7902_v5  ;;  %v8208_v59 = vpack.i.bf16 %v6282_v56, %v6281_v4  ;;  %v6283_v48 = vld [vmem:[%s8946_s24 + $0x362] sm:$0xff] }
 0x26a   : > { %14739 = vst [vmem:[#allocation122_spill] sm:$0xff] %v11703_v10  ;;  %14740 = vst [vmem:[#allocation140_spill] sm:$0xff] %v11707_v36  ;;  %v11709_v3 = vpop.permute.xlu1 %7909  ;;  %v11715_v18 = vsel %vm3463_vm14, %v11577_v39, %v7896_v60  ;;  %v11719_v28 = vsel %vm3463_vm14, %v11581_v51, %v7897_v31  ;;  %v6286_v39 = vld [vmem:[%s8946_s24 + $0x392] sm:$0xff]  ;;  %v11741_v60 = vld [vmem:[%s8946_s24 + $0x180] sm:$0xff] }
 0x26b   : > { %8184 = vrot.lane.b32.xlu0 %v8183_v8, %s8874_s28  ;;  %14741 = vst [vmem:[#allocation146_spill] sm:$0xff] %v11715_v18  ;;  %14742 = vst [vmem:[#allocation147_spill] sm:$0xff] %v11719_v28  ;;  %v8203_v8 = vpack.i.bf16 %v6280_v38, %v6279_v35  ;;  %v6284_v51 = vld [vmem:[%s8946_s24 + $0x372] sm:$0xff]  ;;  %v11746_v56 = vld [vmem:[%s8946_s24 + $0x160] sm:$0xff] }
 0x26c   : > { %v11721_v11 = vpop.permute.xlu0 %7904  ;;  %8199 = vrot.lane.b32.xlu1 %v11075_v50, %s8874_s28  ;;  %v8218_v50 = vpack.i.bf16 %v6286_v39, %v6285_v2  ;;  %v8213_v31 = vpack.i.bf16 %v6284_v51, %v6283_v48  ;;  %v11760_v2 = vld [vmem:[%s8946_s24 + $0x1c0] sm:$0xff]  ;;  %v11765_v48 = vld [vmem:[%s8946_s24 + $0x190] sm:$0xff] }
 0x26d   : > { %v11768_v51 = vld [vmem:[%s8946_s24 + $0x1a0] sm:$0xff]  ;;  %v6299_v36 = vld [vmem:[%s8946_s24 + $0x210] sm:$0xff] }
 0x26e   : > { %v11729_v5 = vpop.permute.xlu1 %7919  ;;  %v6300_v10 = vld [vmem:[%s8946_s24 + $0x220] sm:$0xff] }
 0x26f   : > { %8194 = vrot.lane.b32.xlu0 %v11054_v1, %s8874_s28  ;;  %v11738_v1 = vld [vmem:[%s8946_s24 + $0x170] sm:$0xff]  ;;  %v6298_v18 = vld [vmem:[%s8946_s24 + $0x200] sm:$0xff] }
 0x270   : > { %v11733_v21 = vpop.permute.xlu0 %7914  ;;  %8209 = vrot.lane.b32.xlu1 %v8208_v59, %s8874_s28  ;;  %v8228_v38 = vpack.i.bf16 %v11741_v60, %v11738_v1  ;;  %v8223_v59 = vpack.i.bf16 %v11746_v56, %v11066_v45  ;;  %v6302_v33 = vld [vmem:[%s8946_s24 + $0x240] sm:$0xff] }
 0x272   : > { %v11743_v4 = vpop.permute.xlu1 %7929 }
 0x273   : > { %8204 = vrot.lane.b32.xlu0 %v8203_v8, %s8874_s28  ;;  %v11757_v8 = vld [vmem:[%s8946_s24 + $0x1b0] sm:$0xff] }
 0x274   : > { %8219 = vrot.lane.b32.xlu1 %v8218_v50, %s8874_s28  ;;  %v8238_v45 = vpack.i.bf16 %v11760_v2, %v11757_v8 }
 0x275   : > { %v11748_v35 = vpop.permute.xlu0 %7924 }
 0x276   : > { %v11762_v39 = vpop.permute.xlu1 %7939 }
 0x277   : > { %8214 = vrot.lane.b32.xlu0 %v8213_v31, %s8874_s28  ;;  %v8233_v31 = vpack.i.bf16 %v11768_v51, %v11765_v48 }
 0x278   : > { %8229 = vrot.lane.b32.xlu1 %v8228_v38, %s8875_s29  ;;  %v8248_v38 = vpack.i.bf16 %v6300_v10, %v6299_v36  ;;  %v8253_v10 = vpack.i.bf16 %v6302_v33, %v6301_v22  ;;  %v11799_v36 = vld [vmem:[%s8946_s24 + $0x2b0] sm:$0xff] }
 0x279   : > { %v11770_v50 = vpop.permute.xlu0 %7934 }
 0x27a   : > { %v11780_v28 = vpop.permute.xlu1 %7949 }
 0x27b   : > { %8224 = vrot.lane.b32.xlu0 %v8223_v59, %s8875_s29  ;;  %14743 = vst [vmem:[#allocation141_spill] sm:$0xff] %v11780_v28  ;;  %v8243_v59 = vpack.i.bf16 %v6298_v18, %v11088_v49  ;;  %v11802_v49 = vld [vmem:[%s8946_s24 + $0x2c0] sm:$0xff]  ;;  %v14781_v28 = vld [vmem:[#allocation5_spill] sm:$0xff] }
 0x27c   : > { %8239 = vrot.lane.b32.xlu1 %v8238_v45, %s8875_s29  ;;  %v8258_v45 = vpack.i.bf16 %v6304_v57, %v6303_v25  ;;  %v11818_v57 = vld [vmem:[%s8946_s24 + $0x2f0] sm:$0xff]  ;;  %v11821_v25 = vld [vmem:[%s8946_s24 + $0x300] sm:$0xff] }
 0x27d   : > { %v11783_v40 = vpop.permute.xlu0 %7944 }
 0x27e   : > { %14744 = vst [vmem:[#allocation148_spill] sm:$0xff] %v11783_v40  ;;  %v11790_v23 = vpop.permute.xlu1 %7959 }
 0x27f   : > { %8234 = vrot.lane.b32.xlu0 %v8233_v31, %s8875_s29  ;;  %14745 = vst [vmem:[#allocation149_spill] sm:$0xff] %v11790_v23  ;;  %v11807_v31 = vld [vmem:[%s8946_s24 + $0x2a0] sm:$0xff] }
 0x280   : > { %8249 = vrot.lane.b32.xlu1 %v8248_v38, %s8875_s29  ;;  %v8268_v38 = vpack.i.bf16 %v11802_v49, %v11799_v36  ;;  %v8263_v22 = vpack.i.bf16 %v11807_v31, %v11110_v16 }
 0x281   : > { %v11794_v15 = vpop.permute.xlu0 %7954 }
 0x282   : > { %14746 = vst [vmem:[#allocation126_spill] sm:$0xff] %v11794_v15  ;;  %v11804_v18 = vpop.permute.xlu1 %7969  ;;  %v8288_v15 = vpack.i.bf16 %v11402_v13, %v11370_v41  ;;  %v8293_v41 = vpack.i.bf16 %v11394_v47, %v11405_v43  ;;  %v8313_v43 = vpack.i.bf16 %v11431_v30, %v11448_v44  ;;  %v14762_v44 = vld [vmem:[#allocation28_spill] sm:$0xff] }
 0x283   : > { %8244 = vrot.lane.b32.xlu0 %v8243_v59, %s8875_s29  ;;  %14747 = vst [vmem:[#allocation2_spill] sm:$0xff] %v11804_v18  ;;  %v11826_v59 = vld [vmem:[%s8946_s24 + $0x2d0] sm:$0xff] }
 0x284   : > { %8259 = vrot.lane.b32.xlu1 %v8258_v45, %s8875_s29  ;;  %v8273_v16 = vpack.i.bf16 %v11829_v58, %v11826_v59 }
 0x285   : > { %v11809_v14 = vpop.permute.xlu0 %7964 }
 0x286   : > { %14748 = vst [vmem:[#allocation19_spill] sm:$0xff] %v11809_v14  ;;  %v11823_v33 = vpop.permute.xlu1 %7979 }
 0x287   : > { %8254 = vrot.lane.b32.xlu0 %v8253_v10, %s8875_s29  ;;  %v8278_v10 = vpack.i.bf16 %v11821_v25, %v11818_v57 }
 0x288   : > { %8269 = vrot.lane.b32.xlu1 %v8268_v38, %s8875_s29  ;;  %v8283_v38 = vpack.i.bf16 %v11367_v63, %v11382_v19  ;;  %v8308_v63 = vpack.i.bf16 %v11445_v61, %v11419_v17  ;;  %v8303_v19 = vpack.i.bf16 %v11416_v12, %v11423_v7  ;;  %v8328_v12 = vpack.i.bf16 %v11508_v29, %v11468_v46 }
 0x289   : > { %v11831_v45 = vpop.permute.xlu0 %7974  ;;  %v8323_v7 = vpack.i.bf16 %v11465_v34, %v11482_v9  ;;  %v8333_v34 = vpack.i.bf16 %v11500_v26, %v11511_v54  ;;  %v14763_v9 = vld [vmem:[#allocation29_spill] sm:$0xff]  ;;  %v8798_v26 = vld [vmem:[%s8946_s24 + $0x50] sm:$0xff] }
 0x28a   : > { %14749 = vst [vmem:[#allocation3_spill] sm:$0xff] %v11831_v45  ;;  %v11839_v14 = vpop.permute.xlu1 %7989  ;;  %v6320_v45 = vld [vmem:[%s8946_s24 + $0x3a0] sm:$0xff]  ;;  %v6707_v29 = vunpack.i.h.bf16 %v14763_v9 }
 0x28b   : > { %8264 = vrot.lane.b32.xlu0 %v8263_v22, %s8875_s29  ;;  %14750 = vst [vmem:[#allocation7_spill] sm:$0xff] %v11839_v14 }
 0x28c   : > { %8279 = vrot.lane.b32.xlu1 %v8278_v10, %s8875_s29 }
 0x28d   : > { %v11841_v18 = vpop.permute.xlu0 %7984 }
 0x28e   : > { %14751 = vst [vmem:[#allocation11_spill] sm:$0xff] %v11841_v18  ;;  %v11850_v22 = vpop.permute.xlu1 %7999  ;;  %v8298_v18 = vpack.i.bf16 %v6320_v45, %v11397_v24 }
 0x28f   : > { %8274 = vrot.lane.b32.xlu0 %v8273_v16, %s8875_s29  ;;  %14752 = vst [vmem:[#allocation40_spill] sm:$0xff] %v11850_v22  ;;  %v6717_v16 = vunpack.i.h.bf16 %v14762_v44  ;;  %v8809_v22 = vld [vmem:[%s8946_s24 + $0x180] sm:$0xff] }
 0x290   : > { %8289 = vrot.lane.b32.xlu1 %v8288_v15, %s8875_s29  ;;  %v6139_v15 = vld [vmem:[%s8946_s24 + $0x1c1] sm:$0xff] }
 0x291   : > { %v11852_v23 = vpop.permute.xlu0 %7994  ;;  %v8318_v47 = vpack.i.bf16 %v6139_v15, %v11434_v0  ;;  %v14765_v15 = vld [vmem:[#allocation30_spill] sm:$0xff]  ;;  %v11916_v54 = vsel %vm3001_vm0, %v8798_v26, %v6717_v16  ;;  %v8799_v26 = vld [vmem:[%s8946_s24 + $0x10] sm:$0xff] }
 0x292   : > { %14753 = vst [vmem:[#allocation41_spill] sm:$0xff] %v11852_v23  ;;  %v11859_v13 = vpop.permute.xlu1 %8009 }
 0x293   : > { %8284 = vrot.lane.b32.xlu0 %v8283_v38, %s8875_s29  ;;  %14754 = vst [vmem:[#allocation25_spill] sm:$0xff] %v11859_v13  ;;  %v6716_v38 = vunpack.i.l.bf16 %v14762_v44  ;;  %v14767_v44 = vld [vmem:[#allocation31_spill] sm:$0xff] }
 0x294   : > { %8299 = vrot.lane.b32.xlu1 %v8298_v18, %s8875_s29  ;;  %v6147_v18 = vld [vmem:[%s8946_s24 + $0x261] sm:$0xff] }
 0x295   : > { %v11861_v10 = vpop.permute.xlu0 %8004  ;;  %v8338_v46 = vpack.i.bf16 %v6147_v18, %v11503_v42  ;;  %v8797_v42 = vld [vmem:[%s8946_s24 + $0x40] sm:$0xff]  ;;  %v8348_v18 = vpack.i.bf16 %v11675_v37, %v11605_v27  ;;  %v14769_v27 = vld [vmem:[#allocation33_spill] sm:$0xff] }
 0x296   : > { %14755 = vst [vmem:[#allocation108_spill] sm:$0xff] %v11861_v10  ;;  %v11869_v24 = vpop.permute.xlu1 %8019  ;;  %v6746_v37 = vunpack.i.l.bf16 %v14769_v27 }
 0x297   : > { %8294 = vrot.lane.b32.xlu0 %v8293_v41, %s8875_s29  ;;  %14756 = vst [vmem:[#allocation47_spill] sm:$0xff] %v11869_v24  ;;  %v6706_v41 = vunpack.i.l.bf16 %v14763_v9  ;;  %v6712_v9 = vunpack.i.h.bf16 %v14767_v44 }
 0x298   : > { %8309 = vrot.lane.b32.xlu1 %v8308_v63, %s8876_s30 }
 0x299   : > { %v11872_v45 = vpop.permute.xlu0 %8014 }
 0x29a   : > { %14757 = vst [vmem:[#allocation48_spill] sm:$0xff] %v11872_v45  ;;  %v11879_v17 = vpop.permute.xlu1 %8029 }
 0x29b   : > { %8304 = vrot.lane.b32.xlu0 %v8303_v19, %s8876_s30  ;;  %14758 = vst [vmem:[#allocation46_spill] sm:$0xff] %v11879_v17  ;;  %v199_v19 = vld [vmem:[%s8946_s24] sm:$0xff] }
 0x29c   : > { %8319 = vrot.lane.b32.xlu1 %v8318_v47, %s8876_s30  ;;  %v6722_v47 = vunpack.i.h.bf16 %v14765_v15  ;;  %v3002_v16 = vsel %vm3001_vm0, %v199_v19, %v6706_v41  ;;  %v215_v19 = vld [vmem:[%s8946_s24 + $0x140] sm:$0xff] }
 0x29d   : > { %v11881_v61 = vpop.permute.xlu0 %8024 }
 0x29e   : > { %14759 = vst [vmem:[#allocation62_spill] sm:$0xff] %v11881_v61  ;;  %v11889_v0 = vpop.permute.xlu1 %8039  ;;  %v14772_v61 = vld [vmem:[#allocation35_spill] sm:$0xff] }
 0x29f   : > { %8314 = vrot.lane.b32.xlu0 %v8313_v43, %s8876_s30  ;;  %14760 = vst [vmem:[#allocation55_spill] sm:$0xff] %v11889_v0  ;;  %v6721_v43 = vunpack.i.l.bf16 %v14765_v15  ;;  %v6711_v15 = vunpack.i.l.bf16 %v14767_v44  ;;  %v6370_v44 = vld [vmem:[%s8946_s24 + $0x2a2] sm:$0xff]  ;;  %v6757_v17 = vunpack.i.h.bf16 %v14772_v61 }
 0x2a0   : > { %8329 = vrot.lane.b32.xlu1 %v8328_v12, %s8876_s30 }
 0x2a1   : > { %v11892_v30 = vpop.permute.xlu0 %8034 }
 0x2a2   : > { %14761 = vst [vmem:[#allocation157_spill] sm:$0xff] %v11892_v30  ;;  %v11903_v63 = vpop.permute.xlu1 %8049  ;;  %v8800_v30 = vld [vmem:[%s8946_s24 + $0x60] sm:$0xff] }
 0x2a3   : > { %8324 = vrot.lane.b32.xlu0 %v8323_v7, %s8876_s30  ;;  %14764 = vst [vmem:[#allocation28_spill] sm:$0xff] %v11903_v63  ;;  %v11912_v7 = vsel %vm3001_vm0, %v8797_v42, %v6716_v38  ;;  %v8343_v42 = vpack.i.bf16 %v11522_v53, %v11529_v20  ;;  %v8801_v20 = vld [vmem:[%s8946_s24 + $0x70] sm:$0xff] }
 0x2a4   : > { %8339 = vrot.lane.b32.xlu1 %v8338_v46, %s8876_s30  ;;  %v3003_v46 = vsel %vm3001_vm0, %v8799_v26, %v6707_v29  ;;  %v11941_v41 = vsel %vm3001_vm0, %v8801_v20, %v6722_v47  ;;  %v6747_v29 = vunpack.i.h.bf16 %v14769_v27  ;;  %v8358_v47 = vpack.i.bf16 %v11807_v31, %v11746_v56  ;;  %v8803_v20 = vld [vmem:[%s8946_s24 + $0x30] sm:$0xff] }
 0x2a5   : > { %v11908_v12 = vpop.permute.xlu0 %8044  ;;  %v3005_v10 = vsel %vm3001_vm0, %v8803_v20, %v6712_v9  ;;  %v8805_v56 = vld [vmem:[%s8946_s24 + $0x170] sm:$0xff] }
 0x2a6   : > { %14766 = vst [vmem:[#allocation29_spill] sm:$0xff] %v11908_v12  ;;  %v14768_v12 = vld [vmem:[#allocation32_spill] sm:$0xff]  ;;  %v11932_v45 = vpop.permute.xlu1 %8059 }
 0x2a7   : > { %v6751_v38 = vunpack.i.l.bf16 %v14768_v12  ;;  %8334 = vrot.lane.b32.xlu0 %v8333_v34, %s8876_s30  ;;  %v6752_v63 = vunpack.i.h.bf16 %v14768_v12  ;;  %v11937_v34 = vsel %vm3001_vm0, %v8800_v30, %v6721_v43  ;;  %v14770_v12 = vld [vmem:[#allocation34_spill] sm:$0xff]  ;;  %v6756_v30 = vunpack.i.l.bf16 %v14772_v61 }
 0x2a8   : > { %v6761_v26 = vunpack.i.l.bf16 %v14770_v12  ;;  %v6762_v24 = vunpack.i.h.bf16 %v14770_v12  ;;  %8349 = vrot.lane.b32.xlu1 %v8348_v18, %s8877_s4  ;;  %v8802_v43 = vld [vmem:[%s8946_s24 + $0x20] sm:$0xff]  ;;  %v11962_v61 = vpack.i.bf16 %v6370_v44, %v11598_v52  ;;  %v14775_v44 = vld [vmem:[#allocation37_spill] sm:$0xff] }
 0x2a9   : > { %v11946_v0 = vpop.permute.xlu0 %8054  ;;  %v3004_v27 = vsel %vm3001_vm0, %v8802_v43, %v6711_v15  ;;  %v6419_v18 = vld [vmem:[%s8946_s24 + $0x161] sm:$0xff]  ;;  %v3021_v31 = vsel %vm3001_vm0, %v8805_v56, %v6752_v63  ;;  %v3018_v15 = vsel %vm3001_vm0, %v215_v19, %v6746_v37  ;;  %v14773_v43 = vld [vmem:[#allocation36_spill] sm:$0xff]  ;;  %v6787_v23 = vunpack.i.h.bf16 %v14775_v44 }
 0x2aa   : > { %14771 = vst [vmem:[#allocation30_spill] sm:$0xff] %v11946_v0  ;;  %v8804_v0 = vld [vmem:[%s8946_s24 + $0x160] sm:$0xff]  ;;  %v6792_v13 = vunpack.i.h.bf16 %v14773_v43  ;;  %v6791_v9 = vunpack.i.l.bf16 %v14773_v43  ;;  %v11970_v20 = vpop.permute.xlu1 %8069  ;;  %v6786_v63 = vunpack.i.l.bf16 %v14775_v44  ;;  %v8808_v37 = vld [vmem:[%s8946_s24 + $0x1b0] sm:$0xff]  ;;  %v3022_v43 = vsel %vm3001_vm0, %v8809_v22, %v6756_v30  ;;  %v14778_v44 = vld [vmem:[#allocation39_spill] sm:$0xff] }
 0x2ab   : > { %v3020_v12 = vsel %vm3001_vm0, %v8804_v0, %v6751_v38  ;;  %8344 = vrot.lane.b32.xlu0 %v8343_v42, %s8876_s30  ;;  %14774 = vst [vmem:[#allocation31_spill] sm:$0xff] %v11970_v20  ;;  %v8806_v0 = vld [vmem:[%s8946_s24 + $0x150] sm:$0xff]  ;;  %v8807_v42 = vld [vmem:[%s8946_s24 + $0x1a0] sm:$0xff]  ;;  %v3025_v19 = vsel %vm3001_vm0, %v8808_v37, %v6762_v24  ;;  %v6796_v40 = vunpack.i.l.bf16 %v14778_v44  ;;  %v8363_v24 = vpack.i.bf16 %v11799_v36, %v11738_v1 }
 0x2ac   : > { %v3019_v38 = vsel %vm3001_vm0, %v8806_v0, %v6747_v29  ;;  %v3024_v52 = vsel %vm3001_vm0, %v8807_v42, %v6761_v26  ;;  %v8810_v20 = vld [vmem:[%s8946_s24 + $0x190] sm:$0xff]  ;;  %8359 = vrot.lane.b32.xlu1 %v8358_v47, %s8878_s5  ;;  %v8368_v29 = vpack.i.bf16 %v11522_v53, %v6419_v18  ;;  %v14777_v26 = vld [vmem:[#allocation38_spill] sm:$0xff]  ;;  %v3037_v30 = vsel %vm3034_vm1, %v3004_v27, %v6791_v9 }
 0x2ad   : > { %v11978_v56 = vpop.permute.xlu0 %8064  ;;  %v3023_v14 = vsel %vm3001_vm0, %v8810_v20, %v6757_v17  ;;  %v6802_v0 = vunpack.i.h.bf16 %v14777_v26  ;;  %v6801_v42 = vunpack.i.l.bf16 %v14777_v26  ;;  %v6420_v22 = vld [vmem:[%s8946_s24 + $0x171] sm:$0xff]  ;;  %v3038_v17 = vsel %vm3034_vm1, %v3005_v10, %v6792_v13 }
 0x2ae   : > { %14776 = vst [vmem:[#allocation32_spill] sm:$0xff] %v11978_v56  ;;  %v6797_v47 = vunpack.i.h.bf16 %v14778_v44  ;;  %v14779_v53 = vld [vmem:[#allocation4_spill] sm:$0xff]  ;;  %v12000_v20 = vpop.permute.xlu1 %8079  ;;  %v3035_v37 = vsel %vm3034_vm1, %v3002_v16, %v6786_v63  ;;  %v3036_v26 = vsel %vm3034_vm1, %v3003_v46, %v6787_v23  ;;  %v6826_v1 = vunpack.i.l.bf16 %v14781_v28 }
 0x2af   : > { %8354 = vrot.lane.b32.xlu0 %v11962_v61, %s8877_s4  ;;  %v6831_v18 = vunpack.i.l.bf16 %v14779_v53  ;;  %14780 = vst [vmem:[#allocation33_spill] sm:$0xff] %v12000_v20  ;;  %v6832_v56 = vunpack.i.h.bf16 %v14779_v53  ;;  %v6827_v27 = vunpack.i.h.bf16 %v14781_v28  ;;  %v14783_v13 = vld [vmem:[#allocation8_spill] sm:$0xff]  ;;  %v8378_v44 = vpack.i.bf16 %v11525_v32, %v6420_v22  ;;  %v14784_v53 = vld [vmem:[#allocation6_spill] sm:$0xff] }
 0x2b0   : > { %v6842_v10 = vunpack.i.h.bf16 %v14783_v13  ;;  %v6841_v9 = vunpack.i.l.bf16 %v14783_v13  ;;  %8369 = vrot.lane.b32.xlu1 %v8368_v29, %s8879_s6  ;;  %v3041_v16 = vsel %vm3034_vm1, %v11937_v34, %v6801_v42  ;;  %v3042_v23 = vsel %vm3034_vm1, %v11941_v41, %v6802_v0  ;;  %v6371_v63 = vld [vmem:[%s8946_s24 + $0x2b2] sm:$0xff]  ;;  %v14786_v41 = vld [vmem:[#allocation18_spill] sm:$0xff] }
 0x2b1   : > { %v12006_v36 = vpop.permute.xlu0 %8074  ;;  %v3039_v46 = vsel %vm3034_vm1, %v11912_v7, %v6796_v40  ;;  %v8373_v28 = vpack.i.bf16 %v11547_v55, %v11525_v32  ;;  %v3040_v29 = vsel %vm3034_vm1, %v11916_v54, %v6797_v47  ;;  %v3053_v22 = vsel %vm3034_vm1, %v3020_v12, %v6831_v18  ;;  %v14788_v47 = vld [vmem:[#allocation112_spill] sm:$0xff] }
 0x2b2   : > { %14782 = vst [vmem:[#allocation34_spill] sm:$0xff] %v12006_v36  ;;  %v6837_v13 = vunpack.i.h.bf16 %v14784_v53  ;;  %v6836_v34 = vunpack.i.l.bf16 %v14784_v53  ;;  %v12028_v42 = vpop.permute.xlu1 %8089  ;;  %v3054_v40 = vsel %vm3034_vm1, %v3021_v31, %v6832_v56  ;;  %v3051_v7 = vsel %vm3034_vm1, %v3018_v15, %v6826_v1  ;;  %v14789_v53 = vld [vmem:[#allocation15_spill] sm:$0xff]  ;;  %v14790_v56 = vld [vmem:[#allocation13_spill] sm:$0xff] }
 0x2b3   : > { %8364 = vrot.lane.b32.xlu0 %v8363_v24, %s8878_s5  ;;  %14785 = vst [vmem:[#allocation35_spill] sm:$0xff] %v12028_v42  ;;  %v6872_v0 = vunpack.i.h.bf16 %v14786_v41  ;;  %v6871_v32 = vunpack.i.l.bf16 %v14786_v41  ;;  %v3052_v54 = vsel %vm3034_vm1, %v3019_v38, %v6827_v27  ;;  %v3057_v12 = vsel %vm3034_vm1, %v3024_v52, %v6841_v9  ;;  %v14795_v42 = vld [vmem:[#allocation20_spill] sm:$0xff] }
 0x2b4   : > { %v3058_v24 = vsel %vm3034_vm1, %v3025_v19, %v6842_v10  ;;  %8379 = vrot.lane.b32.xlu1 %v8378_v44, %s8879_s6  ;;  %v8388_v18 = vpack.i.bf16 %v6371_v63, %v14788_v47  ;;  %v6867_v31 = vunpack.i.h.bf16 %v14789_v53  ;;  %v6866_v15 = vunpack.i.l.bf16 %v14789_v53  ;;  %v14791_v19 = vld [vmem:[#allocation17_spill] sm:$0xff]  ;;  %v14793_v47 = vld [vmem:[#allocation22_spill] sm:$0xff] }
 0x2b5   : > { %v12034_v55 = vpop.permute.xlu0 %8084  ;;  %v6882_v1 = vunpack.i.h.bf16 %v14790_v56  ;;  %v6881_v41 = vunpack.i.l.bf16 %v14790_v56  ;;  %v3055_v38 = vsel %vm3034_vm1, %v3022_v43, %v6836_v34  ;;  %v3056_v52 = vsel %vm3034_vm1, %v3023_v14, %v6837_v13  ;;  %v14796_v13 = vld [vmem:[#allocation24_spill] sm:$0xff] }
 0x2b6   : > { %14787 = vst [vmem:[#allocation36_spill] sm:$0xff] %v12034_v55  ;;  %v6372_v55 = vld [vmem:[%s8946_s24 + $0x2c2] sm:$0xff]  ;;  %v6877_v27 = vunpack.i.h.bf16 %v14791_v19  ;;  %v6876_v10 = vunpack.i.l.bf16 %v14791_v19  ;;  %v12051_v9 = vpop.permute.xlu1 %8099  ;;  %v3070_v44 = vsel %vm3067_vm2, %v3037_v30, %v6871_v32  ;;  %v3071_v63 = vsel %vm3067_vm2, %v3038_v17, %v6872_v0  ;;  %v6422_v20 = vld [vmem:[%s8946_s24 + $0x191] sm:$0xff] }
 0x2b7   : > { %8374 = vrot.lane.b32.xlu0 %v8373_v28, %s8876_s30  ;;  %14792 = vst [vmem:[#allocation37_spill] sm:$0xff] %v12051_v9  ;;  %v6912_v53 = vunpack.i.h.bf16 %v14793_v47  ;;  %v6911_v56 = vunpack.i.l.bf16 %v14793_v47  ;;  %v6907_v43 = vunpack.i.h.bf16 %v14795_v42  ;;  %v6906_v14 = vunpack.i.l.bf16 %v14795_v42  ;;  %v14797_v9 = vld [vmem:[#allocation26_spill] sm:$0xff] }
 0x2b8   : > { %v6921_v34 = vunpack.i.l.bf16 %v14796_v13  ;;  %8389 = vrot.lane.b32.xlu1 %v8388_v18, %s8877_s4  ;;  %v12064_v19 = vpack.i.bf16 %v6372_v55, %v11623_v62  ;;  %v3068_v30 = vsel %vm3067_vm2, %v3035_v37, %v6866_v15  ;;  %v3069_v17 = vsel %vm3067_vm2, %v3036_v26, %v6867_v31 }
 0x2b9   : > { %v12057_v28 = vpop.permute.xlu0 %8094  ;;  %v3074_v0 = vsel %vm3067_vm2, %v3041_v16, %v6881_v41  ;;  %v3075_v32 = vsel %vm3067_vm2, %v3042_v23, %v6882_v1  ;;  %v3072_v42 = vsel %vm3067_vm2, %v3039_v46, %v6876_v10  ;;  %v3073_v47 = vsel %vm3067_vm2, %v3040_v29, %v6877_v27  ;;  %v14798_v23 = vld [vmem:[#allocation42_spill] sm:$0xff]  ;;  %v14799_v1 = vld [vmem:[#allocation43_spill] sm:$0xff] }
 0x2ba   : > { %14794 = vst [vmem:[#allocation38_spill] sm:$0xff] %v12057_v28  ;;  %v6922_v28 = vunpack.i.h.bf16 %v14796_v13  ;;  %v6916_v62 = vunpack.i.l.bf16 %v14797_v9  ;;  %v12076_v55 = vpop.permute.xlu1 %8109  ;;  %v3086_v37 = vsel %vm3067_vm2, %v3053_v22, %v6911_v56  ;;  %v3087_v26 = vsel %vm3067_vm2, %v3054_v40, %v6912_v53 }
 0x2bb   : > { %8384 = vrot.lane.b32.xlu0 %v11962_v61, %s8880_s7  ;;  %v6917_v16 = vunpack.i.h.bf16 %v14797_v9  ;;  %v6951_v61 = vunpack.i.l.bf16 %v14798_v23  ;;  %v3084_v46 = vsel %vm3067_vm2, %v3051_v7, %v6906_v14  ;;  %v3085_v29 = vsel %vm3067_vm2, %v3052_v54, %v6907_v43  ;;  %v12098_v54 = vld [vmem:[%s8946_s24 + $0x2d1] sm:$0xff]  ;;  %v6421_v43 = vld [vmem:[%s8946_s24 + $0x181] sm:$0xff] }
 0x2bc   : > { %v3090_v15 = vsel %vm3067_vm2, %v3057_v12, %v6921_v34  ;;  %8399 = vrot.lane.b32.xlu1 %v12064_v19, %s8877_s4  ;;  %v8408_v22 = vpack.i.bf16 %v11826_v59, %v11765_v48  ;;  %v6952_v40 = vunpack.i.h.bf16 %v14798_v23  ;;  %v6947_v41 = vunpack.i.h.bf16 %v14799_v1  ;;  %v12101_v12 = vld [vmem:[%s8946_s24 + $0x2e1] sm:$0xff]  ;;  %v14800_v48 = vld [vmem:[#allocation44_spill] sm:$0xff] }
 0x2bd   : > { %v12082_v31 = vpop.permute.xlu0 %8104  ;;  %v6946_v27 = vunpack.i.l.bf16 %v14799_v1  ;;  %v8403_v7 = vpack.i.bf16 %v11802_v49, %v11741_v60  ;;  %v3091_v10 = vsel %vm3067_vm2, %v3058_v24, %v6922_v28  ;;  %v3088_v9 = vsel %vm3067_vm2, %v3055_v38, %v6916_v62  ;;  %v6437_v14 = vld [vmem:[%s8946_s24 + $0x2c1] sm:$0xff]  ;;  %v14802_v49 = vld [vmem:[#allocation45_spill] sm:$0xff] }
 0x2be   : > { %v6962_v59 = vunpack.i.h.bf16 %v14800_v48  ;;  %v6961_v53 = vunpack.i.l.bf16 %v14800_v48  ;;  %v12107_v56 = vpop.permute.xlu1 %8119  ;;  %v3103_v60 = vsel %vm3100_vm3, %v3070_v44, %v6951_v61  ;;  %v6957_v13 = vunpack.i.h.bf16 %v14802_v49  ;;  %v14804_v24 = vld [vmem:[#allocation50_spill] sm:$0xff]  ;;  %v14805_v62 = vld [vmem:[#allocation51_spill] sm:$0xff] }
 0x2bf   : > { %8394 = vrot.lane.b32.xlu0 %v8388_v18, %s8880_s7  ;;  %14801 = vst [vmem:[#allocation39_spill] sm:$0xff] %v12107_v56  ;;  %v3089_v18 = vsel %vm3067_vm2, %v3056_v52, %v6917_v16  ;;  %v6956_v34 = vunpack.i.l.bf16 %v14802_v49  ;;  %v6992_v38 = vunpack.i.h.bf16 %v14804_v24  ;;  %v6991_v28 = vunpack.i.l.bf16 %v14804_v24  ;;  %v14806_v56 = vld [vmem:[#allocation52_spill] sm:$0xff] }
 0x2c0   : > { %v6986_v1 = vunpack.i.l.bf16 %v14805_v62  ;;  %8409 = vrot.lane.b32.xlu1 %v8408_v22, %s8878_s5  ;;  %v8418_v52 = vpack.i.bf16 %v12101_v12, %v12098_v54  ;;  %v3104_v44 = vsel %vm3100_vm3, %v3071_v63, %v6952_v40  ;;  %v3101_v16 = vsel %vm3100_vm3, %v3068_v30, %v6946_v27 }
 0x2c1   : > { %v12115_v23 = vpop.permute.xlu0 %8114  ;;  %v3102_v61 = vsel %vm3100_vm3, %v3069_v17, %v6947_v41  ;;  %v8413_v48 = vpack.i.bf16 %v6437_v14, %v6421_v43  ;;  %v3107_v49 = vsel %vm3100_vm3, %v3074_v0, %v6961_v53  ;;  %v3108_v24 = vsel %vm3100_vm3, %v3075_v32, %v6962_v59  ;;  %v14808_v17 = vld [vmem:[#allocation53_spill] sm:$0xff]  ;;  %v14811_v43 = vld [vmem:[#allocation59_spill] sm:$0xff] }
 0x2c2   : > { %14803 = vst [vmem:[#allocation4_spill] sm:$0xff] %v12115_v23  ;;  %v6987_v23 = vunpack.i.h.bf16 %v14805_v62  ;;  %v7001_v22 = vunpack.i.l.bf16 %v14806_v56  ;;  %v12131_v36 = vpop.permute.xlu1 %8129  ;;  %v3105_v63 = vsel %vm3100_vm3, %v3072_v42, %v6956_v34  ;;  %v7002_v30 = vunpack.i.h.bf16 %v14806_v56  ;;  %v14810_v42 = vld [vmem:[#allocation58_spill] sm:$0xff]  ;;  %v6454_v62 = vld [vmem:[%s8946_s24 + $0x192] sm:$0xff] }
 0x2c3   : > { %8404 = vrot.lane.b32.xlu0 %v8403_v7, %s8878_s5  ;;  %14807 = vst [vmem:[#allocation5_spill] sm:$0xff] %v12131_v36  ;;  %v6997_v40 = vunpack.i.h.bf16 %v14808_v17  ;;  %v6996_v41 = vunpack.i.l.bf16 %v14808_v17  ;;  %v3106_v32 = vsel %vm3100_vm3, %v3073_v47, %v6957_v13  ;;  %v3119_v27 = vsel %vm3100_vm3, %v3086_v37, %v6991_v28  ;;  %v6470_v47 = vld [vmem:[%s8946_s24 + $0x2d2] sm:$0xff] }
 0x2c4   : > { %v3120_v7 = vsel %vm3100_vm3, %v3087_v26, %v6992_v38  ;;  %v3117_v59 = vsel %vm3100_vm3, %v3084_v46, %v6986_v1  ;;  %8419 = vrot.lane.b32.xlu1 %v8418_v52, %s8876_s30  ;;  %v7032_v53 = vunpack.i.h.bf16 %v14810_v42  ;;  %v7031_v56 = vunpack.i.l.bf16 %v14810_v42  ;;  %v14812_v13 = vld [vmem:[#allocation60_spill] sm:$0xff]  ;;  %v14814_v17 = vld [vmem:[#allocation61_spill] sm:$0xff] }
 0x2c5   : > { %v12138_v0 = vpop.permute.xlu0 %8124  ;;  %v7026_v14 = vunpack.i.l.bf16 %v14811_v43  ;;  %v8423_v34 = vpack.i.bf16 %v12098_v54, %v6422_v20  ;;  %v3118_v37 = vsel %vm3100_vm3, %v3085_v29, %v6987_v23  ;;  %v3123_v26 = vsel %vm3100_vm3, %v3090_v15, %v7001_v22  ;;  %v14815_v23 = vld [vmem:[#allocation66_spill] sm:$0xff] }
 0x2c6   : > { %14809 = vst [vmem:[#allocation8_spill] sm:$0xff] %v12138_v0  ;;  %v7027_v46 = vunpack.i.h.bf16 %v14811_v43  ;;  %v7041_v38 = vunpack.i.l.bf16 %v14812_v13  ;;  %v12156_v28 = vpop.permute.xlu1 %8139  ;;  %v3124_v1 = vsel %vm3100_vm3, %v3091_v10, %v7002_v30  ;;  %v3121_v52 = vsel %vm3100_vm3, %v3088_v9, %v6996_v41  ;;  %v14816_v43 = vld [vmem:[#allocation67_spill] sm:$0xff] }
 0x2c7   : > { %8414 = vrot.lane.b32.xlu0 %v8413_v48, %s8879_s6  ;;  %v3122_v48 = vsel %vm3100_vm3, %v3089_v18, %v6997_v40  ;;  %v7042_v20 = vunpack.i.h.bf16 %v14812_v13  ;;  %v7037_v29 = vunpack.i.h.bf16 %v14814_v17  ;;  %v7036_v15 = vunpack.i.l.bf16 %v14814_v17 }
 0x2c8   : > { %v7071_v22 = vunpack.i.l.bf16 %v14815_v23  ;;  %8429 = vrot.lane.b32.xlu1 %v12064_v19, %s8880_s7  ;;  %v8438_v10 = vpack.i.bf16 %v6470_v47, %v6454_v62  ;;  %v3136_v9 = vsel %vm3133_vm4, %v3103_v60, %v7031_v56  ;;  %v3137_v18 = vsel %vm3133_vm4, %v3104_v44, %v7032_v53  ;;  %v6358_v62 = vld [vmem:[%s8946_s24 + $0x1a2] sm:$0xff] }
 0x2c9   : > { %v12162_v54 = vpop.permute.xlu0 %8134  ;;  %v3134_v30 = vsel %vm3133_vm4, %v3101_v16, %v7026_v14  ;;  %v7072_v40 = vunpack.i.h.bf16 %v14815_v23  ;;  %v3135_v41 = vsel %vm3133_vm4, %v3102_v61, %v7027_v46  ;;  %v3140_v42 = vsel %vm3133_vm4, %v3107_v49, %v7041_v38  ;;  %v6374_v60 = vld [vmem:[%s8946_s24 + $0x2e2] sm:$0xff]  ;;  %v14817_v16 = vld [vmem:[#allocation68_spill] sm:$0xff]  ;;  %v14818_v14 = vld [vmem:[#allocation69_spill] sm:$0xff] }
 0x2ca   : > { %14813 = vst [vmem:[#allocation6_spill] sm:$0xff] %v12162_v54  ;;  %v7067_v13 = vunpack.i.h.bf16 %v14816_v43  ;;  %v7066_v17 = vunpack.i.l.bf16 %v14816_v43  ;;  %v12178_v19 = vpop.permute.xlu1 %8149  ;;  %v3141_v44 = vsel %vm3133_vm4, %v3108_v24, %v7042_v20  ;;  %v7082_v53 = vunpack.i.h.bf16 %v14817_v16  ;;  %v14819_v23 = vld [vmem:[#allocation74_spill] sm:$0xff] }
 0x2cb   : > { %8424 = vrot.lane.b32.xlu0 %v8423_v34, %s8879_s6  ;;  %v7081_v56 = vunpack.i.l.bf16 %v14817_v16  ;;  %v7076_v34 = vunpack.i.l.bf16 %v14818_v14  ;;  %v3138_v49 = vsel %vm3133_vm4, %v3105_v63, %v7036_v15  ;;  %v3139_v47 = vsel %vm3133_vm4, %v3106_v32, %v7037_v29  ;;  %v6423_v63 = vld [vmem:[%s8946_s24 + $0x1a1] sm:$0xff] }
 0x2cc   : > { %v3152_v46 = vsel %vm3133_vm4, %v3119_v27, %v7071_v22  ;;  %8439 = vrot.lane.b32.xlu1 %v8438_v10, %s8880_s7  ;;  %v8448_v38 = vpack.i.bf16 %v11829_v58, %v11768_v51  ;;  %v3153_v24 = vsel %vm3133_vm4, %v3120_v7, %v7072_v40  ;;  %v7077_v20 = vunpack.i.h.bf16 %v14818_v14  ;;  %v14820_v15 = vld [vmem:[#allocation75_spill] sm:$0xff] }
 0x2cd   : > { %v12186_v61 = vpop.permute.xlu0 %8144  ;;  %v7111_v43 = vunpack.i.l.bf16 %v14819_v23  ;;  %v12198_v16 = vpack.i.bf16 %v6374_v60, %v6358_v62  ;;  %v3150_v32 = vsel %vm3133_vm4, %v3117_v59, %v7066_v17  ;;  %v3151_v27 = vsel %vm3133_vm4, %v3118_v37, %v7067_v13  ;;  %v14822_v59 = vld [vmem:[#allocation76_spill] sm:$0xff]  ;;  %v14823_v17 = vld [vmem:[#allocation77_spill] sm:$0xff] }
 0x2ce   : > { %v7112_v29 = vunpack.i.h.bf16 %v14819_v23  ;;  %v7106_v22 = vunpack.i.l.bf16 %v14820_v15  ;;  %v12205_v58 = vpop.permute.xlu1 %8159  ;;  %v3156_v51 = vsel %vm3133_vm4, %v3123_v26, %v7081_v56  ;;  %v3157_v7 = vsel %vm3133_vm4, %v3124_v1, %v7082_v53  ;;  %v6424_v56 = vld [vmem:[%s8946_s24 + $0x1b1] sm:$0xff] }
 0x2cf   : > { %8434 = vrot.lane.b32.xlu0 %v8438_v10, %s8877_s4  ;;  %14821 = vst [vmem:[#allocation18_spill] sm:$0xff] %v12205_v58  ;;  %v3154_v10 = vsel %vm3133_vm4, %v3121_v52, %v7076_v34  ;;  %v7107_v40 = vunpack.i.h.bf16 %v14820_v15  ;;  %v7122_v37 = vunpack.i.h.bf16 %v14822_v59  ;;  %v7121_v13 = vunpack.i.l.bf16 %v14822_v59  ;;  %v6440_v34 = vld [vmem:[%s8946_s24 + $0x2f1] sm:$0xff] }
 0x2d0   : > { %v7116_v60 = vunpack.i.l.bf16 %v14823_v17  ;;  %8449 = vrot.lane.b32.xlu1 %v8448_v38, %s8878_s5  ;;  %v8458_v14 = vpack.i.bf16 %v12101_v12, %v6423_v63  ;;  %v3155_v26 = vsel %vm3133_vm4, %v3122_v48, %v7077_v20  ;;  %v3169_v1 = vsel %vm3166_vm5, %v3136_v9, %v7111_v43  ;;  %v14824_v12 = vld [vmem:[#allocation82_spill] sm:$0xff]  ;;  %v14826_v43 = vld [vmem:[#allocation83_spill] sm:$0xff] }
 0x2d1   : > { %v12211_v62 = vpop.permute.xlu0 %8154  ;;  %v7117_v52 = vunpack.i.h.bf16 %v14823_v17  ;;  %v8453_v53 = vpack.i.bf16 %v11818_v57, %v11757_v8  ;;  %v3170_v23 = vsel %vm3166_vm5, %v3137_v18, %v7112_v29  ;;  %v3167_v38 = vsel %vm3166_vm5, %v3134_v30, %v7106_v22  ;;  %v14827_v57 = vld [vmem:[#allocation84_spill] sm:$0xff]  ;;  %v12243_v22 = vld [vmem:[%s8946_s24 + $0x301] sm:$0xff] }
 0x2d2   : > { %v7152_v63 = vunpack.i.h.bf16 %v14824_v12  ;;  %v7151_v48 = vunpack.i.l.bf16 %v14824_v12  ;;  %v12231_v9 = vpop.permute.xlu1 %8169  ;;  %v3168_v20 = vsel %vm3166_vm5, %v3135_v41, %v7107_v40  ;;  %v7147_v15 = vunpack.i.h.bf16 %v14826_v43 }
 0x2d3   : > { %8444 = vrot.lane.b32.xlu0 %v12198_v16, %s8877_s4  ;;  %14825 = vst [vmem:[#allocation112_spill] sm:$0xff] %v12231_v9  ;;  %v7146_v8 = vunpack.i.l.bf16 %v14826_v43  ;;  %v7161_v59 = vunpack.i.l.bf16 %v14827_v57  ;;  %v3173_v18 = vsel %vm3166_vm5, %v3140_v42, %v7121_v13  ;;  %v3174_v30 = vsel %vm3166_vm5, %v3141_v44, %v7122_v37  ;;  %v14829_v43 = vld [vmem:[#allocation85_spill] sm:$0xff] }
 0x2d4   : > { %v3171_v29 = vsel %vm3166_vm5, %v3138_v49, %v7116_v60  ;;  %8459 = vrot.lane.b32.xlu1 %v8458_v14, %s8879_s6  ;;  %v8468_v41 = vpack.i.bf16 %v6440_v34, %v6424_v56  ;;  %v3172_v40 = vsel %vm3166_vm5, %v3139_v47, %v7117_v52  ;;  %v7162_v12 = vunpack.i.h.bf16 %v14827_v57  ;;  %v6359_v42 = vld [vmem:[%s8946_s24 + $0x1b2] sm:$0xff]  ;;  %v14830_v60 = vld [vmem:[#allocation90_spill] sm:$0xff] }
 0x2d5   : > { %v12237_v17 = vpop.permute.xlu0 %8164  ;;  %v7156_v54 = vunpack.i.l.bf16 %v14829_v43  ;;  %v8463_v9 = vpack.i.bf16 %v12243_v22, %v6440_v34  ;;  %v6375_v13 = vld [vmem:[%s8946_s24 + $0x2f2] sm:$0xff]  ;;  %v3185_v44 = vsel %vm3166_vm5, %v3152_v46, %v7151_v48  ;;  %v3186_v49 = vsel %vm3166_vm5, %v3153_v24, %v7152_v63  ;;  %v14833_v46 = vld [vmem:[#allocation91_spill] sm:$0xff] }
 0x2d6   : > { %14828 = vst [vmem:[#allocation15_spill] sm:$0xff] %v12237_v17  ;;  %v7157_v37 = vunpack.i.h.bf16 %v14829_v43  ;;  %v7191_v14 = vunpack.i.l.bf16 %v14830_v60  ;;  %v12257_v56 = vpop.permute.xlu1 %8179  ;;  %v3183_v47 = vsel %vm3166_vm5, %v3150_v32, %v7146_v8  ;;  %v3184_v52 = vsel %vm3166_vm5, %v3151_v27, %v7147_v15  ;;  %v14834_v48 = vld [vmem:[#allocation92_spill] sm:$0xff]  ;;  %v14837_v15 = vld [vmem:[#allocation93_spill] sm:$0xff] }
 0x2d7   : > { %8454 = vrot.lane.b32.xlu0 %v8453_v53, %s8878_s5  ;;  %14831 = vst [vmem:[#allocation13_spill] sm:$0xff] %v12257_v56  ;;  %v3189_v53 = vsel %vm3166_vm5, %v3156_v51, %v7161_v59  ;;  %v7192_v34 = vunpack.i.h.bf16 %v14830_v60  ;;  %v7187_v24 = vunpack.i.h.bf16 %v14833_v46  ;;  %v7186_v63 = vunpack.i.l.bf16 %v14833_v46  ;;  %v6360_v59 = vld [vmem:[%s8946_s24 + $0x1c2] sm:$0xff]  ;;  %v14900_v17 = vld [vmem:[#allocation149_spill] sm:$0xff] }
 0x2d8   : > { %v7201_v43 = vunpack.i.l.bf16 %v14834_v48  ;;  %8469 = vrot.lane.b32.xlu1 %v8468_v41, %s8879_s6  ;;  %v8478_v56 = vpack.i.bf16 %v6375_v13, %v6359_v42  ;;  %v12270_v32 = vsel %vm3166_vm5, %v3157_v7, %v7162_v12  ;;  %v12273_v27 = vsel %vm3166_vm5, %v3154_v10, %v7156_v54  ;;  %v6376_v60 = vld [vmem:[%s8946_s24 + $0x302] sm:$0xff] }
 0x2d9   : > { %v12263_v57 = vpop.permute.xlu0 %8174  ;;  %14835 = vst [vmem:[#allocation22_spill] sm:$0xff] %v12270_v32  ;;  %14836 = vst [vmem:[#allocation20_spill] sm:$0xff] %v12273_v27  ;;  %v7202_v51 = vunpack.i.h.bf16 %v14834_v48  ;;  %v7196_v8 = vunpack.i.l.bf16 %v14837_v15  ;;  %v12281_v46 = vsel %vm3166_vm5, %v3155_v26, %v7157_v37  ;;  %v3202_v41 = vsel %vm3199_vm6, %v3169_v1, %v7191_v14  ;;  %v14839_v7 = vld [vmem:[#allocation98_spill] sm:$0xff] }
 0x2da   : > { %14832 = vst [vmem:[#allocation17_spill] sm:$0xff] %v12263_v57  ;;  %14838 = vst [vmem:[#allocation24_spill] sm:$0xff] %v12281_v46  ;;  %v7197_v42 = vunpack.i.h.bf16 %v14837_v15  ;;  %v7231_v12 = vunpack.i.l.bf16 %v14839_v7  ;;  %v12286_v13 = vpop.permute.xlu1 %8189  ;;  %v3203_v54 = vsel %vm3199_vm6, %v3170_v23, %v7192_v34  ;;  %v7232_v10 = vunpack.i.h.bf16 %v14839_v7  ;;  %v14844_v7 = vld [vmem:[#allocation100_spill] sm:$0xff]  ;;  %v14845_v46 = vld [vmem:[#allocation106_spill] sm:$0xff] }
 0x2db   : > { %8464 = vrot.lane.b32.xlu0 %v8463_v9, %s8876_s30  ;;  %v14840_v9 = vld [vmem:[#allocation99_spill] sm:$0xff]  ;;  %v3200_v1 = vsel %vm3199_vm6, %v3167_v38, %v7186_v63  ;;  %v3201_v37 = vsel %vm3199_vm6, %v3168_v20, %v7187_v24  ;;  %v12297_v14 = vsel %vm3199_vm6, %v3173_v18, %v7201_v43  ;;  %v12300_v15 = vpack.i.bf16 %v6376_v60, %v6360_v59  ;;  %v6394_v38 = vld [vmem:[%s8946_s24 + $0x1d0] sm:$0xff] }
 0x2dc   : > { %v7227_v48 = vunpack.i.h.bf16 %v14840_v9  ;;  %v7226_v27 = vunpack.i.l.bf16 %v14840_v9  ;;  %14841 = vst [vmem:[#allocation26_spill] sm:$0xff] %v12297_v14  ;;  %8479 = vrot.lane.b32.xlu1 %v8478_v56, %s8877_s4  ;;  %v12303_v23 = vsel %vm3199_vm6, %v3174_v30, %v7202_v51  ;;  %v12306_v34 = vsel %vm3199_vm6, %v3171_v29, %v7196_v8  ;;  %v6410_v20 = vld [vmem:[%s8946_s24 + $0x310] sm:$0xff]  ;;  %v14847_v63 = vld [vmem:[#allocation107_spill] sm:$0xff] }
 0x2dd   : > { %v12292_v26 = vpop.permute.xlu0 %8184  ;;  %14842 = vst [vmem:[#allocation42_spill] sm:$0xff] %v12303_v23  ;;  %14843 = vst [vmem:[#allocation43_spill] sm:$0xff] %v12306_v34  ;;  %v7241_v9 = vunpack.i.l.bf16 %v14844_v7  ;;  %v7271_v32 = vunpack.i.l.bf16 %v14845_v46  ;;  %v12315_v18 = vsel %vm3199_vm6, %v3172_v40, %v7197_v42  ;;  %v3218_v24 = vsel %vm3199_vm6, %v3185_v44, %v7231_v12  ;;  %v14859_v23 = vld [vmem:[#allocation134_spill] sm:$0xff]  ;;  %v14865_v60 = vld [vmem:[#allocation151_spill] sm:$0xff] }
 0x2de   : > { %14846 = vst [vmem:[#allocation44_spill] sm:$0xff] %v12315_v18  ;;  %v7272_v30 = vunpack.i.h.bf16 %v14845_v46  ;;  %v7266_v43 = vunpack.i.l.bf16 %v14847_v63  ;;  %v12320_v29 = vpop.permute.xlu1 %8199  ;;  %v3219_v51 = vsel %vm3199_vm6, %v3186_v49, %v7232_v10  ;;  %v3216_v8 = vsel %vm3199_vm6, %v3183_v47, %v7226_v27 }
 0x2df   : > { %8474 = vrot.lane.b32.xlu0 %v12198_v16, %s8880_s7  ;;  %14848 = vst [vmem:[#allocation45_spill] sm:$0xff] %v12320_v29  ;;  %v3217_v16 = vsel %vm3199_vm6, %v3184_v52, %v7227_v48  ;;  %v7267_v59 = vunpack.i.h.bf16 %v14847_v63  ;;  %v8498_v49 = vpack.i.bf16 %v6410_v20, %v6394_v38  ;;  %v12334_v12 = vsel %vm3199_vm6, %v3189_v53, %v7241_v9  ;;  %v14851_v52 = vld [vmem:[#allocation113_spill] sm:$0xff]  ;;  %v12343_v63 = vld [vmem:[%s8946_s24 + $0x341] sm:$0xff]  ;;  %v14852_v53 = vld [vmem:[#allocation116_spill] sm:$0xff] }
 0x2e0   : > { %8489 = vrot.lane.b32.xlu1 %v12300_v15, %s8877_s4  ;;  %14850 = vst [vmem:[#allocation50_spill] sm:$0xff] %v12334_v12  ;;  %v3235_v47 = vsel %vm3232_vm7, %v3202_v41, %v7271_v32  ;;  %v7311_v27 = vunpack.i.l.bf16 %v14851_v52  ;;  %v8493_v10 = vpack.i.bf16 %v11821_v25, %v11760_v2  ;;  %v6345_v48 = vld [vmem:[%s8946_s24 + $0x331] sm:$0xff]  ;;  %v3236_v46 = vsel %vm3232_vm7, %v3203_v54, %v7272_v30  ;;  %v6425_v32 = vld [vmem:[%s8946_s24 + $0x1c1] sm:$0xff] }
 0x2e1   : > { %v12326_v40 = vpop.permute.xlu0 %8194  ;;  %v3233_v42 = vsel %vm3232_vm7, %v3200_v1, %v7266_v43  ;;  %v7312_v38 = vunpack.i.h.bf16 %v14851_v52  ;;  %v7306_v9 = vunpack.i.l.bf16 %v14852_v53  ;;  %v3234_v41 = vsel %vm3232_vm7, %v3201_v37, %v7267_v59  ;;  %v14855_v25 = vld [vmem:[#allocation125_spill] sm:$0xff]  ;;  %v14857_v30 = vld [vmem:[#allocation127_spill] sm:$0xff]  ;;  %v12917_v29 = vld [vmem:[%s8946_s24 + $0x3a0] sm:$0xff] }
 0x2e2   : > { %v12349_v20 = vpop.permute.xlu1 %8209  ;;  %v7307_v2 = vunpack.i.h.bf16 %v14852_v53  ;;  %v7351_v12 = vunpack.i.l.bf16 %v14855_v25  ;;  %v7352_v1 = vunpack.i.h.bf16 %v14855_v25  ;;  %v7346_v43 = vunpack.i.l.bf16 %v14857_v30  ;;  %v6426_v59 = vld [vmem:[%s8946_s24 + $0x1d1] sm:$0xff] }
 0x2e3   : > { %8484 = vrot.lane.b32.xlu0 %v8478_v56, %s8880_s7  ;;  %14853 = vst [vmem:[#allocation51_spill] sm:$0xff] %v12349_v20  ;;  %v8508_v52 = vpack.i.bf16 %v12343_v63, %v6345_v48  ;;  %v3251_v44 = vsel %vm3232_vm7, %v3218_v24, %v7311_v27  ;;  %v7347_v53 = vunpack.i.h.bf16 %v14857_v30  ;;  %v8503_v34 = vpack.i.bf16 %v12243_v22, %v6425_v32  ;;  %v6444_v20 = vld [vmem:[%s8946_s24 + $0x351] sm:$0xff] }
 0x2e4   : > { %8499 = vrot.lane.b32.xlu1 %v8498_v49, %s8878_s5  ;;  %v3252_v54 = vsel %vm3232_vm7, %v3219_v51, %v7312_v38  ;;  %v3249_v25 = vsel %vm3232_vm7, %v3216_v8, %v7306_v9  ;;  %v7392_v14 = vunpack.i.h.bf16 %v14859_v23  ;;  %v7391_v49 = vunpack.i.l.bf16 %v14859_v23  ;;  %v14862_v23 = vld [vmem:[#allocation142_spill] sm:$0xff] }
 0x2e5   : > { %v12356_v18 = vpop.permute.xlu0 %8204  ;;  %v3250_v24 = vsel %vm3232_vm7, %v3217_v16, %v7307_v2  ;;  %v3268_v27 = vsel %vm3265_vm8, %v3235_v47, %v7351_v12  ;;  %v3269_v8 = vsel %vm3265_vm8, %v3236_v46, %v7352_v1  ;;  %v3266_v38 = vsel %vm3265_vm8, %v3233_v42, %v7346_v43  ;;  %v12386_v16 = vld [vmem:[%s8946_s24 + $0x311] sm:$0xff]  ;;  %v14863_v47 = vld [vmem:[#allocation143_spill] sm:$0xff] }
 0x2e6   : > { %14856 = vst [vmem:[#allocation52_spill] sm:$0xff] %v12356_v18  ;;  %v12372_v48 = vpop.permute.xlu1 %8219  ;;  %v7432_v9 = vunpack.i.h.bf16 %v14862_v23  ;;  %v7431_v56 = vunpack.i.l.bf16 %v14862_v23  ;;  %v3267_v12 = vsel %vm3265_vm8, %v3234_v41, %v7347_v53  ;;  %v7427_v2 = vunpack.i.h.bf16 %v14863_v47  ;;  %v6458_v42 = vld [vmem:[%s8946_s24 + $0x1d2] sm:$0xff] }
 0x2e7   : > { %8494 = vrot.lane.b32.xlu0 %v8493_v10, %s8878_s5  ;;  %v14860_v10 = vld [vmem:[#allocation135_spill] sm:$0xff]  ;;  %v8513_v46 = vpack.i.bf16 %v12386_v16, %v6426_v59  ;;  %v6474_v1 = vld [vmem:[%s8946_s24 + $0x312] sm:$0xff]  ;;  %v3284_v43 = vsel %vm3265_vm8, %v3251_v44, %v7391_v49  ;;  %v12398_v23 = vsel %vm3265_vm8, %v3252_v54, %v7392_v14  ;;  %v7471_v7 = vunpack.i.l.bf16 %v14865_v60 }
 0x2e8   : > { %v7387_v32 = vunpack.i.h.bf16 %v14860_v10  ;;  %v7386_v30 = vunpack.i.l.bf16 %v14860_v10  ;;  %8509 = vrot.lane.b32.xlu1 %v8508_v52, %s8876_s30  ;;  %v7426_v10 = vunpack.i.l.bf16 %v14863_v47  ;;  %14864 = vst [vmem:[#allocation58_spill] sm:$0xff] %v12398_v23  ;;  %v14866_v52 = vld [vmem:[#allocation152_spill] sm:$0xff]  ;;  %v12413_v54 = vsel %vm3298_vm9, %v3268_v27, %v7431_v56  ;;  %v6395_v27 = vld [vmem:[%s8946_s24 + $0x200] sm:$0xff] }
 0x2e9   : > { %v12379_v51 = vpop.permute.xlu0 %8214  ;;  %v7466_v37 = vunpack.i.l.bf16 %v14866_v52  ;;  %v6361_v53 = vld [vmem:[%s8946_s24 + $0x1f2] sm:$0xff]  ;;  %v7467_v47 = vunpack.i.h.bf16 %v14866_v52  ;;  %14868 = vst [vmem:[#allocation59_spill] sm:$0xff] %v12413_v54  ;;  %v12416_v23 = vsel %vm3298_vm9, %v3269_v8, %v7432_v9  ;;  %v6411_v8 = vld [vmem:[%s8946_s24 + $0x340] sm:$0xff]  ;;  %v12428_v9 = vsel %vm3298_vm9, %v3284_v43, %v7471_v7 }
 0x2ea   : > { %14861 = vst [vmem:[#allocation53_spill] sm:$0xff] %v12379_v51  ;;  %v12402_v41 = vpop.permute.xlu1 %8229  ;;  %v6377_v51 = vld [vmem:[%s8946_s24 + $0x332] sm:$0xff]  ;;  %v3283_v59 = vsel %vm3265_vm8, %v3250_v24, %v7387_v32  ;;  %14869 = vst [vmem:[#allocation60_spill] sm:$0xff] %v12416_v23  ;;  %v3299_v24 = vsel %vm3298_vm9, %v3266_v38, %v7426_v10  ;;  %v3300_v32 = vsel %vm3298_vm9, %v3267_v12, %v7427_v2  ;;  %v6362_v38 = vld [vmem:[%s8946_s24 + $0x202] sm:$0xff] }
 0x2eb   : > { %8504 = vrot.lane.b32.xlu0 %v8503_v34, %s8879_s6  ;;  %v3282_v34 = vsel %vm3265_vm8, %v3249_v25, %v7386_v30  ;;  %v14867_v44 = vld [vmem:[#allocation12_spill] sm:$0xff]  ;;  %v8528_v25 = vpack.i.bf16 %v6474_v1, %v6458_v42  ;;  %v8523_v56 = vpack.i.bf16 %v6377_v51, %v6361_v53  ;;  %14870 = vst [vmem:[#allocation61_spill] sm:$0xff] %v12428_v9  ;;  %v6378_v12 = vld [vmem:[%s8946_s24 + $0x342] sm:$0xff] }
 0x2ec   : > { %v7506_v49 = vunpack.i.l.bf16 %v14867_v44  ;;  %v7507_v57 = vunpack.i.h.bf16 %v14867_v44  ;;  %8519 = vrot.lane.b32.xlu1 %v12300_v15, %s8880_s7  ;;  %v3315_v52 = vsel %vm3298_vm9, %v3282_v34, %v7466_v37  ;;  %v14871_v44 = vld [vmem:[#allocation21_spill] sm:$0xff]  ;;  %v3316_v2 = vsel %vm3298_vm9, %v3283_v59, %v7467_v47  ;;  %v14875_v59 = vld [vmem:[#allocation54_spill] sm:$0xff]  ;;  %v14877_v34 = vld [vmem:[#allocation72_spill] sm:$0xff] }
 0x2ed   : > { %v12410_v14 = vpop.permute.xlu0 %8224  ;;  %v7547_v23 = vunpack.i.h.bf16 %v14871_v44  ;;  %v7546_v15 = vunpack.i.l.bf16 %v14871_v44  ;;  %v8538_v44 = vpack.i.bf16 %v6411_v8, %v6395_v27  ;;  %v7587_v47 = vunpack.i.h.bf16 %v14875_v59  ;;  %v6396_v8 = vld [vmem:[%s8946_s24 + $0x210] sm:$0xff] }
 0x2ee   : > { %v12433_v42 = vpop.permute.xlu1 %8239  ;;  %v3332_v7 = vsel %vm3331_vm10, %v3299_v24, %v7506_v49  ;;  %v3333_v37 = vsel %vm3331_vm10, %v3300_v32, %v7507_v57  ;;  %v7586_v51 = vunpack.i.l.bf16 %v14875_v59  ;;  %v12451_v49 = vpack.i.bf16 %v6378_v12, %v6362_v38  ;;  %v6427_v57 = vld [vmem:[%s8946_s24 + $0x201] sm:$0xff]  ;;  %v6412_v9 = vld [vmem:[%s8946_s24 + $0x350] sm:$0xff] }
 0x2ef   : > { %8514 = vrot.lane.b32.xlu0 %v8513_v46, %s8879_s6  ;;  %14872 = vst [vmem:[#allocation66_spill] sm:$0xff] %v12433_v42  ;;  %v14876_v46 = vld [vmem:[#allocation64_spill] sm:$0xff]  ;;  %v3348_v24 = vsel %vm3331_vm10, %v3315_v52, %v7546_v15  ;;  %v3349_v32 = vsel %vm3331_vm10, %v3316_v2, %v7547_v23  ;;  %v8548_v43 = vpack.i.bf16 %v12343_v63, %v6427_v57 }
 0x2f0   : > { %8529 = vrot.lane.b32.xlu1 %v8528_v25, %s8880_s7  ;;  %v7626_v30 = vunpack.i.l.bf16 %v14876_v46  ;;  %v7627_v53 = vunpack.i.h.bf16 %v14876_v46  ;;  %v7667_v25 = vunpack.i.h.bf16 %v14877_v34  ;;  %v14880_v38 = vld [vmem:[#allocation80_spill] sm:$0xff]  ;;  %v3365_v59 = vsel %vm3364_vm11, %v3332_v7, %v7586_v51  ;;  %v12487_v51 = vld [vmem:[%s8946_s24 + $0x361] sm:$0xff] }
 0x2f1   : > { %v12441_v1 = vpop.permute.xlu0 %8234  ;;  %v7707_v12 = vunpack.i.h.bf16 %v14880_v38  ;;  %v7706_v52 = vunpack.i.l.bf16 %v14880_v38  ;;  %v14882_v23 = vld [vmem:[#allocation88_spill] sm:$0xff]  ;;  %v8543_v38 = vpack.i.bf16 %v6412_v9, %v6396_v8  ;;  %v7867_v9 = vunpack.i.h.bf16 %v11659_v6 }
 0x2f2   : > { %v12458_v27 = vpop.permute.xlu1 %8249  ;;  %v7747_v2 = vunpack.i.h.bf16 %v14882_v23  ;;  %v7746_v46 = vunpack.i.l.bf16 %v14882_v23  ;;  %v14883_v54 = vld [vmem:[#allocation96_spill] sm:$0xff]  ;;  %v3381_v60 = vsel %vm3364_vm11, %v3348_v24, %v7626_v30  ;;  %v3382_v23 = vsel %vm3364_vm11, %v3349_v32, %v7627_v53 }
 0x2f3   : > { %8524 = vrot.lane.b32.xlu0 %v8523_v56, %s8877_s4  ;;  %14878 = vst [vmem:[#allocation67_spill] sm:$0xff] %v12458_v27  ;;  %v7666_v56 = vunpack.i.l.bf16 %v14877_v34  ;;  %v7786_v10 = vunpack.i.l.bf16 %v14883_v54  ;;  %v3366_v34 = vsel %vm3364_vm11, %v3333_v37, %v7587_v47  ;;  %v6428_v27 = vld [vmem:[%s8946_s24 + $0x211] sm:$0xff]  ;;  %v3415_v30 = vsel %vm3397_vm12, %v3382_v23, %v7707_v12 }
 0x2f4   : > { %8539 = vrot.lane.b32.xlu1 %v8538_v44, %s8878_s5  ;;  %v7787_v44 = vunpack.i.h.bf16 %v14883_v54  ;;  %v14884_v18 = vld [vmem:[#allocation104_spill] sm:$0xff]  ;;  %v3414_v54 = vsel %vm3397_vm12, %v3381_v60, %v7706_v52  ;;  %v8558_v53 = vpack.i.bf16 %v6444_v20, %v6428_v27  ;;  %v7911_v8 = vunpack.i.l.bf16 %v11709_v3 }
 0x2f5   : > { %v12466_v15 = vpop.permute.xlu0 %8244  ;;  %v7827_v63 = vunpack.i.h.bf16 %v14884_v18  ;;  %v3398_v37 = vsel %vm3397_vm12, %v3365_v59, %v7666_v56  ;;  %v12500_v24 = vsel %vm3430_vm13, %v3414_v54, %v7786_v10  ;;  %v7907_v59 = vunpack.i.h.bf16 %v11721_v11  ;;  %v6379_v27 = vld [vmem:[%s8946_s24 + $0x352] sm:$0xff]  ;;  %v6127_v56 = vld [vmem:[%s8946_s24 + $0xe1] sm:$0xff] }
 0x2f6   : > { %14881 = vst [vmem:[#allocation68_spill] sm:$0xff] %v12466_v15  ;;  %v3399_v15 = vsel %vm3397_vm12, %v3366_v34, %v7667_v25  ;;  %v12484_v57 = vpop.permute.xlu1 %8259  ;;  %v12497_v47 = vsel %vm3430_vm13, %v3398_v37, %v7746_v46  ;;  %14888 = vst [vmem:[#allocation76_spill] sm:$0xff] %v12500_v24  ;;  %v7912_v25 = vunpack.i.h.bf16 %v11709_v3  ;;  %v8553_v60 = vpack.i.bf16 %v12487_v51, %v6444_v20  ;;  %v6128_v10 = vld [vmem:[%s8946_s24 + $0xf1] sm:$0xff]  ;;  %v6125_v20 = vld [vmem:[%s8946_s24 + $0xc1] sm:$0xff] }
 0x2f7   : > { %8534 = vrot.lane.b32.xlu0 %v12451_v49, %s8877_s4  ;;  %14885 = vst [vmem:[#allocation69_spill] sm:$0xff] %v12484_v57  ;;  %14887 = vst [vmem:[#allocation75_spill] sm:$0xff] %v12497_v47  ;;  %v3432_v32 = vsel %vm3430_vm13, %v3399_v15, %v7747_v2  ;;  %v6126_v12 = vld [vmem:[%s8946_s24 + $0xd1] sm:$0xff]  ;;  %v7906_v52 = vunpack.i.l.bf16 %v11721_v11  ;;  %v7922_v15 = vunpack.i.h.bf16 %v11729_v5  ;;  %v3448_v46 = vsel %vm3430_vm13, %v3415_v30, %v7787_v44  ;;  %v6131_v24 = vld [vmem:[%s8946_s24 + $0x121] sm:$0xff] }
 0x2f8   : > { %8549 = vrot.lane.b32.xlu1 %v8548_v43, %s8879_s6  ;;  %v6363_v43 = vld [vmem:[%s8946_s24 + $0x212] sm:$0xff]  ;;  %v12518_v3 = vsel %vm3463_vm14, %v3432_v32, %v7827_v63  ;;  %v7917_v23 = vunpack.i.h.bf16 %v11733_v21  ;;  %v7916_v37 = vunpack.i.l.bf16 %v11733_v21  ;;  %v12529_v11 = vsel %vm3463_vm14, %v3448_v46, %v7867_v9  ;;  %v6129_v63 = vld [vmem:[%s8946_s24 + $0x101] sm:$0xff] }
 0x2f9   : > { %v12491_v7 = vpop.permute.xlu0 %8254  ;;  %14889 = vst [vmem:[#allocation77_spill] sm:$0xff] %v12518_v3  ;;  %v6132_v34 = vld [vmem:[%s8946_s24 + $0x131] sm:$0xff]  ;;  %14890 = vst [vmem:[#allocation82_spill] sm:$0xff] %v12529_v11  ;;  %v7932_v44 = vunpack.i.h.bf16 %v11743_v4  ;;  %v7931_v30 = vunpack.i.l.bf16 %v11743_v4  ;;  %v8568_v3 = vpack.i.bf16 %v6379_v27, %v6363_v43  ;;  %v12539_v21 = vsel %vm3001_vm0, %v6128_v10, %v7912_v25  ;;  %v6364_v4 = vld [vmem:[%s8946_s24 + $0x222] sm:$0xff] }
 0x2fa   : > { %14886 = vst [vmem:[#allocation74_spill] sm:$0xff] %v12491_v7  ;;  %v12515_v2 = vpop.permute.xlu1 %8269  ;;  %v6130_v32 = vld [vmem:[%s8946_s24 + $0x111] sm:$0xff]  ;;  %v12542_v47 = vsel %vm3001_vm0, %v6127_v56, %v7911_v8  ;;  %v12545_v9 = vsel %vm3001_vm0, %v6126_v12, %v7907_v59  ;;  %v7926_v46 = vunpack.i.l.bf16 %v11748_v35  ;;  %v6380_v11 = vld [vmem:[%s8946_s24 + $0x362] sm:$0xff]  ;;  %v12555_v25 = vsel %vm3001_vm0, %v6132_v34, %v7922_v15 }
 0x2fb   : > { %8544 = vrot.lane.b32.xlu0 %v8543_v38, %s8878_s5  ;;  %v7921_v38 = vunpack.i.l.bf16 %v11729_v5  ;;  %v7927_v5 = vunpack.i.h.bf16 %v11748_v35  ;;  %v7942_v8 = vunpack.i.h.bf16 %v11762_v39  ;;  %v7941_v59 = vunpack.i.l.bf16 %v11762_v39  ;;  %v6140_v56 = vld [vmem:[%s8946_s24 + $0x1d1] sm:$0xff] }
 0x2fc   : > { %8559 = vrot.lane.b32.xlu1 %v8558_v53, %s8879_s6  ;;  %v12552_v53 = vsel %vm3001_vm0, %v6125_v20, %v7906_v52  ;;  %v12568_v27 = vsel %vm3001_vm0, %v6129_v63, %v7916_v37  ;;  %v7937_v10 = vunpack.i.h.bf16 %v11770_v50  ;;  %v8811_v39 = vld [vmem:[%s8946_s24 + $0x191] sm:$0xff]  ;;  %v7936_v63 = vunpack.i.l.bf16 %v11770_v50 }
 0x2fd   : > { %v12526_v54 = vpop.permute.xlu0 %8264  ;;  %v12562_v35 = vsel %vm3001_vm0, %v6131_v24, %v7921_v38  ;;  %v12576_v52 = vsel %vm3001_vm0, %v8811_v39, %v7932_v44  ;;  %v8812_v24 = vld [vmem:[%s8946_s24 + $0x181] sm:$0xff]  ;;  %v8813_v20 = vld [vmem:[%s8946_s24 + $0x171] sm:$0xff]  ;;  %v12587_v38 = vpack.i.bf16 %v6380_v11, %v6364_v4  ;;  %v7981_v44 = vunpack.i.l.bf16 %v11823_v33 }
 0x2fe   : > { %v12559_v43 = vpop.permute.xlu1 %8279  ;;  %v12580_v15 = vsel %vm3001_vm0, %v8812_v24, %v7931_v30  ;;  %v12584_v34 = vsel %vm3001_vm0, %v8813_v20, %v7927_v5  ;;  %v6398_v30 = vld [vmem:[%s8946_s24 + $0x230] sm:$0xff]  ;;  %v12601_v11 = vsel %vm3001_vm0, %v6140_v56, %v7942_v8  ;;  %v8815_v4 = vld [vmem:[%s8946_s24 + $0x1c1] sm:$0xff]  ;;  %v8061_v50 = vunpack.i.l.bf16 %v11932_v45  ;;  %v14897_v57 = vld [vmem:[#allocation141_spill] sm:$0xff] }
 0x2ff   : > { %8554 = vrot.lane.b32.xlu0 %v8553_v60, %s8876_s30  ;;  %14891 = vst [vmem:[#allocation83_spill] sm:$0xff] %v12559_v43  ;;  %v12565_v60 = vsel %vm3001_vm0, %v6130_v32, %v7917_v23  ;;  %v8814_v23 = vld [vmem:[%s8946_s24 + $0x161] sm:$0xff]  ;;  %v7982_v32 = vunpack.i.h.bf16 %v11823_v33  ;;  %v6414_v5 = vld [vmem:[%s8946_s24 + $0x370] sm:$0xff]  ;;  %14893 = vst [vmem:[#allocation85_spill] sm:$0xff] %v12601_v11  ;;  %v12605_v39 = vsel %vm3001_vm0, %v8815_v4, %v7941_v59  ;;  %v7952_v8 = vunpack.i.h.bf16 %v14897_v57 }
 0x300   : > { %8569 = vrot.lane.b32.xlu1 %v8568_v3, %s8877_s4  ;;  %v12591_v37 = vsel %vm3001_vm0, %v8814_v23, %v7926_v46  ;;  %14894 = vst [vmem:[#allocation90_spill] sm:$0xff] %v12605_v39  ;;  %v8062_v46 = vunpack.i.h.bf16 %v11932_v45  ;;  %v6397_v20 = vld [vmem:[%s8946_s24 + $0x220] sm:$0xff]  ;;  %v8816_v23 = vld [vmem:[%s8946_s24 + $0x1b1] sm:$0xff]  ;;  %v8142_v56 = vunpack.i.h.bf16 %v12156_v28  ;;  %v8141_v59 = vunpack.i.l.bf16 %v12156_v28 }
 0x301   : > { %v12572_v12 = vpop.permute.xlu0 %8274  ;;  %v6413_v33 = vld [vmem:[%s8946_s24 + $0x360] sm:$0xff]  ;;  %v7951_v45 = vunpack.i.l.bf16 %v14897_v57  ;;  %v8222_v7 = vunpack.i.h.bf16 %v12372_v48  ;;  %v8221_v11 = vunpack.i.l.bf16 %v12372_v48  ;;  %v4807_v39 = vsel %vm3001_vm0, %v12386_v16, %v7982_v32 }
 0x302   : > { %14892 = vst [vmem:[#allocation84_spill] sm:$0xff] %v12572_v12  ;;  %v12609_v24 = vpop.permute.xlu1 %8289  ;;  %v4806_v28 = vsel %vm3001_vm0, %v12243_v22, %v7981_v44  ;;  %v8583_v57 = vpack.i.bf16 %v6413_v33, %v6397_v20  ;;  %v4839_v0 = vsel %vm3034_vm1, %v4807_v39, %v8062_v46  ;;  %v6429_v32 = vld [vmem:[%s8946_s24 + $0x221] sm:$0xff] }
 0x303   : > { %8564 = vrot.lane.b32.xlu0 %v12451_v49, %s8880_s7  ;;  %14895 = vst [vmem:[#allocation91_spill] sm:$0xff] %v12609_v24  ;;  %v12615_v49 = vsel %vm3001_vm0, %v8816_v23, %v7937_v10  ;;  %v8588_v10 = vpack.i.bf16 %v6414_v5, %v6398_v30  ;;  %v14899_v23 = vld [vmem:[#allocation148_spill] sm:$0xff]  ;;  %v7962_v30 = vunpack.i.h.bf16 %v14900_v17  ;;  %v4838_v5 = vsel %vm3034_vm1, %v4806_v28, %v8061_v50  ;;  %v14902_v46 = vld [vmem:[#allocation126_spill] sm:$0xff] }
 0x304   : > { %14896 = vst [vmem:[#allocation92_spill] sm:$0xff] %v12615_v49  ;;  %8579 = vrot.lane.b32.xlu1 %v12587_v38, %s8877_s4  ;;  %v7947_v49 = vunpack.i.h.bf16 %v14899_v23  ;;  %v12634_v24 = vld [vmem:[%s8946_s24 + $0x371] sm:$0xff]  ;;  %v7946_v48 = vunpack.i.l.bf16 %v14899_v23  ;;  %v4870_v22 = vsel %vm3067_vm2, %v4838_v5, %v8141_v59  ;;  %v7961_v23 = vunpack.i.l.bf16 %v14900_v17 }
 0x305   : > { %v12620_v4 = vpop.permute.xlu0 %8284  ;;  %v4902_v36 = vsel %vm3100_vm3, %v4870_v22, %v8221_v11  ;;  %v8593_v17 = vpack.i.bf16 %v12487_v51, %v6429_v32  ;;  %v7956_v22 = vunpack.i.l.bf16 %v14902_v46  ;;  %v6430_v51 = vld [vmem:[%s8946_s24 + $0x231] sm:$0xff] }
 0x306   : > { %14898 = vst [vmem:[#allocation93_spill] sm:$0xff] %v12620_v4  ;;  %v12637_v4 = vld [vmem:[%s8946_s24 + $0x381] sm:$0xff]  ;;  %v8300_v16 = vpop.permute.xlu1 %8299  ;;  %v8820_v32 = vld [vmem:[%s8946_s24 + $0x211] sm:$0xff] }
 0x307   : > { %8574 = vrot.lane.b32.xlu0 %v8568_v3, %s8880_s7  ;;  %v4871_v3 = vsel %vm3067_vm2, %v4839_v0, %v8142_v56  ;;  %v8302_v44 = vunpack.i.h.bf16 %v8300_v16  ;;  %v8301_v20 = vunpack.i.l.bf16 %v8300_v16  ;;  %v8598_v39 = vpack.i.bf16 %v12637_v4, %v12634_v24  ;;  %v6148_v0 = vld [vmem:[%s8946_s24 + $0x271] sm:$0xff]  ;;  %v8819_v16 = vld [vmem:[%s8946_s24 + $0x221] sm:$0xff] }
 0x308   : > { %v4903_v50 = vsel %vm3100_vm3, %v4871_v3, %v8222_v7  ;;  %8589 = vrot.lane.b32.xlu1 %v8588_v10, %s8878_s5  ;;  %v7957_v56 = vunpack.i.h.bf16 %v14902_v46  ;;  %v8817_v7 = vld [vmem:[%s8946_s24 + $0x1a1] sm:$0xff]  ;;  %v8818_v10 = vld [vmem:[%s8946_s24 + $0x231] sm:$0xff]  ;;  %v12682_v3 = vsel %vm3001_vm0, %v8820_v32, %v7947_v49 }
 0x309   : > { %v12646_v33 = vpop.permute.xlu0 %8294  ;;  %v12657_v59 = vsel %vm3133_vm4, %v4902_v36, %v8301_v20  ;;  %v12660_v28 = vsel %vm3133_vm4, %v4903_v50, %v8302_v44  ;;  %v12666_v11 = vsel %vm3001_vm0, %v8817_v7, %v7936_v63  ;;  %v12670_v5 = vsel %vm3001_vm0, %v8818_v10, %v7952_v8  ;;  %v14906_v63 = vld [vmem:[#allocation2_spill] sm:$0xff]  ;;  %v14907_v8 = vld [vmem:[#allocation19_spill] sm:$0xff] }
 0x30a   : > { %14901 = vst [vmem:[#allocation98_spill] sm:$0xff] %v12646_v33  ;;  %14903 = vst [vmem:[#allocation99_spill] sm:$0xff] %v12657_v59  ;;  %v12674_v36 = vsel %vm3001_vm0, %v8819_v16, %v7951_v45  ;;  %v7972_v44 = vunpack.i.h.bf16 %v14906_v63  ;;  %v7971_v20 = vunpack.i.l.bf16 %v14906_v63  ;;  %v7967_v50 = vunpack.i.h.bf16 %v14907_v8  ;;  %v8821_v46 = vld [vmem:[%s8946_s24 + $0x201] sm:$0xff]  ;;  %v8823_v63 = vld [vmem:[%s8946_s24 + $0x251] sm:$0xff] }
 0x30b   : > { %14904 = vst [vmem:[#allocation106_spill] sm:$0xff] %v12660_v28  ;;  %8584 = vrot.lane.b32.xlu0 %v8583_v57, %s8878_s5  ;;  %14905 = vst [vmem:[#allocation107_spill] sm:$0xff] %v12666_v11  ;;  %v12677_v57 = vpop.permute.xlu1 %8309  ;;  %v12691_v7 = vsel %vm3001_vm0, %v8821_v46, %v7946_v48  ;;  %v12694_v10 = vsel %vm3001_vm0, %v6148_v0, %v7962_v30  ;;  %v8822_v49 = vld [vmem:[%s8946_s24 + $0x261] sm:$0xff]  ;;  %v7966_v32 = vunpack.i.l.bf16 %v14907_v8  ;;  %v6462_v0 = vld [vmem:[%s8946_s24 + $0x232] sm:$0xff] }
 0x30c   : > { %v12698_v16 = vsel %vm3001_vm0, %v8822_v49, %v7961_v23  ;;  %8599 = vrot.lane.b32.xlu1 %v8598_v39, %s8876_s30  ;;  %v12704_v59 = vsel %vm3001_vm0, %v8823_v63, %v7957_v56  ;;  %v14908_v28 = vld [vmem:[#allocation3_spill] sm:$0xff]  ;;  %v8603_v23 = vpack.i.bf16 %v12634_v24, %v6430_v51  ;;  %v6478_v46 = vld [vmem:[%s8946_s24 + $0x372] sm:$0xff] }
 0x30d   : > { %v12687_v45 = vpop.permute.xlu0 %8304  ;;  %v7977_v48 = vunpack.i.h.bf16 %v14908_v28  ;;  %v7976_v30 = vunpack.i.l.bf16 %v14908_v28  ;;  %v8824_v8 = vld [vmem:[%s8946_s24 + $0x241] sm:$0xff]  ;;  %v8825_v28 = vld [vmem:[%s8946_s24 + $0x2d1] sm:$0xff] }
 0x30e   : > { %v12714_v39 = vsel %vm3001_vm0, %v8824_v8, %v7956_v22  ;;  %v14909_v49 = vld [vmem:[#allocation7_spill] sm:$0xff]  ;;  %v8827_v22 = vld [vmem:[%s8946_s24 + $0x2b1] sm:$0xff] }
 0x30f   : > { %8594 = vrot.lane.b32.xlu0 %v8593_v17, %s8879_s6  ;;  %v7992_v33 = vunpack.i.h.bf16 %v14909_v49  ;;  %v7991_v56 = vunpack.i.l.bf16 %v14909_v49  ;;  %v14910_v63 = vld [vmem:[#allocation11_spill] sm:$0xff]  ;;  %v12719_v43 = vpop.permute.xlu1 %8319  ;;  %v12723_v17 = vsel %vm3001_vm0, %v8825_v28, %v7972_v44  ;;  %v12731_v8 = vsel %vm3001_vm0, %v8827_v22, %v7967_v50 }
 0x310   : > { %v7986_v11 = vunpack.i.l.bf16 %v14910_v63  ;;  %14911 = vst [vmem:[#allocation113_spill] sm:$0xff] %v12719_v43  ;;  %14912 = vst [vmem:[#allocation116_spill] sm:$0xff] %v12723_v17  ;;  %v8826_v24 = vld [vmem:[%s8946_s24 + $0x2c1] sm:$0xff]  ;;  %v7987_v49 = vunpack.i.h.bf16 %v14910_v63  ;;  %v5304_v43 = vld [vmem:[%s14030_s1 + $0x78] sm:$0xff]  ;;  %8609 = vrot.lane.b32.xlu1 %v12587_v38, %s8880_s7  ;;  %v8618_v50 = vpack.i.bf16 %v6478_v46, %v6462_v0 }
 0x311   : > { %v12727_v51 = vsel %vm3001_vm0, %v8826_v24, %v7971_v20  ;;  %14914 = vst [vmem:[#allocation127_spill] sm:$0xff] %v12731_v8  ;;  %v12734_v42 = vpop.permute.xlu0 %8314  ;;  %v8828_v44 = vld [vmem:[%s8946_s24 + $0x2a1] sm:$0xff]  ;;  %v14917_v20 = vld [vmem:[#allocation40_spill] sm:$0xff]  ;;  %6534 = vmatprep.subr.mxu0 %v5304_v43  ;;  %6614 = vmatprep.subr.mxu1 %v5304_v43 }
 0x312   : > { %14913 = vst [vmem:[#allocation125_spill] sm:$0xff] %v12727_v51  ;;  %14915 = vst [vmem:[#allocation134_spill] sm:$0xff] %v12734_v42  ;;  %v12741_v28 = vsel %vm3001_vm0, %v8828_v44, %v7966_v32  ;;  %v8002_v24 = vunpack.i.h.bf16 %v14917_v20  ;;  %v8001_v17 = vunpack.i.l.bf16 %v14917_v20  ;;  %v8829_v63 = vld [vmem:[%s8946_s24 + $0x2f1] sm:$0xff]  ;;  %v8830_v8 = vld [vmem:[%s8946_s24 + $0x2e1] sm:$0xff]  ;;  %v12773_v46 = vsel %vm3034_vm1, %v12552_v53, %v7986_v11  ;;  %6535 = vmatpush3.msra.mxu0 %v5304_v43 }
 0x313   : > { %14916 = vst [vmem:[#allocation135_spill] sm:$0xff] %v12741_v28  ;;  %v12749_v22 = vsel %vm3001_vm0, %v8829_v63, %v7977_v48  ;;  %v12753_v51 = vsel %vm3001_vm0, %v8830_v8, %v7976_v30  ;;  %v14920_v32 = vld [vmem:[#allocation41_spill] sm:$0xff]  ;;  %8604 = vrot.lane.b32.xlu0 %v8603_v23, %s8879_s6  ;;  %v6399_v20 = vld [vmem:[%s8946_s24 + $0x240] sm:$0xff]  ;;  %v5303_v0 = vld [vmem:[%s14030_s1 + $0x70] sm:$0xff]  ;;  %v12765_v48 = vsel %vm3034_vm1, %v12542_v47, %v7991_v56  ;;  %v12776_v63 = vpop.permute.xlu1 %8329 }
 0x314   : > { %14918 = vst [vmem:[#allocation142_spill] sm:$0xff] %v12749_v22  ;;  %14919 = vst [vmem:[#allocation143_spill] sm:$0xff] %v12753_v51  ;;  %v7997_v44 = vunpack.i.h.bf16 %v14920_v32  ;;  %v7996_v28 = vunpack.i.l.bf16 %v14920_v32  ;;  %v6415_v38 = vld [vmem:[%s8946_s24 + $0x380] sm:$0xff]  ;;  %v12769_v30 = vsel %vm3034_vm1, %v12539_v21, %v7992_v33  ;;  %v14921_v23 = vld [vmem:[#allocation25_spill] sm:$0xff]  ;;  %6630 = vmatpush3.msra.mxu1 %v5304_v43  ;;  %v12782_v47 = vsel %vm3034_vm1, %v12545_v9, %v7987_v49 }
 0x315   : > { %v8011_v8 = vunpack.i.l.bf16 %v14921_v23  ;;  %14922 = vst [vmem:[#allocation152_spill] sm:$0xff] %v12776_v63  ;;  %v6366_v32 = vld [vmem:[%s8946_s24 + $0x242] sm:$0xff]  ;;  %v8012_v56 = vunpack.i.h.bf16 %v14921_v23  ;;  %v14923_v21 = vld [vmem:[#allocation108_spill] sm:$0xff]  ;;  %v12787_v53 = vpop.permute.xlu0 %8324  ;;  %6536 = vmatprep.subr.mxu0 %v5303_v0  ;;  %6615 = vmatprep.subr.mxu1 %v5303_v0  ;;  %v12795_v9 = vsel %vm3034_vm1, %v12562_v35, %v8001_v17  ;;  %v12799_v49 = vsel %vm3034_vm1, %v12555_v25, %v8002_v24 }
 0x316   : > { %v6382_v22 = vld [vmem:[%s8946_s24 + $0x382] sm:$0xff]  ;;  %v8007_v33 = vunpack.i.h.bf16 %v14923_v21  ;;  %v8006_v51 = vunpack.i.l.bf16 %v14923_v21  ;;  %14924 = vst [vmem:[#allocation12_spill] sm:$0xff] %v12787_v53  ;;  %8619 = vrot.lane.b32.xlu1 %v8618_v50, %s8880_s7  ;;  %v8628_v23 = vpack.i.bf16 %v6415_v38, %v6399_v20  ;;  %6537 = vmatpush3.msra.mxu0 %v5303_v0  ;;  %v12805_v63 = vsel %vm3034_vm1, %v12568_v27, %v7996_v28 }
 0x317   : > { %v5302_v11 = vld [vmem:[%s14030_s1 + $0x68] sm:$0xff]  ;;  %v12809_v35 = vsel %vm3034_vm1, %v12565_v60, %v7997_v44  ;;  %8614 = vrot.lane.b32.xlu0 %v8618_v50, %s8877_s4  ;;  %v12812_v25 = vpack.i.bf16 %v6382_v22, %v6366_v32  ;;  %6631 = vmatpush3.msra.mxu1 %v5303_v0  ;;  %v5301_v24 = vld [vmem:[%s14030_s1 + $0x60] sm:$0xff]  ;;  %v12820_v20 = vsel %vm3034_vm1, %v12580_v15, %v8011_v8  ;;  %v12825_v21 = vpop.permute.xlu1 %8339  ;;  %v6400_v50 = vld [vmem:[%s8946_s24 + $0x250] sm:$0xff] }
 0x318   : > { %v6431_v17 = vld [vmem:[%s8946_s24 + $0x241] sm:$0xff]  ;;  %14925 = vst [vmem:[#allocation21_spill] sm:$0xff] %v12820_v20  ;;  %14928 = vst [vmem:[#allocation54_spill] sm:$0xff] %v12825_v21  ;;  %v6416_v22 = vld [vmem:[%s8946_s24 + $0x390] sm:$0xff]  ;;  %6538 = vmatprep.subr.mxu0 %v5302_v11  ;;  %6616 = vmatprep.subr.mxu1 %v5302_v11  ;;  %v12831_v0 = vsel %vm3034_vm1, %v12576_v52, %v8012_v56  ;;  %v12835_v15 = vsel %vm3034_vm1, %v12591_v37, %v8006_v51 }
 0x319   : > { %v14926_v27 = vld [vmem:[#allocation46_spill] sm:$0xff]  ;;  %14929 = vst [vmem:[#allocation64_spill] sm:$0xff] %v12831_v0  ;;  %14930 = vst [vmem:[#allocation72_spill] sm:$0xff] %v12835_v15  ;;  %v12839_v8 = vsel %vm3034_vm1, %v12584_v34, %v8007_v33  ;;  %6539 = vmatpush3.msra.mxu0 %v5302_v11  ;;  %6632 = vmatpush3.msra.mxu1 %v5302_v11  ;;  %v14934_v56 = vld [vmem:[#allocation55_spill] sm:$0xff]  ;;  %v8638_v37 = vpack.i.bf16 %v12637_v4, %v6431_v17 }
 0x31a   : > { %v8032_v28 = vunpack.i.h.bf16 %v14926_v27  ;;  %v8031_v38 = vunpack.i.l.bf16 %v14926_v27  ;;  %v14927_v60 = vld [vmem:[#allocation62_spill] sm:$0xff]  ;;  %14931 = vst [vmem:[#allocation80_spill] sm:$0xff] %v12839_v8  ;;  %v12842_v27 = vpop.permute.xlu0 %8334  ;;  %v8041_v18 = vunpack.i.l.bf16 %v14934_v56  ;;  %8629 = vrot.lane.b32.xlu1 %v8628_v23, %s8878_s5  ;;  %v12850_v34 = vld [vmem:[%s8946_s24 + $0x251] sm:$0xff]  ;;  %6540 = vmatprep.subr.mxu0 %v5301_v24  ;;  %v8042_v11 = vunpack.i.h.bf16 %v14934_v56 }
 0x31b   : > { %v8026_v44 = vunpack.i.l.bf16 %v14927_v60  ;;  %v8027_v32 = vunpack.i.h.bf16 %v14927_v60  ;;  %14932 = vst [vmem:[#allocation88_spill] sm:$0xff] %v12842_v27  ;;  %v12853_v51 = vld [vmem:[%s8946_s24 + $0x391] sm:$0xff]  ;;  %8624 = vrot.lane.b32.xlu0 %v12812_v25, %s8877_s4  ;;  %v8633_v4 = vpack.i.bf16 %v6416_v22, %v6400_v50  ;;  %v12864_v17 = vld [vmem:[%s8946_s24 + $0x3a1] sm:$0xff]  ;;  %6617 = vmatprep.subr.mxu1 %v5301_v24  ;;  %v12880_v50 = vpop.permute.xlu1 %8349 }
 0x31c   : > { %v5300_v33 = vld [vmem:[%s14030_s1 + $0x58] sm:$0xff]  ;;  %v12870_v43 = vsel %vm3034_vm1, %v12674_v36, %v8031_v38  ;;  %v12874_v56 = vsel %vm3034_vm1, %v12670_v5, %v8032_v28  ;;  %v6368_v53 = vld [vmem:[%s8946_s24 + $0x262] sm:$0xff]  ;;  %6541 = vmatpush3.msra.mxu0 %v5301_v24  ;;  %6633 = vmatpush3.msra.mxu1 %v5301_v24  ;;  %v12899_v15 = vld [vmem:[%s8946_s24 + $0x3b0] sm:$0xff]  ;;  %v12906_v24 = vsel %vm3034_vm1, %v12698_v16, %v8041_v18  ;;  %v8351_v58 = vunpack.i.l.bf16 %v12880_v50 }
 0x31d   : > { %v14935_v60 = vld [vmem:[#allocation157_spill] sm:$0xff]  ;;  %v6384_v8 = vld [vmem:[%s8946_s24 + $0x3a2] sm:$0xff]  ;;  %v12887_v36 = vsel %vm3034_vm1, %v12682_v3, %v8027_v32  ;;  %6542 = vmatprep.subr.mxu0 %v5300_v33  ;;  %6618 = vmatprep.subr.mxu1 %v5300_v33  ;;  %v5299_v3 = vld [vmem:[%s14030_s1 + $0x50] sm:$0xff]  ;;  %v8643_v0 = vpack.i.bf16 %v12864_v17, %v12853_v51  ;;  %v12922_v18 = vsel %vm3034_vm1, %v12694_v10, %v8042_v11  ;;  %v8111_v11 = vunpack.i.l.bf16 %v12076_v55 }
 0x31e   : > { %v8037_v6 = vunpack.i.h.bf16 %v14935_v60  ;;  %v8036_v23 = vunpack.i.l.bf16 %v14935_v60  ;;  %v6367_v52 = vld [vmem:[%s8946_s24 + $0x252] sm:$0xff]  ;;  %v12878_v60 = vsel %vm3034_vm1, %v12691_v7, %v8026_v44  ;;  %v14937_v38 = vld [vmem:[#allocation31_spill] sm:$0xff]  ;;  %v12891_v27 = vpop.permute.xlu0 %8344  ;;  %v8648_v7 = vpack.i.bf16 %v12853_v51, %v12850_v34  ;;  %8639 = vrot.lane.b32.xlu1 %v8638_v37, %s8879_s6  ;;  %v12914_v20 = vld [vmem:[%s8946_s24 + $0x260] sm:$0xff]  ;;  %6543 = vmatpush3.msra.mxu0 %v5300_v33 }
 0x31f   : > { %v6383_v22 = vld [vmem:[%s8946_s24 + $0x392] sm:$0xff]  ;;  %v8072_v5 = vunpack.i.h.bf16 %v14937_v38  ;;  %v8071_v28 = vunpack.i.l.bf16 %v14937_v38  ;;  %8634 = vrot.lane.b32.xlu0 %v8633_v4, %s8878_s5  ;;  %6634 = vmatpush3.msra.mxu1 %v5300_v33  ;;  %v5298_v10 = vld [vmem:[%s14030_s1 + $0x48] sm:$0xff]  ;;  %v12943_v42 = vpop.permute.xlu1 %8359 }
 0x320   : > { %v12896_v44 = vld [vmem:[%s8946_s24 + $0x270] sm:$0xff]  ;;  %v12926_v16 = vsel %vm3034_vm1, %v12714_v39, %v8036_v23  ;;  %v12930_v37 = vsel %vm3034_vm1, %v12704_v59, %v8037_v6  ;;  %v12945_v39 = vpack.i.bf16 %v6383_v22, %v6367_v52  ;;  %v12947_v23 = vpack.i.bf16 %v6384_v8, %v6368_v53  ;;  %v12952_v59 = vld [vmem:[%s8946_s24 + $0x261] sm:$0xff]  ;;  %6544 = vmatprep.subr.mxu0 %v5299_v3 }
 0x321   : > { %v14938_v32 = vld [vmem:[#allocation32_spill] sm:$0xff]  ;;  %6619 = vmatprep.subr.mxu1 %v5299_v3  ;;  %v4842_v21 = vsel %vm3067_vm2, %v12765_v48, %v8071_v28  ;;  %v4843_v52 = vsel %vm3067_vm2, %v12769_v30, %v8072_v5  ;;  %v8112_v53 = vunpack.i.h.bf16 %v12076_v55  ;;  %6545 = vmatpush3.msra.mxu0 %v5299_v3  ;;  %v8107_v48 = vunpack.i.h.bf16 %v12082_v31  ;;  %v5297_v55 = vld [vmem:[%s14030_s1 + $0x40] sm:$0xff] }
 0x322   : > { %v8067_v38 = vunpack.i.h.bf16 %v14938_v32  ;;  %v8066_v34 = vunpack.i.l.bf16 %v14938_v32  ;;  %v12934_v51 = vld [vmem:[%s8946_s24 + $0x271] sm:$0xff]  ;;  %v12965_v8 = vpop.permute.xlu0 %8354  ;;  %6635 = vmatpush3.msra.mxu1 %v5299_v3  ;;  %v8106_v28 = vunpack.i.l.bf16 %v12082_v31  ;;  %8649 = vrot.lane.b32.xlu1 %v8648_v7, %s8879_s6  ;;  %v8151_v30 = vunpack.i.l.bf16 %v12178_v19 }
 0x323   : > { %v12937_v32 = vld [vmem:[%s8946_s24 + $0x3b1] sm:$0xff]  ;;  %6546 = vmatprep.subr.mxu0 %v5298_v10  ;;  %8644 = vrot.lane.b32.xlu0 %v8643_v0, %s8876_s30  ;;  %v12989_v5 = vsel %vm3067_vm2, %v12870_v43, %v8111_v11  ;;  %v8152_v7 = vunpack.i.h.bf16 %v12178_v19  ;;  %v8147_v3 = vunpack.i.h.bf16 %v12186_v61  ;;  %v8146_v0 = vunpack.i.l.bf16 %v12186_v61 }
 0x324   : > { %v12955_v4 = vld [vmem:[%s8946_s24 + $0x272] sm:$0xff]  ;;  %v4840_v6 = vsel %vm3067_vm2, %v12773_v46, %v8066_v34  ;;  %v4841_v12 = vsel %vm3067_vm2, %v12782_v47, %v8067_v38  ;;  %6620 = vmatprep.subr.mxu1 %v5298_v10  ;;  %v12994_v38 = vpop.permute.xlu1 %8369  ;;  %6547 = vmatpush3.msra.mxu0 %v5298_v10  ;;  %v12998_v34 = vsel %vm3067_vm2, %v12874_v56, %v8112_v53  ;;  %v8187_v31 = vunpack.i.h.bf16 %v12292_v26 }
 0x325   : > { %v12958_v33 = vld [vmem:[%s8946_s24 + $0x3b2] sm:$0xff]  ;;  %6636 = vmatpush3.msra.mxu1 %v5298_v10  ;;  %v8186_v47 = vunpack.i.l.bf16 %v12292_v26  ;;  %v8226_v43 = vunpack.i.l.bf16 %v12410_v14  ;;  %6548 = vmatprep.subr.mxu0 %v5297_v55  ;;  %v4856_v61 = vsel %vm3067_vm2, %v12878_v60, %v8106_v28  ;;  %v4857_v56 = vsel %vm3067_vm2, %v12887_v36, %v8107_v48  ;;  %s5698_s24 = sshll.u32 %s15111_s19, 3 }
 0x326   : > { %v13003_v11 = vpop.permute.xlu0 %8364  ;;  %6621 = vmatprep.subr.mxu1 %v5297_v55  ;;  %v5296_v19 = vld [vmem:[%s14030_s1 + $0x38] sm:$0xff]  ;;  %v8227_v10 = vunpack.i.h.bf16 %v12410_v14  ;;  %v8266_v26 = vunpack.i.l.bf16 %v12526_v54  ;;  %8659 = vrot.lane.b32.xlu1 %v12945_v39, %s8877_s4  ;;  %v13017_v53 = vsel %vm3100_vm3, %v4842_v21, %v8151_v30  ;;  %v8267_v46 = vunpack.i.h.bf16 %v12526_v54  ;;  %v5295_v14 = vld [vmem:[%s14030_s1 + $0x30] sm:$0xff]  ;;  %s192_s30 = sadd.s32 %s5699_s20, %s5698_s24 }
 0x327   : > { %6549 = vmatpush3.msra.mxu0 %v5297_v55  ;;  %v8306_v22 = vunpack.i.l.bf16 %v12687_v45  ;;  %v8346_v60 = vunpack.i.l.bf16 %v12891_v27  ;;  %8654 = vrot.lane.b32.xlu0 %v12812_v25, %s8880_s7  ;;  %v13028_v36 = vsel %vm3100_vm3, %v4843_v52, %v8152_v7  ;;  %v4872_v21 = vsel %vm3100_vm3, %v4840_v6, %v8146_v0  ;;  %s5700_s21 = sshll.u32 %s192_s30, 3 }
 0x328   : > { %6637 = vmatpush3.msra.mxu1 %v5297_v55  ;;  %v4873_v48 = vsel %vm3100_vm3, %v4841_v12, %v8147_v3  ;;  %v8307_v54 = vunpack.i.h.bf16 %v12687_v45  ;;  %v13033_v28 = vpop.permute.xlu1 %8379  ;;  %6550 = vmatprep.subr.mxu0 %v5296_v19  ;;  %v4888_v25 = vsel %vm3100_vm3, %v4856_v61, %v8186_v47  ;;  %v4889_v55 = vsel %vm3100_vm3, %v4857_v56, %v8187_v31  ;;  %v5294_v47 = vld [vmem:[%s14030_s1 + $0x28] sm:$0xff] }
 0x329   : > { %6622 = vmatprep.subr.mxu1 %v5296_v19  ;;  %v4904_v30 = vsel %vm3133_vm4, %v4872_v21, %v8226_v43  ;;  %6551 = vmatpush3.msra.mxu0 %v5296_v19  ;;  %v4905_v12 = vsel %vm3133_vm4, %v4873_v48, %v8227_v10  ;;  %v4920_v45 = vsel %vm3133_vm4, %v4888_v25, %v8266_v26  ;;  %v8352_v6 = vunpack.i.h.bf16 %v12880_v50 }
 0x32a   : > { %v13039_v52 = vpop.permute.xlu0 %8374  ;;  %6638 = vmatpush3.msra.mxu1 %v5296_v19  ;;  %v8347_v7 = vunpack.i.h.bf16 %v12891_v27  ;;  %8669 = vrot.lane.b32.xlu1 %v12947_v23, %s8877_s4  ;;  %v4921_v31 = vsel %vm3133_vm4, %v4889_v55, %v8267_v46  ;;  %v4936_v3 = vsel %vm3166_vm5, %v4904_v30, %v8306_v22  ;;  %v4952_v0 = vsel %vm3166_vm5, %v4920_v45, %v8346_v60  ;;  %s13948_s4 = scalar_lea.vmem %s14032_s3, %s5700_s21 }
 0x32b   : > { %6552 = vmatprep.subr.mxu0 %v5295_v14  ;;  %v8361_v43 = vunpack.i.l.bf16 %v12943_v42  ;;  %8664 = vrot.lane.b32.xlu0 %v12945_v39, %s8880_s7  ;;  %v4937_v27 = vsel %vm3166_vm5, %v4905_v12, %v8307_v54  ;;  %v8362_v50 = vunpack.i.h.bf16 %v12943_v42  ;;  %v8357_v19 = vunpack.i.h.bf16 %v12965_v8  ;;  %v5293_v42 = vld [vmem:[%s14030_s1 + $0x20] sm:$0xff] }
 0x32c   : > { %6623 = vmatprep.subr.mxu1 %v5295_v14  ;;  %v8356_v61 = vunpack.i.l.bf16 %v12965_v8  ;;  %v13060_v56 = vpop.permute.xlu1 %8389  ;;  %6553 = vmatpush3.msra.mxu0 %v5295_v14  ;;  %v4968_v22 = vsel %vm3199_vm6, %v4936_v3, %v8351_v58  ;;  %v8372_v46 = vunpack.i.h.bf16 %v12994_v38  ;;  %v8371_v10 = vunpack.i.l.bf16 %v12994_v38 }
 0x32d   : > { %6639 = vmatpush3.msra.mxu1 %v5295_v14  ;;  %v8366_v39 = vunpack.i.l.bf16 %v13003_v11  ;;  %6554 = vmatprep.subr.mxu0 %v5294_v47  ;;  %v4953_v8 = vsel %vm3166_vm5, %v4921_v31, %v8347_v7  ;;  %v4984_v60 = vsel %vm3199_vm6, %v4952_v0, %v8352_v6  ;;  %v8367_v14 = vunpack.i.h.bf16 %v13003_v11  ;;  %v5292_v11 = vld [vmem:[%s14030_s1 + $0x18] sm:$0xff] }
 0x32e   : > { %v8385_v26 = vpop.permute.xlu0 %8384  ;;  %6624 = vmatprep.subr.mxu1 %v5294_v47  ;;  %v8381_v58 = vunpack.i.l.bf16 %v13033_v28  ;;  %v14939_v38 = vpack.i.bf16 %v12899_v15, %v12896_v44  ;;  %6555 = vmatpush3.msra.mxu0 %v5294_v47  ;;  %v5000_v21 = vsel %vm3232_vm7, %v4968_v22, %v8361_v43  ;;  %v8382_v48 = vunpack.i.h.bf16 %v13033_v28 }
 0x32f   : > { %v8387_v54 = vunpack.i.h.bf16 %v8385_v26  ;;  %v8386_v25 = vunpack.i.l.bf16 %v8385_v26  ;;  %v14940_v55 = vpack.i.bf16 %v12917_v29, %v12914_v20  ;;  %6640 = vmatpush3.msra.mxu1 %v5294_v47  ;;  %v8192_v15 = vunpack.i.h.bf16 %v12286_v13  ;;  %6556 = vmatprep.subr.mxu0 %v5293_v42 }
 0x330   : > { %8679 = vrot.lane.b32.xlu1 %v14939_v38, %s8878_s5  ;;  %v5016_v44 = vsel %vm3232_vm7, %v4984_v60, %v8362_v50  ;;  %v4969_v30 = vsel %vm3199_vm6, %v4937_v27, %v8356_v61  ;;  %v4985_v28 = vsel %vm3199_vm6, %v4953_v8, %v8357_v19  ;;  %v13090_v12 = vpop.permute.xlu1 %8399  ;;  %6625 = vmatprep.subr.mxu1 %v5293_v42  ;;  %v8191_v29 = vunpack.i.l.bf16 %v12286_v13  ;;  %v5291_v13 = vld [vmem:[%s14030_s1 + $0x10] sm:$0xff]  ;;  %v5290_v8 = vld [vmem:[%s14030_s1 + $0x8] sm:$0xff] }
 0x331   : > { %8674 = vrot.lane.b32.xlu0 %v14940_v55, %s8878_s5  ;;  %v5032_v20 = vsel %vm3265_vm8, %v5000_v21, %v8371_v10  ;;  %v5048_v45 = vsel %vm3265_vm8, %v5016_v44, %v8372_v46  ;;  %v5001_v6 = vsel %vm3232_vm7, %v4969_v30, %v8366_v39  ;;  %6557 = vmatpush3.msra.mxu0 %v5293_v42  ;;  %v8231_v27 = vunpack.i.l.bf16 %v12402_v41 }
 0x332   : > { %v8395_v7 = vpop.permute.xlu0 %8394  ;;  %6641 = vmatpush3.msra.mxu1 %v5293_v42  ;;  %v5017_v47 = vsel %vm3232_vm7, %v4985_v28, %v8367_v14  ;;  %v5033_v31 = vsel %vm3265_vm8, %v5001_v6, %v8381_v58  ;;  %v14941_v43 = vpack.i.bf16 %v12937_v32, %v12934_v51  ;;  %6558 = vmatprep.subr.mxu0 %v5292_v11  ;;  %v8232_v51 = vunpack.i.h.bf16 %v12402_v41 }
 0x333   : > { %v8397_v3 = vunpack.i.h.bf16 %v8395_v7  ;;  %v8396_v0 = vunpack.i.l.bf16 %v8395_v7  ;;  %v5049_v50 = vsel %vm3265_vm8, %v5017_v47, %v8382_v48  ;;  %v5064_v19 = vsel %vm3298_vm9, %v5032_v20, %v8386_v25  ;;  %6626 = vmatprep.subr.mxu1 %v5292_v11  ;;  %6559 = vmatpush3.msra.mxu0 %v5292_v11 }
 0x334   : > { %8689 = vrot.lane.b32.xlu1 %v14941_v43, %s8879_s6  ;;  %v5080_v61 = vsel %vm3298_vm9, %v5048_v45, %v8387_v54  ;;  %v14942_v22 = vpack.i.bf16 %v12864_v17, %v12952_v59  ;;  %v8271_v32 = vunpack.i.l.bf16 %v12515_v2  ;;  %v13117_v39 = vpop.permute.xlu1 %8409  ;;  %6642 = vmatpush3.msra.mxu1 %v5292_v11  ;;  %v4890_v26 = vsel %vm3100_vm3, %v12989_v5, %v8191_v29 }
 0x335   : > { %v5065_v46 = vsel %vm3298_vm9, %v5033_v31, %v8396_v0  ;;  %v5081_v10 = vsel %vm3298_vm9, %v5049_v50, %v8397_v3  ;;  %v8272_v42 = vunpack.i.h.bf16 %v12515_v2  ;;  %6560 = vmatprep.subr.mxu0 %v5291_v13  ;;  %6627 = vmatprep.subr.mxu1 %v5291_v13  ;;  %v8312_v60 = vunpack.i.h.bf16 %v12677_v57 }
 0x336   : > { %8684 = vrot.lane.b32.xlu0 %v14942_v22, %s8879_s6  ;;  %v5097_v17 = vsel %vm3331_vm10, %v5065_v46, 0.0  ;;  %v5113_v59 = vsel %vm3331_vm10, %v5081_v10, 0.0  ;;  %v8405_v41 = vpop.permute.xlu0 %8404  ;;  %v8311_v14 = vunpack.i.l.bf16 %v12677_v57  ;;  %v5096_v58 = vsel %vm3331_vm10, %v5064_v19, 0.0  ;;  %6561 = vmatpush3.msra.mxu0 %v5291_v13 }
 0x337   : > { %v5112_v5 = vsel %vm3331_vm10, %v5080_v61, 0.0  ;;  %v14943_v2 = vpack.i.bf16 %v12958_v33, %v12955_v4  ;;  %v4891_v38 = vsel %vm3100_vm3, %v12998_v34, %v8192_v15  ;;  %v4906_v21 = vsel %vm3133_vm4, %v13017_v53, %v8231_v27  ;;  %6643 = vmatpush3.msra.mxu1 %v5291_v13  ;;  %v5289_v4 = vld [vmem:[%s14030_s1] sm:$0xff]  ;;  %6562 = vmatprep.subr.mxu0 %v5290_v8 }
 0x338   : > { %v8376_v48 = vunpack.i.l.bf16 %v13039_v52  ;;  %v8391_v57 = vunpack.i.l.bf16 %v13060_v56  ;;  %v4907_v33 = vsel %vm3133_vm4, %v13028_v36, %v8232_v51  ;;  %v4922_v34 = vsel %vm3133_vm4, %v4890_v26, %v8271_v32  ;;  %v13150_v53 = vpop.permute.xlu1 %8419  ;;  %6628 = vmatprep.subr.mxu1 %v5290_v8  ;;  %6563 = vmatpush3.msra.mxu0 %v5290_v8 }
 0x339   : > { %8699 = vrot.lane.b32.xlu1 %v14943_v2, %s8880_s7  ;;  %v8392_v54 = vunpack.i.h.bf16 %v13060_v56  ;;  %v8708_v25 = vpack.i.bf16 %v5113_v59, %v5097_v17  ;;  %v4923_v55 = vsel %vm3133_vm4, %v4891_v38, %v8272_v42  ;;  %v8406_v11 = vunpack.i.l.bf16 %v8405_v41  ;;  %6644 = vmatpush3.msra.mxu1 %v5290_v8 }
 0x33a   : > { %8694 = vrot.lane.b32.xlu0 %v12947_v23, %s8880_s7  ;;  %v8407_v23 = vunpack.i.h.bf16 %v8405_v41  ;;  %v8415_v15 = vpop.permute.xlu0 %8414  ;;  %v8703_v44 = vpack.i.bf16 %v5112_v5, %v5096_v58  ;;  %v4938_v30 = vsel %vm3166_vm5, %v4906_v21, %v8311_v14  ;;  %v4939_v36 = vsel %vm3166_vm5, %v4907_v33, %v8312_v60  ;;  %s8886_s7 = smov 64   ;;  %6564 = vmatprep.subr.mxu0 %v5289_v4  ;;  %v14944_v5 = vld [vmem:[#allocation33_spill] sm:$0xff] }
 0x33b   : > { %v8417_v28 = vunpack.i.h.bf16 %v8415_v15  ;;  %v8416_v29 = vunpack.i.l.bf16 %v8415_v15  ;;  %v8377_v56 = vunpack.i.h.bf16 %v13039_v52  ;;  %v4954_v20 = vsel %vm3166_vm5, %v4922_v34, %v8376_v48  ;;  %6629 = vmatprep.subr.mxu1 %v5289_v4  ;;  %6565 = vmatpush3.msra.mxu0 %v5289_v4 }
 0x33c   : > { %v4970_v45 = vsel %vm3199_vm6, %v4938_v30, %v8391_v57  ;;  %v8401_v6 = vunpack.i.l.bf16 %v13090_v12  ;;  %v4986_v7 = vsel %vm3199_vm6, %v4954_v20, %v8392_v54  ;;  %v8402_v47 = vunpack.i.h.bf16 %v13090_v12  ;;  %v8430_v0 = vpop.permute.xlu1 %8429  ;;  %6645 = vmatpush3.msra.mxu1 %v5289_v4  ;;  %v14945_v57 = vld [vmem:[#allocation34_spill] sm:$0xff]  ;;  %v14947_v30 = vld [vmem:[#allocation28_spill] sm:$0xff] }
 0x33d   : > { %8709 = vrot.lane.b32.xlu1 %v8708_v25, %s8886_s7  ;;  %v8412_v31 = vunpack.i.h.bf16 %v13117_v39  ;;  %v8411_v3 = vunpack.i.l.bf16 %v13117_v39  ;;  %v5002_v52 = vsel %vm3232_vm7, %v4970_v45, %v8406_v11  ;;  %v5018_v43 = vsel %vm3232_vm7, %v4986_v7, %v8407_v23  ;;  %v14946_v25 = vld [vmem:[#allocation39_spill] sm:$0xff]  ;;  %v14949_v7 = vld [vmem:[#allocation29_spill] sm:$0xff] }
 0x33e   : > { %8704 = vrot.lane.b32.xlu0 %v8703_v44, %s8886_s7  ;;  %v8432_v13 = vunpack.i.h.bf16 %v8430_v0  ;;  %v8431_v27 = vunpack.i.l.bf16 %v8430_v0  ;;  %v8425_v50 = vpop.permute.xlu0 %8424  ;;  %v5034_v19 = vsel %vm3265_vm8, %v5002_v52, %v8416_v29  ;;  %v5050_v61 = vsel %vm3265_vm8, %v5018_v43, %v8417_v28  ;;  %v14948_v28 = vld [vmem:[#allocation4_spill] sm:$0xff] }
 0x33f   : > { %v8427_v22 = vunpack.i.h.bf16 %v8425_v50  ;;  %v8426_v12 = vunpack.i.l.bf16 %v8425_v50  ;;  %v4955_v51 = vsel %vm3166_vm5, %v4923_v55, %v8377_v56  ;;  %v4971_v32 = vsel %vm3199_vm6, %v4939_v36, %v8401_v6 }
 0x340   : > { %v5066_v46 = vsel %vm3298_vm9, %v5034_v19, %v8431_v27  ;;  %v5082_v10 = vsel %vm3298_vm9, %v5050_v61, %v8432_v13  ;;  %v4987_v39 = vsel %vm3199_vm6, %v4955_v51, %v8402_v47  ;;  %v5003_v26 = vsel %vm3232_vm7, %v4971_v32, %v8411_v3  ;;  %v8440_v59 = vpop.permute.xlu1 %8439  ;;  %v14951_v32 = vld [vmem:[#allocation84_spill] sm:$0xff] }
 0x341   : > { %v5098_v42 = vsel %vm3331_vm10, %v5066_v46, 0.0  ;;  %v5114_v17 = vsel %vm3331_vm10, %v5082_v10, 0.0  ;;  %v5019_v41 = vsel %vm3232_vm7, %v4987_v39, %v8412_v31  ;;  %v8442_v8 = vunpack.i.h.bf16 %v8440_v59  ;;  %v14952_v39 = vld [vmem:[#allocation134_spill] sm:$0xff] }
 0x342   : > { %v8441_v60 = vunpack.i.l.bf16 %v8440_v59  ;;  %v13178_v14 = vpop.permute.xlu0 %8434  ;;  %v8713_v58 = vpack.i.bf16 %v5114_v17, %v5098_v42  ;;  %v8082_v2 = vunpack.i.h.bf16 %v14944_v5  ;;  %v8081_v38 = vunpack.i.l.bf16 %v14944_v5 }
 0x343   : > { %v5035_v21 = vsel %vm3265_vm8, %v5003_v26, %v8426_v12  ;;  %v5051_v48 = vsel %vm3265_vm8, %v5019_v41, %v8427_v22  ;;  %v8077_v4 = vunpack.i.h.bf16 %v14945_v57  ;;  %v8076_v33 = vunpack.i.l.bf16 %v14945_v57  ;;  %v14950_v12 = vld [vmem:[#allocation18_spill] sm:$0xff] }
 0x344   : > { %v5067_v34 = vsel %vm3298_vm9, %v5035_v21, %v8441_v60  ;;  %v5083_v54 = vsel %vm3298_vm9, %v5051_v48, %v8442_v8  ;;  %8714 = vrot.lane.b32.xlu0 %v8713_v58, %s8886_s7  ;;  %v8122_v55 = vunpack.i.h.bf16 %v14946_v25  ;;  %v8121_v23 = vunpack.i.l.bf16 %v14946_v25  ;;  %v13193_v44 = vpop.permute.xlu1 %8449 }
 0x345   : > { %v5099_v11 = vsel %vm3331_vm10, %v5067_v34, 0.0  ;;  %v5115_v15 = vsel %vm3331_vm10, %v5083_v54, 0.0  ;;  %v8052_v36 = vunpack.i.h.bf16 %v14947_v30  ;;  %v8117_v29 = vunpack.i.h.bf16 %v14948_v28 }
 0x346   : > { %v8116_v56 = vunpack.i.l.bf16 %v14948_v28  ;;  %v13198_v20 = vpop.permute.xlu0 %8444  ;;  %v8718_v45 = vpack.i.bf16 %v5115_v15, %v5099_v11  ;;  %v8051_v6 = vunpack.i.l.bf16 %v14947_v30  ;;  %v8047_v47 = vunpack.i.h.bf16 %v14949_v7 }
 0x347   : > { %v8046_v31 = vunpack.i.l.bf16 %v14949_v7  ;;  %v13205_v3 = vsel %vm3067_vm2, %v12795_v9, %v8081_v38  ;;  %v13209_v0 = vsel %vm3067_vm2, %v12799_v49, %v8082_v2  ;;  %v4844_v52 = vsel %vm3067_vm2, %v12805_v63, %v8076_v33 }
 0x348   : > { %v4845_v43 = vsel %vm3067_vm2, %v12809_v35, %v8077_v4  ;;  %v8156_v13 = vunpack.i.l.bf16 %v12211_v62  ;;  %8719 = vrot.lane.b32.xlu1 %v8718_v45, %s8886_s7  ;;  %v13219_v27 = vsel %vm3067_vm2, %v12906_v24, %v8121_v23  ;;  %v13223_v9 = vsel %vm3067_vm2, %v12922_v18, %v8122_v55  ;;  %v8460_v63 = vpop.permute.xlu1 %8459 }
 0x349   : > { %v8157_v49 = vunpack.i.h.bf16 %v12211_v62  ;;  %v8196_v50 = vunpack.i.l.bf16 %v12326_v40  ;;  %v4860_v35 = vsel %vm3067_vm2, %v12926_v16, %v8116_v56  ;;  %v4861_v19 = vsel %vm3067_vm2, %v12930_v37, %v8117_v29 }
 0x34a   : > { %v8197_v61 = vunpack.i.h.bf16 %v12326_v40  ;;  %v8236_v24 = vunpack.i.l.bf16 %v12441_v1  ;;  %v8455_v22 = vpop.permute.xlu0 %8454  ;;  %v8162_v51 = vunpack.i.h.bf16 %v14950_v12  ;;  %v8237_v18 = vunpack.i.h.bf16 %v12441_v1 }
 0x34b   : > { %v8277_v62 = vunpack.i.h.bf16 %v14951_v32  ;;  %v8276_v46 = vunpack.i.l.bf16 %v14951_v32  ;;  %v8161_v10 = vunpack.i.l.bf16 %v14950_v12  ;;  %v4876_v16 = vsel %vm3100_vm3, %v4844_v52, %v8156_v13 }
 0x34c   : > { %v8317_v26 = vunpack.i.h.bf16 %v14952_v39  ;;  %v8316_v37 = vunpack.i.l.bf16 %v14952_v39  ;;  %v4877_v40 = vsel %vm3100_vm3, %v4845_v43, %v8157_v49  ;;  %v4892_v42 = vsel %vm3100_vm3, %v4860_v35, %v8196_v50  ;;  %v8470_v59 = vpop.permute.xlu1 %8469 }
 0x34d   : > { %v8421_v17 = vunpack.i.l.bf16 %v13150_v53  ;;  %v8436_v1 = vunpack.i.l.bf16 %v13178_v14  ;;  %v4893_v41 = vsel %vm3100_vm3, %v4861_v19, %v8197_v61  ;;  %v4908_v8 = vsel %vm3133_vm4, %v4876_v16, %v8236_v24 }
 0x34e   : > { %v8437_v60 = vunpack.i.h.bf16 %v13178_v14  ;;  %v8451_v58 = vunpack.i.l.bf16 %v13193_v44  ;;  %v13249_v5 = vpop.permute.xlu0 %8464  ;;  %v4909_v2 = vsel %vm3133_vm4, %v4877_v40, %v8237_v18  ;;  %v4924_v38 = vsel %vm3133_vm4, %v4892_v42, %v8276_v46 }
 0x34f   : > { %v4925_v21 = vsel %vm3133_vm4, %v4893_v41, %v8277_v62  ;;  %v8452_v48 = vunpack.i.h.bf16 %v13193_v44  ;;  %v4940_v57 = vsel %vm3166_vm5, %v4908_v8, %v8316_v37  ;;  %v4941_v4 = vsel %vm3166_vm5, %v4909_v2, %v8317_v26  ;;  %v14953_v37 = vld [vmem:[#allocation45_spill] sm:$0xff] }
 0x350   : > { %v8462_v33 = vunpack.i.h.bf16 %v8460_v63  ;;  %v8461_v34 = vunpack.i.l.bf16 %v8460_v63  ;;  %v8422_v14 = vunpack.i.h.bf16 %v13150_v53  ;;  %v4956_v54 = vsel %vm3166_vm5, %v4924_v38, %v8421_v17  ;;  %v13261_v23 = vpop.permute.xlu1 %8479  ;;  %v14955_v38 = vld [vmem:[#allocation83_spill] sm:$0xff] }
 0x351   : > { %v4972_v25 = vsel %vm3199_vm6, %v4940_v57, %v8436_v1  ;;  %v8446_v55 = vunpack.i.l.bf16 %v13198_v20  ;;  %v4988_v11 = vsel %vm3199_vm6, %v4956_v54, %v8437_v60  ;;  %v8447_v44 = vunpack.i.h.bf16 %v13198_v20 }
 0x352   : > { %v5004_v15 = vsel %vm3232_vm7, %v4972_v25, %v8451_v58  ;;  %v8456_v28 = vunpack.i.l.bf16 %v8455_v22  ;;  %v8475_v29 = vpop.permute.xlu0 %8474  ;;  %v5020_v56 = vsel %vm3232_vm7, %v4988_v11, %v8452_v48  ;;  %v8457_v45 = vunpack.i.h.bf16 %v8455_v22 }
 0x353   : > { %v8477_v53 = vunpack.i.h.bf16 %v8475_v29  ;;  %v8476_v52 = vunpack.i.l.bf16 %v8475_v29  ;;  %v5036_v43 = vsel %vm3265_vm8, %v5004_v15, %v8461_v34  ;;  %v5052_v13 = vsel %vm3265_vm8, %v5020_v56, %v8462_v33 }
 0x354   : > { %v8472_v49 = vunpack.i.h.bf16 %v8470_v59  ;;  %v8471_v50 = vunpack.i.l.bf16 %v8470_v59  ;;  %v4957_v63 = vsel %vm3166_vm5, %v4925_v21, %v8422_v14  ;;  %v4973_v35 = vsel %vm3199_vm6, %v4941_v4, %v8446_v55  ;;  %v13273_v61 = vpop.permute.xlu1 %8489  ;;  %v14954_v59 = vld [vmem:[#allocation66_spill] sm:$0xff]  ;;  %v14956_v14 = vld [vmem:[#allocation113_spill] sm:$0xff] }
 0x355   : > { %v5068_v19 = vsel %vm3298_vm9, %v5036_v43, %v8476_v52  ;;  %v5084_v20 = vsel %vm3298_vm9, %v5052_v13, %v8477_v53  ;;  %v4989_v24 = vsel %vm3199_vm6, %v4957_v63, %v8447_v44  ;;  %v5005_v22 = vsel %vm3232_vm7, %v4973_v35, %v8456_v28 }
 0x356   : > { %v5100_v18 = vsel %vm3331_vm10, %v5068_v19, 0.0  ;;  %v5116_v32 = vsel %vm3331_vm10, %v5084_v20, 0.0  ;;  %v8485_v62 = vpop.permute.xlu0 %8484  ;;  %v5021_v46 = vsel %vm3232_vm7, %v4989_v24, %v8457_v45  ;;  %v8202_v40 = vunpack.i.h.bf16 %v14953_v37 }
 0x357   : > { %v8487_v16 = vunpack.i.h.bf16 %v8485_v62  ;;  %v8486_v39 = vunpack.i.l.bf16 %v8485_v62  ;;  %v8723_v26 = vpack.i.bf16 %v5116_v32, %v5100_v18  ;;  %v8201_v42 = vunpack.i.l.bf16 %v14953_v37 }
 0x358   : > { %v5037_v17 = vsel %vm3265_vm8, %v5005_v22, %v8471_v50  ;;  %v5053_v1 = vsel %vm3265_vm8, %v5021_v46, %v8472_v49  ;;  %v8242_v41 = vunpack.i.h.bf16 %v14954_v59  ;;  %v8241_v8 = vunpack.i.l.bf16 %v14954_v59  ;;  %v8500_v2 = vpop.permute.xlu1 %8499 }
 0x359   : > { %v5069_v60 = vsel %vm3298_vm9, %v5037_v17, %v8486_v39  ;;  %v5085_v58 = vsel %vm3298_vm9, %v5053_v1, %v8487_v16  ;;  %8724 = vrot.lane.b32.xlu0 %v8723_v26, %s8886_s7  ;;  %v8282_v21 = vunpack.i.h.bf16 %v14955_v38  ;;  %v8281_v48 = vunpack.i.l.bf16 %v14955_v38 }
 0x35a   : > { %v5101_v57 = vsel %vm3331_vm10, %v5069_v60, 0.0  ;;  %v5117_v4 = vsel %vm3331_vm10, %v5085_v58, 0.0  ;;  %v8495_v33 = vpop.permute.xlu0 %8494  ;;  %v4878_v34 = vsel %vm3100_vm3, %v13205_v3, %v8161_v10  ;;  %v8322_v54 = vunpack.i.h.bf16 %v14956_v14 }
 0x35b   : > { %v8321_v25 = vunpack.i.l.bf16 %v14956_v14  ;;  %v8728_v55 = vpack.i.bf16 %v5117_v4, %v5101_v57  ;;  %v4879_v11 = vsel %vm3100_vm3, %v13209_v0, %v8162_v51  ;;  %v4894_v15 = vsel %vm3100_vm3, %v13219_v27, %v8201_v42  ;;  %v14957_v57 = vld [vmem:[#allocation35_spill] sm:$0xff] }
 0x35c   : > { %v8466_v44 = vunpack.i.l.bf16 %v13249_v5  ;;  %v8481_v28 = vunpack.i.l.bf16 %v13261_v23  ;;  %v4895_v3 = vsel %vm3100_vm3, %v13223_v9, %v8202_v40  ;;  %v4910_v10 = vsel %vm3133_vm4, %v4878_v34, %v8241_v8  ;;  %v13313_v12 = vpop.permute.xlu1 %8509 }
 0x35d   : > { %v4911_v29 = vsel %vm3133_vm4, %v4879_v11, %v8242_v41  ;;  %v8482_v56 = vunpack.i.h.bf16 %v13261_v23  ;;  %8729 = vrot.lane.b32.xlu1 %v8728_v55, %s8886_s7  ;;  %v4926_v0 = vsel %vm3133_vm4, %v4894_v15, %v8281_v48  ;;  %v4927_v27 = vsel %vm3133_vm4, %v4895_v3, %v8282_v21 }
 0x35e   : > { %v8497_v51 = vunpack.i.h.bf16 %v8495_v33  ;;  %v8496_v45 = vunpack.i.l.bf16 %v8495_v33  ;;  %v8505_v53 = vpop.permute.xlu0 %8504  ;;  %v4942_v52 = vsel %vm3166_vm5, %v4910_v10, %v8321_v25  ;;  %v4943_v9 = vsel %vm3166_vm5, %v4911_v29, %v8322_v54  ;;  %v14958_v54 = vld [vmem:[#allocation36_spill] sm:$0xff] }
 0x35f   : > { %v8507_v43 = vunpack.i.h.bf16 %v8505_v53  ;;  %v8506_v13 = vunpack.i.l.bf16 %v8505_v53  ;;  %v8467_v49 = vunpack.i.h.bf16 %v13249_v5  ;;  %v4958_v23 = vsel %vm3166_vm5, %v4926_v0, %v8466_v44  ;;  %v14959_v44 = vld [vmem:[#allocation5_spill] sm:$0xff] }
 0x360   : > { %v4974_v50 = vsel %vm3199_vm6, %v4942_v52, %v8481_v28  ;;  %v8491_v63 = vunpack.i.l.bf16 %v13273_v61  ;;  %v4990_v35 = vsel %vm3199_vm6, %v4958_v23, %v8482_v56  ;;  %v8492_v19 = vunpack.i.h.bf16 %v13273_v61  ;;  %v8520_v22 = vpop.permute.xlu1 %8519  ;;  %v14960_v0 = vld [vmem:[#allocation125_spill] sm:$0xff] }
 0x361   : > { %v8502_v20 = vunpack.i.h.bf16 %v8500_v2  ;;  %v8501_v24 = vunpack.i.l.bf16 %v8500_v2  ;;  %v5006_v18 = vsel %vm3232_vm7, %v4974_v50, %v8496_v45  ;;  %v5022_v32 = vsel %vm3232_vm7, %v4990_v35, %v8497_v51  ;;  %v14961_v51 = vld [vmem:[#allocation8_spill] sm:$0xff] }
 0x362   : > { %v8522_v62 = vunpack.i.h.bf16 %v8520_v22  ;;  %v8521_v46 = vunpack.i.l.bf16 %v8520_v22  ;;  %v8515_v5 = vpop.permute.xlu0 %8514  ;;  %v5038_v16 = vsel %vm3265_vm8, %v5006_v18, %v8506_v13  ;;  %v5054_v39 = vsel %vm3265_vm8, %v5022_v32, %v8507_v43  ;;  %v14962_v43 = vld [vmem:[#allocation116_spill] sm:$0xff] }
 0x363   : > { %v8517_v26 = vunpack.i.h.bf16 %v8515_v5  ;;  %v8516_v37 = vunpack.i.l.bf16 %v8515_v5  ;;  %v4959_v40 = vsel %vm3166_vm5, %v4927_v27, %v8467_v49  ;;  %v4975_v61 = vsel %vm3199_vm6, %v4943_v9, %v8491_v63  ;;  %v14963_v49 = vld [vmem:[#allocation135_spill] sm:$0xff]  ;;  %v14965_v63 = vld [vmem:[#allocation21_spill] sm:$0xff] }
 0x364   : > { %v5070_v42 = vsel %vm3298_vm9, %v5038_v16, %v8521_v46  ;;  %v5086_v17 = vsel %vm3298_vm9, %v5054_v39, %v8522_v62  ;;  %v4991_v1 = vsel %vm3199_vm6, %v4959_v40, %v8492_v19  ;;  %v5007_v59 = vsel %vm3232_vm7, %v4975_v61, %v8501_v24  ;;  %v8530_v60 = vpop.permute.xlu1 %8529  ;;  %v14966_v19 = vld [vmem:[#allocation64_spill] sm:$0xff] }
 0x365   : > { %v5102_v41 = vsel %vm3331_vm10, %v5070_v42, 0.0  ;;  %v5118_v8 = vsel %vm3331_vm10, %v5086_v17, 0.0  ;;  %v5023_v58 = vsel %vm3232_vm7, %v4991_v1, %v8502_v20  ;;  %v8532_v2 = vunpack.i.h.bf16 %v8530_v60  ;;  %v14967_v20 = vld [vmem:[#allocation72_spill] sm:$0xff] }
 0x366   : > { %v8531_v38 = vunpack.i.l.bf16 %v8530_v60  ;;  %v13338_v21 = vpop.permute.xlu0 %8524  ;;  %v8733_v48 = vpack.i.bf16 %v5118_v8, %v5102_v41  ;;  %v8092_v4 = vunpack.i.h.bf16 %v14957_v57  ;;  %v8091_v33 = vunpack.i.l.bf16 %v14957_v57  ;;  %v14968_v24 = vld [vmem:[#allocation80_spill] sm:$0xff] }
 0x367   : > { %v5039_v34 = vsel %vm3265_vm8, %v5007_v59, %v8516_v37  ;;  %v5055_v14 = vsel %vm3265_vm8, %v5023_v58, %v8517_v26  ;;  %v8087_v25 = vunpack.i.h.bf16 %v14958_v54  ;;  %v8086_v55 = vunpack.i.l.bf16 %v14958_v54  ;;  %v14970_v62 = vld [vmem:[#allocation52_spill] sm:$0xff]  ;;  %v14973_v59 = vld [vmem:[#allocation93_spill] sm:$0xff] }
 0x368   : > { %v5071_v11 = vsel %vm3298_vm9, %v5039_v34, %v8531_v38  ;;  %v5087_v15 = vsel %vm3298_vm9, %v5055_v14, %v8532_v2  ;;  %8734 = vrot.lane.b32.xlu0 %v8733_v48, %s8886_s7  ;;  %v8132_v28 = vunpack.i.h.bf16 %v14959_v44  ;;  %v8131_v3 = vunpack.i.l.bf16 %v14959_v44  ;;  %v13353_v56 = vpop.permute.xlu1 %8539  ;;  %v14971_v37 = vld [vmem:[#allocation68_spill] sm:$0xff] }
 0x369   : > { %v5103_v10 = vsel %vm3331_vm10, %v5071_v11, 0.0  ;;  %v5119_v29 = vsel %vm3331_vm10, %v5087_v15, 0.0  ;;  %v4834_v27 = vsel %vm3034_vm1, %v14960_v0, %v8051_v6  ;;  %v8127_v45 = vunpack.i.h.bf16 %v14961_v51  ;;  %v14964_v6 = vld [vmem:[#allocation127_spill] sm:$0xff]  ;;  %v14972_v42 = vld [vmem:[#allocation112_spill] sm:$0xff] }
 0x36a   : > { %v8126_v53 = vunpack.i.l.bf16 %v14961_v51  ;;  %v13361_v52 = vpop.permute.xlu0 %8534  ;;  %v8738_v9 = vpack.i.bf16 %v5119_v29, %v5103_v10  ;;  %v4835_v13 = vsel %vm3034_vm1, %v14962_v43, %v8052_v36  ;;  %v4832_v23 = vsel %vm3034_vm1, %v14963_v49, %v8046_v31  ;;  %v14969_v31 = vld [vmem:[#allocation15_spill] sm:$0xff]  ;;  %v14974_v2 = vld [vmem:[#allocation12_spill] sm:$0xff] }
 0x36b   : > { %v4833_v50 = vsel %vm3034_vm1, %v14964_v6, %v8047_v47  ;;  %v13377_v35 = vsel %vm3067_vm2, %v14965_v63, %v8091_v33  ;;  %v13381_v30 = vsel %vm3067_vm2, %v14966_v19, %v8092_v4  ;;  %v4848_v36 = vsel %vm3067_vm2, %v14967_v20, %v8086_v55 }
 0x36c   : > { %v4849_v22 = vsel %vm3067_vm2, %v14968_v24, %v8087_v25  ;;  %v8166_v18 = vunpack.i.l.bf16 %v14969_v31  ;;  %8739 = vrot.lane.b32.xlu1 %v8738_v9, %s8886_s7  ;;  %v13390_v7 = vsel %vm3067_vm2, %v4834_v27, %v8131_v3  ;;  %v13393_v47 = vsel %vm3067_vm2, %v4835_v13, %v8132_v28  ;;  %v8550_v5 = vpop.permute.xlu1 %8549 }
 0x36d   : > { %v8167_v32 = vunpack.i.h.bf16 %v14969_v31  ;;  %v8206_v46 = vunpack.i.l.bf16 %v14970_v62  ;;  %v4864_v16 = vsel %vm3067_vm2, %v4832_v23, %v8126_v53  ;;  %v4865_v39 = vsel %vm3067_vm2, %v4833_v50, %v8127_v45 }
 0x36e   : > { %v8207_v26 = vunpack.i.h.bf16 %v14970_v62  ;;  %v8246_v40 = vunpack.i.l.bf16 %v14971_v37  ;;  %v8545_v61 = vpop.permute.xlu0 %8544  ;;  %v8172_v17 = vunpack.i.h.bf16 %v14972_v42  ;;  %v8247_v1 = vunpack.i.h.bf16 %v14971_v37 }
 0x36f   : > { %v8287_v41 = vunpack.i.h.bf16 %v14973_v59  ;;  %v8286_v8 = vunpack.i.l.bf16 %v14973_v59  ;;  %v8171_v60 = vunpack.i.l.bf16 %v14972_v42  ;;  %v4880_v58 = vsel %vm3100_vm3, %v4848_v36, %v8166_v18  ;;  %v14975_v59 = vld [vmem:[#allocation51_spill] sm:$0xff] }
 0x370   : > { %v8327_v38 = vunpack.i.h.bf16 %v14974_v2  ;;  %v8326_v48 = vunpack.i.l.bf16 %v14974_v2  ;;  %v4881_v57 = vsel %vm3100_vm3, %v4849_v22, %v8167_v32  ;;  %v4896_v4 = vsel %vm3100_vm3, %v4864_v16, %v8206_v46  ;;  %v8560_v14 = vpop.permute.xlu1 %8559 }
 0x371   : > { %v8511_v33 = vunpack.i.l.bf16 %v13313_v12  ;;  %v8526_v34 = vunpack.i.l.bf16 %v13338_v21  ;;  %v4897_v54 = vsel %vm3100_vm3, %v4865_v39, %v8207_v26  ;;  %v4912_v25 = vsel %vm3133_vm4, %v4880_v58, %v8246_v40 }
 0x372   : > { %v8527_v55 = vunpack.i.h.bf16 %v13338_v21  ;;  %v8541_v11 = vunpack.i.l.bf16 %v13353_v56  ;;  %v13417_v15 = vpop.permute.xlu0 %8554  ;;  %v4913_v44 = vsel %vm3133_vm4, %v4881_v57, %v8247_v1  ;;  %v4928_v28 = vsel %vm3133_vm4, %v4896_v4, %v8286_v8 }
 0x373   : > { %v4929_v3 = vsel %vm3133_vm4, %v4897_v54, %v8287_v41  ;;  %v8542_v10 = vunpack.i.h.bf16 %v13353_v56  ;;  %v4944_v29 = vsel %vm3166_vm5, %v4912_v25, %v8326_v48  ;;  %v4945_v0 = vsel %vm3166_vm5, %v4913_v44, %v8327_v38  ;;  %v14976_v38 = vld [vmem:[#allocation67_spill] sm:$0xff] }
 0x374   : > { %v8552_v27 = vunpack.i.h.bf16 %v8550_v5  ;;  %v8551_v51 = vunpack.i.l.bf16 %v8550_v5  ;;  %v8512_v21 = vunpack.i.h.bf16 %v13313_v12  ;;  %v4960_v45 = vsel %vm3166_vm5, %v4928_v28, %v8511_v33  ;;  %v13429_v43 = vpop.permute.xlu1 %8569 }
 0x375   : > { %v4976_v53 = vsel %vm3199_vm6, %v4944_v29, %v8526_v34  ;;  %v8536_v9 = vunpack.i.l.bf16 %v13361_v52  ;;  %v4992_v13 = vsel %vm3199_vm6, %v4960_v45, %v8527_v55  ;;  %v8537_v49 = vunpack.i.h.bf16 %v13361_v52 }
 0x376   : > { %v5008_v56 = vsel %vm3232_vm7, %v4976_v53, %v8541_v11  ;;  %v8546_v23 = vunpack.i.l.bf16 %v8545_v61  ;;  %v8565_v6 = vpop.permute.xlu0 %8564  ;;  %v5024_v50 = vsel %vm3232_vm7, %v4992_v13, %v8542_v10  ;;  %v8547_v63 = vunpack.i.h.bf16 %v8545_v61 }
 0x377   : > { %v8567_v12 = vunpack.i.h.bf16 %v8565_v6  ;;  %v8566_v19 = vunpack.i.l.bf16 %v8565_v6  ;;  %v5040_v20 = vsel %vm3265_vm8, %v5008_v56, %v8551_v51  ;;  %v5056_v36 = vsel %vm3265_vm8, %v5024_v50, %v8552_v27 }
 0x378   : > { %v8562_v24 = vunpack.i.h.bf16 %v8560_v14  ;;  %v8561_v22 = vunpack.i.l.bf16 %v8560_v14  ;;  %v4961_v31 = vsel %vm3166_vm5, %v4929_v3, %v8512_v21  ;;  %v4977_v18 = vsel %vm3199_vm6, %v4945_v0, %v8536_v9  ;;  %v13441_v62 = vpop.permute.xlu1 %8579  ;;  %v14977_v14 = vld [vmem:[#allocation91_spill] sm:$0xff]  ;;  %v14978_v3 = vld [vmem:[#allocation152_spill] sm:$0xff] }
 0x379   : > { %v5072_v32 = vsel %vm3298_vm9, %v5040_v20, %v8566_v19  ;;  %v5088_v52 = vsel %vm3298_vm9, %v5056_v36, %v8567_v12  ;;  %v4993_v46 = vsel %vm3199_vm6, %v4961_v31, %v8537_v49  ;;  %v5009_v5 = vsel %vm3232_vm7, %v4977_v18, %v8546_v23 }
 0x37a   : > { %v5104_v16 = vsel %vm3331_vm10, %v5072_v32, 0.0  ;;  %v5120_v39 = vsel %vm3331_vm10, %v5088_v52, 0.0  ;;  %v8575_v26 = vpop.permute.xlu0 %8574  ;;  %v5025_v37 = vsel %vm3232_vm7, %v4993_v46, %v8547_v63  ;;  %v8212_v41 = vunpack.i.h.bf16 %v14975_v59 }
 0x37b   : > { %v8577_v40 = vunpack.i.h.bf16 %v8575_v26  ;;  %v8576_v61 = vunpack.i.l.bf16 %v8575_v26  ;;  %v8743_v1 = vpack.i.bf16 %v5120_v39, %v5104_v16  ;;  %v8211_v8 = vunpack.i.l.bf16 %v14975_v59 }
 0x37c   : > { %v5041_v58 = vsel %vm3265_vm8, %v5009_v5, %v8561_v22  ;;  %v5057_v2 = vsel %vm3265_vm8, %v5025_v37, %v8562_v24  ;;  %v8252_v48 = vunpack.i.h.bf16 %v14976_v38  ;;  %v8251_v57 = vunpack.i.l.bf16 %v14976_v38  ;;  %v8590_v34 = vpop.permute.xlu1 %8589 }
 0x37d   : > { %v5073_v4 = vsel %vm3298_vm9, %v5041_v58, %v8576_v61  ;;  %v5089_v33 = vsel %vm3298_vm9, %v5057_v2, %v8577_v40  ;;  %8744 = vrot.lane.b32.xlu0 %v8743_v1, %s8886_s7  ;;  %v8292_v54 = vunpack.i.h.bf16 %v14977_v14  ;;  %v8291_v25 = vunpack.i.l.bf16 %v14977_v14 }
 0x37e   : > { %v5105_v55 = vsel %vm3331_vm10, %v5073_v4, 0.0  ;;  %v5121_v11 = vsel %vm3331_vm10, %v5089_v33, 0.0  ;;  %v8585_v44 = vpop.permute.xlu0 %8584  ;;  %v4882_v28 = vsel %vm3100_vm3, %v13377_v35, %v8171_v60  ;;  %v8332_v10 = vunpack.i.h.bf16 %v14978_v3  ;;  %v14979_v4 = vld [vmem:[#allocation30_spill] sm:$0xff] }
 0x37f   : > { %v8331_v29 = vunpack.i.l.bf16 %v14978_v3  ;;  %v8748_v0 = vpack.i.bf16 %v5121_v11, %v5105_v55  ;;  %v4883_v27 = vsel %vm3100_vm3, %v13381_v30, %v8172_v17  ;;  %v4898_v51 = vsel %vm3100_vm3, %v13390_v7, %v8211_v8  ;;  %v14982_v11 = vld [vmem:[#allocation90_spill] sm:$0xff] }
 0x380   : > { %v8556_v21 = vunpack.i.l.bf16 %v13417_v15  ;;  %v8571_v45 = vunpack.i.l.bf16 %v13429_v43  ;;  %v4899_v35 = vsel %vm3100_vm3, %v13393_v47, %v8212_v41  ;;  %v4914_v60 = vsel %vm3133_vm4, %v4882_v28, %v8251_v57  ;;  %v13481_v42 = vpop.permute.xlu1 %8599  ;;  %v14983_v28 = vld [vmem:[#allocation37_spill] sm:$0xff] }
 0x381   : > { %v4915_v53 = vsel %vm3133_vm4, %v4883_v27, %v8252_v48  ;;  %v8572_v9 = vunpack.i.h.bf16 %v13429_v43  ;;  %8749 = vrot.lane.b32.xlu1 %v8748_v0, %s8886_s7  ;;  %v4930_v30 = vsel %vm3133_vm4, %v4898_v51, %v8291_v25  ;;  %v4931_v7 = vsel %vm3133_vm4, %v4899_v35, %v8292_v54  ;;  %v14980_v25 = vld [vmem:[#allocation47_spill] sm:$0xff]  ;;  %v14984_v0 = vld [vmem:[#allocation38_spill] sm:$0xff] }
 0x382   : > { %v8587_v17 = vunpack.i.h.bf16 %v8585_v44  ;;  %v8586_v13 = vunpack.i.l.bf16 %v8585_v44  ;;  %v8595_v56 = vpop.permute.xlu0 %8594  ;;  %v4946_v49 = vsel %vm3166_vm5, %v4914_v60, %v8331_v29  ;;  %v4947_v47 = vsel %vm3166_vm5, %v4915_v53, %v8332_v10  ;;  %v14986_v53 = vld [vmem:[#allocation85_spill] sm:$0xff] }
 0x383   : > { %v8597_v23 = vunpack.i.h.bf16 %v8595_v56  ;;  %v8596_v6 = vunpack.i.l.bf16 %v8595_v56  ;;  %v8557_v50 = vunpack.i.h.bf16 %v13417_v15  ;;  %v4962_v43 = vsel %vm3166_vm5, %v4930_v30, %v8556_v21  ;;  %v14987_v30 = vld [vmem:[#allocation6_spill] sm:$0xff] }
 0x384   : > { %v4978_v63 = vsel %vm3199_vm6, %v4946_v49, %v8571_v45  ;;  %v8581_v12 = vunpack.i.l.bf16 %v13441_v62  ;;  %v4994_v19 = vsel %vm3199_vm6, %v4962_v43, %v8572_v9  ;;  %v8582_v20 = vunpack.i.h.bf16 %v13441_v62  ;;  %v8610_v22 = vpop.permute.xlu1 %8609  ;;  %v14988_v49 = vld [vmem:[#allocation48_spill] sm:$0xff] }
 0x385   : > { %v8592_v36 = vunpack.i.h.bf16 %v8590_v34  ;;  %v8591_v24 = vunpack.i.l.bf16 %v8590_v34  ;;  %v5010_v31 = vsel %vm3232_vm7, %v4978_v63, %v8586_v13  ;;  %v5026_v18 = vsel %vm3232_vm7, %v4994_v19, %v8587_v17  ;;  %v14992_v43 = vld [vmem:[#allocation92_spill] sm:$0xff] }
 0x386   : > { %v8612_v32 = vunpack.i.h.bf16 %v8610_v22  ;;  %v8611_v52 = vunpack.i.l.bf16 %v8610_v22  ;;  %v8605_v15 = vpop.permute.xlu0 %8604  ;;  %v5042_v46 = vsel %vm3265_vm8, %v5010_v31, %v8596_v6  ;;  %v5058_v5 = vsel %vm3265_vm8, %v5026_v18, %v8597_v23  ;;  %v14990_v23 = vld [vmem:[#allocation107_spill] sm:$0xff]  ;;  %v14995_v31 = vld [vmem:[#allocation17_spill] sm:$0xff] }
 0x387   : > { %v8607_v16 = vunpack.i.h.bf16 %v8605_v15  ;;  %v8606_v39 = vunpack.i.l.bf16 %v8605_v15  ;;  %v4963_v26 = vsel %vm3166_vm5, %v4931_v7, %v8557_v50  ;;  %v4979_v62 = vsel %vm3199_vm6, %v4947_v47, %v8581_v12  ;;  %v14993_v12 = vld [vmem:[#allocation143_spill] sm:$0xff] }
 0x388   : > { %v5074_v37 = vsel %vm3298_vm9, %v5042_v46, %v8611_v52  ;;  %v5090_v40 = vsel %vm3298_vm9, %v5058_v5, %v8612_v32  ;;  %v4995_v61 = vsel %vm3199_vm6, %v4963_v26, %v8582_v20  ;;  %v5011_v1 = vsel %vm3232_vm7, %v4979_v62, %v8591_v24  ;;  %v8620_v8 = vpop.permute.xlu1 %8619  ;;  %v14994_v20 = vld [vmem:[#allocation142_spill] sm:$0xff]  ;;  %v14996_v46 = vld [vmem:[#allocation53_spill] sm:$0xff] }
 0x389   : > { %v5106_v59 = vsel %vm3331_vm10, %v5074_v37, 0.0  ;;  %v5122_v41 = vsel %vm3331_vm10, %v5090_v40, 0.0  ;;  %v5027_v58 = vsel %vm3232_vm7, %v4995_v61, %v8592_v36  ;;  %v8622_v2 = vunpack.i.h.bf16 %v8620_v8  ;;  %v14997_v37 = vld [vmem:[#allocation13_spill] sm:$0xff]  ;;  %v14998_v61 = vld [vmem:[#allocation74_spill] sm:$0xff] }
 0x38a   : > { %v8621_v38 = vunpack.i.l.bf16 %v8620_v8  ;;  %v13506_v48 = vpop.permute.xlu0 %8614  ;;  %v8753_v57 = vpack.i.bf16 %v5122_v41, %v5106_v59  ;;  %v8057_v33 = vunpack.i.h.bf16 %v14979_v4  ;;  %v8056_v34 = vunpack.i.l.bf16 %v14979_v4 }
 0x38b   : > { %v5043_v14 = vsel %vm3265_vm8, %v5011_v1, %v8606_v39  ;;  %v5059_v54 = vsel %vm3265_vm8, %v5027_v58, %v8607_v16  ;;  %v14981_v55 = vunpack.i.l.bf16 %v14980_v25  ;;  %v8101_v3 = vunpack.i.l.bf16 %v14983_v28  ;;  %v14999_v58 = vld [vmem:[#allocation98_spill] sm:$0xff] }
 0x38c   : > { %v5075_v10 = vsel %vm3298_vm9, %v5043_v14, %v8621_v38  ;;  %v5091_v29 = vsel %vm3298_vm9, %v5059_v54, %v8622_v2  ;;  %8754 = vrot.lane.b32.xlu0 %v8753_v57, %s8886_s7  ;;  %v8097_v27 = vunpack.i.h.bf16 %v14984_v0  ;;  %v8096_v51 = vunpack.i.l.bf16 %v14984_v0  ;;  %v13524_v35 = vpop.permute.xlu1 %8629 }
 0x38d   : > { %v4822_v44 = vsel %vm3034_vm1, %v14982_v11, %v14981_v55  ;;  %v5107_v21 = vsel %vm3331_vm10, %v5075_v10, 0.0  ;;  %v5123_v45 = vsel %vm3331_vm10, %v5091_v29, 0.0  ;;  %v14985_v60 = vunpack.i.h.bf16 %v14980_v25 }
 0x38e   : > { %v8137_v7 = vunpack.i.h.bf16 %v14987_v30  ;;  %v8136_v17 = vunpack.i.l.bf16 %v14987_v30  ;;  %v13534_v13 = vpop.permute.xlu0 %8624  ;;  %v8758_v56 = vpack.i.bf16 %v5123_v45, %v5107_v21  ;;  %v14989_v47 = vunpack.i.l.bf16 %v14988_v49 }
 0x38f   : > { %v13530_v9 = vsel %vm3034_vm1, %v14986_v53, %v14985_v60  ;;  %v14991_v50 = vunpack.i.h.bf16 %v14988_v49  ;;  %v4836_v19 = vsel %vm3034_vm1, %v14993_v12, %v8056_v34  ;;  %v4837_v36 = vsel %vm3034_vm1, %v14994_v20, %v8057_v33  ;;  %v15000_v33 = vld [vmem:[#allocation88_spill] sm:$0xff] }
 0x390   : > { %v4820_v6 = vsel %vm3034_vm1, %v14990_v23, %v14989_v47  ;;  %v8102_v24 = vunpack.i.h.bf16 %v14983_v28  ;;  %v13550_v22 = vsel %vm3067_vm2, %v4822_v44, %v8101_v3  ;;  %v8177_v18 = vunpack.i.h.bf16 %v14995_v31  ;;  %8759 = vrot.lane.b32.xlu1 %v8758_v56, %s8886_s7  ;;  %v8640_v39 = vpop.permute.xlu1 %8639  ;;  %v15001_v3 = vld [vmem:[#allocation69_spill] sm:$0xff] }
 0x391   : > { %v4821_v63 = vsel %vm3034_vm1, %v14992_v43, %v14991_v50  ;;  %v8176_v32 = vunpack.i.l.bf16 %v14995_v31  ;;  %v4852_v52 = vsel %vm3067_vm2, %v4820_v6, %v8096_v51  ;;  %v8217_v5 = vunpack.i.h.bf16 %v14996_v46 }
 0x392   : > { %v4853_v15 = vsel %vm3067_vm2, %v4821_v63, %v8097_v27  ;;  %v8216_v16 = vunpack.i.l.bf16 %v14996_v46  ;;  %v4868_v26 = vsel %vm3067_vm2, %v4836_v19, %v8136_v17  ;;  %v4869_v62 = vsel %vm3067_vm2, %v4837_v36, %v8137_v7  ;;  %v8635_v59 = vpop.permute.xlu0 %8634 }
 0x393   : > { %v8182_v40 = vunpack.i.h.bf16 %v14997_v37  ;;  %v8256_v1 = vunpack.i.l.bf16 %v14998_v61  ;;  %v8181_v41 = vunpack.i.l.bf16 %v14997_v37  ;;  %v8257_v8 = vunpack.i.h.bf16 %v14998_v61 }
 0x394   : > { %v8297_v2 = vunpack.i.h.bf16 %v14999_v58  ;;  %v8296_v38 = vunpack.i.l.bf16 %v14999_v58  ;;  %v4884_v57 = vsel %vm3100_vm3, %v4852_v52, %v8176_v32  ;;  %v4885_v4 = vsel %vm3100_vm3, %v4853_v15, %v8177_v18  ;;  %v8650_v44 = vpop.permute.xlu1 %8649 }
 0x395   : > { %v8337_v34 = vunpack.i.h.bf16 %v15000_v33  ;;  %v8336_v14 = vunpack.i.l.bf16 %v15000_v33  ;;  %v4900_v54 = vsel %vm3100_vm3, %v4868_v26, %v8216_v16  ;;  %v4901_v25 = vsel %vm3100_vm3, %v4869_v62, %v8217_v5 }
 0x396   : > { %v8601_v55 = vunpack.i.l.bf16 %v13481_v42  ;;  %v8616_v11 = vunpack.i.l.bf16 %v13506_v48  ;;  %v8261_v10 = vunpack.i.l.bf16 %v15001_v3  ;;  %v4916_v29 = vsel %vm3133_vm4, %v4884_v57, %v8256_v1  ;;  %v13579_v51 = vpop.permute.xlu0 %8644  ;;  %v15002_v57 = vld [vmem:[#allocation54_spill] sm:$0xff] }
 0x397   : > { %v8617_v0 = vunpack.i.h.bf16 %v13506_v48  ;;  %v8631_v27 = vunpack.i.l.bf16 %v13524_v35  ;;  %v4917_v21 = vsel %vm3133_vm4, %v4885_v4, %v8257_v8  ;;  %v4932_v45 = vsel %vm3133_vm4, %v4900_v54, %v8296_v38 }
 0x398   : > { %v4933_v60 = vsel %vm3133_vm4, %v4901_v25, %v8297_v2  ;;  %v8632_v53 = vunpack.i.h.bf16 %v13524_v35  ;;  %v4948_v30 = vsel %vm3166_vm5, %v4916_v29, %v8336_v14  ;;  %v4949_v7 = vsel %vm3166_vm5, %v4917_v21, %v8337_v34  ;;  %v13591_v6 = vpop.permute.xlu1 %8659 }
 0x399   : > { %v8642_v17 = vunpack.i.h.bf16 %v8640_v39  ;;  %v8641_v56 = vunpack.i.l.bf16 %v8640_v39  ;;  %v8602_v48 = vunpack.i.h.bf16 %v13481_v42  ;;  %v4964_v49 = vsel %vm3166_vm5, %v4932_v45, %v8601_v55 }
 0x39a   : > { %v4980_v47 = vsel %vm3199_vm6, %v4948_v30, %v8616_v11  ;;  %v8626_v23 = vunpack.i.l.bf16 %v13534_v13  ;;  %v4996_v50 = vsel %vm3199_vm6, %v4964_v49, %v8617_v0  ;;  %v8627_v43 = vunpack.i.h.bf16 %v13534_v13  ;;  %v8655_v12 = vpop.permute.xlu0 %8654 }
 0x39b   : > { %v5012_v35 = vsel %vm3232_vm7, %v4980_v47, %v8631_v27  ;;  %v8636_v63 = vunpack.i.l.bf16 %v8635_v59  ;;  %v5028_v19 = vsel %vm3232_vm7, %v4996_v50, %v8632_v53  ;;  %v8637_v20 = vunpack.i.h.bf16 %v8635_v59  ;;  %v15004_v47 = vld [vmem:[#allocation99_spill] sm:$0xff] }
 0x39c   : > { %v8657_v42 = vunpack.i.h.bf16 %v8655_v12  ;;  %v8656_v36 = vunpack.i.l.bf16 %v8655_v12  ;;  %v5044_v31 = vsel %vm3265_vm8, %v5012_v35, %v8641_v56  ;;  %v5060_v18 = vsel %vm3265_vm8, %v5028_v19, %v8642_v17  ;;  %v8670_v16 = vpop.permute.xlu1 %8669 }
 0x39d   : > { %v8652_v32 = vunpack.i.h.bf16 %v8650_v44  ;;  %v8651_v52 = vunpack.i.l.bf16 %v8650_v44  ;;  %v4965_v15 = vsel %vm3166_vm5, %v4933_v60, %v8602_v48  ;;  %v4981_v46 = vsel %vm3199_vm6, %v4949_v7, %v8626_v23  ;;  %v15003_v48 = vld [vmem:[#allocation106_spill] sm:$0xff] }
 0x39e   : > { %v5076_v5 = vsel %vm3298_vm9, %v5044_v31, %v8656_v36  ;;  %v5092_v13 = vsel %vm3298_vm9, %v5060_v18, %v8657_v42  ;;  %v4997_v39 = vsel %vm3199_vm6, %v4965_v15, %v8627_v43  ;;  %v5013_v26 = vsel %vm3232_vm7, %v4981_v46, %v8636_v63  ;;  %v8665_v1 = vpop.permute.xlu0 %8664 }
 0x39f   : > { %v5108_v62 = vsel %vm3331_vm10, %v5076_v5, 0.0  ;;  %v5124_v61 = vsel %vm3331_vm10, %v5092_v13, 0.0  ;;  %v5029_v59 = vsel %vm3232_vm7, %v4997_v39, %v8637_v20  ;;  %v8667_v8 = vunpack.i.h.bf16 %v8665_v1 }
 0x3a0   : > { %v8666_v58 = vunpack.i.l.bf16 %v8665_v1  ;;  %v8763_v2 = vpack.i.bf16 %v5124_v61, %v5108_v62  ;;  %v8262_v38 = vunpack.i.h.bf16 %v15001_v3  ;;  %v8341_v4 = vunpack.i.l.bf16 %v15002_v57 }
 0x3a1   : > { %v5045_v33 = vsel %vm3265_vm8, %v5013_v26, %v8651_v52  ;;  %v5061_v34 = vsel %vm3265_vm8, %v5029_v59, %v8652_v32  ;;  %v4855_v14 = vsel %vm3067_vm2, %v13530_v9, %v8102_v24  ;;  %v4886_v54 = vsel %vm3100_vm3, %v13550_v22, %v8181_v41 }
 0x3a2   : > { %v5077_v25 = vsel %vm3298_vm9, %v5045_v33, %v8666_v58  ;;  %v5093_v55 = vsel %vm3298_vm9, %v5061_v34, %v8667_v8  ;;  %8764 = vrot.lane.b32.xlu0 %v8763_v2, %s8886_s7  ;;  %v8680_v11 = vpop.permute.xlu1 %8679  ;;  %v4887_v44 = vsel %vm3100_vm3, %v4855_v14, %v8182_v40  ;;  %v8342_v28 = vunpack.i.h.bf16 %v15002_v57 }
 0x3a3   : > { %v5109_v9 = vsel %vm3331_vm10, %v5077_v25, 0.0  ;;  %v5125_v24 = vsel %vm3331_vm10, %v5093_v55, 0.0  ;;  %v8675_v3 = vpop.permute.xlu0 %8674  ;;  %v4918_v22 = vsel %vm3133_vm4, %v4886_v54, %v8261_v10  ;;  %v8647_v41 = vunpack.i.h.bf16 %v13579_v51 }
 0x3a4   : > { %v8646_v29 = vunpack.i.l.bf16 %v13579_v51  ;;  %v8768_v0 = vpack.i.bf16 %v5125_v24, %v5109_v9  ;;  %v4919_v27 = vsel %vm3133_vm4, %v4887_v44, %v8262_v38  ;;  %v4950_v37 = vsel %vm3166_vm5, %v4918_v22, %v8341_v4  ;;  %v15005_v44 = vld [vmem:[#allocation104_spill] sm:$0xff]  ;;  %v15007_v9 = vld [vmem:[#allocation75_spill] sm:$0xff] }
 0x3a5   : > { %v8672_v21 = vunpack.i.h.bf16 %v8670_v16  ;;  %v8671_v40 = vunpack.i.l.bf16 %v8670_v16  ;;  %v8662_v45 = vunpack.i.h.bf16 %v13591_v6  ;;  %v8661_v60 = vunpack.i.l.bf16 %v13591_v6 }
 0x3a6   : > { %v8682_v53 = vunpack.i.h.bf16 %v8680_v11  ;;  %v8681_v30 = vunpack.i.l.bf16 %v8680_v11  ;;  %8769 = vrot.lane.b32.xlu1 %v8768_v0, %s8886_s7  ;;  %v8690_v10 = vpop.permute.xlu1 %8689  ;;  %v4951_v7 = vsel %vm3166_vm5, %v4919_v27, %v8342_v28  ;;  %v8677_v17 = vunpack.i.h.bf16 %v8675_v3  ;;  %v15011_v0 = vld [vmem:[#allocation77_spill] sm:$0xff] }
 0x3a7   : > { %v8676_v51 = vunpack.i.l.bf16 %v8675_v3  ;;  %v4967_v49 = vsel %vm3166_vm5, %v15003_v48, %v8647_v41  ;;  %v4966_v23 = vsel %vm3166_vm5, %v15004_v47, %v8646_v29  ;;  %v8692_v50 = vunpack.i.h.bf16 %v8690_v10  ;;  %v15008_v3 = vld [vmem:[#allocation118_spill] sm:$0xff]  ;;  %v15010_v41 = vld [vmem:[#allocation76_spill] sm:$0xff]  ;;  %v15020_v47 = vld [vmem:[#allocation59_spill] sm:$0xff] }
 0x3a8   : > { %v8685_v56 = vpop.permute.xlu0 %8684  ;;  %v8691_v35 = vunpack.i.l.bf16 %v8690_v10  ;;  %v4983_v6 = vsel %vm3199_vm6, %v4951_v7, %v8671_v40  ;;  %v4999_v43 = vsel %vm3199_vm6, %v4967_v49, %v8672_v21  ;;  %v4982_v19 = vsel %vm3199_vm6, %v4950_v37, %v8661_v60  ;;  %v15012_v37 = vld [vmem:[#allocation82_spill] sm:$0xff]  ;;  %v15013_v40 = vld [vmem:[#allocation63_spill] sm:$0xff] }
 0x3a9   : > { %v8687_v63 = vunpack.i.h.bf16 %v8685_v56  ;;  %v8686_v12 = vunpack.i.l.bf16 %v8685_v56  ;;  %v4998_v20 = vsel %vm3199_vm6, %v4966_v23, %v8662_v45  ;;  %v5015_v42 = vsel %vm3232_vm7, %v4983_v6, %v8681_v30  ;;  %v15014_v60 = vld [vmem:[#allocation71_spill] sm:$0xff]  ;;  %v15018_v48 = vld [vmem:[#allocation10_spill] sm:$0xff] }
 0x3aa   : > { %v5031_v36 = vsel %vm3232_vm7, %v4999_v43, %v8682_v53  ;;  %v5014_v18 = vsel %vm3232_vm7, %v4982_v19, %v8676_v51  ;;  %v5030_v32 = vsel %vm3232_vm7, %v4998_v20, %v8677_v17  ;;  %v5047_v5 = vsel %vm3265_vm8, %v5015_v42, %v8691_v35  ;;  %v15015_v7 = vld [vmem:[#allocation151_spill] sm:$0xff]  ;;  %v15017_v51 = vld [vmem:[#allocation58_spill] sm:$0xff]  ;;  %v15025_v20 = vld [vmem:[#allocation16_spill] sm:$0xff] }
 0x3ab   : > { %v8700_v31 = vpop.permute.xlu1 %8699  ;;  %v5063_v13 = vsel %vm3265_vm8, %v5031_v36, %v8692_v50  ;;  %v5046_v26 = vsel %vm3265_vm8, %v5014_v18, %v8686_v12  ;;  %v5062_v62 = vsel %vm3265_vm8, %v5030_v32, %v8687_v63  ;;  %v15006_v28 = vunpack.i.l.bf16 %v15005_v44  ;;  %v15021_v50 = vld [vmem:[#allocation79_spill] sm:$0xff]  ;;  %v15024_v12 = vld [vmem:[#allocation60_spill] sm:$0xff]  ;;  %v15027_v36 = vld [vmem:[#allocation61_spill] sm:$0xff] }
 0x3ac   : > { %v8702_v52 = vunpack.i.h.bf16 %v8700_v31  ;;  %v8701_v15 = vunpack.i.l.bf16 %v8700_v31  ;;  %v8695_v46 = vpop.permute.xlu0 %8694  ;;  %v15009_v22 = vunpack.i.l.bf16 %v15008_v3  ;;  %v7631_v45 = vunpack.i.l.bf16 %v15013_v40  ;;  %v15022_v6 = vld [vmem:[#allocation87_spill] sm:$0xff] }
 0x3ad   : > { %v8697_v16 = vunpack.i.h.bf16 %v8695_v46  ;;  %v8696_v39 = vunpack.i.l.bf16 %v8695_v46  ;;  %v3464_v24 = vsel %vm3463_vm14, %v15007_v9, %v15006_v28  ;;  %v7671_v53 = vunpack.i.l.bf16 %v15014_v60  ;;  %v15030_v46 = vld [vmem:[#allocation49_spill] sm:$0xff] }
 0x3ae   : > { %v5079_v61 = vsel %vm3298_vm9, %v5047_v5, %v8701_v15  ;;  %v5095_v1 = vsel %vm3298_vm9, %v5063_v13, %v8702_v52  ;;  %v3480_v29 = vsel %vm3463_vm14, %v15010_v41, %v15009_v22  ;;  %v15016_v17 = vunpack.i.h.bf16 %v15015_v7  ;;  %v15029_v52 = vld [vmem:[#allocation95_spill] sm:$0xff]  ;;  %v15034_v41 = vld [vmem:[#allocation110_spill] sm:$0xff]  ;;  %v15036_v7 = vld [vmem:[#allocation120_spill] sm:$0xff] }
 0x3af   : > { %v5111_v59 = vsel %vm3331_vm10, %v5079_v61, 0.0  ;;  %v5127_v8 = vsel %vm3331_vm10, %v5095_v1, 0.0  ;;  %v5078_v58 = vsel %vm3298_vm9, %v5046_v26, %v8696_v39  ;;  %v5094_v2 = vsel %vm3298_vm9, %v5062_v62, %v8697_v16  ;;  %v8710_v38 = vpop.permute.xlu1 %8709  ;;  %v15032_v39 = vld [vmem:[#allocation103_spill] sm:$0xff]  ;;  %v15033_v62 = vld [vmem:[#allocation153_spill] sm:$0xff] }
 0x3b0   : > { %v5110_v57 = vsel %vm3331_vm10, %v5078_v58, 0.0  ;;  %v5126_v4 = vsel %vm3331_vm10, %v5094_v2, 0.0  ;;  %v8712_v33 = vunpack.i.h.bf16 %v8710_v38  ;;  %v8711_v34 = vunpack.i.l.bf16 %v8710_v38  ;;  %v8705_v14 = vpop.permute.xlu0 %8704 }
 0x3b1   : > { %v8707_v54 = vunpack.i.h.bf16 %v8705_v14  ;;  %v8706_v25 = vunpack.i.l.bf16 %v8705_v14  ;;  %v8778_v55 = vpack.i.bf16 %v5127_v8, %v5111_v59  ;;  %v8773_v11 = vpack.i.bf16 %v5126_v4, %v5110_v57 }
 0x3b2   : > { %v5258_v27 = vsel %vm5256_vm15, %v15011_v0, %v8711_v34  ;;  %v5274_v21 = vsel %vm5256_vm15, %v15012_v37, %v8712_v33  ;;  %v3318_v56 = vsel %vm3298_vm9, %v15017_v51, %v15016_v17  ;;  %v15019_v49 = vunpack.i.l.bf16 %v15018_v48  ;;  %v15035_v0 = vld [vmem:[#allocation117_spill] sm:$0xff] }
 0x3b3   : > { %8779 = vrot.lane.b32.xlu1 %v8778_v55, %s8886_s7  ;;  %8774 = vrot.lane.b32.xlu0 %v8773_v11, %s8886_s7  ;;  %v5257_v30 = vsel %vm5256_vm15, %v3464_v24, %v8706_v25  ;;  %v5273_v10 = vsel %vm5256_vm15, %v3480_v29, %v8707_v54  ;;  %v7711_v35 = vunpack.i.l.bf16 %v15021_v50  ;;  %v7751_v43 = vunpack.i.l.bf16 %v15022_v6 }
 0x3b4   : > { %v3334_v23 = vsel %vm3331_vm10, %v15020_v47, %v15019_v49  ;;  %6566 = vmatprep.mubr.f32.mxu0 %v5257_v30  ;;  %6590 = vmatprep.mubr.f32.mxu1 %v5273_v10  ;;  %v15023_v63 = vunpack.i.h.bf16 %v15018_v48  ;;  %v15026_v42 = vunpack.i.l.bf16 %v15025_v20  ;;  %v15028_v18 = vunpack.i.h.bf16 %v15025_v20  ;;  %v15037_v48 = vld [vmem:[#allocation100_spill] sm:$0xff]  ;;  %v15039_v47 = vld [vmem:[#allocation22_spill] sm:$0xff] }
 0x3b5   : > { %v7791_v15 = vunpack.i.l.bf16 %v15029_v52  ;;  %6567 = vmatmul.mubr.f32.vlgmr.msra.gmra.mxu0 %v5258_v27  ;;  %6591 = vmatmul.mubr.f32.vlgmr.msra.gmra.mxu1 %v5274_v21  ;;  %v7592_v5 = vunpack.i.h.bf16 %v15030_v46  ;;  %v15031_v13 = vunpack.i.l.bf16 %v15030_v46  ;;  %v7831_v26 = vunpack.i.l.bf16 %v15032_v39 }
 0x3b6   : > { %v3335_v19 = vsel %vm3331_vm10, %v15024_v12, %v15023_v63  ;;  %v3350_v31 = vsel %vm3331_vm10, %v15027_v36, %v15026_v42  ;;  %v3351_v32 = vsel %vm3331_vm10, %v3318_v56, %v15028_v18  ;;  %v7871_v61 = vunpack.i.l.bf16 %v15033_v62  ;;  %v8715_v4 = vpop.permute.xlu0 %8714  ;;  %v15042_v12 = vld [vmem:[#allocation20_spill] sm:$0xff] }
 0x3b7   : > { %v3367_v16 = vsel %vm3364_vm11, %v3334_v23, %v15031_v13  ;;  %v7632_v1 = vunpack.i.h.bf16 %v15013_v40  ;;  %v3383_v59 = vsel %vm3364_vm11, %v3350_v31, %v7631_v45  ;;  %v7672_v8 = vunpack.i.h.bf16 %v15014_v60  ;;  %v15044_v42 = vld [vmem:[#allocation24_spill] sm:$0xff]  ;;  %v15045_v31 = vld [vmem:[#allocation109_spill] sm:$0xff]  ;;  %v15050_v13 = vld [vmem:[#allocation42_spill] sm:$0xff] }
 0x3b8   : > { %v3400_v58 = vsel %vm3397_vm12, %v3367_v16, %v7671_v53  ;;  %v7712_v2 = vunpack.i.h.bf16 %v15021_v50  ;;  %v3416_v38 = vsel %vm3397_vm12, %v3383_v59, %v7711_v35  ;;  %v7752_v57 = vunpack.i.h.bf16 %v15022_v6 }
 0x3b9   : > { %v3433_v33 = vsel %vm3430_vm13, %v3400_v58, %v7751_v43  ;;  %v7792_v34 = vunpack.i.h.bf16 %v15029_v52  ;;  %v8717_v14 = vunpack.i.h.bf16 %v8715_v4  ;;  %v8716_v54 = vunpack.i.l.bf16 %v8715_v4  ;;  %v15040_v43 = vld [vmem:[#allocation101_spill] sm:$0xff] }
 0x3ba   : > { %v3449_v25 = vsel %vm3430_vm13, %v3416_v38, %v7791_v15  ;;  %v7832_v55 = vunpack.i.h.bf16 %v15032_v39  ;;  %v7872_v11 = vunpack.i.h.bf16 %v15033_v62  ;;  %v3466_v44 = vsel %vm3463_vm14, %v3433_v33, %v7831_v26  ;;  %v8720_v40 = vpop.permute.xlu1 %8719  ;;  %v15048_v15 = vld [vmem:[#allocation128_spill] sm:$0xff]  ;;  %v15051_v39 = vld [vmem:[#allocation43_spill] sm:$0xff]  ;;  %v15052_v62 = vld [vmem:[#allocation129_spill] sm:$0xff] }
 0x3bb   : > { %v3482_v28 = vsel %vm3463_vm14, %v3449_v25, %v7871_v61  ;;  %v3368_v9 = vsel %vm3364_vm11, %v3335_v19, %v7592_v5  ;;  %v3384_v24 = vsel %vm3364_vm11, %v3351_v32, %v7632_v1  ;;  %v5259_v3 = vsel %vm5256_vm15, %v3466_v44, %v8716_v54  ;;  %v15047_v32 = vld [vmem:[#allocation26_spill] sm:$0xff]  ;;  %v15057_v25 = vld [vmem:[#allocation145_spill] sm:$0xff] }
 0x3bc   : > { %v5275_v22 = vsel %vm5256_vm15, %v3482_v28, %v8717_v14  ;;  %v7276_v29 = vunpack.i.l.bf16 %v15034_v41  ;;  %v7322_v27 = vunpack.i.h.bf16 %v15035_v0  ;;  %v3401_v37 = vsel %vm3397_vm12, %v3368_v9, %v7672_v8  ;;  %6569 = vmatprep.mubr.f32.mxu0 %v5259_v3  ;;  %v15054_v8 = vld [vmem:[#allocation44_spill] sm:$0xff] }
 0x3bd   : > { %v3417_v21 = vsel %vm3397_vm12, %v3384_v24, %v7712_v2  ;;  %6593 = vmatprep.mubr.f32.mxu1 %v5275_v22  ;;  %v8722_v45 = vunpack.i.h.bf16 %v8720_v40  ;;  %v8721_v60 = vunpack.i.l.bf16 %v8720_v40  ;;  %v3434_v53 = vsel %vm3430_vm13, %v3401_v37, %v7752_v57  ;;  %v15055_v2 = vld [vmem:[#allocation50_spill] sm:$0xff]  ;;  %v15058_v9 = vld [vmem:[#allocation156_spill] sm:$0xff]  ;;  %v15061_v40 = vld [vmem:[#allocation27_spill] sm:$0xff] }
 0x3be   : > { %v3450_v30 = vsel %vm3430_vm13, %v3417_v21, %v7792_v34  ;;  %v7321_v10 = vunpack.i.l.bf16 %v15035_v0  ;;  %v7316_v17 = vunpack.i.l.bf16 %v15036_v7  ;;  %v3467_v51 = vsel %vm3463_vm14, %v3434_v53, %v7832_v55  ;;  %v15056_v34 = vld [vmem:[#allocation137_spill] sm:$0xff] }
 0x3bf   : > { %v3483_v56 = vsel %vm3463_vm14, %v3450_v30, %v7872_v11  ;;  %v15038_v49 = vunpack.i.h.bf16 %v15037_v48  ;;  %v7317_v50 = vunpack.i.h.bf16 %v15036_v7  ;;  %v5260_v35 = vsel %vm5256_vm15, %v3467_v51, %v8721_v60  ;;  %v15062_v7 = vld [vmem:[#allocation57_spill] sm:$0xff]  ;;  %v15063_v48 = vld [vmem:[#allocation70_spill] sm:$0xff] }
 0x3c0   : > { %v5276_v6 = vsel %vm5256_vm15, %v3483_v56, %v8722_v45  ;;  %v15041_v63 = vunpack.i.l.bf16 %v15040_v43  ;;  %v15043_v20 = vunpack.i.h.bf16 %v15040_v43  ;;  %v15046_v18 = vunpack.i.l.bf16 %v15045_v31  ;;  %6570 = vmatmul.mubr.f32.gmra.mxu0 %v5260_v35 }
 0x3c1   : > { %v3223_v23 = vsel %vm3199_vm6, %v15039_v47, %v15038_v49  ;;  %v7361_v46 = vunpack.i.l.bf16 %v15048_v15  ;;  %6594 = vmatmul.mubr.f32.gmra.mxu1 %v5276_v6  ;;  %v15049_v5 = vunpack.i.h.bf16 %v15045_v31  ;;  %v3237_v26 = vsel %vm3232_vm7, %v15051_v39, %v7276_v29  ;;  %v15059_v29 = vld [vmem:[#allocation14_spill] sm:$0xff] }
 0x3c2   : > { %v3220_v19 = vsel %vm3199_vm6, %v15042_v12, %v15041_v63  ;;  %v3221_v36 = vsel %vm3199_vm6, %v15044_v42, %v15043_v20  ;;  %v3239_v52 = vsel %vm3232_vm7, %v15047_v32, %v15046_v18  ;;  %v7357_v61 = vunpack.i.h.bf16 %v15052_v62  ;;  %v15064_v47 = vld [vmem:[#allocation78_spill] sm:$0xff] }
 0x3c3   : > { %v13760_v16 = vsel %vm3232_vm7, %v15050_v13, %v15049_v5  ;;  %v7356_v1 = vunpack.i.l.bf16 %v15052_v62  ;;  %v15053_v59 = vunpack.i.h.bf16 %v15034_v41  ;;  %v13772_v38 = vsel %vm3232_vm7, %v15055_v2, %v7321_v10  ;;  %v15065_v6 = vld [vmem:[#allocation86_spill] sm:$0xff]  ;;  %v15069_v5 = vld [vmem:[#allocation132_spill] sm:$0xff] }
 0x3c4   : > { %v13775_v57 = vsel %vm3232_vm7, %v3223_v23, %v7322_v27  ;;  %v3253_v4 = vsel %vm3232_vm7, %v3220_v19, %v7316_v17  ;;  %v3254_v33 = vsel %vm3232_vm7, %v3221_v36, %v7317_v50  ;;  %v7397_v14 = vunpack.i.h.bf16 %v15056_v34  ;;  %v15060_v27 = vld [vmem:[#allocation136_spill] sm:$0xff]  ;;  %v15066_v63 = vld [vmem:[#allocation94_spill] sm:$0xff] }
 0x3c5   : > { %v3238_v58 = vsel %vm3232_vm7, %v15054_v8, %v15053_v59  ;;  %v7396_v54 = vunpack.i.l.bf16 %v15056_v34  ;;  %v7436_v55 = vunpack.i.l.bf16 %v15057_v25  ;;  %v7362_v11 = vunpack.i.h.bf16 %v15048_v15  ;;  %v15067_v36 = vld [vmem:[#allocation102_spill] sm:$0xff] }
 0x3c6   : > { %v13784_v44 = vsel %vm3265_vm8, %v3239_v52, %v7361_v46  ;;  %v7437_v28 = vunpack.i.h.bf16 %v15057_v25  ;;  %v7476_v24 = vunpack.i.l.bf16 %v15058_v9  ;;  %v3270_v3 = vsel %vm3265_vm8, %v3237_v26, %v7356_v1  ;;  %v15068_v52 = vld [vmem:[#allocation111_spill] sm:$0xff] }
 0x3c7   : > { %v3271_v22 = vsel %vm3265_vm8, %v3238_v58, %v7357_v61  ;;  %v7477_v41 = vunpack.i.h.bf16 %v15058_v9  ;;  %v7516_v0 = vunpack.i.l.bf16 %v15059_v29  ;;  %v7402_v37 = vunpack.i.h.bf16 %v15060_v27 }
 0x3c8   : > { %v7517_v21 = vunpack.i.h.bf16 %v15059_v29  ;;  %v7557_v45 = vunpack.i.h.bf16 %v15061_v40  ;;  %v7556_v60 = vunpack.i.l.bf16 %v15061_v40  ;;  %v3286_v53 = vsel %vm3265_vm8, %v3253_v4, %v7396_v54  ;;  %v15070_v29 = vld [vmem:[#allocation144_spill] sm:$0xff] }
 0x3c9   : > { %v3287_v30 = vsel %vm3265_vm8, %v3254_v33, %v7397_v14  ;;  %v3303_v10 = vsel %vm3298_vm9, %v3270_v3, %v7436_v55  ;;  %v7596_v17 = vunpack.i.l.bf16 %v15062_v7  ;;  %v3304_v51 = vsel %vm3298_vm9, %v3271_v22, %v7437_v28 }
 0x3ca   : > { %v3319_v56 = vsel %vm3298_vm9, %v3286_v53, %v7476_v24  ;;  %v7636_v49 = vunpack.i.l.bf16 %v15063_v48  ;;  %v7676_v23 = vunpack.i.l.bf16 %v15064_v47  ;;  %v3320_v50 = vsel %vm3298_vm9, %v3287_v30, %v7477_v41 }
 0x3cb   : > { %v3336_v35 = vsel %vm3331_vm10, %v3303_v10, %v7516_v0  ;;  %v7716_v43 = vunpack.i.l.bf16 %v15065_v6  ;;  %v7756_v12 = vunpack.i.l.bf16 %v15066_v63  ;;  %v3337_v19 = vsel %vm3331_vm10, %v3304_v51, %v7517_v21  ;;  %v8725_v58 = vpop.permute.xlu0 %8724 }
 0x3cc   : > { %v3352_v20 = vsel %vm3331_vm10, %v3319_v56, %v7556_v60  ;;  %v3353_v42 = vsel %vm3331_vm10, %v3320_v50, %v7557_v45  ;;  %v7796_v31 = vunpack.i.l.bf16 %v15067_v36  ;;  %v7597_v18 = vunpack.i.h.bf16 %v15062_v7 }
 0x3cd   : > { %v3369_v32 = vsel %vm3364_vm11, %v3336_v35, %v7596_v17  ;;  %v7836_v46 = vunpack.i.l.bf16 %v15068_v52  ;;  %v7876_v13 = vunpack.i.l.bf16 %v15069_v5  ;;  %v7637_v39 = vunpack.i.h.bf16 %v15063_v48  ;;  %v15071_v17 = vld [vmem:[#allocation154_spill] sm:$0xff] }
 0x3ce   : > { %v3385_v26 = vsel %vm3364_vm11, %v3352_v20, %v7636_v49  ;;  %v7677_v62 = vunpack.i.h.bf16 %v15064_v47  ;;  %v3402_v61 = vsel %vm3397_vm12, %v3369_v32, %v7676_v23  ;;  %v7717_v1 = vunpack.i.h.bf16 %v15065_v6  ;;  %v15072_v47 = vld [vmem:[#allocation9_spill] sm:$0xff] }
 0x3cf   : > { %v3418_v59 = vsel %vm3397_vm12, %v3385_v26, %v7716_v43  ;;  %v7757_v8 = vunpack.i.h.bf16 %v15066_v63  ;;  %v3435_v2 = vsel %vm3430_vm13, %v3402_v61, %v7756_v12  ;;  %v7797_v4 = vunpack.i.h.bf16 %v15067_v36  ;;  %v8730_v45 = vpop.permute.xlu1 %8729  ;;  %v15073_v63 = vld [vmem:[#allocation23_spill] sm:$0xff] }
 0x3d0   : > { %v8727_v33 = vunpack.i.h.bf16 %v8725_v58  ;;  %v8726_v34 = vunpack.i.l.bf16 %v8725_v58  ;;  %v3451_v14 = vsel %vm3430_vm13, %v3418_v59, %v7796_v31  ;;  %v7837_v54 = vunpack.i.h.bf16 %v15068_v52  ;;  %v15076_v52 = vld [vmem:[#allocation73_spill] sm:$0xff] }
 0x3d1   : > { %v7877_v25 = vunpack.i.h.bf16 %v15069_v5  ;;  %v3468_v55 = vsel %vm3463_vm14, %v3435_v2, %v7836_v46  ;;  %v3484_v28 = vsel %vm3463_vm14, %v3451_v14, %v7876_v13  ;;  %v3370_v9 = vsel %vm3364_vm11, %v3337_v19, %v7597_v18  ;;  %v15075_v18 = vld [vmem:[#allocation65_spill] sm:$0xff]  ;;  %v15081_v2 = vld [vmem:[#allocation119_spill] sm:$0xff] }
 0x3d2   : > { %v3386_v24 = vsel %vm3364_vm11, %v3353_v42, %v7637_v39  ;;  %v5261_v3 = vsel %vm5256_vm15, %v3468_v55, %v8726_v34  ;;  %v5277_v22 = vsel %vm5256_vm15, %v3484_v28, %v8727_v33  ;;  %v7401_v41 = vunpack.i.l.bf16 %v15060_v27  ;;  %v15077_v5 = vld [vmem:[#allocation81_spill] sm:$0xff] }
 0x3d3   : > { %v7441_v0 = vunpack.i.l.bf16 %v15070_v29  ;;  %v3403_v21 = vsel %vm3397_vm12, %v3370_v9, %v7677_v62  ;;  %v3419_v40 = vsel %vm3397_vm12, %v3386_v24, %v7717_v1  ;;  %6572 = vmatprep.mubr.f32.mxu0 %v5261_v3  ;;  %6596 = vmatprep.mubr.f32.mxu1 %v5277_v22  ;;  %v8732_v60 = vunpack.i.h.bf16 %v8730_v45  ;;  %v15079_v62 = vld [vmem:[#allocation97_spill] sm:$0xff] }
 0x3d4   : > { %v8731_v53 = vunpack.i.l.bf16 %v8730_v45  ;;  %v3436_v30 = vsel %vm3430_vm13, %v3403_v21, %v7757_v8  ;;  %v3452_v10 = vsel %vm3430_vm13, %v3419_v40, %v7797_v4  ;;  %v7442_v7 = vunpack.i.h.bf16 %v15070_v29  ;;  %v15080_v8 = vld [vmem:[#allocation105_spill] sm:$0xff] }
 0x3d5   : > { %v7481_v51 = vunpack.i.l.bf16 %v15071_v17  ;;  %v3469_v56 = vsel %vm3463_vm14, %v3436_v30, %v7837_v54  ;;  %v3485_v48 = vsel %vm3463_vm14, %v3452_v10, %v7877_v25  ;;  %v7482_v49 = vunpack.i.h.bf16 %v15071_v17 }
 0x3d6   : > { %v7521_v23 = vunpack.i.l.bf16 %v15072_v47  ;;  %v5262_v50 = vsel %vm5256_vm15, %v3469_v56, %v8731_v53  ;;  %v5278_v35 = vsel %vm5256_vm15, %v3485_v48, %v8732_v60  ;;  %v3273_v6 = vsel %vm3265_vm8, %v13760_v16, %v7362_v11  ;;  %v15074_v16 = vld [vmem:[#allocation56_spill] sm:$0xff] }
 0x3d7   : > { %v7522_v43 = vunpack.i.h.bf16 %v15072_v47  ;;  %v7562_v12 = vunpack.i.h.bf16 %v15073_v63  ;;  %v7561_v19 = vunpack.i.l.bf16 %v15073_v63  ;;  %6573 = vmatmul.mubr.f32.gmra.mxu0 %v5262_v50  ;;  %6597 = vmatmul.mubr.f32.gmra.mxu1 %v5278_v35  ;;  %v3288_v20 = vsel %vm3265_vm8, %v13772_v38, %v7401_v41 }
 0x3d8   : > { %v3289_v42 = vsel %vm3265_vm8, %v13775_v57, %v7402_v37  ;;  %v3305_v15 = vsel %vm3298_vm9, %v13784_v44, %v7441_v0  ;;  %v7601_v11 = vunpack.i.l.bf16 %v15074_v16  ;;  %v3306_v36 = vsel %vm3298_vm9, %v3273_v6, %v7442_v7  ;;  %v15078_v57 = vld [vmem:[#allocation89_spill] sm:$0xff] }
 0x3d9   : > { %v3321_v31 = vsel %vm3298_vm9, %v3288_v20, %v7481_v51  ;;  %v7641_v32 = vunpack.i.l.bf16 %v15075_v18  ;;  %v7681_v46 = vunpack.i.l.bf16 %v15076_v52  ;;  %v3322_v38 = vsel %vm3298_vm9, %v3289_v42, %v7482_v49  ;;  %v15083_v42 = vld [vmem:[#allocation139_spill] sm:$0xff] }
 0x3da   : > { %v3338_v27 = vsel %vm3331_vm10, %v3305_v15, %v7521_v23  ;;  %v7721_v13 = vunpack.i.l.bf16 %v15077_v5  ;;  %v7761_v37 = vunpack.i.l.bf16 %v15078_v57  ;;  %v3339_v44 = vsel %vm3331_vm10, %v3306_v36, %v7522_v43  ;;  %v8735_v9 = vpop.permute.xlu0 %8734 }
 0x3db   : > { %v3354_v39 = vsel %vm3331_vm10, %v3321_v31, %v7561_v19  ;;  %v3355_v26 = vsel %vm3331_vm10, %v3322_v38, %v7562_v12  ;;  %v7801_v61 = vunpack.i.l.bf16 %v15079_v62  ;;  %v7602_v1 = vunpack.i.h.bf16 %v15074_v16  ;;  %v15082_v19 = vld [vmem:[#allocation150_spill] sm:$0xff]  ;;  %v15084_v31 = vld [vmem:[#allocation155_spill] sm:$0xff] }
 0x3dc   : > { %v3371_v59 = vsel %vm3364_vm11, %v3338_v27, %v7601_v11  ;;  %v7841_v58 = vunpack.i.l.bf16 %v15080_v8  ;;  %v7881_v4 = vunpack.i.l.bf16 %v15081_v2  ;;  %v7642_v33 = vunpack.i.h.bf16 %v15075_v18 }
 0x3dd   : > { %v3387_v34 = vsel %vm3364_vm11, %v3354_v39, %v7641_v32  ;;  %v7682_v14 = vunpack.i.h.bf16 %v15076_v52  ;;  %v3404_v54 = vsel %vm3397_vm12, %v3371_v59, %v7681_v46  ;;  %v7722_v25 = vunpack.i.h.bf16 %v15077_v5  ;;  %v15085_v32 = vld [vmem:[#allocation121_spill] sm:$0xff]  ;;  %v15086_v5 = vld [vmem:[#allocation123_spill] sm:$0xff] }
 0x3de   : > { %v3420_v55 = vsel %vm3397_vm12, %v3387_v34, %v7721_v13  ;;  %v7762_v28 = vunpack.i.h.bf16 %v15078_v57  ;;  %v3437_v24 = vsel %vm3430_vm13, %v3404_v54, %v7761_v37  ;;  %v7802_v3 = vunpack.i.h.bf16 %v15079_v62  ;;  %v8740_v51 = vpop.permute.xlu1 %8739  ;;  %v15087_v57 = vld [vmem:[#allocation133_spill] sm:$0xff]  ;;  %v15088_v62 = vld [vmem:[#allocation124_spill] sm:$0xff]  ;;  %v15091_v34 = vld [vmem:[#allocation146_spill] sm:$0xff] }
 0x3df   : > { %v8737_v22 = vunpack.i.h.bf16 %v8735_v9  ;;  %v8736_v41 = vunpack.i.l.bf16 %v8735_v9  ;;  %v3453_v29 = vsel %vm3430_vm13, %v3420_v55, %v7801_v61  ;;  %v7842_v0 = vunpack.i.h.bf16 %v15080_v8 }
 0x3e0   : > { %v7882_v21 = vunpack.i.h.bf16 %v15081_v2  ;;  %v3470_v40 = vsel %vm3463_vm14, %v3437_v24, %v7841_v58  ;;  %v3486_v45 = vsel %vm3463_vm14, %v3453_v29, %v7881_v4  ;;  %v3372_v60 = vsel %vm3364_vm11, %v3339_v44, %v7602_v1  ;;  %v15089_v1 = vld [vmem:[#allocation138_spill] sm:$0xff]  ;;  %v15093_v24 = vld [vmem:[#allocation147_spill] sm:$0xff] }
 0x3e1   : > { %v3388_v53 = vsel %vm3364_vm11, %v3355_v26, %v7642_v33  ;;  %v5263_v30 = vsel %vm5256_vm15, %v3470_v40, %v8736_v41  ;;  %v5279_v10 = vsel %vm5256_vm15, %v3486_v45, %v8737_v22  ;;  %v3405_v7 = vsel %vm3397_vm12, %v3372_v60, %v7682_v14  ;;  %v15090_v4 = vld [vmem:[#allocation130_spill] sm:$0xff] }
 0x3e2   : > { %v3421_v17 = vsel %vm3397_vm12, %v3388_v53, %v7722_v25  ;;  %6575 = vmatprep.mubr.f32.mxu0 %v5263_v30  ;;  %6599 = vmatprep.mubr.f32.mxu1 %v5279_v10  ;;  %v8742_v56 = vunpack.i.h.bf16 %v8740_v51  ;;  %v8741_v48 = vunpack.i.l.bf16 %v8740_v51  ;;  %v3438_v49 = vsel %vm3430_vm13, %v3405_v7, %v7762_v28  ;;  %v15092_v28 = vld [vmem:[#allocation131_spill] sm:$0xff]  ;;  %v15094_v45 = vld [vmem:[#allocation114_spill] sm:$0xff] }
 0x3e3   : > { %v3454_v47 = vsel %vm3430_vm13, %v3421_v17, %v7802_v3  ;;  %v3471_v23 = vsel %vm3463_vm14, %v3438_v49, %v7842_v0  ;;  %v15095_v53 = vld [vmem:[#allocation122_spill] sm:$0xff]  ;;  %v15096_v10 = vld [vmem:[#allocation115_spill] sm:$0xff]  ;;  %v15097_v17 = vld [vmem:[#allocation140_spill] sm:$0xff] }
 0x3e4   : > { %v3487_v50 = vsel %vm3463_vm14, %v3454_v47, %v7882_v21  ;;  %v5264_v35 = vsel %vm5256_vm15, %v3471_v23, %v8741_v48 }
 0x3e5   : > { %v5280_v6 = vsel %vm5256_vm15, %v3487_v50, %v8742_v56  ;;  %6576 = vmatmul.mubr.f32.gmra.mxu0 %v5264_v35  ;;  %v13943_v56 = vld [vmem:[%s14031_s2] ss:$0 sm:$0xff] }
 0x3e6   : > { %6600 = vmatmul.mubr.f32.gmra.mxu1 %v5280_v6 }
 0x3ef   : > { %v8745_v43 = vpop.permute.xlu0 %8744 }
 0x3f0   : > { %v8747_v63 = vunpack.i.h.bf16 %v8745_v43  ;;  %v8746_v12 = vunpack.i.l.bf16 %v8745_v43 }
 0x3f2   : > { %v5265_v20 = vsel %vm5256_vm15, %v15082_v19, %v8746_v12  ;;  %v5281_v15 = vsel %vm5256_vm15, %v15083_v42, %v8747_v63 }
 0x3f3   : > { %v8750_v16 = vpop.permute.xlu1 %8749  ;;  %6578 = vmatprep.mubr.f32.mxu0 %v5265_v20  ;;  %6602 = vmatprep.mubr.f32.mxu1 %v5281_v15 }
 0x3f4   : > { %v8752_v11 = vunpack.i.h.bf16 %v8750_v16  ;;  %v8751_v36 = vunpack.i.l.bf16 %v8750_v16 }
 0x3f6   : > { %v5266_v18 = vsel %vm5256_vm15, %v15084_v31, %v8751_v36  ;;  %v5282_v52 = vsel %vm5256_vm15, %v15085_v32, %v8752_v11 }
 0x3f7   : > { %6579 = vmatmul.mubr.f32.gmra.mxu0 %v5266_v18  ;;  %6603 = vmatmul.mubr.f32.gmra.mxu1 %v5282_v52 }
 0x3fe   : > { %v8755_v46 = vpop.permute.xlu0 %8754 }
 0x3ff   : > { %v8757_v38 = vunpack.i.h.bf16 %v8755_v46  ;;  %v8756_v27 = vunpack.i.l.bf16 %v8755_v46 }
 0x401   : > { %v5267_v13 = vsel %vm5256_vm15, %v15086_v5, %v8756_v27  ;;  %v5283_v37 = vsel %vm5256_vm15, %v15087_v57, %v8757_v38 }
 0x402   : > { %v8760_v44 = vpop.permute.xlu1 %8759  ;;  %6581 = vmatprep.mubr.f32.mxu0 %v5267_v13  ;;  %6605 = vmatprep.mubr.f32.mxu1 %v5283_v37 }
 0x403   : > { %v8762_v39 = vunpack.i.h.bf16 %v8760_v44  ;;  %v8761_v26 = vunpack.i.l.bf16 %v8760_v44 }
 0x405   : > { %v5268_v61 = vsel %vm5256_vm15, %v15088_v62, %v8761_v26  ;;  %v5284_v59 = vsel %vm5256_vm15, %v15089_v1, %v8762_v39 }
 0x406   : > { %6582 = vmatmul.mubr.f32.gmra.mxu0 %v5268_v61  ;;  %6606 = vmatmul.mubr.f32.gmra.mxu1 %v5284_v59 }
 0x414   : > { %v8765_v8 = vpop.permute.xlu0 %8764 }
 0x415   : > { %v8767_v58 = vunpack.i.h.bf16 %v8765_v8  ;;  %v8766_v2 = vunpack.i.l.bf16 %v8765_v8 }
 0x417   : > { %v5269_v33 = vsel %vm5256_vm15, %v15090_v4, %v8766_v2  ;;  %v5285_v14 = vsel %vm5256_vm15, %v15091_v34, %v8767_v58 }
 0x418   : > { %v8770_v54 = vpop.permute.xlu1 %8769  ;;  %6584 = vmatprep.mubr.f32.mxu0 %v5269_v33  ;;  %6608 = vmatprep.mubr.f32.mxu1 %v5285_v14 }
 0x419   : > { %v8772_v25 = vunpack.i.h.bf16 %v8770_v54  ;;  %v8771_v55 = vunpack.i.l.bf16 %v8770_v54 }
 0x41b   : > { %v5270_v9 = vsel %vm5256_vm15, %v15092_v28, %v8771_v55  ;;  %v5286_v3 = vsel %vm5256_vm15, %v15093_v24, %v8772_v25 }
 0x41c   : > { %6585 = vmatmul.mubr.f32.gmra.mxu0 %v5270_v9  ;;  %6609 = vmatmul.mubr.f32.gmra.mxu1 %v5286_v3 }
 0x425   : > { %v8780_v22 = vpop.permute.xlu1 %8779  ;;  %v8775_v41 = vpop.permute.xlu0 %8774 }
 0x426   : > { %v8782_v29 = vunpack.i.h.bf16 %v8780_v22  ;;  %v8781_v0 = vunpack.i.l.bf16 %v8780_v22  ;;  %v8777_v21 = vunpack.i.h.bf16 %v8775_v41  ;;  %v8776_v40 = vunpack.i.l.bf16 %v8775_v41 }
 0x428   : > { %v5271_v60 = vsel %vm5256_vm15, %v15094_v45, %v8776_v40  ;;  %v5287_v30 = vsel %vm5256_vm15, %v15095_v53, %v8777_v21  ;;  %v5272_v7 = vsel %vm5256_vm15, %v15096_v10, %v8781_v0  ;;  %v5288_v51 = vsel %vm5256_vm15, %v15097_v17, %v8782_v29 }
 0x429   : > { %6587 = vmatprep.mubr.f32.mxu0 %v5271_v60  ;;  %6611 = vmatprep.mubr.f32.mxu1 %v5287_v30 }
 0x42a   : > { %6588 = vmatmul.mubr.f32.gmra.mxu0 %v5272_v7  ;;  %6612 = vmatmul.mubr.f32.gmra.mxu1 %v5288_v51 }
 0x475   : > { %v6568_v48 = vpop.f32.mrf.mxu0  ;;  %v6592_v49 = vpop.f32.mrf.mxu1 }
 0x476   : > { %v5384_v47 = vadd.f32 %v6568_v48, %v13943_v56  ;;  %v5464_v23 = vadd.f32 %v6592_v49, %v13943_v56 }
 0x477   : > { %v5378_v50 = vpop.f32.mrf.mxu0  ;;  %v5458_v35 = vpop.f32.mrf.mxu1 }
 0x478   : > { %5538 = vst [vmem:[%s13948_s4 + $0x8] sm:$0xff] %v5384_v47  ;;  %5554 = vst [vmem:[%s13948_s4 + $0x88] sm:$0xff] %v5464_v23  ;;  %v5379_v6 = vadd.f32 %v13943_v56, %v5378_v50  ;;  %v5459_v43 = vadd.f32 %v13943_v56, %v5458_v35 }
 0x47a   : > { %5537 = vst [vmem:[%s13948_s4] sm:$0xff] %v5379_v6  ;;  %5553 = vst [vmem:[%s13948_s4 + $0x80] sm:$0xff] %v5459_v43 }
 0x480   : > { %v6571_v63 = vpop.f32.mrf.mxu0 }
 0x481   : > { %v6595_v12 = vpop.f32.mrf.mxu1  ;;  %v5394_v19 = vadd.f32 %v6571_v63, %v13943_v56 }
 0x482   : > { %v5474_v20 = vadd.f32 %v6595_v12, %v13943_v56  ;;  %v5388_v42 = vpop.f32.mrf.mxu0 }
 0x483   : > { %v5468_v15 = vpop.f32.mrf.mxu1  ;;  %5540 = vst [vmem:[%s13948_s4 + $0x18] sm:$0xff] %v5394_v19  ;;  %v5389_v16 = vadd.f32 %v13943_v56, %v5388_v42 }
 0x484   : > { %5556 = vst [vmem:[%s13948_s4 + $0x98] sm:$0xff] %v5474_v20  ;;  %v5469_v11 = vadd.f32 %v13943_v56, %v5468_v15 }
 0x485   : > { %5539 = vst [vmem:[%s13948_s4 + $0x10] sm:$0xff] %v5389_v16 }
 0x486   : > { %5555 = vst [vmem:[%s13948_s4 + $0x90] sm:$0xff] %v5469_v11 }
 0x497   : > { %v6574_v36 = vpop.f32.mrf.mxu0  ;;  %v6598_v31 = vpop.f32.mrf.mxu1 }
 0x498   : > { %v5404_v18 = vadd.f32 %v6574_v36, %v13943_v56  ;;  %v5484_v32 = vadd.f32 %v6598_v31, %v13943_v56 }
 0x499   : > { %v5398_v52 = vpop.f32.mrf.mxu0  ;;  %v5478_v46 = vpop.f32.mrf.mxu1 }
 0x49a   : > { %5542 = vst [vmem:[%s13948_s4 + $0x28] sm:$0xff] %v5404_v18  ;;  %5558 = vst [vmem:[%s13948_s4 + $0xa8] sm:$0xff] %v5484_v32  ;;  %v5399_v38 = vadd.f32 %v13943_v56, %v5398_v52  ;;  %v5479_v27 = vadd.f32 %v13943_v56, %v5478_v46 }
 0x49c   : > { %5541 = vst [vmem:[%s13948_s4 + $0x20] sm:$0xff] %v5399_v38  ;;  %5557 = vst [vmem:[%s13948_s4 + $0xa0] sm:$0xff] %v5479_v27 }
 0x4a5   : > { %v6577_v5 = vpop.f32.mrf.mxu0 }
 0x4a6   : > { %v6601_v13 = vpop.f32.mrf.mxu1  ;;  %v5414_v57 = vadd.f32 %v6577_v5, %v13943_v56 }
 0x4a7   : > { %v5494_v37 = vadd.f32 %v6601_v13, %v13943_v56  ;;  %v5408_v44 = vpop.f32.mrf.mxu0 }
 0x4a8   : > { %v5488_v39 = vpop.f32.mrf.mxu1  ;;  %5544 = vst [vmem:[%s13948_s4 + $0x38] sm:$0xff] %v5414_v57  ;;  %v5409_v26 = vadd.f32 %v13943_v56, %v5408_v44 }
 0x4a9   : > { %5560 = vst [vmem:[%s13948_s4 + $0xb8] sm:$0xff] %v5494_v37  ;;  %v5489_v62 = vadd.f32 %v13943_v56, %v5488_v39 }
 0x4aa   : > { %5543 = vst [vmem:[%s13948_s4 + $0x30] sm:$0xff] %v5409_v26 }
 0x4ab   : > { %5559 = vst [vmem:[%s13948_s4 + $0xb0] sm:$0xff] %v5489_v62 }
 0x4b7   : > { %v6580_v61 = vpop.f32.mrf.mxu0  ;;  %v6604_v1 = vpop.f32.mrf.mxu1 }
 0x4b8   : > { %v5424_v59 = vadd.f32 %v6580_v61, %v13943_v56  ;;  %v5504_v8 = vadd.f32 %v6604_v1, %v13943_v56 }
 0x4b9   : > { %v5418_v58 = vpop.f32.mrf.mxu0  ;;  %v5498_v2 = vpop.f32.mrf.mxu1 }
 0x4ba   : > { %5546 = vst [vmem:[%s13948_s4 + $0x48] sm:$0xff] %v5424_v59  ;;  %5562 = vst [vmem:[%s13948_s4 + $0xc8] sm:$0xff] %v5504_v8  ;;  %v5419_v4 = vadd.f32 %v13943_v56, %v5418_v58  ;;  %v5499_v33 = vadd.f32 %v13943_v56, %v5498_v2 }
 0x4bc   : > { %5545 = vst [vmem:[%s13948_s4 + $0x40] sm:$0xff] %v5419_v4  ;;  %5561 = vst [vmem:[%s13948_s4 + $0xc0] sm:$0xff] %v5499_v33 }
 0x4c6   : > { %v6583_v34 = vpop.f32.mrf.mxu0  ;;  %v6607_v14 = vpop.f32.mrf.mxu1 }
 0x4c7   : > { %v5434_v54 = vadd.f32 %v6583_v34, %v13943_v56  ;;  %v5514_v25 = vadd.f32 %v6607_v14, %v13943_v56 }
 0x4c8   : > { %v5428_v55 = vpop.f32.mrf.mxu0  ;;  %v5508_v28 = vpop.f32.mrf.mxu1 }
 0x4c9   : > { %5548 = vst [vmem:[%s13948_s4 + $0x58] sm:$0xff] %v5434_v54  ;;  %5564 = vst [vmem:[%s13948_s4 + $0xd8] sm:$0xff] %v5514_v25  ;;  %v5429_v9 = vadd.f32 %v13943_v56, %v5428_v55  ;;  %v5509_v24 = vadd.f32 %v13943_v56, %v5508_v28 }
 0x4cb   : > { %5547 = vst [vmem:[%s13948_s4 + $0x50] sm:$0xff] %v5429_v9  ;;  %5563 = vst [vmem:[%s13948_s4 + $0xd0] sm:$0xff] %v5509_v24 }
 0x4dc   : > { %v6586_v3 = vpop.f32.mrf.mxu0  ;;  %v6610_v22 = vpop.f32.mrf.mxu1 }
 0x4dd   : > { %v5444_v41 = vadd.f32 %v6586_v3, %v13943_v56  ;;  %v5524_v29 = vadd.f32 %v6610_v22, %v13943_v56 }
 0x4de   : > { %v5438_v0 = vpop.f32.mrf.mxu0  ;;  %v5518_v21 = vpop.f32.mrf.mxu1 }
 0x4df   : > { %5550 = vst [vmem:[%s13948_s4 + $0x68] sm:$0xff] %v5444_v41  ;;  %5566 = vst [vmem:[%s13948_s4 + $0xe8] sm:$0xff] %v5524_v29  ;;  %v5439_v40 = vadd.f32 %v13943_v56, %v5438_v0  ;;  %v5519_v45 = vadd.f32 %v13943_v56, %v5518_v21 }
 0x4e1   : > { %5549 = vst [vmem:[%s13948_s4 + $0x60] sm:$0xff] %v5439_v40  ;;  %5565 = vst [vmem:[%s13948_s4 + $0xe0] sm:$0xff] %v5519_v45 }
 0x4ea   : > { %v6589_v60 = vpop.f32.mrf.mxu0  ;;  %v6613_v53 = vpop.f32.mrf.mxu1 }
 0x4eb   : > { %v5454_v30 = vadd.f32 %v6589_v60, %v13943_v56  ;;  %v5534_v10 = vadd.f32 %v6613_v53, %v13943_v56 }
 0x4ec   : > { %v5448_v7 = vpop.f32.mrf.mxu0  ;;  %v5528_v17 = vpop.f32.mrf.mxu1 }
 0x4ed   : > { %5552 = vst [vmem:[%s13948_s4 + $0x78] sm:$0xff] %v5454_v30  ;;  %5568 = vst [vmem:[%s13948_s4 + $0xf8] sm:$0xff] %v5534_v10  ;;  %v5449_v51 = vadd.f32 %v13943_v56, %v5448_v7  ;;  %v5529_v48 = vadd.f32 %v13943_v56, %v5528_v17 }
 0x4ef   : > { %5551 = vst [vmem:[%s13948_s4 + $0x70] sm:$0xff] %v5449_v51  ;;  %5567 = vst [vmem:[%s13948_s4 + $0xf0] sm:$0xff] %v5529_v48 }
 0x4f0 PF: > { %s13_s16 = sadd.s32 1, %s8869_s16   ;;  %s15098_s12 = smov %s8861_s14 }
 0x4f1   : > { %p10_p7 = scmp.ge.s32.totalorder %s13_s16, 6   ;;  %s15099_s13 = smov %s8865_s15 }
 0x4f2   : > { %s15100_s14 = smov %s15103_s17  ;;  %s15101_s15 = smov %s15107_s18 }
 0x4f3   :  { %12 = sbr.rel (!%p10_p7) target bundleno = 3 (0x3), region = 71 }

</bundles_post_ra>
